<compile_context>
chip_gen: v7x
topology: tpu7x:2x2x1
jax: 0.10.0
libtpu: 0.0.40
codegen_flags: <defaults>
</compile_context>

<pallas_src>
import functools

import jax
import jax.numpy as jnp
from jax.experimental import pallas as pl
from jax.experimental.pallas import tpu as pltpu


def _vmem_limit_bytes():
    """Generation-aware scoped-VMEM limit (~3/4 of physical VMEM, clamped)."""
    cap = 64 * 1024 * 1024
    try:
        info = pltpu.get_tpu_info()
        cap = int(getattr(info, "vmem_capacity_bytes", cap))
    except Exception:
        pass
    return max(32 * 1024 * 1024, min((cap * 3) // 4, 112 * 1024 * 1024))


# ----------------------------------------------------------------------------
# Fused kernel: [BN-affine + ReLU of previous layer] -> kx-im2col (zero pad)
#               -> 3 MXU matmuls (K = 3*Cin) + bias
#               -> per-channel sum / sumsq for the *next* BatchNorm.
# ----------------------------------------------------------------------------
def _conv_bn_stats_kernel(x_ref, sc_ref, sh_ref, w_ref, b_ref,      # inputs
                          y_ref, s_ref, q_ref,                      # outputs
                          im_ref,                                   # VMEM scratch
                          *, apply_in_norm, H, W, Cin):
    # x_ref  : (1, H, W, Cin)       raw (pre-BN) activations of previous layer, bf16
    # sc_ref : (1, Cin) f32         previous-BN scale  (ignored for the first conv)
    # sh_ref : (1, Cin) f32         previous-BN shift  (ignored for the first conv)
    # w_ref  : (3, 3*Cin, TILE_CO)  bf16 conv weights, [ky, kx*Cin + ci, co]
    # b_ref  : (1, TILE_CO) f32     conv bias
    # y_ref  : (1, H, W, TILE_CO)   conv output (pre-BN), bf16 or f32
    # s_ref  : (1, 1, TILE_CO) f32  per-(image, co-tile) channel sum of y
    # q_ref  : (1, 1, TILE_CO) f32  per-(image, co-tile) channel sum of y^2
    # im_ref : (H+2, W, 3*Cin) bf16 im2col rows: im[r, w, kx*Cin+ci] = xpad[r, w+kx, ci]
    K3 = 3 * Cin

    # ---- fused input path: previous BN affine + ReLU in f32, cast once to bf16 ----
    x = x_ref[0].astype(jnp.float32)                                 # (H, W, Cin)
    if apply_in_norm:
        x = jnp.maximum(x * sc_ref[...] + sh_ref[...], 0.0)          # relu(BN(prev))
    xb = x.astype(im_ref.dtype)

    # ---- build kx-shifted im2col rows once (reused by all three ky bands). ----
    # Zero only the padding border; the interior is fully overwritten every step.
    im_ref[0:1] = jnp.zeros((1, W, K3), im_ref.dtype)                # top pad row
    im_ref[H + 1:H + 2] = jnp.zeros((1, W, K3), im_ref.dtype)        # bottom pad row
    im_ref[1:H + 1, 0:1, 0:Cin] = jnp.zeros((H, 1, Cin), im_ref.dtype)            # left pad (kx=0)
    im_ref[1:H + 1, W - 1:W, 2 * Cin:K3] = jnp.zeros((H, 1, Cin), im_ref.dtype)   # right pad (kx=2)
    im_ref[1:H + 1, 1:W, 0:Cin] = xb[:, 0:W - 1, :]                  # kx = 0
    im_ref[1:H + 1, :, Cin:2 * Cin] = xb                             # kx = 1
    im_ref[1:H + 1, 0:W - 1, 2 * Cin:K3] = xb[:, 1:W, :]             # kx = 2

    # ---- 3x3 conv: three K=3*Cin bf16 MXU matmuls, accumulated in vregs (f32) ----
    acc = jnp.dot(im_ref[0:H].reshape(H * W, K3), w_ref[0],
                  preferred_element_type=jnp.float32)
    acc = acc + jnp.dot(im_ref[1:H + 1].reshape(H * W, K3), w_ref[1],
                        preferred_element_type=jnp.float32)
    acc = acc + jnp.dot(im_ref[2:H + 2].reshape(H * W, K3), w_ref[2],
                        preferred_element_type=jnp.float32)
    y = acc + b_ref[...]                                             # bias in epilogue

    # ---- epilogue: conv output + batch-stat partials for the next BatchNorm ----
    s_ref[...] = jnp.sum(y, axis=0, keepdims=True).reshape(s_ref.shape)
    q_ref[...] = jnp.sum(y * y, axis=0, keepdims=True).reshape(q_ref.shape)
    y_ref[...] = y.reshape(y_ref.shape).astype(y_ref.dtype)


def conv3x3_bn_stats(x, w, b, in_scale, in_shift, *, apply_in_norm,
                     out_dtype=jnp.bfloat16, tile_co=128):
    """x: (N,H,W,Cin) bf16, w: (3,3,Cin,Cout) HWIO, b: (Cout,).
    Returns (conv output pre-BN, per-image channel sum, per-image channel sumsq)."""
    N, H, W, Cin = x.shape
    Cout = w.shape[-1]
    # tile_co <= 128 keeps the (H*W, tile_co) f32 SSA accumulator inside the vreg file
    # at these spatial sizes (and is MXU-saturating on v5e). Only consider 256 on
    # v6e/v7x once H-row halo tiling bounds H*W.  With Cout < 128 the output stores
    # are masked (not lane-dense); unavoidable for this channel count.
    tile_co = Cout if Cout <= tile_co else tile_co
    assert Cout % tile_co == 0, (Cout, tile_co)
    num_co = Cout // tile_co

    w_r = w.reshape(3, 3 * Cin, Cout).astype(jnp.bfloat16)           # [ky, kx*Cin+ci, co]
    b_r = b.reshape(1, Cout).astype(jnp.float32)

    kern = functools.partial(_conv_bn_stats_kernel,
                             apply_in_norm=apply_in_norm, H=H, W=W, Cin=Cin)
    # Grid order (N outer, co inner): weights are re-fetched per image; fine while the
    # weight block is smaller than the activation tile (swap if channels grow large).
    y, s, q = pl.pallas_call(
        kern,
        out_shape=(
            jax.ShapeDtypeStruct((N, H, W, Cout), out_dtype),
            jax.ShapeDtypeStruct((N, 1, Cout), jnp.float32),
            jax.ShapeDtypeStruct((N, 1, Cout), jnp.float32),
        ),
        grid=(N, num_co),
        in_specs=[
            pl.BlockSpec((1, H, W, Cin), lambda n, c: (n, 0, 0, 0)),
            pl.BlockSpec((1, Cin), lambda n, c: (0, 0)),
            pl.BlockSpec((1, Cin), lambda n, c: (0, 0)),
            pl.BlockSpec((3, 3 * Cin, tile_co), lambda n, c: (0, 0, c)),
            pl.BlockSpec((1, tile_co), lambda n, c: (0, c)),
        ],
        out_specs=(
            pl.BlockSpec((1, H, W, tile_co), lambda n, c: (n, 0, 0, c)),
            pl.BlockSpec((1, 1, tile_co), lambda n, c: (n, 0, c)),
            pl.BlockSpec((1, 1, tile_co), lambda n, c: (n, 0, c)),
        ),
        scratch_shapes=[
            pltpu.VMEM((H + 2, W, 3 * Cin), jnp.bfloat16),            # kx-im2col rows
        ],
        compiler_params=pltpu.CompilerParams(
            dimension_semantics=("parallel", "parallel"),             # megacore-friendly
            vmem_limit_bytes=_vmem_limit_bytes(),
        ),
    )(x, in_scale, in_shift, w_r, b_r)
    return y, s, q


# ----------------------------------------------------------------------------
# Final BatchNorm affine + ReLU (after conv3), lane-dense (W*C) last dim,
# tiled over (N, H-row-tiles), all axes parallel.
# ----------------------------------------------------------------------------
def _norm_relu_kernel(x_ref, sc_ref, sh_ref, o_ref):
    x = x_ref[...].astype(jnp.float32)                               # (1, TH, W*C)
    o_ref[...] = jnp.maximum(x * sc_ref[...] + sh_ref[...], 0.0).astype(o_ref.dtype)


def _row_tile(h, cap=64):
    if h <= cap:
        return h
    for t in range(cap, 7, -1):
        if h % t == 0 and t % 8 == 0:
            return t
    return h


def norm_relu(x, scale, shift, *, out_dtype=jnp.float32):
    """BN affine + ReLU over an NHWC tensor; operates on a (N, H, W*C) view so the
    output stores are lane-dense even when C < 128."""
    N, H, W, C = x.shape
    x2 = x.reshape(N, H, W * C)                      # metadata-only trailing-dim merge
    sc = jnp.tile(scale.reshape(1, C), (1, W))       # per-(w, c) scale matching the merge
    sh = jnp.tile(shift.reshape(1, C), (1, W))
    th = _row_tile(H)
    out = pl.pallas_call(
        _norm_relu_kernel,
        out_shape=jax.ShapeDtypeStruct((N, H, W * C), out_dtype),
        grid=(N, H // th),
        in_specs=[
            pl.BlockSpec((1, th, W * C), lambda n, h: (n, h, 0)),
            pl.BlockSpec((1, W * C), lambda n, h: (0, 0)),
            pl.BlockSpec((1, W * C), lambda n, h: (0, 0)),
        ],
        out_specs=pl.BlockSpec((1, th, W * C), lambda n, h: (n, h, 0)),
        compiler_params=pltpu.CompilerParams(
            dimension_semantics=("parallel", "parallel"),
            vmem_limit_bytes=_vmem_limit_bytes(),
        ),
    )(x2, sc, sh)
    return out.reshape(N, H, W, C)


# ----------------------------------------------------------------------------
# triple_conv forward: conv3x3 -> BN -> ReLU, three times (training-mode BN stats).
# ----------------------------------------------------------------------------
def triple_conv_apply(params, x_nchw):
    x = jnp.transpose(x_nchw, (0, 2, 3, 1)).astype(jnp.bfloat16)     # NCHW -> NHWC bf16
    N, H, W, Cin = x.shape
    count = float(N * H * W)

    def bn_affine(s, q, gamma, beta, eps=1e-5):
        # Tiny per-channel reduction in plain JAX (inputs are (N, 1, C) partials).
        # Note: bf16 activations/weights + E[x^2]-E[x]^2 variance => compare against
        # a PyTorch f32 reference with a loose tolerance.
        s = jnp.sum(s, axis=(0, 1))
        q = jnp.sum(q, axis=(0, 1))
        mean = s / count
        var = jnp.maximum(q / count - mean * mean, 0.0)              # biased batch var
        scale = gamma / jnp.sqrt(var + eps)
        shift = beta - mean * scale
        return (scale.reshape(1, -1).astype(jnp.float32),
                shift.reshape(1, -1).astype(jnp.float32))

    ident_s = jnp.ones((1, Cin), jnp.float32)
    ident_b = jnp.zeros((1, Cin), jnp.float32)

    # conv1 (+stats) -> BN1 folded into conv2's input path
    y1, s1, q1 = conv3x3_bn_stats(x, params["w1"], params["b1"], ident_s, ident_b,
                                  apply_in_norm=False, out_dtype=jnp.bfloat16)
    sc1, sh1 = bn_affine(s1, q1, params["g1"], params["be1"])

    # conv2 (+stats), input = relu(BN1(y1)) applied in-kernel
    y2, s2, q2 = conv3x3_bn_stats(y1, params["w2"], params["b2"], sc1, sh1,
                                  apply_in_norm=True, out_dtype=jnp.bfloat16)
    sc2, sh2 = bn_affine(s2, q2, params["g2"], params["be2"])

    # conv3 (+stats), input = relu(BN2(y2)) applied in-kernel
    y3, s3, q3 = conv3x3_bn_stats(y2, params["w3"], params["b3"], sc2, sh2,
                                  apply_in_norm=True, out_dtype=jnp.float32)
    sc3, sh3 = bn_affine(s3, q3, params["g3"], params["be3"])

    out = norm_relu(y3, sc3, sh3)                                    # final BN + ReLU
    return jnp.transpose(out, (0, 3, 1, 2))                          # NHWC -> NCHW


# ----------------------------------------------------------------------------
# Deterministic synthetic parameters (HWIO conv weights; BN gamma=1, beta=0).
# ----------------------------------------------------------------------------
def init_params(key, in_ch, out_ch):
    ks = jax.random.split(key, 6)

    def conv_w(k, cin, cout):
        return jax.random.normal(k, (3, 3, cin, cout), jnp.float32) / jnp.sqrt(9.0 * cin)

    return {
        "w1": conv_w(ks[0], in_ch, out_ch),
        "b1": jax.random.normal(ks[1], (out_ch,), jnp.float32) * 0.01,
        "g1": jnp.ones((out_ch,), jnp.float32),
        "be1": jnp.zeros((out_ch,), jnp.float32),
        "w2": conv_w(ks[2], out_ch, out_ch),
        "b2": jax.random.normal(ks[3], (out_ch,), jnp.float32) * 0.01,
        "g2": jnp.ones((out_ch,), jnp.float32),
        "be2": jnp.zeros((out_ch,), jnp.float32),
        "w3": conv_w(ks[4], out_ch, out_ch),
        "b3": jax.random.normal(ks[5], (out_ch,), jnp.float32) * 0.01,
        "g3": jnp.ones((out_ch,), jnp.float32),
        "be3": jnp.zeros((out_ch,), jnp.float32),
    }


if __name__ == "__main__":
    in_ch, out_ch = 4, 64
    N, H, W = 2, 16, 16

    key = jax.random.PRNGKey(0)
    pkey, xkey = jax.random.split(key)
    params = init_params(pkey, in_ch, out_ch)
    x = jax.random.normal(xkey, (N, in_ch, H, W), jnp.float32)

    fwd = jax.jit(triple_conv_apply)
    y = jax.block_until_ready(fwd(params, x))

    assert y.shape == (N, out_ch, H, W), y.shape
    assert bool(jnp.all(jnp.isfinite(y)))
    assert bool(jnp.all(y >= 0.0))          # output of a ReLU
    print("KERNEL_OK")
</pallas_src>

<mosaic_0001>
module attributes {stable_mosaic.version = 11 : i64} {
  func.func @_conv_bn_stats_kernel(%arg0: i32, %arg1: i32, %arg2: memref<1x16x16x4xbf16, #tpu.memory_space<vmem>>, %arg3: memref<1x4xf32, #tpu.memory_space<vmem>>, %arg4: memref<1x4xf32, #tpu.memory_space<vmem>>, %arg5: memref<3x12x64xbf16, #tpu.memory_space<vmem>>, %arg6: memref<1x64xf32, #tpu.memory_space<vmem>>, %arg7: memref<1x16x16x64xbf16, #tpu.memory_space<vmem>>, %arg8: memref<1x1x64xf32, #tpu.memory_space<vmem>>, %arg9: memref<1x1x64xf32, #tpu.memory_space<vmem>>, %arg10: memref<18x16x12xbf16, #tpu.memory_space<vmem>>) attributes {dimension_semantics = [#tpu.dimension_semantics<parallel>, #tpu.dimension_semantics<parallel>], iteration_bounds = array<i64: 2, 1>, scalar_prefetch = 0 : i64, scratch_operands = 1 : i64, tpu.core_type = #tpu.core_type<tc>, window_params = [{transform_indices = @transform_0, window_bounds = array<i64: 1, 16, 16, 4>}, {pipeline_mode = #tpu.pipeline_mode<synchronous>, transform_indices = @transform_1, window_bounds = array<i64: 1, 4>}, {pipeline_mode = #tpu.pipeline_mode<synchronous>, transform_indices = @transform_2, window_bounds = array<i64: 1, 4>}, {transform_indices = @transform_3, window_bounds = array<i64: 3, 12, 64>}, {transform_indices = @transform_4, window_bounds = array<i64: 1, 64>}, {transform_indices = @transform_5, window_bounds = array<i64: 1, 16, 16, 64>}, {transform_indices = @transform_6, window_bounds = array<i64: 1, 1, 64>}, {transform_indices = @transform_7, window_bounds = array<i64: 1, 1, 64>}]} {
    %c0 = arith.constant 0 : index
    %c0_0 = arith.constant 0 : index
    %c0_1 = arith.constant 0 : index
    %c0_2 = arith.constant 0 : index
    %0 = vector.load %arg2[%c0, %c0_0, %c0_1, %c0_2] : memref<1x16x16x4xbf16, #tpu.memory_space<vmem>>, vector<1x16x16x4xbf16>
    %1 = vector.shape_cast %0 : vector<1x16x16x4xbf16> to vector<16x16x4xbf16>
    %2 = arith.extf %1 : vector<16x16x4xbf16> to vector<16x16x4xf32>
    %3 = arith.truncf %2 : vector<16x16x4xf32> to vector<16x16x4xbf16>
    %cst = arith.constant 0.000000e+00 : bf16
    %4 = vector.broadcast %cst : bf16 to vector<1x16x12xbf16>
    %c0_3 = arith.constant 0 : index
    %c0_4 = arith.constant 0 : index
    %c0_5 = arith.constant 0 : index
    %5 = vector.load %arg10[%c0_3, %c0_4, %c0_5] : memref<18x16x12xbf16, #tpu.memory_space<vmem>>, vector<1x16x12xbf16>
    tpu.vector_store %arg10[%c0_3, %c0_4, %c0_5], %4 {strides = array<i32>} : memref<18x16x12xbf16, #tpu.memory_space<vmem>>, vector<1x16x12xbf16>,
    %cst_6 = arith.constant 0.000000e+00 : bf16
    %6 = vector.broadcast %cst_6 : bf16 to vector<1x16x12xbf16>
    %c17 = arith.constant 17 : index
    %c0_7 = arith.constant 0 : index
    %c0_8 = arith.constant 0 : index
    %7 = vector.load %arg10[%c17, %c0_7, %c0_8] : memref<18x16x12xbf16, #tpu.memory_space<vmem>>, vector<1x16x12xbf16>
    tpu.vector_store %arg10[%c17, %c0_7, %c0_8], %6 {strides = array<i32>} : memref<18x16x12xbf16, #tpu.memory_space<vmem>>, vector<1x16x12xbf16>,
    %cst_9 = arith.constant 0.000000e+00 : bf16
    %8 = vector.broadcast %cst_9 : bf16 to vector<16x1x4xbf16>
    %c1 = arith.constant 1 : index
    %c0_10 = arith.constant 0 : index
    %c0_11 = arith.constant 0 : index
    %9 = vector.load %arg10[%c1, %c0_10, %c0_11] : memref<18x16x12xbf16, #tpu.memory_space<vmem>>, vector<16x1x4xbf16>
    tpu.vector_store %arg10[%c1, %c0_10, %c0_11], %8 {strides = array<i32>} : memref<18x16x12xbf16, #tpu.memory_space<vmem>>, vector<16x1x4xbf16>,
    %cst_12 = arith.constant 0.000000e+00 : bf16
    %10 = vector.broadcast %cst_12 : bf16 to vector<16x1x4xbf16>
    %c1_13 = arith.constant 1 : index
    %c15 = arith.constant 15 : index
    %c8 = arith.constant 8 : index
    %11 = vector.load %arg10[%c1_13, %c15, %c8] : memref<18x16x12xbf16, #tpu.memory_space<vmem>>, vector<16x1x4xbf16>
    tpu.vector_store %arg10[%c1_13, %c15, %c8], %10 {strides = array<i32>} : memref<18x16x12xbf16, #tpu.memory_space<vmem>>, vector<16x1x4xbf16>,
    %12 = vector.extract_strided_slice %3 {offsets = [0, 0, 0], sizes = [16, 15, 4], strides = [1, 1, 1]} : vector<16x16x4xbf16> to vector<16x15x4xbf16>
    %c1_14 = arith.constant 1 : index
    %c1_15 = arith.constant 1 : index
    %c0_16 = arith.constant 0 : index
    %13 = vector.load %arg10[%c1_14, %c1_15, %c0_16] : memref<18x16x12xbf16, #tpu.memory_space<vmem>>, vector<16x15x4xbf16>
    tpu.vector_store %arg10[%c1_14, %c1_15, %c0_16], %12 {strides = array<i32>} : memref<18x16x12xbf16, #tpu.memory_space<vmem>>, vector<16x15x4xbf16>,
    %c1_17 = arith.constant 1 : index
    %c0_18 = arith.constant 0 : index
    %c4 = arith.constant 4 : index
    %14 = vector.load %arg10[%c1_17, %c0_18, %c4] : memref<18x16x12xbf16, #tpu.memory_space<vmem>>, vector<16x16x4xbf16>
    tpu.vector_store %arg10[%c1_17, %c0_18, %c4], %3 {strides = array<i32>} : memref<18x16x12xbf16, #tpu.memory_space<vmem>>, vector<16x16x4xbf16>,
    %15 = vector.extract_strided_slice %3 {offsets = [0, 1, 0], sizes = [16, 15, 4], strides = [1, 1, 1]} : vector<16x16x4xbf16> to vector<16x15x4xbf16>
    %c1_19 = arith.constant 1 : index
    %c0_20 = arith.constant 0 : index
    %c8_21 = arith.constant 8 : index
    %16 = vector.load %arg10[%c1_19, %c0_20, %c8_21] : memref<18x16x12xbf16, #tpu.memory_space<vmem>>, vector<16x15x4xbf16>
    tpu.vector_store %arg10[%c1_19, %c0_20, %c8_21], %15 {strides = array<i32>} : memref<18x16x12xbf16, #tpu.memory_space<vmem>>, vector<16x15x4xbf16>,
    %c0_22 = arith.constant 0 : index
    %c0_23 = arith.constant 0 : index
    %c0_24 = arith.constant 0 : index
    %17 = vector.load %arg10[%c0_22, %c0_23, %c0_24] : memref<18x16x12xbf16, #tpu.memory_space<vmem>>, vector<16x16x12xbf16>
    %18 = vector.shape_cast %17 : vector<16x16x12xbf16> to vector<256x12xbf16>
    %c0_25 = arith.constant 0 : index
    %c0_26 = arith.constant 0 : index
    %c0_27 = arith.constant 0 : index
    %19 = vector.load %arg5[%c0_25, %c0_26, %c0_27] : memref<3x12x64xbf16, #tpu.memory_space<vmem>>, vector<1x12x64xbf16>
    %20 = vector.shape_cast %19 : vector<1x12x64xbf16> to vector<12x64xbf16>
    %cst_28 = arith.constant dense<0.000000e+00> : vector<256x64xf32>
    %21 = tpu.matmul %18, %20, %cst_28 {dimension_numbers = #tpu.dot_dimension_numbers<[1], [0], [0], [1], [0, 0, 1, 1], [], []>} : vector<256x12xbf16>, vector<12x64xbf16>, vector<256x64xf32> -> vector<256x64xf32>
    %c1_29 = arith.constant 1 : index
    %c0_30 = arith.constant 0 : index
    %c0_31 = arith.constant 0 : index
    %22 = vector.load %arg10[%c1_29, %c0_30, %c0_31] : memref<18x16x12xbf16, #tpu.memory_space<vmem>>, vector<16x16x12xbf16>
    %23 = vector.shape_cast %22 : vector<16x16x12xbf16> to vector<256x12xbf16>
    %c1_32 = arith.constant 1 : index
    %c0_33 = arith.constant 0 : index
    %c0_34 = arith.constant 0 : index
    %24 = vector.load %arg5[%c1_32, %c0_33, %c0_34] : memref<3x12x64xbf16, #tpu.memory_space<vmem>>, vector<1x12x64xbf16>
    %25 = vector.shape_cast %24 : vector<1x12x64xbf16> to vector<12x64xbf16>
    %cst_35 = arith.constant dense<0.000000e+00> : vector<256x64xf32>
    %26 = tpu.matmul %23, %25, %cst_35 {dimension_numbers = #tpu.dot_dimension_numbers<[1], [0], [0], [1], [0, 0, 1, 1], [], []>} : vector<256x12xbf16>, vector<12x64xbf16>, vector<256x64xf32> -> vector<256x64xf32>
    %27 = arith.addf %21, %26 : vector<256x64xf32>
    %c2 = arith.constant 2 : index
    %c0_36 = arith.constant 0 : index
    %c0_37 = arith.constant 0 : index
    %28 = vector.load %arg10[%c2, %c0_36, %c0_37] : memref<18x16x12xbf16, #tpu.memory_space<vmem>>, vector<16x16x12xbf16>
    %29 = vector.shape_cast %28 : vector<16x16x12xbf16> to vector<256x12xbf16>
    %c2_38 = arith.constant 2 : index
    %c0_39 = arith.constant 0 : index
    %c0_40 = arith.constant 0 : index
    %30 = vector.load %arg5[%c2_38, %c0_39, %c0_40] : memref<3x12x64xbf16, #tpu.memory_space<vmem>>, vector<1x12x64xbf16>
    %31 = vector.shape_cast %30 : vector<1x12x64xbf16> to vector<12x64xbf16>
    %cst_41 = arith.constant dense<0.000000e+00> : vector<256x64xf32>
    %32 = tpu.matmul %29, %31, %cst_41 {dimension_numbers = #tpu.dot_dimension_numbers<[1], [0], [0], [1], [0, 0, 1, 1], [], []>} : vector<256x12xbf16>, vector<12x64xbf16>, vector<256x64xf32> -> vector<256x64xf32>
    %33 = arith.addf %27, %32 : vector<256x64xf32>
    %c0_42 = arith.constant 0 : index
    %c0_43 = arith.constant 0 : index
    %34 = vector.load %arg6[%c0_42, %c0_43] : memref<1x64xf32, #tpu.memory_space<vmem>>, vector<1x64xf32>
    %35 = vector.broadcast %34 : vector<1x64xf32> to vector<256x64xf32>
    %36 = arith.addf %33, %35 : vector<256x64xf32>
    %cst_44 = arith.constant dense<0.000000e+00> : vector<64xf32>
    %37 = vector.multi_reduction <add>, %36, %cst_44 [0] : vector<256x64xf32> to vector<64xf32>
    %38 = vector.shape_cast %37 : vector<64xf32> to vector<1x64xf32>
    %39 = vector.shape_cast %38 : vector<1x64xf32> to vector<1x1x64xf32>
    %c0_45 = arith.constant 0 : index
    %c0_46 = arith.constant 0 : index
    %c0_47 = arith.constant 0 : index
    %40 = vector.load %arg8[%c0_45, %c0_46, %c0_47] : memref<1x1x64xf32, #tpu.memory_space<vmem>>, vector<1x1x64xf32>
    tpu.vector_store %arg8[%c0_45, %c0_46, %c0_47], %39 {strides = array<i32>} : memref<1x1x64xf32, #tpu.memory_space<vmem>>, vector<1x1x64xf32>,
    %41 = arith.mulf %36, %36 : vector<256x64xf32>
    %cst_48 = arith.constant dense<0.000000e+00> : vector<64xf32>
    %42 = vector.multi_reduction <add>, %41, %cst_48 [0] : vector<256x64xf32> to vector<64xf32>
    %43 = vector.shape_cast %42 : vector<64xf32> to vector<1x64xf32>
    %44 = vector.shape_cast %43 : vector<1x64xf32> to vector<1x1x64xf32>
    %c0_49 = arith.constant 0 : index
    %c0_50 = arith.constant 0 : index
    %c0_51 = arith.constant 0 : index
    %45 = vector.load %arg9[%c0_49, %c0_50, %c0_51] : memref<1x1x64xf32, #tpu.memory_space<vmem>>, vector<1x1x64xf32>
    tpu.vector_store %arg9[%c0_49, %c0_50, %c0_51], %44 {strides = array<i32>} : memref<1x1x64xf32, #tpu.memory_space<vmem>>, vector<1x1x64xf32>,
    %46 = vector.shape_cast %36 : vector<256x64xf32> to vector<1x16x16x64xf32>
    %47 = arith.truncf %46 : vector<1x16x16x64xf32> to vector<1x16x16x64xbf16>
    %c0_52 = arith.constant 0 : index
    %c0_53 = arith.constant 0 : index
    %c0_54 = arith.constant 0 : index
    %c0_55 = arith.constant 0 : index
    %48 = vector.load %arg7[%c0_52, %c0_53, %c0_54, %c0_55] : memref<1x16x16x64xbf16, #tpu.memory_space<vmem>>, vector<1x16x16x64xbf16>
    tpu.vector_store %arg7[%c0_52, %c0_53, %c0_54, %c0_55], %47 {strides = array<i32>} : memref<1x16x16x64xbf16, #tpu.memory_space<vmem>>, vector<1x16x16x64xbf16>,
    return
  }
  func.func @transform_0(%arg0: i32, %arg1: i32) -> (i32, i32, i32, i32) {
    %c0_i32 = arith.constant 0 : i32
    %c0_i32_0 = arith.constant 0 : i32
    %c0_i32_1 = arith.constant 0 : i32
    %c0_i32_2 = arith.constant 0 : i32
    return %arg0, %c0_i32, %c0_i32_0, %c0_i32_1 : i32, i32, i32, i32
  }
  func.func @transform_1(%arg0: i32, %arg1: i32) -> (i32, i32) {
    %c0_i32 = arith.constant 0 : i32
    %c0_i32_0 = arith.constant 0 : i32
    %c0_i32_1 = arith.constant 0 : i32
    return %c0_i32, %c0_i32_0 : i32, i32
  }
  func.func @transform_2(%arg0: i32, %arg1: i32) -> (i32, i32) {
    %c0_i32 = arith.constant 0 : i32
    %c0_i32_0 = arith.constant 0 : i32
    %c0_i32_1 = arith.constant 0 : i32
    return %c0_i32, %c0_i32_0 : i32, i32
  }
  func.func @transform_3(%arg0: i32, %arg1: i32) -> (i32, i32, i32) {
    %c0_i32 = arith.constant 0 : i32
    %c0_i32_0 = arith.constant 0 : i32
    %c0_i32_1 = arith.constant 0 : i32
    return %c0_i32, %c0_i32_0, %arg1 : i32, i32, i32
  }
  func.func @transform_4(%arg0: i32, %arg1: i32) -> (i32, i32) {
    %c0_i32 = arith.constant 0 : i32
    %c0_i32_0 = arith.constant 0 : i32
    return %c0_i32, %arg1 : i32, i32
  }
  func.func @transform_5(%arg0: i32, %arg1: i32) -> (i32, i32, i32, i32) {
    %c0_i32 = arith.constant 0 : i32
    %c0_i32_0 = arith.constant 0 : i32
    %c0_i32_1 = arith.constant 0 : i32
    return %arg0, %c0_i32, %c0_i32_0, %arg1 : i32, i32, i32, i32
  }
  func.func @transform_6(%arg0: i32, %arg1: i32) -> (i32, i32, i32) {
    %c0_i32 = arith.constant 0 : i32
    %c0_i32_0 = arith.constant 0 : i32
    return %arg0, %c0_i32, %arg1 : i32, i32, i32
  }
  func.func @transform_7(%arg0: i32, %arg1: i32) -> (i32, i32, i32) {
    %c0_i32 = arith.constant 0 : i32
    %c0_i32_0 = arith.constant 0 : i32
    return %arg0, %c0_i32, %arg1 : i32, i32, i32
  }
}

module attributes {stable_mosaic.version = 11 : i64} {
  func.func @_conv_bn_stats_kernel(%arg0: i32, %arg1: i32, %arg2: memref<1x16x16x64xbf16, #tpu.memory_space<vmem>>, %arg3: memref<1x64xf32, #tpu.memory_space<vmem>>, %arg4: memref<1x64xf32, #tpu.memory_space<vmem>>, %arg5: memref<3x192x64xbf16, #tpu.memory_space<vmem>>, %arg6: memref<1x64xf32, #tpu.memory_space<vmem>>, %arg7: memref<1x16x16x64xbf16, #tpu.memory_space<vmem>>, %arg8: memref<1x1x64xf32, #tpu.memory_space<vmem>>, %arg9: memref<1x1x64xf32, #tpu.memory_space<vmem>>, %arg10: memref<18x16x192xbf16, #tpu.memory_space<vmem>>) attributes {dimension_semantics = [#tpu.dimension_semantics<parallel>, #tpu.dimension_semantics<parallel>], iteration_bounds = array<i64: 2, 1>, scalar_prefetch = 0 : i64, scratch_operands = 1 : i64, tpu.core_type = #tpu.core_type<tc>, window_params = [{transform_indices = @transform_0, window_bounds = array<i64: 1, 16, 16, 64>}, {pipeline_mode = #tpu.pipeline_mode<synchronous>, transform_indices = @transform_1, window_bounds = array<i64: 1, 64>}, {pipeline_mode = #tpu.pipeline_mode<synchronous>, transform_indices = @transform_2, window_bounds = array<i64: 1, 64>}, {transform_indices = @transform_3, window_bounds = array<i64: 3, 192, 64>}, {transform_indices = @transform_4, window_bounds = array<i64: 1, 64>}, {transform_indices = @transform_5, window_bounds = array<i64: 1, 16, 16, 64>}, {transform_indices = @transform_6, window_bounds = array<i64: 1, 1, 64>}, {transform_indices = @transform_7, window_bounds = array<i64: 1, 1, 64>}]} {
    %c0 = arith.constant 0 : index
    %c0_0 = arith.constant 0 : index
    %c0_1 = arith.constant 0 : index
    %c0_2 = arith.constant 0 : index
    %0 = vector.load %arg2[%c0, %c0_0, %c0_1, %c0_2] : memref<1x16x16x64xbf16, #tpu.memory_space<vmem>>, vector<1x16x16x64xbf16>
    %1 = vector.shape_cast %0 : vector<1x16x16x64xbf16> to vector<16x16x64xbf16>
    %2 = arith.extf %1 : vector<16x16x64xbf16> to vector<16x16x64xf32>
    %c0_3 = arith.constant 0 : index
    %c0_4 = arith.constant 0 : index
    %3 = vector.load %arg3[%c0_3, %c0_4] : memref<1x64xf32, #tpu.memory_space<vmem>>, vector<1x64xf32>
    %4 = vector.shape_cast %3 : vector<1x64xf32> to vector<1x1x64xf32>
    %5 = vector.broadcast %4 : vector<1x1x64xf32> to vector<16x16x64xf32>
    %6 = arith.mulf %2, %5 : vector<16x16x64xf32>
    %c0_5 = arith.constant 0 : index
    %c0_6 = arith.constant 0 : index
    %7 = vector.load %arg4[%c0_5, %c0_6] : memref<1x64xf32, #tpu.memory_space<vmem>>, vector<1x64xf32>
    %8 = vector.shape_cast %7 : vector<1x64xf32> to vector<1x1x64xf32>
    %9 = vector.broadcast %8 : vector<1x1x64xf32> to vector<16x16x64xf32>
    %10 = arith.addf %6, %9 : vector<16x16x64xf32>
    %cst = arith.constant 0.000000e+00 : f32
    %11 = vector.broadcast %cst : f32 to vector<16x16x64xf32>
    %12 = arith.maximumf %10, %11 : vector<16x16x64xf32>
    %13 = arith.truncf %12 : vector<16x16x64xf32> to vector<16x16x64xbf16>
    %cst_7 = arith.constant 0.000000e+00 : bf16
    %14 = vector.broadcast %cst_7 : bf16 to vector<1x16x192xbf16>
    %c0_8 = arith.constant 0 : index
    %c0_9 = arith.constant 0 : index
    %c0_10 = arith.constant 0 : index
    %15 = vector.load %arg10[%c0_8, %c0_9, %c0_10] : memref<18x16x192xbf16, #tpu.memory_space<vmem>>, vector<1x16x192xbf16>
    tpu.vector_store %arg10[%c0_8, %c0_9, %c0_10], %14 {strides = array<i32>} : memref<18x16x192xbf16, #tpu.memory_space<vmem>>, vector<1x16x192xbf16>,
    %cst_11 = arith.constant 0.000000e+00 : bf16
    %16 = vector.broadcast %cst_11 : bf16 to vector<1x16x192xbf16>
    %c17 = arith.constant 17 : index
    %c0_12 = arith.constant 0 : index
    %c0_13 = arith.constant 0 : index
    %17 = vector.load %arg10[%c17, %c0_12, %c0_13] : memref<18x16x192xbf16, #tpu.memory_space<vmem>>, vector<1x16x192xbf16>
    tpu.vector_store %arg10[%c17, %c0_12, %c0_13], %16 {strides = array<i32>} : memref<18x16x192xbf16, #tpu.memory_space<vmem>>, vector<1x16x192xbf16>,
    %cst_14 = arith.constant 0.000000e+00 : bf16
    %18 = vector.broadcast %cst_14 : bf16 to vector<16x1x64xbf16>
    %c1 = arith.constant 1 : index
    %c0_15 = arith.constant 0 : index
    %c0_16 = arith.constant 0 : index
    %19 = vector.load %arg10[%c1, %c0_15, %c0_16] : memref<18x16x192xbf16, #tpu.memory_space<vmem>>, vector<16x1x64xbf16>
    tpu.vector_store %arg10[%c1, %c0_15, %c0_16], %18 {strides = array<i32>} : memref<18x16x192xbf16, #tpu.memory_space<vmem>>, vector<16x1x64xbf16>,
    %cst_17 = arith.constant 0.000000e+00 : bf16
    %20 = vector.broadcast %cst_17 : bf16 to vector<16x1x64xbf16>
    %c1_18 = arith.constant 1 : index
    %c15 = arith.constant 15 : index
    %c128 = arith.constant 128 : index
    %21 = vector.load %arg10[%c1_18, %c15, %c128] : memref<18x16x192xbf16, #tpu.memory_space<vmem>>, vector<16x1x64xbf16>
    tpu.vector_store %arg10[%c1_18, %c15, %c128], %20 {strides = array<i32>} : memref<18x16x192xbf16, #tpu.memory_space<vmem>>, vector<16x1x64xbf16>,
    %22 = vector.extract_strided_slice %13 {offsets = [0, 0, 0], sizes = [16, 15, 64], strides = [1, 1, 1]} : vector<16x16x64xbf16> to vector<16x15x64xbf16>
    %c1_19 = arith.constant 1 : index
    %c1_20 = arith.constant 1 : index
    %c0_21 = arith.constant 0 : index
    %23 = vector.load %arg10[%c1_19, %c1_20, %c0_21] : memref<18x16x192xbf16, #tpu.memory_space<vmem>>, vector<16x15x64xbf16>
    tpu.vector_store %arg10[%c1_19, %c1_20, %c0_21], %22 {strides = array<i32>} : memref<18x16x192xbf16, #tpu.memory_space<vmem>>, vector<16x15x64xbf16>,
    %c1_22 = arith.constant 1 : index
    %c0_23 = arith.constant 0 : index
    %c64 = arith.constant 64 : index
    %24 = vector.load %arg10[%c1_22, %c0_23, %c64] : memref<18x16x192xbf16, #tpu.memory_space<vmem>>, vector<16x16x64xbf16>
    tpu.vector_store %arg10[%c1_22, %c0_23, %c64], %13 {strides = array<i32>} : memref<18x16x192xbf16, #tpu.memory_space<vmem>>, vector<16x16x64xbf16>,
    %25 = vector.extract_strided_slice %13 {offsets = [0, 1, 0], sizes = [16, 15, 64], strides = [1, 1, 1]} : vector<16x16x64xbf16> to vector<16x15x64xbf16>
    %c1_24 = arith.constant 1 : index
    %c0_25 = arith.constant 0 : index
    %c128_26 = arith.constant 128 : index
    %26 = vector.load %arg10[%c1_24, %c0_25, %c128_26] : memref<18x16x192xbf16, #tpu.memory_space<vmem>>, vector<16x15x64xbf16>
    tpu.vector_store %arg10[%c1_24, %c0_25, %c128_26], %25 {strides = array<i32>} : memref<18x16x192xbf16, #tpu.memory_space<vmem>>, vector<16x15x64xbf16>,
    %c0_27 = arith.constant 0 : index
    %c0_28 = arith.constant 0 : index
    %c0_29 = arith.constant 0 : index
    %27 = vector.load %arg10[%c0_27, %c0_28, %c0_29] : memref<18x16x192xbf16, #tpu.memory_space<vmem>>, vector<16x16x192xbf16>
    %28 = vector.shape_cast %27 : vector<16x16x192xbf16> to vector<256x192xbf16>
    %c0_30 = arith.constant 0 : index
    %c0_31 = arith.constant 0 : index
    %c0_32 = arith.constant 0 : index
    %29 = vector.load %arg5[%c0_30, %c0_31, %c0_32] : memref<3x192x64xbf16, #tpu.memory_space<vmem>>, vector<1x192x64xbf16>
    %30 = vector.shape_cast %29 : vector<1x192x64xbf16> to vector<192x64xbf16>
    %cst_33 = arith.constant dense<0.000000e+00> : vector<256x64xf32>
    %31 = tpu.matmul %28, %30, %cst_33 {dimension_numbers = #tpu.dot_dimension_numbers<[1], [0], [0], [1], [0, 0, 1, 1], [], []>} : vector<256x192xbf16>, vector<192x64xbf16>, vector<256x64xf32> -> vector<256x64xf32>
    %c1_34 = arith.constant 1 : index
    %c0_35 = arith.constant 0 : index
    %c0_36 = arith.constant 0 : index
    %32 = vector.load %arg10[%c1_34, %c0_35, %c0_36] : memref<18x16x192xbf16, #tpu.memory_space<vmem>>, vector<16x16x192xbf16>
    %33 = vector.shape_cast %32 : vector<16x16x192xbf16> to vector<256x192xbf16>
    %c1_37 = arith.constant 1 : index
    %c0_38 = arith.constant 0 : index
    %c0_39 = arith.constant 0 : index
    %34 = vector.load %arg5[%c1_37, %c0_38, %c0_39] : memref<3x192x64xbf16, #tpu.memory_space<vmem>>, vector<1x192x64xbf16>
    %35 = vector.shape_cast %34 : vector<1x192x64xbf16> to vector<192x64xbf16>
    %cst_40 = arith.constant dense<0.000000e+00> : vector<256x64xf32>
    %36 = tpu.matmul %33, %35, %cst_40 {dimension_numbers = #tpu.dot_dimension_numbers<[1], [0], [0], [1], [0, 0, 1, 1], [], []>} : vector<256x192xbf16>, vector<192x64xbf16>, vector<256x64xf32> -> vector<256x64xf32>
    %37 = arith.addf %31, %36 : vector<256x64xf32>
    %c2 = arith.constant 2 : index
    %c0_41 = arith.constant 0 : index
    %c0_42 = arith.constant 0 : index
    %38 = vector.load %arg10[%c2, %c0_41, %c0_42] : memref<18x16x192xbf16, #tpu.memory_space<vmem>>, vector<16x16x192xbf16>
    %39 = vector.shape_cast %38 : vector<16x16x192xbf16> to vector<256x192xbf16>
    %c2_43 = arith.constant 2 : index
    %c0_44 = arith.constant 0 : index
    %c0_45 = arith.constant 0 : index
    %40 = vector.load %arg5[%c2_43, %c0_44, %c0_45] : memref<3x192x64xbf16, #tpu.memory_space<vmem>>, vector<1x192x64xbf16>
    %41 = vector.shape_cast %40 : vector<1x192x64xbf16> to vector<192x64xbf16>
    %cst_46 = arith.constant dense<0.000000e+00> : vector<256x64xf32>
    %42 = tpu.matmul %39, %41, %cst_46 {dimension_numbers = #tpu.dot_dimension_numbers<[1], [0], [0], [1], [0, 0, 1, 1], [], []>} : vector<256x192xbf16>, vector<192x64xbf16>, vector<256x64xf32> -> vector<256x64xf32>
    %43 = arith.addf %37, %42 : vector<256x64xf32>
    %c0_47 = arith.constant 0 : index
    %c0_48 = arith.constant 0 : index
    %44 = vector.load %arg6[%c0_47, %c0_48] : memref<1x64xf32, #tpu.memory_space<vmem>>, vector<1x64xf32>
    %45 = vector.broadcast %44 : vector<1x64xf32> to vector<256x64xf32>
    %46 = arith.addf %43, %45 : vector<256x64xf32>
    %cst_49 = arith.constant dense<0.000000e+00> : vector<64xf32>
    %47 = vector.multi_reduction <add>, %46, %cst_49 [0] : vector<256x64xf32> to vector<64xf32>
    %48 = vector.shape_cast %47 : vector<64xf32> to vector<1x64xf32>
    %49 = vector.shape_cast %48 : vector<1x64xf32> to vector<1x1x64xf32>
    %c0_50 = arith.constant 0 : index
    %c0_51 = arith.constant 0 : index
    %c0_52 = arith.constant 0 : index
    %50 = vector.load %arg8[%c0_50, %c0_51, %c0_52] : memref<1x1x64xf32, #tpu.memory_space<vmem>>, vector<1x1x64xf32>
    tpu.vector_store %arg8[%c0_50, %c0_51, %c0_52], %49 {strides = array<i32>} : memref<1x1x64xf32, #tpu.memory_space<vmem>>, vector<1x1x64xf32>,
    %51 = arith.mulf %46, %46 : vector<256x64xf32>
    %cst_53 = arith.constant dense<0.000000e+00> : vector<64xf32>
    %52 = vector.multi_reduction <add>, %51, %cst_53 [0] : vector<256x64xf32> to vector<64xf32>
    %53 = vector.shape_cast %52 : vector<64xf32> to vector<1x64xf32>
    %54 = vector.shape_cast %53 : vector<1x64xf32> to vector<1x1x64xf32>
    %c0_54 = arith.constant 0 : index
    %c0_55 = arith.constant 0 : index
    %c0_56 = arith.constant 0 : index
    %55 = vector.load %arg9[%c0_54, %c0_55, %c0_56] : memref<1x1x64xf32, #tpu.memory_space<vmem>>, vector<1x1x64xf32>
    tpu.vector_store %arg9[%c0_54, %c0_55, %c0_56], %54 {strides = array<i32>} : memref<1x1x64xf32, #tpu.memory_space<vmem>>, vector<1x1x64xf32>,
    %56 = vector.shape_cast %46 : vector<256x64xf32> to vector<1x16x16x64xf32>
    %57 = arith.truncf %56 : vector<1x16x16x64xf32> to vector<1x16x16x64xbf16>
    %c0_57 = arith.constant 0 : index
    %c0_58 = arith.constant 0 : index
    %c0_59 = arith.constant 0 : index
    %c0_60 = arith.constant 0 : index
    %58 = vector.load %arg7[%c0_57, %c0_58, %c0_59, %c0_60] : memref<1x16x16x64xbf16, #tpu.memory_space<vmem>>, vector<1x16x16x64xbf16>
    tpu.vector_store %arg7[%c0_57, %c0_58, %c0_59, %c0_60], %57 {strides = array<i32>} : memref<1x16x16x64xbf16, #tpu.memory_space<vmem>>, vector<1x16x16x64xbf16>,
    return
  }
  func.func @transform_0(%arg0: i32, %arg1: i32) -> (i32, i32, i32, i32) {
    %c0_i32 = arith.constant 0 : i32
    %c0_i32_0 = arith.constant 0 : i32
    %c0_i32_1 = arith.constant 0 : i32
    %c0_i32_2 = arith.constant 0 : i32
    return %arg0, %c0_i32, %c0_i32_0, %c0_i32_1 : i32, i32, i32, i32
  }
  func.func @transform_1(%arg0: i32, %arg1: i32) -> (i32, i32) {
    %c0_i32 = arith.constant 0 : i32
    %c0_i32_0 = arith.constant 0 : i32
    %c0_i32_1 = arith.constant 0 : i32
    return %c0_i32, %c0_i32_0 : i32, i32
  }
  func.func @transform_2(%arg0: i32, %arg1: i32) -> (i32, i32) {
    %c0_i32 = arith.constant 0 : i32
    %c0_i32_0 = arith.constant 0 : i32
    %c0_i32_1 = arith.constant 0 : i32
    return %c0_i32, %c0_i32_0 : i32, i32
  }
  func.func @transform_3(%arg0: i32, %arg1: i32) -> (i32, i32, i32) {
    %c0_i32 = arith.constant 0 : i32
    %c0_i32_0 = arith.constant 0 : i32
    %c0_i32_1 = arith.constant 0 : i32
    return %c0_i32, %c0_i32_0, %arg1 : i32, i32, i32
  }
  func.func @transform_4(%arg0: i32, %arg1: i32) -> (i32, i32) {
    %c0_i32 = arith.constant 0 : i32
    %c0_i32_0 = arith.constant 0 : i32
    return %c0_i32, %arg1 : i32, i32
  }
  func.func @transform_5(%arg0: i32, %arg1: i32) -> (i32, i32, i32, i32) {
    %c0_i32 = arith.constant 0 : i32
    %c0_i32_0 = arith.constant 0 : i32
    %c0_i32_1 = arith.constant 0 : i32
    return %arg0, %c0_i32, %c0_i32_0, %arg1 : i32, i32, i32, i32
  }
  func.func @transform_6(%arg0: i32, %arg1: i32) -> (i32, i32, i32) {
    %c0_i32 = arith.constant 0 : i32
    %c0_i32_0 = arith.constant 0 : i32
    return %arg0, %c0_i32, %arg1 : i32, i32, i32
  }
  func.func @transform_7(%arg0: i32, %arg1: i32) -> (i32, i32, i32) {
    %c0_i32 = arith.constant 0 : i32
    %c0_i32_0 = arith.constant 0 : i32
    return %arg0, %c0_i32, %arg1 : i32, i32, i32
  }
}

module attributes {stable_mosaic.version = 11 : i64} {
  func.func @_conv_bn_stats_kernel(%arg0: i32, %arg1: i32, %arg2: memref<1x16x16x64xbf16, #tpu.memory_space<vmem>>, %arg3: memref<1x64xf32, #tpu.memory_space<vmem>>, %arg4: memref<1x64xf32, #tpu.memory_space<vmem>>, %arg5: memref<3x192x64xbf16, #tpu.memory_space<vmem>>, %arg6: memref<1x64xf32, #tpu.memory_space<vmem>>, %arg7: memref<1x16x16x64xf32, #tpu.memory_space<vmem>>, %arg8: memref<1x1x64xf32, #tpu.memory_space<vmem>>, %arg9: memref<1x1x64xf32, #tpu.memory_space<vmem>>, %arg10: memref<18x16x192xbf16, #tpu.memory_space<vmem>>) attributes {dimension_semantics = [#tpu.dimension_semantics<parallel>, #tpu.dimension_semantics<parallel>], iteration_bounds = array<i64: 2, 1>, scalar_prefetch = 0 : i64, scratch_operands = 1 : i64, tpu.core_type = #tpu.core_type<tc>, window_params = [{transform_indices = @transform_0, window_bounds = array<i64: 1, 16, 16, 64>}, {pipeline_mode = #tpu.pipeline_mode<synchronous>, transform_indices = @transform_1, window_bounds = array<i64: 1, 64>}, {pipeline_mode = #tpu.pipeline_mode<synchronous>, transform_indices = @transform_2, window_bounds = array<i64: 1, 64>}, {transform_indices = @transform_3, window_bounds = array<i64: 3, 192, 64>}, {transform_indices = @transform_4, window_bounds = array<i64: 1, 64>}, {transform_indices = @transform_5, window_bounds = array<i64: 1, 16, 16, 64>}, {transform_indices = @transform_6, window_bounds = array<i64: 1, 1, 64>}, {transform_indices = @transform_7, window_bounds = array<i64: 1, 1, 64>}]} {
    %c0 = arith.constant 0 : index
    %c0_0 = arith.constant 0 : index
    %c0_1 = arith.constant 0 : index
    %c0_2 = arith.constant 0 : index
    %0 = vector.load %arg2[%c0, %c0_0, %c0_1, %c0_2] : memref<1x16x16x64xbf16, #tpu.memory_space<vmem>>, vector<1x16x16x64xbf16>
    %1 = vector.shape_cast %0 : vector<1x16x16x64xbf16> to vector<16x16x64xbf16>
    %2 = arith.extf %1 : vector<16x16x64xbf16> to vector<16x16x64xf32>
    %c0_3 = arith.constant 0 : index
    %c0_4 = arith.constant 0 : index
    %3 = vector.load %arg3[%c0_3, %c0_4] : memref<1x64xf32, #tpu.memory_space<vmem>>, vector<1x64xf32>
    %4 = vector.shape_cast %3 : vector<1x64xf32> to vector<1x1x64xf32>
    %5 = vector.broadcast %4 : vector<1x1x64xf32> to vector<16x16x64xf32>
    %6 = arith.mulf %2, %5 : vector<16x16x64xf32>
    %c0_5 = arith.constant 0 : index
    %c0_6 = arith.constant 0 : index
    %7 = vector.load %arg4[%c0_5, %c0_6] : memref<1x64xf32, #tpu.memory_space<vmem>>, vector<1x64xf32>
    %8 = vector.shape_cast %7 : vector<1x64xf32> to vector<1x1x64xf32>
    %9 = vector.broadcast %8 : vector<1x1x64xf32> to vector<16x16x64xf32>
    %10 = arith.addf %6, %9 : vector<16x16x64xf32>
    %cst = arith.constant 0.000000e+00 : f32
    %11 = vector.broadcast %cst : f32 to vector<16x16x64xf32>
    %12 = arith.maximumf %10, %11 : vector<16x16x64xf32>
    %13 = arith.truncf %12 : vector<16x16x64xf32> to vector<16x16x64xbf16>
    %cst_7 = arith.constant 0.000000e+00 : bf16
    %14 = vector.broadcast %cst_7 : bf16 to vector<1x16x192xbf16>
    %c0_8 = arith.constant 0 : index
    %c0_9 = arith.constant 0 : index
    %c0_10 = arith.constant 0 : index
    %15 = vector.load %arg10[%c0_8, %c0_9, %c0_10] : memref<18x16x192xbf16, #tpu.memory_space<vmem>>, vector<1x16x192xbf16>
    tpu.vector_store %arg10[%c0_8, %c0_9, %c0_10], %14 {strides = array<i32>} : memref<18x16x192xbf16, #tpu.memory_space<vmem>>, vector<1x16x192xbf16>,
    %cst_11 = arith.constant 0.000000e+00 : bf16
    %16 = vector.broadcast %cst_11 : bf16 to vector<1x16x192xbf16>
    %c17 = arith.constant 17 : index
    %c0_12 = arith.constant 0 : index
    %c0_13 = arith.constant 0 : index
    %17 = vector.load %arg10[%c17, %c0_12, %c0_13] : memref<18x16x192xbf16, #tpu.memory_space<vmem>>, vector<1x16x192xbf16>
    tpu.vector_store %arg10[%c17, %c0_12, %c0_13], %16 {strides = array<i32>} : memref<18x16x192xbf16, #tpu.memory_space<vmem>>, vector<1x16x192xbf16>,
    %cst_14 = arith.constant 0.000000e+00 : bf16
    %18 = vector.broadcast %cst_14 : bf16 to vector<16x1x64xbf16>
    %c1 = arith.constant 1 : index
    %c0_15 = arith.constant 0 : index
    %c0_16 = arith.constant 0 : index
    %19 = vector.load %arg10[%c1, %c0_15, %c0_16] : memref<18x16x192xbf16, #tpu.memory_space<vmem>>, vector<16x1x64xbf16>
    tpu.vector_store %arg10[%c1, %c0_15, %c0_16], %18 {strides = array<i32>} : memref<18x16x192xbf16, #tpu.memory_space<vmem>>, vector<16x1x64xbf16>,
    %cst_17 = arith.constant 0.000000e+00 : bf16
    %20 = vector.broadcast %cst_17 : bf16 to vector<16x1x64xbf16>
    %c1_18 = arith.constant 1 : index
    %c15 = arith.constant 15 : index
    %c128 = arith.constant 128 : index
    %21 = vector.load %arg10[%c1_18, %c15, %c128] : memref<18x16x192xbf16, #tpu.memory_space<vmem>>, vector<16x1x64xbf16>
    tpu.vector_store %arg10[%c1_18, %c15, %c128], %20 {strides = array<i32>} : memref<18x16x192xbf16, #tpu.memory_space<vmem>>, vector<16x1x64xbf16>,
    %22 = vector.extract_strided_slice %13 {offsets = [0, 0, 0], sizes = [16, 15, 64], strides = [1, 1, 1]} : vector<16x16x64xbf16> to vector<16x15x64xbf16>
    %c1_19 = arith.constant 1 : index
    %c1_20 = arith.constant 1 : index
    %c0_21 = arith.constant 0 : index
    %23 = vector.load %arg10[%c1_19, %c1_20, %c0_21] : memref<18x16x192xbf16, #tpu.memory_space<vmem>>, vector<16x15x64xbf16>
    tpu.vector_store %arg10[%c1_19, %c1_20, %c0_21], %22 {strides = array<i32>} : memref<18x16x192xbf16, #tpu.memory_space<vmem>>, vector<16x15x64xbf16>,
    %c1_22 = arith.constant 1 : index
    %c0_23 = arith.constant 0 : index
    %c64 = arith.constant 64 : index
    %24 = vector.load %arg10[%c1_22, %c0_23, %c64] : memref<18x16x192xbf16, #tpu.memory_space<vmem>>, vector<16x16x64xbf16>
    tpu.vector_store %arg10[%c1_22, %c0_23, %c64], %13 {strides = array<i32>} : memref<18x16x192xbf16, #tpu.memory_space<vmem>>, vector<16x16x64xbf16>,
    %25 = vector.extract_strided_slice %13 {offsets = [0, 1, 0], sizes = [16, 15, 64], strides = [1, 1, 1]} : vector<16x16x64xbf16> to vector<16x15x64xbf16>
    %c1_24 = arith.constant 1 : index
    %c0_25 = arith.constant 0 : index
    %c128_26 = arith.constant 128 : index
    %26 = vector.load %arg10[%c1_24, %c0_25, %c128_26] : memref<18x16x192xbf16, #tpu.memory_space<vmem>>, vector<16x15x64xbf16>
    tpu.vector_store %arg10[%c1_24, %c0_25, %c128_26], %25 {strides = array<i32>} : memref<18x16x192xbf16, #tpu.memory_space<vmem>>, vector<16x15x64xbf16>,
    %c0_27 = arith.constant 0 : index
    %c0_28 = arith.constant 0 : index
    %c0_29 = arith.constant 0 : index
    %27 = vector.load %arg10[%c0_27, %c0_28, %c0_29] : memref<18x16x192xbf16, #tpu.memory_space<vmem>>, vector<16x16x192xbf16>
    %28 = vector.shape_cast %27 : vector<16x16x192xbf16> to vector<256x192xbf16>
    %c0_30 = arith.constant 0 : index
    %c0_31 = arith.constant 0 : index
    %c0_32 = arith.constant 0 : index
    %29 = vector.load %arg5[%c0_30, %c0_31, %c0_32] : memref<3x192x64xbf16, #tpu.memory_space<vmem>>, vector<1x192x64xbf16>
    %30 = vector.shape_cast %29 : vector<1x192x64xbf16> to vector<192x64xbf16>
    %cst_33 = arith.constant dense<0.000000e+00> : vector<256x64xf32>
    %31 = tpu.matmul %28, %30, %cst_33 {dimension_numbers = #tpu.dot_dimension_numbers<[1], [0], [0], [1], [0, 0, 1, 1], [], []>} : vector<256x192xbf16>, vector<192x64xbf16>, vector<256x64xf32> -> vector<256x64xf32>
    %c1_34 = arith.constant 1 : index
    %c0_35 = arith.constant 0 : index
    %c0_36 = arith.constant 0 : index
    %32 = vector.load %arg10[%c1_34, %c0_35, %c0_36] : memref<18x16x192xbf16, #tpu.memory_space<vmem>>, vector<16x16x192xbf16>
    %33 = vector.shape_cast %32 : vector<16x16x192xbf16> to vector<256x192xbf16>
    %c1_37 = arith.constant 1 : index
    %c0_38 = arith.constant 0 : index
    %c0_39 = arith.constant 0 : index
    %34 = vector.load %arg5[%c1_37, %c0_38, %c0_39] : memref<3x192x64xbf16, #tpu.memory_space<vmem>>, vector<1x192x64xbf16>
    %35 = vector.shape_cast %34 : vector<1x192x64xbf16> to vector<192x64xbf16>
    %cst_40 = arith.constant dense<0.000000e+00> : vector<256x64xf32>
    %36 = tpu.matmul %33, %35, %cst_40 {dimension_numbers = #tpu.dot_dimension_numbers<[1], [0], [0], [1], [0, 0, 1, 1], [], []>} : vector<256x192xbf16>, vector<192x64xbf16>, vector<256x64xf32> -> vector<256x64xf32>
    %37 = arith.addf %31, %36 : vector<256x64xf32>
    %c2 = arith.constant 2 : index
    %c0_41 = arith.constant 0 : index
    %c0_42 = arith.constant 0 : index
    %38 = vector.load %arg10[%c2, %c0_41, %c0_42] : memref<18x16x192xbf16, #tpu.memory_space<vmem>>, vector<16x16x192xbf16>
    %39 = vector.shape_cast %38 : vector<16x16x192xbf16> to vector<256x192xbf16>
    %c2_43 = arith.constant 2 : index
    %c0_44 = arith.constant 0 : index
    %c0_45 = arith.constant 0 : index
    %40 = vector.load %arg5[%c2_43, %c0_44, %c0_45] : memref<3x192x64xbf16, #tpu.memory_space<vmem>>, vector<1x192x64xbf16>
    %41 = vector.shape_cast %40 : vector<1x192x64xbf16> to vector<192x64xbf16>
    %cst_46 = arith.constant dense<0.000000e+00> : vector<256x64xf32>
    %42 = tpu.matmul %39, %41, %cst_46 {dimension_numbers = #tpu.dot_dimension_numbers<[1], [0], [0], [1], [0, 0, 1, 1], [], []>} : vector<256x192xbf16>, vector<192x64xbf16>, vector<256x64xf32> -> vector<256x64xf32>
    %43 = arith.addf %37, %42 : vector<256x64xf32>
    %c0_47 = arith.constant 0 : index
    %c0_48 = arith.constant 0 : index
    %44 = vector.load %arg6[%c0_47, %c0_48] : memref<1x64xf32, #tpu.memory_space<vmem>>, vector<1x64xf32>
    %45 = vector.broadcast %44 : vector<1x64xf32> to vector<256x64xf32>
    %46 = arith.addf %43, %45 : vector<256x64xf32>
    %cst_49 = arith.constant dense<0.000000e+00> : vector<64xf32>
    %47 = vector.multi_reduction <add>, %46, %cst_49 [0] : vector<256x64xf32> to vector<64xf32>
    %48 = vector.shape_cast %47 : vector<64xf32> to vector<1x64xf32>
    %49 = vector.shape_cast %48 : vector<1x64xf32> to vector<1x1x64xf32>
    %c0_50 = arith.constant 0 : index
    %c0_51 = arith.constant 0 : index
    %c0_52 = arith.constant 0 : index
    %50 = vector.load %arg8[%c0_50, %c0_51, %c0_52] : memref<1x1x64xf32, #tpu.memory_space<vmem>>, vector<1x1x64xf32>
    tpu.vector_store %arg8[%c0_50, %c0_51, %c0_52], %49 {strides = array<i32>} : memref<1x1x64xf32, #tpu.memory_space<vmem>>, vector<1x1x64xf32>,
    %51 = arith.mulf %46, %46 : vector<256x64xf32>
    %cst_53 = arith.constant dense<0.000000e+00> : vector<64xf32>
    %52 = vector.multi_reduction <add>, %51, %cst_53 [0] : vector<256x64xf32> to vector<64xf32>
    %53 = vector.shape_cast %52 : vector<64xf32> to vector<1x64xf32>
    %54 = vector.shape_cast %53 : vector<1x64xf32> to vector<1x1x64xf32>
    %c0_54 = arith.constant 0 : index
    %c0_55 = arith.constant 0 : index
    %c0_56 = arith.constant 0 : index
    %55 = vector.load %arg9[%c0_54, %c0_55, %c0_56] : memref<1x1x64xf32, #tpu.memory_space<vmem>>, vector<1x1x64xf32>
    tpu.vector_store %arg9[%c0_54, %c0_55, %c0_56], %54 {strides = array<i32>} : memref<1x1x64xf32, #tpu.memory_space<vmem>>, vector<1x1x64xf32>,
    %56 = vector.shape_cast %46 : vector<256x64xf32> to vector<1x16x16x64xf32>
    %c0_57 = arith.constant 0 : index
    %c0_58 = arith.constant 0 : index
    %c0_59 = arith.constant 0 : index
    %c0_60 = arith.constant 0 : index
    %57 = vector.load %arg7[%c0_57, %c0_58, %c0_59, %c0_60] : memref<1x16x16x64xf32, #tpu.memory_space<vmem>>, vector<1x16x16x64xf32>
    tpu.vector_store %arg7[%c0_57, %c0_58, %c0_59, %c0_60], %56 {strides = array<i32>} : memref<1x16x16x64xf32, #tpu.memory_space<vmem>>, vector<1x16x16x64xf32>,
    return
  }
  func.func @transform_0(%arg0: i32, %arg1: i32) -> (i32, i32, i32, i32) {
    %c0_i32 = arith.constant 0 : i32
    %c0_i32_0 = arith.constant 0 : i32
    %c0_i32_1 = arith.constant 0 : i32
    %c0_i32_2 = arith.constant 0 : i32
    return %arg0, %c0_i32, %c0_i32_0, %c0_i32_1 : i32, i32, i32, i32
  }
  func.func @transform_1(%arg0: i32, %arg1: i32) -> (i32, i32) {
    %c0_i32 = arith.constant 0 : i32
    %c0_i32_0 = arith.constant 0 : i32
    %c0_i32_1 = arith.constant 0 : i32
    return %c0_i32, %c0_i32_0 : i32, i32
  }
  func.func @transform_2(%arg0: i32, %arg1: i32) -> (i32, i32) {
    %c0_i32 = arith.constant 0 : i32
    %c0_i32_0 = arith.constant 0 : i32
    %c0_i32_1 = arith.constant 0 : i32
    return %c0_i32, %c0_i32_0 : i32, i32
  }
  func.func @transform_3(%arg0: i32, %arg1: i32) -> (i32, i32, i32) {
    %c0_i32 = arith.constant 0 : i32
    %c0_i32_0 = arith.constant 0 : i32
    %c0_i32_1 = arith.constant 0 : i32
    return %c0_i32, %c0_i32_0, %arg1 : i32, i32, i32
  }
  func.func @transform_4(%arg0: i32, %arg1: i32) -> (i32, i32) {
    %c0_i32 = arith.constant 0 : i32
    %c0_i32_0 = arith.constant 0 : i32
    return %c0_i32, %arg1 : i32, i32
  }
  func.func @transform_5(%arg0: i32, %arg1: i32) -> (i32, i32, i32, i32) {
    %c0_i32 = arith.constant 0 : i32
    %c0_i32_0 = arith.constant 0 : i32
    %c0_i32_1 = arith.constant 0 : i32
    return %arg0, %c0_i32, %c0_i32_0, %arg1 : i32, i32, i32, i32
  }
  func.func @transform_6(%arg0: i32, %arg1: i32) -> (i32, i32, i32) {
    %c0_i32 = arith.constant 0 : i32
    %c0_i32_0 = arith.constant 0 : i32
    return %arg0, %c0_i32, %arg1 : i32, i32, i32
  }
  func.func @transform_7(%arg0: i32, %arg1: i32) -> (i32, i32, i32) {
    %c0_i32 = arith.constant 0 : i32
    %c0_i32_0 = arith.constant 0 : i32
    return %arg0, %c0_i32, %arg1 : i32, i32, i32
  }
}

module attributes {stable_mosaic.version = 11 : i64} {
  func.func @_norm_relu_kernel(%arg0: i32, %arg1: i32, %arg2: memref<1x16x1024xf32, #tpu.memory_space<vmem>>, %arg3: memref<1x1024xf32, #tpu.memory_space<vmem>>, %arg4: memref<1x1024xf32, #tpu.memory_space<vmem>>, %arg5: memref<1x16x1024xf32, #tpu.memory_space<vmem>>) attributes {dimension_semantics = [#tpu.dimension_semantics<parallel>, #tpu.dimension_semantics<parallel>], iteration_bounds = array<i64: 2, 1>, scalar_prefetch = 0 : i64, scratch_operands = 0 : i64, tpu.core_type = #tpu.core_type<tc>, window_params = [{transform_indices = @transform_0, window_bounds = array<i64: 1, 16, 1024>}, {pipeline_mode = #tpu.pipeline_mode<synchronous>, transform_indices = @transform_1, window_bounds = array<i64: 1, 1024>}, {pipeline_mode = #tpu.pipeline_mode<synchronous>, transform_indices = @transform_2, window_bounds = array<i64: 1, 1024>}, {transform_indices = @transform_3, window_bounds = array<i64: 1, 16, 1024>}]} {
    %c0 = arith.constant 0 : index
    %c0_0 = arith.constant 0 : index
    %c0_1 = arith.constant 0 : index
    %0 = vector.load %arg2[%c0, %c0_0, %c0_1] : memref<1x16x1024xf32, #tpu.memory_space<vmem>>, vector<1x16x1024xf32>
    %c0_2 = arith.constant 0 : index
    %c0_3 = arith.constant 0 : index
    %1 = vector.load %arg3[%c0_2, %c0_3] : memref<1x1024xf32, #tpu.memory_space<vmem>>, vector<1x1024xf32>
    %2 = vector.shape_cast %1 : vector<1x1024xf32> to vector<1x1x1024xf32>
    %3 = vector.broadcast %2 : vector<1x1x1024xf32> to vector<1x16x1024xf32>
    %4 = arith.mulf %0, %3 : vector<1x16x1024xf32>
    %c0_4 = arith.constant 0 : index
    %c0_5 = arith.constant 0 : index
    %5 = vector.load %arg4[%c0_4, %c0_5] : memref<1x1024xf32, #tpu.memory_space<vmem>>, vector<1x1024xf32>
    %6 = vector.shape_cast %5 : vector<1x1024xf32> to vector<1x1x1024xf32>
    %7 = vector.broadcast %6 : vector<1x1x1024xf32> to vector<1x16x1024xf32>
    %8 = arith.addf %4, %7 : vector<1x16x1024xf32>
    %cst = arith.constant 0.000000e+00 : f32
    %9 = vector.broadcast %cst : f32 to vector<1x16x1024xf32>
    %10 = arith.maximumf %8, %9 : vector<1x16x1024xf32>
    %c0_6 = arith.constant 0 : index
    %c0_7 = arith.constant 0 : index
    %c0_8 = arith.constant 0 : index
    %11 = vector.load %arg5[%c0_6, %c0_7, %c0_8] : memref<1x16x1024xf32, #tpu.memory_space<vmem>>, vector<1x16x1024xf32>
    tpu.vector_store %arg5[%c0_6, %c0_7, %c0_8], %10 {strides = array<i32>} : memref<1x16x1024xf32, #tpu.memory_space<vmem>>, vector<1x16x1024xf32>,
    return
  }
  func.func @transform_0(%arg0: i32, %arg1: i32) -> (i32, i32, i32) {
    %c0_i32 = arith.constant 0 : i32
    %c0_i32_0 = arith.constant 0 : i32
    return %arg0, %arg1, %c0_i32 : i32, i32, i32
  }
  func.func @transform_1(%arg0: i32, %arg1: i32) -> (i32, i32) {
    %c0_i32 = arith.constant 0 : i32
    %c0_i32_0 = arith.constant 0 : i32
    %c0_i32_1 = arith.constant 0 : i32
    return %c0_i32, %c0_i32_0 : i32, i32
  }
  func.func @transform_2(%arg0: i32, %arg1: i32) -> (i32, i32) {
    %c0_i32 = arith.constant 0 : i32
    %c0_i32_0 = arith.constant 0 : i32
    %c0_i32_1 = arith.constant 0 : i32
    return %c0_i32, %c0_i32_0 : i32, i32
  }
  func.func @transform_3(%arg0: i32, %arg1: i32) -> (i32, i32, i32) {
    %c0_i32 = arith.constant 0 : i32
    %c0_i32_0 = arith.constant 0 : i32
    return %arg0, %arg1, %c0_i32 : i32, i32, i32
  }
}

</mosaic_0001>

<bundles_post_ra>
// kernel: triple_conv_apply.7
= control target key start
LH: loop header
LB: loop body
LE: loop exit
PB: predicated region body
PF: predicated region fallthrough
CT: control target
= control target key end

     0   :  { %s556_s12 = smov 0   ;;  %s558_s13 = smov 0   ;;  %s648_s0 = inlined_call_operand.vmem [shape: f32[2,16,1024], index: 0, kind: input, shape index: {}]   ;;  %s649_s1 = inlined_call_operand.vmem [shape: f32[1,1024], index: 1, kind: input, shape index: {}]   ;;  %s650_s2 = inlined_call_operand.vmem [shape: f32[1,1024], index: 2, kind: input, shape index: {}]   ;;  %s651_s3 = inlined_call_operand.vmem [shape: f32[2,16,1024], index: 3, kind: output, shape index: {}]  }
   0x1   :  { %s560_s14 = smov 0  }
   0x2 LB: > { %s25_s15 = sadd.s32 1, %s530_s13  ;;  %p479_p0 = scmp.ge.s32.totalorder %s534_s14, 1  ;;  %s534_s14 = sphi %s560_s14, %s13_s14   ;;  %s530_s13 = sphi %s558_s13, %s653_s13   ;;  %s526_s12 = sphi %s556_s12, %s652_s12  }
   0x3   : > { %p27_p1 = scmp.ge.s32.totalorder %s25_s15, 2  ;;  %p159_p2 = scmp.lt.s32.totalorder %s534_s14, 3 }
   0x5   : > { %s655_s15 = smov (%p27_p1, %s25_s15), 0  ;;  %p160_p3 = pnand %p479_p0, %p159_p2 }
   0x6   : > { %p194_p4 = scmp.lt.s32.totalorder (!%p160_p3), %s526_s12, 1  ;;  %v233_v0 = vlaneseq (!%p160_p3)  ;;  %v231_v2 = vld [vmem:[%s649_s1] sm:$0xff] (!%p160_p3) }
   0x7   : > { %163 = sbr.rel (%p160_p3) target bundleno = 35 (0x23), region = 32  ;;  %v289_v3 = vld [vmem:[%s650_s2] sm:$0xff] (!%p160_p3) }
   0x8   : > { %v576_v1 = vshrl.u32 (!%p160_p3), %v233_v0, 7 }
   0xa   : > { %v235_v4 = vsub.s32 (!%p160_p3), 0, %v576_v1  ;;  %v239_v5 = vsub.s32 (!%p160_p3), 1, %v576_v1  ;;  %v243_v6 = vsub.s32 (!%p160_p3), 2, %v576_v1  ;;  %v247_v7 = vsub.s32 (!%p160_p3), 3, %v576_v1 }
   0xb   : > { %v251_v8 = vsub.s32 (!%p160_p3), 4, %v576_v1  ;;  %v255_v9 = vsub.s32 (!%p160_p3), 5, %v576_v1  ;;  %v259_v10 = vsub.s32 (!%p160_p3), 6, %v576_v1  ;;  %v263_v11 = vsub.s32 (!%p160_p3), 7, %v576_v1 }
   0xc   : > { %v236_v13 = vrot.slane (!%p160_p3), %v231_v2, %v235_v4  ;;  %v294_v14 = vrot.slane (!%p160_p3), %v289_v3, %v235_v4  ;;  %v240_v16 = vrot.slane (!%p160_p3), %v231_v2, %v239_v5  ;;  %v298_v17 = vrot.slane (!%p160_p3), %v289_v3, %v239_v5 }
   0xd   : > { %v244_v19 = vrot.slane (!%p160_p3), %v231_v2, %v243_v6  ;;  %v302_v20 = vrot.slane (!%p160_p3), %v289_v3, %v243_v6  ;;  %v248_v22 = vrot.slane (!%p160_p3), %v231_v2, %v247_v7  ;;  %v306_v23 = vrot.slane (!%p160_p3), %v289_v3, %v247_v7 }
   0xe   : > { %s657_s12 = smov (!%p194_p4, %s526_s12), 1  ;;  %v252_v27 = vrot.slane %v231_v2, %v251_v8  ;;  %v310_v28 = vrot.slane %v289_v3, %v251_v8  ;;  %v256_v32 = vrot.slane %v231_v2, %v255_v9  ;;  %v314_v33 = vrot.slane %v289_v3, %v255_v9 }
   0xf   : > { %s486_s20 = sshll.u32 %s657_s12, 7  ;;  %v260_v38 = vrot.slane %v231_v2, %v259_v10  ;;  %v318_v42 = vrot.slane %v289_v3, %v259_v10  ;;  %v264_v54 = vrot.slane %v231_v2, %v263_v11  ;;  %v322_v59 = vrot.slane %v289_v3, %v263_v11 }
  0x10   : > { %s594_s23 = scalar_lea.vmem %s648_s0, %s486_s20  ;;  %s612_s26 = scalar_lea.vmem %s651_s3, %s486_s20 }
  0x11   : > { %v215_v12 = vld [vmem:[%s594_s23] sm:$0xff]  ;;  %v216_v15 = vld [vmem:[%s594_s23 + $0x8] sm:$0xff]  ;;  %v217_v18 = vld [vmem:[%s594_s23 + $0x10] sm:$0xff] }
  0x12   : > { %v218_v21 = vld [vmem:[%s594_s23 + $0x18] sm:$0xff]  ;;  %v219_v24 = vld [vmem:[%s594_s23 + $0x20] sm:$0xff]  ;;  %v273_v25 = vmul.f32 %v236_v13, %v215_v12  ;;  %v274_v26 = vmul.f32 %v240_v16, %v216_v15  ;;  %v220_v29 = vld [vmem:[%s594_s23 + $0x28] sm:$0xff]  ;;  %v275_v30 = vmul.f32 %v244_v19, %v217_v18 }
  0x13   : > { %v276_v31 = vmul.f32 %v248_v22, %v218_v21  ;;  %v221_v34 = vld [vmem:[%s594_s23 + $0x30] sm:$0xff]  ;;  %v277_v37 = vmul.f32 %v252_v27, %v219_v24  ;;  %v278_v41 = vmul.f32 %v256_v32, %v220_v29  ;;  %v223_v43 = vld [vmem:[%s594_s23 + $0x40] sm:$0xff]  ;;  %v222_v48 = vld [vmem:[%s594_s23 + $0x38] sm:$0xff] }
  0x14   : > { %v331_v35 = vadd.f32 %v294_v14, %v273_v25  ;;  %v332_v36 = vadd.f32 %v298_v17, %v274_v26  ;;  %v333_v39 = vadd.f32 %v302_v20, %v275_v30  ;;  %v279_v47 = vmul.f32 %v260_v38, %v221_v34  ;;  %v224_v49 = vld [vmem:[%s594_s23 + $0x48] sm:$0xff]  ;;  %v225_v50 = vld [vmem:[%s594_s23 + $0x50] sm:$0xff]  ;;  %v226_v55 = vld [vmem:[%s594_s23 + $0x58] sm:$0xff] }
  0x15   : > { %v334_v40 = vadd.f32 %v306_v23, %v276_v31  ;;  %v335_v46 = vadd.f32 %v310_v28, %v277_v37  ;;  %v336_v53 = vadd.f32 %v314_v33, %v278_v41  ;;  %v227_v56 = vld [vmem:[%s594_s23 + $0x60] sm:$0xff]  ;;  %v281_v60 = vmul.f32 %v236_v13, %v223_v43  ;;  %v228_v61 = vld [vmem:[%s594_s23 + $0x68] sm:$0xff]  ;;  %v229_v2 = vld [vmem:[%s594_s23 + $0x70] sm:$0xff] }
  0x16   : > { %v347_v44 = vmax.f32 %v331_v35, 0.0  ;;  %v348_v45 = vmax.f32 %v332_v36, 0.0  ;;  %v349_v51 = vmax.f32 %v333_v39, 0.0  ;;  %v337_v58 = vadd.f32 %v318_v42, %v279_v47  ;;  %v230_v11 = vld [vmem:[%s594_s23 + $0x78] sm:$0xff] }
  0x17   : > { %v350_v52 = vmax.f32 %v334_v40, 0.0  ;;  %v351_v57 = vmax.f32 %v335_v46, 0.0  ;;  %v352_v62 = vmax.f32 %v336_v53, 0.0  ;;  %v280_v63 = vmul.f32 %v264_v54, %v222_v48 }
  0x18   : > { %363 = vst [vmem:[%s612_s26] sm:$0xff] %v347_v44  ;;  %364 = vst [vmem:[%s612_s26 + $0x8] sm:$0xff] %v348_v45  ;;  %v282_v0 = vmul.f32 %v240_v16, %v224_v49  ;;  %v283_v1 = vmul.f32 %v244_v19, %v225_v50  ;;  %v353_v4 = vmax.f32 %v337_v58, 0.0  ;;  %v339_v5 = vadd.f32 %v294_v14, %v281_v60 }
  0x19   : > { %365 = vst [vmem:[%s612_s26 + $0x10] sm:$0xff] %v349_v51  ;;  %366 = vst [vmem:[%s612_s26 + $0x18] sm:$0xff] %v350_v52  ;;  %v284_v6 = vmul.f32 %v248_v22, %v226_v55  ;;  %v285_v7 = vmul.f32 %v252_v27, %v227_v56  ;;  %v338_v8 = vadd.f32 %v322_v59, %v280_v63 }
  0x1a   : > { %367 = vst [vmem:[%s612_s26 + $0x20] sm:$0xff] %v351_v57  ;;  %368 = vst [vmem:[%s612_s26 + $0x28] sm:$0xff] %v352_v62  ;;  %v340_v3 = vadd.f32 %v298_v17, %v282_v0  ;;  %v341_v9 = vadd.f32 %v302_v20, %v283_v1  ;;  %v286_v10 = vmul.f32 %v256_v32, %v228_v61  ;;  %v355_v12 = vmax.f32 %v339_v5, 0.0 }
  0x1b   : > { %369 = vst [vmem:[%s612_s26 + $0x30] sm:$0xff] %v353_v4  ;;  %v342_v13 = vadd.f32 %v306_v23, %v284_v6  ;;  %v343_v15 = vadd.f32 %v310_v28, %v285_v7  ;;  %v287_v16 = vmul.f32 %v260_v38, %v229_v2  ;;  %v354_v14 = vmax.f32 %v338_v8, 0.0 }
  0x1c   : > { %v356_v18 = vmax.f32 %v340_v3, 0.0  ;;  %v357_v19 = vmax.f32 %v341_v9, 0.0  ;;  %v344_v21 = vadd.f32 %v314_v33, %v286_v10  ;;  %371 = vst [vmem:[%s612_s26 + $0x40] sm:$0xff] %v355_v12  ;;  %v288_v24 = vmul.f32 %v264_v54, %v230_v11 }
  0x1d   : > { %v358_v17 = vmax.f32 %v342_v13, 0.0  ;;  %v359_v20 = vmax.f32 %v343_v15, 0.0  ;;  %v345_v22 = vadd.f32 %v318_v42, %v287_v16  ;;  %370 = vst [vmem:[%s612_s26 + $0x38] sm:$0xff] %v354_v14 }
  0x1e   : > { %372 = vst [vmem:[%s612_s26 + $0x48] sm:$0xff] %v356_v18  ;;  %373 = vst [vmem:[%s612_s26 + $0x50] sm:$0xff] %v357_v19  ;;  %v360_v23 = vmax.f32 %v344_v21, 0.0  ;;  %v346_v26 = vadd.f32 %v322_v59, %v288_v24 }
  0x1f   : > { %374 = vst [vmem:[%s612_s26 + $0x58] sm:$0xff] %v358_v17  ;;  %375 = vst [vmem:[%s612_s26 + $0x60] sm:$0xff] %v359_v20  ;;  %v361_v25 = vmax.f32 %v345_v22, 0.0 }
  0x20   : > { %376 = vst [vmem:[%s612_s26 + $0x68] sm:$0xff] %v360_v23  ;;  %v362_v27 = vmax.f32 %v346_v26, 0.0 }
  0x21   : > { %377 = vst [vmem:[%s612_s26 + $0x70] sm:$0xff] %v361_v25 }
  0x22   : > { %378 = vst [vmem:[%s612_s26 + $0x78] sm:$0xff] %v362_v27 }
  0x23 PF: > { %s13_s14 = sadd.s32 1, %s534_s14   ;;  %s652_s12 = smov %s530_s13 }
  0x24   : > { %p10_p5 = scmp.ge.s32.totalorder %s13_s14, 4   ;;  %s653_s13 = smov %s655_s15 }
  0x26   :  { %12 = sbr.rel (!%p10_p5) target bundleno = 2 (0x2), region = 62 }

// kernel: triple_conv_apply.4
= control target key start
LH: loop header
LB: loop body
LE: loop exit
PB: predicated region body
PF: predicated region fallthrough
CT: control target
= control target key end

     0   :  { %13 = vsyncpa [#allocation4], 0  ;;  %s2788_s1 = smov 0   ;;  %s2790_s24 = smov 0   ;;  %s3585_s0 = inlined_call_operand.vmem [shape: bf16[2,16,16,4], index: 0, kind: input, shape index: {}]   ;;  %s3586_s1 = inlined_call_operand.vmem [shape: f32[1,4], index: 1, kind: input, shape index: {}]   ;;  %s3587_s2 = inlined_call_operand.vmem [shape: f32[1,4], index: 2, kind: input, shape index: {}]   ;;  %s3588_s3 = inlined_call_operand.vmem [shape: bf16[3,12,64], index: 3, kind: input, shape index: {}]   ;;  %s3589_s4 = inlined_call_operand.hbm [shape: f32[1,64], index: 4, kind: input, shape index: {}]   ;;  %s3590_s5 = inlined_call_operand.vmem [shape: bf16[2,16,16,64], index: 5, kind: output, shape index: {0}]   ;;  %s3591_s6 = inlined_call_operand.vmem [shape: f32[2,1,64], index: 6, kind: output, shape index: {1}]   ;;  %s3592_s7 = inlined_call_operand.vmem [shape: f32[2,1,64], index: 7, kind: output, shape index: {2}]  }
   0x1   :  { %s2792_s2 = smov 0  }
   0x2 LB: > { %s2256_s25 = sadd.s32 4294967295, %s2742_s2   ;;  %s31_s26 = sadd.s32 1, %s2738_s24  ;;  %s2742_s2 = sphi %s2792_s2, %s19_s2   ;;  %s2738_s24 = sphi %s2790_s24, %s3610_s24   ;;  %s2734_s1 = sphi %s2788_s1, %s3609_s1  }
   0x3   : > { %p33_p0 = scmp.ge.s32.totalorder %s31_s26, 2  ;;  %p2258_p1 = scmp.ge.s32.totalorder %s2742_s2, 1 }
   0x4   : > { %p240_p2 = scmp.lt.s32.totalorder %s2742_s2, 3  ;;  %p2813_p4 = scmp.eq.s32.totalorder %s2256_s25, 0 }
   0x5   : > { %s3612_s26 = smov (%p33_p0, %s31_s26), 0  ;;  %s2744_s29 = smov [#allocation3]  }
   0x6   : > { %p2809_p3 = pnand %p2258_p1, %p240_p2  ;;  %s268_s30 = sshll.u32 %s2744_s29, 4  ;;  %s269_s30 = int_to_ptr.vmem [resolvable:$true] %s268_s30 }
   0x7   : > { %s3597_s28 = scalar_select %p2813_p4, 1, 0 }
   0x8   : > { %s3596_s27 = scalar_select %p2809_p3, 1, 0 }
   0x9   : > { %p2635_p5 = pneg %p2809_p3  ;;  %s2688_s11 = scalar_lea.hbm %s3589_s4, 16 }
   0xa   : > { %p2689_p7 = scmp.ne.s32.totalorder %s3589_s4, %s2688_s11  ;;  %p2695_p11 = scmp.lt.u32.totalorder %s2688_s11, %s3589_s4 }
   0xb   : > { %p2821_p6 = pnand %p2813_p4, %p2635_p5 }
   0xd   : > { %p2690_p8 = pneg %p2821_p6 }
   0xf   : > { %p2691_p9 = pnand %p2690_p8, %p2689_p7 }
  0x11   : > { %p2692_p10 = pneg %p2691_p9 }
  0x13   : > { %p2697_p12 = pnand %p2695_p11, %p2692_p10 }
  0x15   : > { %2700 = shalt.err (!%p2697_p12)
}
  0x16   : > { %s2701_s16 = scalar_lea.vmem %s269_s30, 16  ;;  %s2708_s17 = scalar_lea.vmem %s269_s30, 32 }
  0x17   : > { %p2702_p13 = scmp.ne.s32.totalorder %s269_s30, %s2701_s16  ;;  %p2709_p2 = scmp.lt.s32.totalorder %s269_s30, %s269_s30 }
  0x18   : > { %p2710_p5 = scmp.lt.s32.totalorder %s2708_s17, %s2701_s16 }
  0x19   : > { %p2704_p0 = pnand %p2702_p13, %p2690_p8 }
  0x1a   : > { %p2711_p4 = por %p2710_p5, %p2709_p2 }
  0x1b   : > { %p2705_p1 = pneg %p2704_p0 }
  0x1d   : > { %p2712_p3 = pnand %p2711_p4, %p2705_p1 }
  0x1f   : > { %2715 = shalt.err (!%p2712_p3)
}
  0x20   : > { %2638 = dma.hbm_to_vmem [thread:$0]  (!%p2821_p6), %s3589_s4, 16, %s269_s30, [#allocation4]  }
  0x21   : > { %p3599_p7 = scmp.ne.s32.totalorder %s3596_s27, 0 }
  0x22   : > { %p3600_p9 = scmp.ne.s32.totalorder (!%p3599_p7), %s3597_s28, 0 }
  0x23   : > { %289 = sbr.rel (%p3599_p7) target bundleno = 507 (0x1fb), region = 40 }
  0x2a   : > { %2729 = dma.done.wait (%p3600_p9), [#allocation4], 16  }
  0x2b   : > { %2731 = vsyncadd (%p3600_p9), [#allocation4], 4294967280  ;;  %p340_p8 = scmp.lt.s32.totalorder %s2734_s1, 1  ;;  %vm402_vm0 = vcmask 97280   ;;  %v2745_v0 = vmov 0   ;;  %s2746_s25 = smov 4  }
  0x2c   : > { %403 = vst.msk [vmem:[#allocation2] sm:$0xff] %vm402_vm0, %v2745_v0  ;;  %405 = vst.msk [vmem:[#allocation2 + $0x88] sm:$0xff] %vm402_vm0, %v2745_v0  ;;  %s2747_s27 = smov 8   ;;  %vm408_vm1 = vsmask.f32 256  ;;  %vm407_vm2 = vcmask 24576  }
  0x2d   : > { %s3614_s1 = smov (!%p340_p8, %s2734_s1), 1  ;;  %vm458_vm3 = vcmask 97351   ;;  %vm459_vm4 = vsmask.f32 7966  ;;  %vm1054_vm5 = vcmask 1045504   ;;  %vm717_vm6 = vcmask 31744   ;;  %vm2967_vm8 = vmand %vm407_vm2, %vm408_vm1 }
  0x2e   : > { %s2374_s20 = sshll.u32 %s3614_s1, 7  ;;  %vm718_vm7 = vsmask.f32 7938  ;;  %v410_v55 = vld [vmem:[#allocation2 + $0x8] sm:$0x1]  ;;  %vm2984_vm9 = vmand %vm458_vm3, %vm459_vm4  ;;  %vm816_vm11 = vcmask 64544   ;;  %s362_s16 = scalar_lea.vmem %s3591_s6, %s3614_s1 }
  0x2f   : > { %s2859_s23 = scalar_lea.vmem %s3585_s0, %s2374_s20  ;;  %v461_v61 = vld [vmem:[#allocation2 + $0x8] sm:$0x80]  ;;  %vm3064_vm10 = vmand %vm717_vm6, %vm718_vm7  ;;  %vm913_vm12 = vcmask 97344   ;;  %vm914_vm13 = vsmask.f32 7424  ;;  %s3399_s13 = scalar_lea.vmem %s3590_s5, %s2374_s20  ;;  %vm2046_vm15 = vcmask 519168  }
  0x30   : > { %v2862_v1 = vld [vmem:[%s2859_s23] sm:$0xff]   ;;  %v2865_v2 = vld [vmem:[%s2859_s23 + $0x10] sm:$0xff]   ;;  %v2870_v3 = vld [vmem:[%s2859_s23 + $0x8] sm:$0xff]   ;;  %vm1814_vm1 = vcmask 516096   ;;  %s368_s19 = scalar_lea.vmem %s3592_s7, %s3614_s1 }
  0x31   : > { %768 = vrot.lane.b32.xlu0 %v2862_v1, %s2746_s25  ;;  %772 = vrot.lane.b32.xlu1 %v2865_v2, %s2746_s25  ;;  %v590_v4 = vshrl.u32 %v2862_v1, 16  ;;  %v593_v5 = vshll.u32 %v2862_v1, 16  ;;  %v600_v6 = vshll.u32 %v2870_v3, 16  ;;  %v597_v8 = vshrl.u32 %v2870_v3, 16  ;;  %v2886_v11 = vld [vmem:[%s2859_s23 + $0x18] sm:$0xff]   ;;  %v2896_v17 = vld [vmem:[%s2859_s23 + $0x20] sm:$0xff]   ;;  %vm3271_vm14 = vmand %vm913_vm12, %vm914_vm13 }
  0x32   : > { %v607_v9 = vshll.u32 %v2865_v2, 16  ;;  %v604_v14 = vshrl.u32 %v2865_v2, 16  ;;  %v614_v16 = vshll.u32 %v2886_v11, 16  ;;  %v611_v19 = vshrl.u32 %v2886_v11, 16  ;;  %v2906_v22 = vld [vmem:[%s2859_s23 + $0x28] sm:$0xff]   ;;  %v2913_v25 = vld [vmem:[%s2859_s23 + $0x30] sm:$0xff]  }
  0x33   : > { %v833_v7 = vrot.slane %v593_v5, 1  ;;  %v835_v10 = vrot.slane %v600_v6, 1  ;;  %v621_v21 = vshll.u32 %v2896_v17, 16  ;;  %v2908_v23 = vrot.slane %v590_v4, 7  ;;  %v2917_v27 = vld [vmem:[%s2859_s23 + $0x38] sm:$0xff]   ;;  %v2930_v33 = vld [vmem:[%s2859_s23 + $0x40] sm:$0xff]  }
  0x34   : > { %v837_v15 = vrot.slane %v607_v9, 1  ;;  %v839_v20 = vrot.slane %v614_v16, 1  ;;  %v2910_v24 = vrot.slane %v597_v8, 7  ;;  %v618_v26 = vshrl.u32 %v2896_v17, 16  ;;  %v2933_v34 = vld [vmem:[%s2859_s23 + $0x48] sm:$0xff]   ;;  %v964_v40 = vld [vmem:[#allocation2] sm:$0xff] }
  0x35   : > { %770 = vrot.lane.b32.xlu0 %v2870_v3, %s2746_s25  ;;  %v834_v12 = vor.u32 %v833_v7, %v590_v4  ;;  %v836_v13 = vor.u32 %v835_v10, %v597_v8  ;;  %v841_v29 = vrot.slane %v621_v21, 1  ;;  %v628_v30 = vshll.u32 %v2906_v22, 16  ;;  %v2947_v44 = vld [vmem:[%s2859_s23 + $0x50] sm:$0xff]   ;;  %2495 = vmatprep.mubr.msk.bf16.mxu0 %vm402_vm0, %v964_v40  ;;  %v2961_v51 = vld [vmem:[%s2859_s23 + $0x58] sm:$0xff]   ;;  %v470_v40 = vld [vmem:[#allocation2 + $0x20] sm:$0x80] }
  0x36   : > { %v838_v18 = vor.u32 %v837_v15, %v604_v14  ;;  %v840_v28 = vor.u32 %v839_v20, %v611_v19  ;;  %v2923_v31 = vrot.slane %v604_v14, 7  ;;  %v2927_v32 = vrot.slane %v611_v19, 7  ;;  %v416_v4 = vld [vmem:[#allocation2 + $0x18] sm:$0x1]  ;;  %v467_v7 = vld [vmem:[#allocation2 + $0x18] sm:$0x80] }
  0x37   : > { %865 = vrot.lane.b32.xlu1 %v834_v12, %s2747_s27  ;;  %v2935_v35 = vrot.slane %v618_v26, 7  ;;  %v625_v36 = vshrl.u32 %v2906_v22, 16  ;;  %v632_v37 = vshrl.u32 %v2913_v25, 16  ;;  %v635_v38 = vshll.u32 %v2913_v25, 16  ;;  %v413_v12 = vld [vmem:[#allocation2 + $0x10] sm:$0x1] }
  0x38   : > { %v642_v39 = vshll.u32 %v2917_v27, 16  ;;  %v842_v41 = vor.u32 %v841_v29, %v618_v26  ;;  %v843_v43 = vrot.slane %v628_v30, 1  ;;  %v649_v45 = vshll.u32 %v2930_v33, 16  ;;  %v419_v20 = vld [vmem:[#allocation2 + $0x20] sm:$0x1] }
  0x39   : > { %774 = vrot.lane.b32.xlu0 %v2886_v11, %s2746_s25  ;;  %v2942_v42 = vrot.slane %v625_v36, 7  ;;  %v2953_v46 = vrot.slane %v632_v37, 7  ;;  %v639_v47 = vshrl.u32 %v2917_v27, 16  ;;  %v646_v48 = vshrl.u32 %v2930_v33, 16  ;;  %v476_v2 = vld [vmem:[#allocation2 + $0x30] sm:$0x80] }
  0x3a   : > { %v656_v49 = vshll.u32 %v2933_v34, 16  ;;  %v845_v50 = vrot.slane %v635_v38, 1  ;;  %v653_v52 = vshrl.u32 %v2933_v34, 16  ;;  %v663_v53 = vshll.u32 %v2947_v44, 16 }
  0x3b   : > { %867 = vrot.lane.b32.xlu1 %v836_v13, %s2747_s27  ;;  %v2973_v56 = vrot.slane %v639_v47, 7  ;;  %v847_v57 = vrot.slane %v642_v39, 1  ;;  %v2979_v58 = vrot.slane %v646_v48, 7  ;;  %v660_v59 = vshrl.u32 %v2947_v44, 16  ;;  %v464_v13 = vld [vmem:[#allocation2 + $0x10] sm:$0x80] }
  0x3c   : > { %v844_v62 = vor.u32 %v843_v43, %v625_v36  ;;  %v2991_v63 = vrot.slane %v649_v45, 1  ;;  %v2995_v0 = vrot.slane %v653_v52, 7  ;;  %v3001_v8 = vrot.slane %v656_v49, 1  ;;  %v3026_v43 = vld [vmem:[%s2859_s23 + $0x60] sm:$0xff]  }
  0x3d   : > { %776 = vrot.lane.b32.xlu0 %v2896_v17, %s2746_s25  ;;  %v411_v10 = vsel %vm2967_vm8, 0, %v410_v55  ;;  %v3007_v14 = vrot.slane %v660_v59, 7  ;;  %v3011_v15 = vrot.slane %v663_v53, 1  ;;  %v462_v19 = vsel %vm2984_vm9, 0, %v461_v61 }
  0x3e   : > { %412 = vst [vmem:[#allocation2 + $0x8] sm:$0x1] %v411_v10  ;;  %463 = vst [vmem:[#allocation2 + $0x8] sm:$0x80] %v462_v19  ;;  %v417_v26 = vsel %vm2967_vm8, 0, %v416_v4  ;;  %v414_v29 = vsel %vm2967_vm8, 0, %v413_v12  ;;  %v595_v10 = vor.u32 %v593_v5, %v2908_v23  ;;  %v602_v12 = vor.u32 %v600_v6, %v2910_v24 }
  0x3f   : > { %869 = vrot.lane.b32.xlu1 %v838_v18, %s2747_s27  ;;  %v667_v18 = vshrl.u32 %v2961_v51, 16  ;;  %v465_v36 = vsel %vm2984_vm9, 0, %v464_v13  ;;  %418 = vst [vmem:[#allocation2 + $0x18] sm:$0x1] %v417_v26  ;;  %415 = vst [vmem:[#allocation2 + $0x10] sm:$0x1] %v414_v29  ;;  %v609_v1 = vor.u32 %v607_v9, %v2923_v31  ;;  %v848_v3 = vor.u32 %v847_v57, %v639_v47 }
  0x40   : > { %466 = vst [vmem:[#allocation2 + $0x10] sm:$0x80] %v465_v36  ;;  %v420_v55 = vsel %vm2967_vm8, 0, %v419_v20  ;;  %v471_v61 = vsel %vm2984_vm9, 0, %v470_v40  ;;  %v670_v13 = vshll.u32 %v2961_v51, 16  ;;  %v674_v5 = vshrl.u32 %v3026_v43, 16 }
  0x41   : > { %778 = vrot.lane.b32.xlu0 %v2906_v22, %s2746_s25  ;;  %421 = vst [vmem:[#allocation2 + $0x20] sm:$0x1] %v420_v55  ;;  %472 = vst [vmem:[#allocation2 + $0x20] sm:$0x80] %v471_v61  ;;  %v2686_v20 = vld [vmem:[%s3588_s3 + $0x8] sm:$0x3f]   ;;  %v616_v9 = vor.u32 %v614_v16, %v2927_v32  ;;  %v623_v11 = vor.u32 %v621_v21, %v2935_v35 }
  0x42   : > { %v425_v26 = vld [vmem:[#allocation2 + $0x30] sm:$0x1]  ;;  %2627 = vmatprep.subr.msk.bf16.mxu1 %vm1054_vm5, %v2686_v20  ;;  %v1056_v24 = vsel %vm1054_vm5, %v2686_v20, 0  ;;  %v477_v31 = vsel %vm2984_vm9, 0, %v476_v2  ;;  %v3088_v16 = vrot.slane %v667_v18, 7  ;;  %v3107_v55 = vrot.slane %v670_v13, 1 }
  0x43   : > { %871 = vrot.lane.b32.xlu1 %v840_v28, %s2747_s27  ;;  %v468_v28 = vsel %vm2984_vm9, 0, %v467_v7  ;;  %v426_v23 = vsel %vm2967_vm8, 0, %v425_v26  ;;  %v2687_v47 = vld [vmem:[%s3588_s3 + $0x10] sm:$0x3f]   ;;  %2460 = vmatpush3.bf16.msra.mxu1 %v1056_v24  ;;  %478 = vst [vmem:[#allocation2 + $0x30] sm:$0x80] %v477_v31  ;;  %v630_v26 = vor.u32 %v628_v30, %v2942_v42 }
  0x44   : > { %469 = vst [vmem:[#allocation2 + $0x18] sm:$0x80] %v468_v28  ;;  %427 = vst [vmem:[#allocation2 + $0x30] sm:$0x1] %v426_v23  ;;  %v428_v57 = vld [vmem:[#allocation2 + $0x38] sm:$0x1] }
  0x45   : > { %780 = vrot.lane.b32.xlu0 %v2913_v25, %s2746_s25  ;;  %v720_v32 = vld [vmem:[#allocation2 + $0x8] sm:$0xff]  ;;  %v479_v28 = vld [vmem:[#allocation2 + $0x38] sm:$0x80]  ;;  %v3095_v17 = vsel %vm1054_vm5, %v2687_v47, 0  ;;  %v429_v21 = vsel %vm2967_vm8, 0, %v428_v57  ;;  %v3133_v24 = vld [vmem:[%s2859_s23 + $0x70] sm:$0xff]   ;;  %v852_v57 = vor.u32 %v3001_v8, %v653_v52 }
  0x46   : > { %v721_v29 = vsel %vm3064_vm10, %v595_v10, %v720_v32  ;;  %v480_v35 = vsel %vm2984_vm9, 0, %v479_v28  ;;  %430 = vst [vmem:[#allocation2 + $0x38] sm:$0x1] %v429_v21  ;;  %v485_v20 = vld [vmem:[#allocation2 + $0x48] sm:$0x80]  ;;  %v3137_v31 = vrot.slane %v674_v5, 7  ;;  %v637_v32 = vor.u32 %v635_v38, %v2953_v46 }
  0x47   : > { %873 = vrot.lane.b32.xlu1 %v842_v41, %s2747_s27  ;;  %v846_v41 = vor.u32 %v845_v50, %v632_v37  ;;  %v2685_v37 = vld [vmem:[%s3588_s3] sm:$0x3f]   ;;  %v422_v50 = vld [vmem:[#allocation2 + $0x28] sm:$0x1]  ;;  %v723_v40 = vld [vmem:[#allocation2 + $0x10] sm:$0xff]  ;;  %722 = vst [vmem:[#allocation2 + $0x8] sm:$0xff] %v721_v29  ;;  %v644_v21 = vor.u32 %v642_v39, %v2973_v56 }
  0x48   : > { %v423_v4 = vsel %vm2967_vm8, 0, %v422_v50  ;;  %2628 = vmatprep.subr.msk.bf16.mxu0 %vm1054_vm5, %v2685_v37  ;;  %v3050_v19 = vsel %vm1054_vm5, %v2685_v37, 0  ;;  %2629 = vmatprep.subr.msk.bf16.mxu1 %vm1054_vm5, %v2685_v37  ;;  %v724_v37 = vsel %vm3064_vm10, %v602_v12, %v723_v40  ;;  %v729_v50 = vld [vmem:[#allocation2 + $0x20] sm:$0xff]  ;;  %481 = vst [vmem:[#allocation2 + $0x38] sm:$0x80] %v480_v35  ;;  %v486_v2 = vsel %vm2984_vm9, 0, %v485_v20 }
  0x49   : > { %782 = vrot.lane.b32.xlu0 %v2917_v27, %s2746_s25  ;;  %424 = vst [vmem:[#allocation2 + $0x28] sm:$0x1] %v423_v4  ;;  %2494 = vmatpush3.bf16.msra.mxu0 %v3050_v19  ;;  %v482_v4 = vld [vmem:[#allocation2 + $0x40] sm:$0x80]  ;;  %725 = vst [vmem:[#allocation2 + $0x10] sm:$0xff] %v724_v37  ;;  %v3157_v25 = vld [vmem:[%s2859_s23 + $0x78] sm:$0xff]   ;;  %v658_v20 = vor.u32 %v656_v49, %v2995_v0  ;;  %v672_v49 = vor.u32 %v670_v13, %v3088_v16 }
  0x4a   : > { %2630 = vmatprep.subr.msk.bf16.mxu0 %vm1054_vm5, %v2687_v47  ;;  %v483_v10 = vsel %vm2984_vm9, 0, %v482_v4  ;;  %v434_v12 = vld [vmem:[#allocation2 + $0x48] sm:$0x1]  ;;  %487 = vst [vmem:[#allocation2 + $0x48] sm:$0x80] %v486_v2  ;;  %v688_v4 = vshrl.u32 %v3133_v24, 16  ;;  %v856_v13 = vor.u32 %v3107_v55, %v667_v18 }
  0x4b   : > { %875 = vrot.lane.b32.xlu1 %v844_v62, %s2747_s27  ;;  %v473_v62 = vld [vmem:[#allocation2 + $0x28] sm:$0x80]  ;;  %v726_v36 = vld [vmem:[#allocation2 + $0x18] sm:$0xff]  ;;  %484 = vst [vmem:[#allocation2 + $0x40] sm:$0x80] %v483_v10  ;;  %v435_v23 = vsel %vm2967_vm8, 0, %v434_v12 }
  0x4c   : > { %v474_v7 = vsel %vm2984_vm9, 0, %v473_v62  ;;  %v727_v61 = vsel %vm3064_vm10, %v609_v1, %v726_v36  ;;  %v431_v62 = vld [vmem:[#allocation2 + $0x40] sm:$0x1]  ;;  %v677_v1 = vshll.u32 %v3026_v43, 16  ;;  %436 = vst [vmem:[#allocation2 + $0x48] sm:$0x1] %v435_v23 }
  0x4d   : > { %784 = vrot.lane.b32.xlu0 %v2930_v33, %s2746_s25  ;;  %475 = vst [vmem:[#allocation2 + $0x28] sm:$0x80] %v474_v7  ;;  %728 = vst [vmem:[#allocation2 + $0x18] sm:$0xff] %v727_v61  ;;  %v432_v7 = vsel %vm2967_vm8, 0, %v431_v62  ;;  %v488_v42 = vld [vmem:[#allocation2 + $0x50] sm:$0x80]  ;;  %v651_v62 = vor.u32 %v649_v45, %v2979_v58 }
  0x4e   : > { %433 = vst [vmem:[#allocation2 + $0x40] sm:$0x1] %v432_v7  ;;  %v440_v47 = vld [vmem:[#allocation2 + $0x58] sm:$0x1]  ;;  %v491_v29 = vld [vmem:[#allocation2 + $0x58] sm:$0x80]  ;;  %v854_v7 = vor.u32 %v3011_v15, %v660_v59  ;;  %v679_v16 = vor.u32 %v677_v1, %v3137_v31 }
  0x4f   : > { %877 = vrot.lane.b32.xlu1 %v846_v41, %s2747_s27  ;;  %v850_v41 = vor.u32 %v2991_v63, %v646_v48  ;;  %v3116_v48 = vld [vmem:[%s2859_s23 + $0x68] sm:$0xff]   ;;  %v730_v63 = vsel %vm3064_vm10, %v616_v9, %v729_v50  ;;  %v437_v9 = vld [vmem:[#allocation2 + $0x50] sm:$0x1]  ;;  %v441_v28 = vsel %vm2967_vm8, 0, %v440_v47  ;;  %v443_v36 = vld [vmem:[#allocation2 + $0x60] sm:$0x1] }
  0x50   : > { %731 = vst [vmem:[#allocation2 + $0x20] sm:$0xff] %v730_v63  ;;  %v438_v30 = vsel %vm2967_vm8, 0, %v437_v9  ;;  %v681_v38 = vshrl.u32 %v3116_v48, 16  ;;  %v735_v46 = vld [vmem:[#allocation2 + $0x30] sm:$0xff]  ;;  %442 = vst [vmem:[#allocation2 + $0x58] sm:$0x1] %v441_v28 }
  0x51   : > { %786 = vrot.lane.b32.xlu0 %v2933_v34, %s2746_s25  ;;  %439 = vst [vmem:[#allocation2 + $0x50] sm:$0x1] %v438_v30  ;;  %v492_v52 = vsel %vm2984_vm9, 0, %v491_v29  ;;  %v444_v8 = vsel %vm2967_vm8, 0, %v443_v36  ;;  %v494_v40 = vld [vmem:[#allocation2 + $0x60] sm:$0x80]  ;;  %v665_v34 = vor.u32 %v663_v53, %v3007_v14 }
  0x52   : > { %v684_v35 = vshll.u32 %v3116_v48, 16  ;;  %493 = vst [vmem:[#allocation2 + $0x58] sm:$0x80] %v492_v52  ;;  %445 = vst [vmem:[#allocation2 + $0x60] sm:$0x1] %v444_v8  ;;  %v495_v61 = vsel %vm2984_vm9, 0, %v494_v40 }
  0x53   : > { %879 = vrot.lane.b32.xlu1 %v848_v3, %s2747_s27  ;;  %v446_v37 = vld [vmem:[#allocation2 + $0x68] sm:$0x1]  ;;  %v497_v50 = vld [vmem:[#allocation2 + $0x68] sm:$0x80]  ;;  %v738_v27 = vld [vmem:[#allocation2 + $0x38] sm:$0xff]  ;;  %v683_v33 = vrot.slane %v681_v38, 7 }
  0x54   : > { %v732_v3 = vld [vmem:[#allocation2 + $0x28] sm:$0xff]  ;;  %496 = vst [vmem:[#allocation2 + $0x60] sm:$0x80] %v495_v61  ;;  %v447_v39 = vsel %vm2967_vm8, 0, %v446_v37  ;;  %v498_v56 = vsel %vm2984_vm9, 0, %v497_v50  ;;  %v739_v45 = vsel %vm3064_vm10, %v637_v32, %v738_v27  ;;  %v695_v59 = vshrl.u32 %v3157_v25, 16 }
  0x55   : > { %788 = vrot.lane.b32.xlu0 %v2947_v44, %s2746_s25  ;;  %v733_v22 = vsel %vm3064_vm10, %v623_v11, %v732_v3  ;;  %v489_v11 = vsel %vm2984_vm9, 0, %v488_v42  ;;  %v449_v63 = vld [vmem:[#allocation2 + $0x70] sm:$0x1]  ;;  %448 = vst [vmem:[#allocation2 + $0x68] sm:$0x1] %v447_v39  ;;  %740 = vst [vmem:[#allocation2 + $0x38] sm:$0xff] %v739_v45  ;;  %v686_v55 = vor.u32 %v684_v35, %v683_v33 }
  0x56   : > { %734 = vst [vmem:[#allocation2 + $0x28] sm:$0xff] %v733_v22  ;;  %490 = vst [vmem:[#allocation2 + $0x50] sm:$0x80] %v489_v11  ;;  %v450_v58 = vsel %vm2967_vm8, 0, %v449_v63  ;;  %v500_v10 = vld [vmem:[#allocation2 + $0x70] sm:$0x80] }
  0x57   : > { %881 = vrot.lane.b32.xlu1 %v850_v41, %s2747_s27  ;;  %v736_v41 = vsel %vm3064_vm10, %v630_v26, %v735_v46  ;;  %499 = vst [vmem:[#allocation2 + $0x68] sm:$0x80] %v498_v56  ;;  %v452_v12 = vld [vmem:[#allocation2 + $0x78] sm:$0x1]  ;;  %v741_v15 = vld [vmem:[#allocation2 + $0x40] sm:$0xff]  ;;  %v501_v26 = vsel %vm2984_vm9, 0, %v500_v10 }
  0x58   : > { %737 = vst [vmem:[#allocation2 + $0x30] sm:$0xff] %v736_v41  ;;  %451 = vst [vmem:[#allocation2 + $0x70] sm:$0x1] %v450_v58  ;;  %v453_v3 = vsel %vm2967_vm8, 0, %v452_v12  ;;  %v503_v23 = vld [vmem:[#allocation2 + $0x78] sm:$0x80]  ;;  %v742_v0 = vsel %vm3064_vm10, %v644_v21, %v741_v15 }
  0x59   : > { %790 = vrot.lane.b32.xlu0 %v2961_v51, %s2746_s25  ;;  %v744_v2 = vld [vmem:[#allocation2 + $0x48] sm:$0xff]  ;;  %502 = vst [vmem:[#allocation2 + $0x70] sm:$0x80] %v501_v26  ;;  %454 = vst [vmem:[#allocation2 + $0x78] sm:$0x1] %v453_v3  ;;  %v504_v9 = vsel %vm2984_vm9, 0, %v503_v23 }
  0x5a   : > { %v455_v22 = vld [vmem:[#allocation2 + $0x80] sm:$0x1]  ;;  %v506_v30 = vld [vmem:[#allocation2 + $0x80] sm:$0x80]  ;;  %v690_v42 = vrot.slane %v688_v4, 7  ;;  %743 = vst [vmem:[#allocation2 + $0x40] sm:$0xff] %v742_v0  ;;  %v745_v44 = vsel %vm3064_vm10, %v651_v62, %v744_v2 }
  0x5b   : > { %883 = vrot.lane.b32.xlu1 %v852_v57, %s2747_s27  ;;  %505 = vst [vmem:[#allocation2 + $0x78] sm:$0x80] %v504_v9  ;;  %v456_v53 = vsel %vm2967_vm8, 0, %v455_v22  ;;  %v507_v14 = vsel %vm2984_vm9, 0, %v506_v30  ;;  %v857_v47 = vrot.slane %v677_v1, 1  ;;  %v697_v54 = vrot.slane %v695_v59, 7 }
  0x5c   : > { %746 = vst [vmem:[#allocation2 + $0x48] sm:$0xff] %v745_v44  ;;  %457 = vst [vmem:[#allocation2 + $0x80] sm:$0x1] %v456_v53  ;;  %v691_v51 = vshll.u32 %v3133_v24, 16  ;;  %v750_v18 = vld [vmem:[#allocation2 + $0x58] sm:$0xff]  ;;  %v698_v1 = vshll.u32 %v3157_v25, 16 }
  0x5d   : > { %792 = vrot.lane.b32.xlu0 %v3026_v43, %s2746_s25  ;;  %v747_v32 = vld [vmem:[#allocation2 + $0x50] sm:$0xff]  ;;  %508 = vst [vmem:[#allocation2 + $0x80] sm:$0x80] %v507_v14  ;;  %v751_v31 = vsel %vm3064_vm10, %v665_v34, %v750_v18  ;;  %v753_v57 = vld [vmem:[#allocation2 + $0x60] sm:$0xff]  ;;  %v858_v36 = vor.u32 %v857_v47, %v674_v5  ;;  %v859_v46 = vrot.slane %v684_v35, 1 }
  0x5e   : > { %v748_v60 = vsel %vm3064_vm10, %v658_v20, %v747_v32  ;;  %v693_v11 = vor.u32 %v691_v51, %v690_v42  ;;  %752 = vst [vmem:[#allocation2 + $0x58] sm:$0xff] %v751_v31  ;;  %v754_v28 = vsel %vm3064_vm10, %v672_v49, %v753_v57  ;;  %v756_v29 = vld [vmem:[#allocation2 + $0x68] sm:$0xff]  ;;  %v700_v52 = vor.u32 %v698_v1, %v697_v54 }
  0x5f   : > { %885 = vrot.lane.b32.xlu1 %v854_v7, %s2747_s27  ;;  %749 = vst [vmem:[#allocation2 + $0x50] sm:$0xff] %v748_v60  ;;  %755 = vst [vmem:[#allocation2 + $0x60] sm:$0xff] %v754_v28  ;;  %v757_v8 = vsel %vm3064_vm10, %v679_v16, %v756_v29  ;;  %v861_v40 = vrot.slane %v691_v51, 1  ;;  %v860_v35 = vor.u32 %v859_v46, %v681_v38  ;;  %v863_v37 = vrot.slane %v698_v1, 1 }
  0x60   : > { %758 = vst [vmem:[#allocation2 + $0x68] sm:$0xff] %v757_v8  ;;  %v759_v21 = vld [vmem:[#allocation2 + $0x70] sm:$0xff] }
  0x61   : > { %794 = vrot.lane.b32.xlu0 %v3116_v48, %s2746_s25  ;;  %v760_v41 = vsel %vm3064_vm10, %v686_v55, %v759_v21  ;;  %v862_v62 = vor.u32 %v861_v40, %v688_v4  ;;  %v864_v27 = vor.u32 %v863_v37, %v695_v59 }
  0x62   : > { %v762_v61 = vld [vmem:[#allocation2 + $0x78] sm:$0xff]  ;;  %761 = vst [vmem:[#allocation2 + $0x70] sm:$0xff] %v760_v41 }
  0x63   : > { %887 = vrot.lane.b32.xlu1 %v856_v13, %s2747_s27  ;;  %v763_v43 = vsel %vm3064_vm10, %v693_v11, %v762_v61 }
  0x64   : > { %v765_v5 = vld [vmem:[#allocation2 + $0x80] sm:$0xff]  ;;  %764 = vst [vmem:[#allocation2 + $0x78] sm:$0xff] %v763_v43 }
  0x65   : > { %796 = vrot.lane.b32.xlu0 %v3133_v24, %s2746_s25  ;;  %v766_v50 = vsel %vm3064_vm10, %v700_v52, %v765_v5 }
  0x66   : > { %767 = vst [vmem:[#allocation2 + $0x80] sm:$0xff] %v766_v50 }
  0x67   : > { %889 = vrot.lane.b32.xlu1 %v858_v36, %s2747_s27 }
  0x69   : > { %798 = vrot.lane.b32.xlu0 %v3157_v25, %s2746_s25 }
  0x6b   : > { %891 = vrot.lane.b32.xlu1 %v860_v35, %s2747_s27 }
  0x6d   : > { %893 = vrot.lane.b32.xlu0 %v862_v62, %s2747_s27 }
  0x6f   : > { %895 = vrot.lane.b32.xlu1 %v864_v27, %s2747_s27 }
  0xa3   : > { %v769_v48 = vpop.permute.xlu0 %768  ;;  %v773_v6 = vpop.permute.xlu1 %772 }
  0xa4   : > { %817 = vst.msk [vmem:[#allocation2 + $0x8] sm:$0xff] %vm816_vm11, %v769_v48  ;;  %819 = vst.msk [vmem:[#allocation2 + $0x18] sm:$0xff] %vm816_vm11, %v773_v6  ;;  %v1452_v6 = vld [vmem:[#allocation2 + $0x88] sm:$0xff] }
  0xa7   : > { %v771_v24 = vpop.permute.xlu0 %770 }
  0xa8   : > { %818 = vst.msk [vmem:[#allocation2 + $0x10] sm:$0xff] %vm816_vm11, %v771_v24 }
  0xa9   : > { %v866_v25 = vpop.permute.xlu1 %865 }
  0xab   : > { %v916_v4 = vld [vmem:[#allocation2 + $0x8] sm:$0xff]  ;;  %v775_v39 = vpop.permute.xlu0 %774  ;;  %v922_v58 = vld [vmem:[#allocation2 + $0x18] sm:$0xff] }
  0xac   : > { %v917_v56 = vsel %vm3271_vm14, %v866_v25, %v916_v4  ;;  %820 = vst.msk [vmem:[#allocation2 + $0x20] sm:$0xff] %vm816_vm11, %v775_v39 }
  0xad   : > { %918 = vst [vmem:[#allocation2 + $0x8] sm:$0xff] %v917_v56  ;;  %2461 = vmatprep.mubr.msk.bf16.mxu1 %vm402_vm0, %v917_v56  ;;  %2496 = vmatmul.mubr.msk.bf16.vlgmr.msra.gmra.mrb[0].mxu0 %vm402_vm0, %v917_v56  ;;  %v868_v63 = vpop.permute.xlu1 %867 }
  0xae   : > { %2528 = vmatpush3.bf16.msra.mxu0 %v3095_v17 }
  0xaf   : > { %v919_v7 = vld [vmem:[#allocation2 + $0x10] sm:$0xff]  ;;  %v777_v33 = vpop.permute.xlu0 %776 }
  0xb0   : > { %v920_v45 = vsel %vm3271_vm14, %v868_v63, %v919_v7  ;;  %821 = vst.msk [vmem:[#allocation2 + $0x28] sm:$0xff] %vm816_vm11, %v777_v33 }
  0xb1   : > { %921 = vst [vmem:[#allocation2 + $0x10] sm:$0xff] %v920_v45  ;;  %2462 = vmatmul.mubr.msk.bf16.vlgmr.msra.gmra.mrb[0].mxu1 %vm402_vm0, %v920_v45  ;;  %2499 = vmatprep.mubr.msk.bf16.mxu0 %vm402_vm0, %v920_v45  ;;  %v870_v10 = vpop.permute.xlu1 %869 }
  0xb2   : > { %2562 = vmatpush3.bf16.msra.mxu1 %v3050_v19  ;;  %v923_v12 = vsel %vm3271_vm14, %v870_v10, %v922_v58 }
  0xb3   : > { %v779_v17 = vpop.permute.xlu0 %778  ;;  %924 = vst [vmem:[#allocation2 + $0x18] sm:$0xff] %v923_v12  ;;  %v925_v20 = vld [vmem:[#allocation2 + $0x20] sm:$0xff]  ;;  %2465 = vmatprep.mubr.msk.bf16.mxu1 %vm402_vm0, %v923_v12 }
  0xb4   : > { %822 = vst.msk [vmem:[#allocation2 + $0x30] sm:$0xff] %vm816_vm11, %v779_v17 }
  0xb5   : > { %2500 = vmatmul.mubr.msk.bf16.gmra.mrb[4].mxu0 %vm402_vm0, %v923_v12  ;;  %v872_v59 = vpop.permute.xlu1 %871 }
  0xb6   : > { %v926_v15 = vsel %vm3271_vm14, %v872_v59, %v925_v20 }
  0xb7   : > { %v781_v26 = vpop.permute.xlu0 %780  ;;  %927 = vst [vmem:[#allocation2 + $0x20] sm:$0xff] %v926_v15  ;;  %v928_v19 = vld [vmem:[#allocation2 + $0x28] sm:$0xff]  ;;  %2503 = vmatprep.mubr.msk.bf16.mxu0 %vm402_vm0, %v926_v15 }
  0xb8   : > { %823 = vst.msk [vmem:[#allocation2 + $0x38] sm:$0xff] %vm816_vm11, %v781_v26  ;;  %v3391_v26 = vld [vmem:[#allocation3] ss:$0 sm:$0xff] }
  0xb9   : > { %2466 = vmatmul.mubr.msk.bf16.gmra.mrb[4].mxu1 %vm402_vm0, %v926_v15  ;;  %v874_v3 = vpop.permute.xlu1 %873 }
  0xba   : > { %v929_v23 = vsel %vm3271_vm14, %v874_v3, %v928_v19 }
  0xbb   : > { %v783_v34 = vpop.permute.xlu0 %782  ;;  %930 = vst [vmem:[#allocation2 + $0x28] sm:$0xff] %v929_v23  ;;  %v931_v49 = vld [vmem:[#allocation2 + $0x30] sm:$0xff]  ;;  %2469 = vmatprep.mubr.msk.bf16.mxu1 %vm402_vm0, %v929_v23 }
  0xbc   : > { %824 = vst.msk [vmem:[#allocation2 + $0x40] sm:$0xff] %vm816_vm11, %v783_v34 }
  0xbd   : > { %2504 = vmatmul.mubr.msk.bf16.gmra.mrb[8].mxu0 %vm402_vm0, %v929_v23  ;;  %v876_v0 = vpop.permute.xlu1 %875 }
  0xbe   : > { %v932_v2 = vsel %vm3271_vm14, %v876_v0, %v931_v49 }
  0xbf   : > { %v785_v9 = vpop.permute.xlu0 %784  ;;  %933 = vst [vmem:[#allocation2 + $0x30] sm:$0xff] %v932_v2  ;;  %v934_v22 = vld [vmem:[#allocation2 + $0x38] sm:$0xff]  ;;  %2507 = vmatprep.mubr.msk.bf16.mxu0 %vm402_vm0, %v932_v2 }
  0xc0   : > { %825 = vst.msk [vmem:[#allocation2 + $0x48] sm:$0xff] %vm816_vm11, %v785_v9 }
  0xc1   : > { %2470 = vmatmul.mubr.msk.bf16.gmra.mrb[8].mxu1 %vm402_vm0, %v932_v2  ;;  %v878_v30 = vpop.permute.xlu1 %877 }
  0xc2   : > { %v935_v42 = vsel %vm3271_vm14, %v878_v30, %v934_v22 }
  0xc3   : > { %v787_v44 = vpop.permute.xlu0 %786  ;;  %936 = vst [vmem:[#allocation2 + $0x38] sm:$0xff] %v935_v42  ;;  %v937_v53 = vld [vmem:[#allocation2 + $0x40] sm:$0xff]  ;;  %2473 = vmatprep.mubr.msk.bf16.mxu1 %vm402_vm0, %v935_v42 }
  0xc4   : > { %826 = vst.msk [vmem:[#allocation2 + $0x50] sm:$0xff] %vm816_vm11, %v787_v44 }
  0xc5   : > { %2508 = vmatmul.mubr.msk.bf16.gmra.mrb[12].mxu0 %vm402_vm0, %v935_v42  ;;  %v880_v14 = vpop.permute.xlu1 %879 }
  0xc6   : > { %2529 = vmatprep.mubr.msk.bf16.mxu0 %vm402_vm0, %v920_v45  ;;  %v3315_v13 = vsel %vm3271_vm14, %v880_v14, %v937_v53 }
  0xc7   : > { %v789_v16 = vpop.permute.xlu0 %788  ;;  %939 = vst [vmem:[#allocation2 + $0x40] sm:$0xff] %v3315_v13  ;;  %v940_v47 = vld [vmem:[#allocation2 + $0x48] sm:$0xff] }
  0xc8   : > { %827 = vst.msk [vmem:[#allocation2 + $0x58] sm:$0xff] %vm816_vm11, %v789_v16 }
  0xc9   : > { %2474 = vmatmul.mubr.msk.bf16.gmra.mrb[12].mxu1 %vm402_vm0, %v3315_v13  ;;  %v882_v54 = vpop.permute.xlu1 %881 }
  0xca   : > { %v941_v32 = vsel %vm3271_vm14, %v882_v54, %v940_v47 }
  0xcb   : > { %v791_v51 = vpop.permute.xlu0 %790  ;;  %942 = vst [vmem:[#allocation2 + $0x48] sm:$0xff] %v941_v32  ;;  %v943_v60 = vld [vmem:[#allocation2 + $0x50] sm:$0xff]  ;;  %2477 = vmatprep.mubr.msk.bf16.mxu1 %vm402_vm0, %v941_v32 }
  0xcc   : > { %828 = vst.msk [vmem:[#allocation2 + $0x60] sm:$0xff] %vm816_vm11, %v791_v51 }
  0xcd   : > { %2530 = vmatmul.mubr.msk.bf16.vlgmr.msra.gmra.mrb[0].mxu0 %vm402_vm0, %v923_v12  ;;  %v884_v18 = vpop.permute.xlu1 %883 }
  0xce   : > { %2533 = vmatprep.mubr.msk.bf16.mxu0 %vm402_vm0, %v926_v15  ;;  %v944_v55 = vsel %vm3271_vm14, %v884_v18, %v943_v60 }
  0xcf   : > { %v793_v1 = vpop.permute.xlu0 %792  ;;  %945 = vst [vmem:[#allocation2 + $0x50] sm:$0xff] %v944_v55  ;;  %v946_v31 = vld [vmem:[#allocation2 + $0x58] sm:$0xff] }
  0xd0   : > { %829 = vst.msk [vmem:[#allocation2 + $0x68] sm:$0xff] %vm816_vm11, %v793_v1 }
  0xd1   : > { %2478 = vmatmul.mubr.msk.bf16.gmra.mrb[16].mxu1 %vm402_vm0, %v944_v55  ;;  %v886_v57 = vpop.permute.xlu1 %885 }
  0xd2   : > { %v947_v11 = vsel %vm3271_vm14, %v886_v57, %v946_v31 }
  0xd3   : > { %v795_v28 = vpop.permute.xlu0 %794  ;;  %948 = vst [vmem:[#allocation2 + $0x58] sm:$0xff] %v947_v11  ;;  %v949_v29 = vld [vmem:[#allocation2 + $0x60] sm:$0xff]  ;;  %2481 = vmatprep.mubr.msk.bf16.mxu1 %vm402_vm0, %v947_v11 }
  0xd4   : > { %830 = vst.msk [vmem:[#allocation2 + $0x70] sm:$0xff] %vm816_vm11, %v795_v28 }
  0xd5   : > { %2534 = vmatmul.mubr.msk.bf16.gmra.mrb[4].mxu0 %vm402_vm0, %v929_v23  ;;  %v888_v36 = vpop.permute.xlu1 %887 }
  0xd6   : > { %2537 = vmatprep.mubr.msk.bf16.mxu0 %vm402_vm0, %v932_v2  ;;  %v950_v46 = vsel %vm3271_vm14, %v888_v36, %v949_v29 }
  0xd7   : > { %v797_v52 = vpop.permute.xlu0 %796  ;;  %951 = vst [vmem:[#allocation2 + $0x60] sm:$0xff] %v950_v46  ;;  %v952_v8 = vld [vmem:[#allocation2 + $0x68] sm:$0xff] }
  0xd8   : > { %831 = vst.msk [vmem:[#allocation2 + $0x78] sm:$0xff] %vm816_vm11, %v797_v52 }
  0xd9   : > { %2482 = vmatmul.mubr.msk.bf16.gmra.mrb[20].mxu1 %vm402_vm0, %v950_v46  ;;  %v890_v40 = vpop.permute.xlu1 %889 }
  0xda   : > { %v953_v21 = vsel %vm3271_vm14, %v890_v40, %v952_v8 }
  0xdb   : > { %v799_v41 = vpop.permute.xlu0 %798  ;;  %954 = vst [vmem:[#allocation2 + $0x68] sm:$0xff] %v953_v21  ;;  %v955_v61 = vld [vmem:[#allocation2 + $0x70] sm:$0xff]  ;;  %2485 = vmatprep.mubr.msk.bf16.mxu1 %vm402_vm0, %v953_v21 }
  0xdc   : > { %832 = vst.msk [vmem:[#allocation2 + $0x80] sm:$0xff] %vm816_vm11, %v799_v41 }
  0xdd   : > { %2538 = vmatmul.mubr.msk.bf16.gmra.mrb[8].mxu0 %vm402_vm0, %v935_v42  ;;  %v892_v43 = vpop.permute.xlu1 %891 }
  0xde   : > { %2541 = vmatprep.mubr.msk.bf16.mxu0 %vm402_vm0, %v3315_v13  ;;  %v956_v5 = vsel %vm3271_vm14, %v892_v43, %v955_v61 }
  0xdf   : > { %v958_v35 = vld [vmem:[#allocation2 + $0x78] sm:$0xff]  ;;  %v894_v37 = vpop.permute.xlu0 %893  ;;  %957 = vst [vmem:[#allocation2 + $0x70] sm:$0xff] %v956_v5 }
  0xe0   : > { %v959_v50 = vsel %vm3271_vm14, %v894_v37, %v958_v35 }
  0xe1   : > { %960 = vst [vmem:[#allocation2 + $0x78] sm:$0xff] %v959_v50  ;;  %2486 = vmatmul.mubr.msk.bf16.gmra.mrb[24].mxu1 %vm402_vm0, %v956_v5  ;;  %v896_v62 = vpop.permute.xlu1 %895 }
  0xe2   : > { %2489 = vmatprep.mubr.msk.bf16.mxu1 %vm402_vm0, %v959_v50 }
  0xe3   : > { %v961_v27 = vld [vmem:[#allocation2 + $0x80] sm:$0xff] }
  0xe4   : > { %v962_v48 = vsel %vm3271_vm14, %v896_v62, %v961_v27 }
  0xe5   : > { %963 = vst [vmem:[#allocation2 + $0x80] sm:$0xff] %v962_v48  ;;  %2542 = vmatmul.mubr.msk.bf16.gmra.mrb[12].mxu0 %vm402_vm0, %v941_v32 }
  0xe6   : > { %2545 = vmatprep.mubr.msk.bf16.mxu0 %vm402_vm0, %v944_v55 }
  0xe9   : > { %2490 = vmatmul.mubr.msk.bf16.gmra.mrb[28].mxu1 %vm402_vm0, %v962_v48 }
  0xea   : > { %2511 = vmatprep.mubr.msk.bf16.mxu1 %vm402_vm0, %v3315_v13 }
  0xed   : > { %2546 = vmatmul.mubr.msk.bf16.gmra.mrb[16].mxu0 %vm402_vm0, %v947_v11 }
  0xee   : > { %2549 = vmatprep.mubr.msk.bf16.mxu0 %vm402_vm0, %v950_v46 }
  0xf1   : > { %2512 = vmatmul.mubr.msk.bf16.vlgmr.msra.gmra.mrb[16].mxu1 %vm402_vm0, %v941_v32 }
  0xf2   : > { %2515 = vmatprep.mubr.msk.bf16.mxu1 %vm402_vm0, %v944_v55 }
  0xf5   : > { %2550 = vmatmul.mubr.msk.bf16.gmra.mrb[20].mxu0 %vm402_vm0, %v953_v21 }
  0xf6   : > { %2553 = vmatprep.mubr.msk.bf16.mxu0 %vm402_vm0, %v956_v5 }
  0xf9   : > { %2516 = vmatmul.mubr.msk.bf16.gmra.mrb[20].mxu1 %vm402_vm0, %v947_v11 }
  0xfa   : > { %2519 = vmatprep.mubr.msk.bf16.mxu1 %vm402_vm0, %v950_v46 }
  0xfd   : > { %2554 = vmatmul.mubr.msk.bf16.gmra.mrb[24].mxu0 %vm402_vm0, %v959_v50 }
  0xfe   : > { %2557 = vmatprep.mubr.msk.bf16.mxu0 %vm402_vm0, %v962_v48 }
 0x101   : > { %2520 = vmatmul.mubr.msk.bf16.gmra.mrb[24].mxu1 %vm402_vm0, %v953_v21 }
 0x102   : > { %2523 = vmatprep.mubr.msk.bf16.mxu1 %vm402_vm0, %v956_v5 }
 0x105   : > { %2558 = vmatmul.mubr.msk.bf16.gmra.mrb[28].mxu0 %vm402_vm0, %v1452_v6 }
 0x109   : > { %2524 = vmatmul.mubr.msk.bf16.gmra.mrb[28].mxu1 %vm402_vm0, %v959_v50  ;;  %vm1744_vm0 = vcmask 523264  }
 0x184   : > { %v2463_v24 = vpop.f32.mrb[0].mxu1 }
 0x185   : > { %v1092_v38 = vpop.f32.mrb[1].mxu1 }
 0x186   : > { %v2464_v25 = vpop.f32.mrb[2].mxu1 }
 0x187   : > { %v1095_v4 = vpop.f32.mrb[3].mxu1 }
 0x18c   : > { %v2467_v39 = vpop.f32.mrb[4].mxu1 }
 0x18d   : > { %v1108_v56 = vpop.f32.mrb[5].mxu1 }
 0x18e   : > { %v2468_v63 = vpop.f32.mrb[6].mxu1 }
 0x18f   : > { %v1111_v7 = vpop.f32.mrb[7].mxu1 }
 0x194   : > { %v3375_v33 = vpop.f32.mrb[8].mxu1 }
 0x195   : > { %v3377_v45 = vpop.f32.mrb[9].mxu1 }
 0x196   : > { %v3379_v58 = vpop.f32.mrb[10].mxu1 }
 0x197   : > { %v3381_v10 = vpop.f32.mrb[11].mxu1 }
 0x19c   : > { %v3383_v12 = vpop.f32.mrb[12].mxu1 }
 0x19d   : > { %v3385_v17 = vpop.f32.mrb[13].mxu1 }
 0x19e   : > { %v3387_v20 = vpop.f32.mrb[14].mxu1 }
 0x19f   : > { %v3389_v59 = vpop.f32.mrb[15].mxu1 }
 0x1a0   : > { %v2531_v15 = vpop.f32.mrb[0].mxu0 }
 0x1a1   : > { %v2563_v19 = vadd.f32 %v2531_v15, %v2463_v24  ;;  %v1546_v3 = vpop.f32.mrb[1].mxu0 }
 0x1a2   : > { %v2564_v23 = vadd.f32 %v1546_v3, %v1092_v38  ;;  %v2532_v34 = vpop.f32.mrb[2].mxu0 }
 0x1a3   : > { %v1714_v49 = vadd.f32 %v2563_v19, %v3391_v26  ;;  %v2565_v0 = vadd.f32 %v2532_v34, %v2464_v25  ;;  %v1549_v2 = vpop.f32.mrb[3].mxu0 }
 0x1a4   : > { %v1712_v9 = vadd.f32 %v2564_v23, %v3391_v26  ;;  %v2566_v22 = vadd.f32 %v1549_v2, %v1095_v4 }
 0x1a5   : > { %v2378_v30 = vpack.c.bf16 %v1714_v49, %v1714_v49  ;;  %v1715_v42 = vadd.f32 %v2565_v0, %v3391_v26  ;;  %v1818_v13 = vmul.f32 %v1714_v49, %v1714_v49  ;;  %v1748_v57 = vsel %vm1744_vm0, %v1714_v49, 0.0 }
 0x1a6   : > { %v1816_v44 = vmul.f32 %v1712_v9, %v1712_v9  ;;  %v2376_v53 = vpack.c.bf16 %v1712_v9, %v1712_v9  ;;  %v1713_v14 = vadd.f32 %v2566_v22, %v3391_v26  ;;  %v1745_v47 = vsel %vm1744_vm0, %v1712_v9, 0.0 }
 0x1a7   : > { %2049 = vst.msk [vmem:[%s3399_s13 + $0x8] sm:$0xf] %vm2046_vm15, %v2378_v30  ;;  %v2379_v16 = vpack.c.bf16 %v1715_v42, %v1715_v42  ;;  %v1819_v18 = vmul.f32 %v1715_v42, %v1715_v42  ;;  %v1851_v41 = vsel %vm1744_vm0, %v1818_v13, 0.0  ;;  %v1750_v5 = vsel %vm1744_vm0, %v1715_v42, 0.0 }
 0x1a8   : > { %2047 = vst.msk [vmem:[%s3399_s13] sm:$0xf] %vm2046_vm15, %v2376_v53  ;;  %v1746_v54 = vsel %vm1744_vm0, %v1713_v14, 0.0  ;;  %v1817_v32 = vmul.f32 %v1713_v14, %v1713_v14  ;;  %v2377_v51 = vpack.c.bf16 %v1713_v14, %v1713_v14  ;;  %v2535_v60 = vpop.f32.mrb[4].mxu0  ;;  %v1848_v11 = vsel %vm1744_vm0, %v1816_v44, 0.0 }
 0x1a9   : > { %2050 = vst.msk [vmem:[%s3399_s13 + $0xc] sm:$0xf] %vm2046_vm15, %v2379_v16  ;;  %v1747_v55 = vadd.f32 %v1746_v54, %v1745_v47  ;;  %v2567_v1 = vadd.f32 %v2535_v60, %v2467_v39  ;;  %v1562_v31 = vpop.f32.mrb[5].mxu0  ;;  %v1853_v35 = vsel %vm1744_vm0, %v1819_v18, 0.0 }
 0x1aa   : > { %v1849_v28 = vsel %vm1744_vm0, %v1817_v32, 0.0  ;;  %2048 = vst.msk [vmem:[%s3399_s13 + $0x4] sm:$0xf] %vm2046_vm15, %v2377_v51  ;;  %v2568_v29 = vadd.f32 %v1562_v31, %v1108_v56  ;;  %v2536_v36 = vpop.f32.mrb[6].mxu0 }
 0x1ab   : > { %v1749_v46 = vadd.f32 %v1748_v57, %v1747_v55  ;;  %v1850_v52 = vadd.f32 %v1849_v28, %v1848_v11  ;;  %v1718_v8 = vadd.f32 %v2567_v1, %v3391_v26  ;;  %v2569_v40 = vadd.f32 %v2536_v36, %v2468_v63  ;;  %v1565_v21 = vpop.f32.mrb[7].mxu0 }
 0x1ac   : > { %v1716_v61 = vadd.f32 %v2568_v29, %v3391_v26  ;;  %v2570_v43 = vadd.f32 %v1565_v21, %v1111_v7 }
 0x1ad   : > { %v1852_v37 = vadd.f32 %v1851_v41, %v1850_v52  ;;  %v2382_v50 = vpack.c.bf16 %v1718_v8, %v1718_v8  ;;  %v1751_v62 = vadd.f32 %v1750_v5, %v1749_v46  ;;  %v1719_v38 = vadd.f32 %v2569_v40, %v3391_v26 }
 0x1ae   : > { %v1752_v27 = vsel %vm1744_vm0, %v1716_v61, 0.0  ;;  %v1820_v48 = vmul.f32 %v1716_v61, %v1716_v61  ;;  %v2380_v6 = vpack.c.bf16 %v1716_v61, %v1716_v61  ;;  %v1717_v25 = vadd.f32 %v2570_v43, %v3391_v26 }
 0x1af   : > { %2053 = vst.msk [vmem:[%s3399_s13 + $0x18] sm:$0xf] %vm2046_vm15, %v2382_v50  ;;  %v1854_v24 = vadd.f32 %v1853_v35, %v1852_v37  ;;  %v1753_v4 = vadd.f32 %v1752_v27, %v1751_v62  ;;  %v1822_v63 = vmul.f32 %v1718_v8, %v1718_v8  ;;  %v2383_v15 = vpack.c.bf16 %v1719_v38, %v1719_v38 }
 0x1b0   : > { %v1855_v39 = vsel %vm1744_vm0, %v1820_v48, 0.0  ;;  %2051 = vst.msk [vmem:[%s3399_s13 + $0x10] sm:$0xf] %vm2046_vm15, %v2380_v6  ;;  %v2539_v56 = vpop.f32.mrb[8].mxu0  ;;  %v1754_v3 = vsel %vm1744_vm0, %v1717_v25, 0.0  ;;  %v1821_v23 = vmul.f32 %v1717_v25, %v1717_v25  ;;  %v2381_v34 = vpack.c.bf16 %v1717_v25, %v1717_v25 }
 0x1b1   : > { %v1856_v7 = vadd.f32 %v1855_v39, %v1854_v24  ;;  %v1578_v19 = vpop.f32.mrb[9].mxu0  ;;  %v2571_v49 = vadd.f32 %v2539_v56, %v3375_v33  ;;  %v1756_v2 = vsel %vm1744_vm0, %v1718_v8, 0.0  ;;  %2054 = vst.msk [vmem:[%s3399_s13 + $0x1c] sm:$0xf] %vm2046_vm15, %v2383_v15  ;;  %v1755_v9 = vadd.f32 %v1754_v3, %v1753_v4 }
 0x1b2   : > { %v2540_v0 = vpop.f32.mrb[10].mxu0  ;;  %v2572_v22 = vadd.f32 %v1578_v19, %v3377_v45  ;;  %v1823_v44 = vmul.f32 %v1719_v38, %v1719_v38  ;;  %v1857_v53 = vsel %vm1744_vm0, %v1821_v23, 0.0  ;;  %2052 = vst.msk [vmem:[%s3399_s13 + $0x14] sm:$0xf] %vm2046_vm15, %v2381_v34  ;;  %v1859_v45 = vsel %vm1744_vm0, %v1822_v63, 0.0 }
 0x1b3   : > { %v2573_v30 = vadd.f32 %v2540_v0, %v3379_v58  ;;  %v1581_v42 = vpop.f32.mrb[11].mxu0  ;;  %v1722_v14 = vadd.f32 %v2571_v49, %v3391_v26  ;;  %v1757_v13 = vadd.f32 %v1756_v2, %v1755_v9  ;;  %v1858_v16 = vadd.f32 %v1857_v53, %v1856_v7 }
 0x1b4   : > { %v2574_v33 = vadd.f32 %v1581_v42, %v3381_v10  ;;  %v1720_v47 = vadd.f32 %v2572_v22, %v3391_v26  ;;  %v1758_v58 = vsel %vm1744_vm0, %v1719_v38, 0.0  ;;  %v1861_v10 = vsel %vm1744_vm0, %v1823_v44, 0.0 }
 0x1b5   : > { %v1723_v54 = vadd.f32 %v2573_v30, %v3391_v26  ;;  %v2386_v32 = vpack.c.bf16 %v1722_v14, %v1722_v14  ;;  %v1860_v60 = vadd.f32 %v1859_v45, %v1858_v16  ;;  %v1759_v18 = vadd.f32 %v1758_v58, %v1757_v13 }
 0x1b6   : > { %v1721_v51 = vadd.f32 %v2574_v33, %v3391_v26  ;;  %v1760_v55 = vsel %vm1744_vm0, %v1720_v47, 0.0  ;;  %v1824_v1 = vmul.f32 %v1720_v47, %v1720_v47  ;;  %v1826_v31 = vmul.f32 %v1722_v14, %v1722_v14 }
 0x1b7   : > { %2057 = vst.msk [vmem:[%s3399_s13 + $0x28] sm:$0xf] %vm2046_vm15, %v2386_v32  ;;  %v2384_v57 = vpack.c.bf16 %v1720_v47, %v1720_v47  ;;  %v1761_v28 = vadd.f32 %v1760_v55, %v1759_v18  ;;  %v1862_v29 = vadd.f32 %v1861_v10, %v1860_v60  ;;  %v2387_v46 = vpack.c.bf16 %v1723_v54, %v1723_v54 }
 0x1b8   : > { %v2543_v11 = vpop.f32.mrb[12].mxu0  ;;  %v1863_v36 = vsel %vm1744_vm0, %v1824_v1, 0.0  ;;  %v1827_v8 = vmul.f32 %v1723_v54, %v1723_v54  ;;  %v1762_v40 = vsel %vm1744_vm0, %v1721_v51, 0.0  ;;  %v1825_v21 = vmul.f32 %v1721_v51, %v1721_v51 }
 0x1b9   : > { %v1594_v52 = vpop.f32.mrb[13].mxu0  ;;  %2055 = vst.msk [vmem:[%s3399_s13 + $0x20] sm:$0xf] %vm2046_vm15, %v2384_v57  ;;  %v2385_v41 = vpack.c.bf16 %v1721_v51, %v1721_v51  ;;  %v1864_v43 = vadd.f32 %v1863_v36, %v1862_v29  ;;  %2058 = vst.msk [vmem:[%s3399_s13 + $0x2c] sm:$0xf] %vm2046_vm15, %v2387_v46  ;;  %v1763_v5 = vadd.f32 %v1762_v40, %v1761_v28  ;;  %v1764_v62 = vsel %vm1744_vm0, %v1722_v14, 0.0 }
 0x1ba   : > { %v2544_v61 = vpop.f32.mrb[14].mxu0  ;;  %v2575_v35 = vadd.f32 %v2543_v11, %v3383_v12  ;;  %v2576_v37 = vadd.f32 %v1594_v52, %v3385_v17  ;;  %v1865_v27 = vsel %vm1744_vm0, %v1825_v21, 0.0  ;;  %v1867_v17 = vsel %vm1744_vm0, %v1826_v31, 0.0 }
 0x1bb   : > { %v1597_v50 = vpop.f32.mrb[15].mxu0  ;;  %2056 = vst.msk [vmem:[%s3399_s13 + $0x24] sm:$0xf] %vm2046_vm15, %v2385_v41  ;;  %v2577_v48 = vadd.f32 %v2544_v61, %v3387_v20  ;;  %v1765_v24 = vadd.f32 %v1764_v62, %v1763_v5  ;;  %v1866_v38 = vadd.f32 %v1865_v27, %v1864_v43  ;;  %v1766_v56 = vsel %vm1744_vm0, %v1723_v54, 0.0 }
 0x1bc   : > { %v2578_v6 = vadd.f32 %v1597_v50, %v3389_v59  ;;  %v1726_v25 = vadd.f32 %v2575_v35, %v3391_v26  ;;  %v1724_v12 = vadd.f32 %v2576_v37, %v3391_v26  ;;  %v1869_v20 = vsel %vm1744_vm0, %v1827_v8, 0.0 }
 0x1bd   : > { %v1727_v4 = vadd.f32 %v2577_v48, %v3391_v26  ;;  %v1868_v63 = vadd.f32 %v1867_v17, %v1866_v38  ;;  %v1767_v7 = vadd.f32 %v1766_v56, %v1765_v24 }
 0x1be   : > { %v1725_v39 = vadd.f32 %v2578_v6, %v3391_v26  ;;  %v2390_v59 = vpack.c.bf16 %v1726_v25, %v1726_v25  ;;  %v1768_v15 = vsel %vm1744_vm0, %v1724_v12, 0.0  ;;  %v1828_v19 = vmul.f32 %v1724_v12, %v1724_v12 }
 0x1bf   : > { %v2388_v3 = vpack.c.bf16 %v1724_v12, %v1724_v12  ;;  %v1870_v34 = vadd.f32 %v1869_v20, %v1868_v63  ;;  %v1769_v0 = vadd.f32 %v1768_v15, %v1767_v7  ;;  %v2391_v9 = vpack.c.bf16 %v1727_v4, %v1727_v4 }
 0x1c0   : > { %v2547_v23 = vpop.f32.mrb[16].mxu0  ;;  %2061 = vst.msk [vmem:[%s3399_s13 + $0x38] sm:$0xf] %vm2046_vm15, %v2390_v59  ;;  %v1871_v2 = vsel %vm1744_vm0, %v1828_v19, 0.0  ;;  %v1770_v22 = vsel %vm1744_vm0, %v1725_v39, 0.0  ;;  %v1830_v42 = vmul.f32 %v1726_v25, %v1726_v25  ;;  %v1829_v53 = vmul.f32 %v1725_v39, %v1725_v39 }
 0x1c1   : > { %v1610_v49 = vpop.f32.mrb[17].mxu0  ;;  %2059 = vst.msk [vmem:[%s3399_s13 + $0x30] sm:$0xf] %vm2046_vm15, %v2388_v3  ;;  %v1872_v44 = vadd.f32 %v1871_v2, %v1870_v34  ;;  %v2389_v14 = vpack.c.bf16 %v1725_v39, %v1725_v39  ;;  %2062 = vst.msk [vmem:[%s3399_s13 + $0x3c] sm:$0xf] %vm2046_vm15, %v2391_v9  ;;  %v1771_v13 = vadd.f32 %v1770_v22, %v1769_v0  ;;  %v1772_v47 = vsel %vm1744_vm0, %v1726_v25, 0.0 }
 0x1c2   : > { %v2548_v30 = vpop.f32.mrb[18].mxu0  ;;  %v1831_v54 = vmul.f32 %v1727_v4, %v1727_v4  ;;  %v1873_v45 = vsel %vm1744_vm0, %v1829_v53, 0.0  ;;  %v1875_v1 = vsel %vm1744_vm0, %v1830_v42, 0.0  ;;  %v1774_v10 = vsel %vm1744_vm0, %v1727_v4, 0.0 }
 0x1c3   : > { %v1613_v33 = vpop.f32.mrb[19].mxu0  ;;  %2060 = vst.msk [vmem:[%s3399_s13 + $0x34] sm:$0xf] %vm2046_vm15, %v2389_v14  ;;  %v1773_v51 = vadd.f32 %v1772_v47, %v1771_v13  ;;  %v1874_v60 = vadd.f32 %v1873_v45, %v1872_v44 }
 0x1c4   : > { %v2513_v16 = vpop.f32.mrb[16].mxu1  ;;  %v1877_v8 = vsel %vm1744_vm0, %v1831_v54, 0.0 }
 0x1c5   : > { %v2579_v58 = vadd.f32 %v2547_v23, %v2513_v16  ;;  %v1373_v32 = vpop.f32.mrb[17].mxu1  ;;  %v1876_v28 = vadd.f32 %v1875_v1, %v1874_v60  ;;  %v1775_v36 = vadd.f32 %v1774_v10, %v1773_v51 }
 0x1c6   : > { %v2580_v18 = vadd.f32 %v1610_v49, %v1373_v32  ;;  %v2514_v55 = vpop.f32.mrb[18].mxu1 }
 0x1c7   : > { %v1730_v31 = vadd.f32 %v2579_v58, %v3391_v26  ;;  %v2581_v57 = vadd.f32 %v2548_v30, %v2514_v55  ;;  %v1376_v11 = vpop.f32.mrb[19].mxu1  ;;  %v1878_v5 = vadd.f32 %v1877_v8, %v1876_v28 }
 0x1c8   : > { %v1728_v29 = vadd.f32 %v2580_v18, %v3391_v26  ;;  %v2582_v46 = vadd.f32 %v1613_v33, %v1376_v11  ;;  %v2551_v52 = vpop.f32.mrb[20].mxu0 }
 0x1c9   : > { %v2394_v40 = vpack.c.bf16 %v1730_v31, %v1730_v31  ;;  %v1731_v21 = vadd.f32 %v2581_v57, %v3391_v26  ;;  %v1626_v41 = vpop.f32.mrb[21].mxu0  ;;  %v1834_v38 = vmul.f32 %v1730_v31, %v1730_v31  ;;  %v1780_v59 = vsel %vm1744_vm0, %v1730_v31, 0.0 }
 0x1ca   : > { %v1776_v61 = vsel %vm1744_vm0, %v1728_v29, 0.0  ;;  %v1832_v43 = vmul.f32 %v1728_v29, %v1728_v29  ;;  %v2392_v35 = vpack.c.bf16 %v1728_v29, %v1728_v29  ;;  %v2552_v37 = vpop.f32.mrb[22].mxu0  ;;  %v1729_v6 = vadd.f32 %v2582_v46, %v3391_v26 }
 0x1cb   : > { %2065 = vst.msk [vmem:[%s3399_s13 + $0x48] sm:$0xf] %vm2046_vm15, %v2394_v40  ;;  %v1777_v50 = vadd.f32 %v1776_v61, %v1775_v36  ;;  %v1629_v62 = vpop.f32.mrb[23].mxu0  ;;  %v2395_v48 = vpack.c.bf16 %v1731_v21, %v1731_v21  ;;  %v1835_v23 = vmul.f32 %v1731_v21, %v1731_v21  ;;  %v1883_v9 = vsel %vm1744_vm0, %v1834_v38, 0.0 }
 0x1cc   : > { %v1879_v27 = vsel %vm1744_vm0, %v1832_v43, 0.0  ;;  %2063 = vst.msk [vmem:[%s3399_s13 + $0x40] sm:$0xf] %vm2046_vm15, %v2392_v35  ;;  %v2517_v24 = vpop.f32.mrb[20].mxu1  ;;  %v1778_v4 = vsel %vm1744_vm0, %v1729_v6, 0.0  ;;  %v1833_v39 = vmul.f32 %v1729_v6, %v1729_v6  ;;  %v2393_v56 = vpack.c.bf16 %v1729_v6, %v1729_v6 }
 0x1cd   : > { %v1880_v25 = vadd.f32 %v1879_v27, %v1878_v5  ;;  %v2583_v12 = vadd.f32 %v2551_v52, %v2517_v24  ;;  %v1389_v17 = vpop.f32.mrb[21].mxu1  ;;  %2066 = vst.msk [vmem:[%s3399_s13 + $0x4c] sm:$0xf] %vm2046_vm15, %v2395_v48  ;;  %v1779_v7 = vadd.f32 %v1778_v4, %v1777_v50  ;;  %v1782_v22 = vsel %vm1744_vm0, %v1731_v21, 0.0 }
 0x1ce   : > { %v2584_v20 = vadd.f32 %v1626_v41, %v1389_v17  ;;  %v2518_v63 = vpop.f32.mrb[22].mxu1  ;;  %v1881_v34 = vsel %vm1744_vm0, %v1833_v39, 0.0  ;;  %2064 = vst.msk [vmem:[%s3399_s13 + $0x44] sm:$0xf] %vm2046_vm15, %v2393_v56  ;;  %v1885_v32 = vsel %vm1744_vm0, %v1835_v23, 0.0 }
 0x1cf   : > { %v1734_v15 = vadd.f32 %v2583_v12, %v3391_v26  ;;  %v2585_v19 = vadd.f32 %v2552_v37, %v2518_v63  ;;  %v1392_v3 = vpop.f32.mrb[23].mxu1  ;;  %v1781_v30 = vadd.f32 %v1780_v59, %v1779_v7  ;;  %v1882_v42 = vadd.f32 %v1881_v34, %v1880_v25 }
 0x1d0   : > { %v1732_v49 = vadd.f32 %v2584_v20, %v3391_v26  ;;  %v2586_v0 = vadd.f32 %v1629_v62, %v1392_v3  ;;  %v2555_v2 = vpop.f32.mrb[24].mxu0 }
 0x1d1   : > { %v1642_v44 = vpop.f32.mrb[25].mxu0  ;;  %v2398_v53 = vpack.c.bf16 %v1734_v15, %v1734_v15  ;;  %v1884_v47 = vadd.f32 %v1883_v9, %v1882_v42  ;;  %v1783_v54 = vadd.f32 %v1782_v22, %v1781_v30  ;;  %v1735_v45 = vadd.f32 %v2585_v19, %v3391_v26 }
 0x1d2   : > { %v1784_v14 = vsel %vm1744_vm0, %v1732_v49, 0.0  ;;  %v1836_v33 = vmul.f32 %v1732_v49, %v1732_v49  ;;  %v2396_v13 = vpack.c.bf16 %v1732_v49, %v1732_v49  ;;  %v2556_v16 = vpop.f32.mrb[26].mxu0  ;;  %v1733_v60 = vadd.f32 %v2586_v0, %v3391_v26 }
 0x1d3   : > { %v1645_v58 = vpop.f32.mrb[27].mxu0  ;;  %2069 = vst.msk [vmem:[%s3399_s13 + $0x58] sm:$0xf] %vm2046_vm15, %v2398_v53  ;;  %v1788_v55 = vsel %vm1744_vm0, %v1734_v15, 0.0  ;;  %v1838_v1 = vmul.f32 %v1734_v15, %v1734_v15  ;;  %v1785_v10 = vadd.f32 %v1784_v14, %v1783_v54  ;;  %v1886_v31 = vadd.f32 %v1885_v32, %v1884_v47 }
 0x1d4   : > { %v1887_v51 = vsel %vm1744_vm0, %v1836_v33, 0.0  ;;  %2067 = vst.msk [vmem:[%s3399_s13 + $0x50] sm:$0xf] %vm2046_vm15, %v2396_v13  ;;  %v2521_v18 = vpop.f32.mrb[24].mxu1  ;;  %v2399_v11 = vpack.c.bf16 %v1735_v45, %v1735_v45  ;;  %v1786_v28 = vsel %vm1744_vm0, %v1733_v60, 0.0  ;;  %v1837_v29 = vmul.f32 %v1733_v60, %v1733_v60 }
 0x1d5   : > { %v1405_v57 = vpop.f32.mrb[25].mxu1  ;;  %v2397_v36 = vpack.c.bf16 %v1733_v60, %v1733_v60  ;;  %v1888_v52 = vadd.f32 %v1887_v51, %v1886_v31  ;;  %v1839_v8 = vmul.f32 %v1735_v45, %v1735_v45  ;;  %v1787_v40 = vadd.f32 %v1786_v28, %v1785_v10 }
 0x1d6   : > { %v2522_v46 = vpop.f32.mrb[26].mxu1  ;;  %v2587_v21 = vadd.f32 %v2555_v2, %v2521_v18  ;;  %2070 = vst.msk [vmem:[%s3399_s13 + $0x5c] sm:$0xf] %vm2046_vm15, %v2399_v11  ;;  %v1889_v61 = vsel %vm1744_vm0, %v1837_v29, 0.0  ;;  %v2588_v43 = vadd.f32 %v1642_v44, %v1405_v57  ;;  %v1891_v6 = vsel %vm1744_vm0, %v1838_v1, 0.0 }
 0x1d7   : > { %v1408_v41 = vpop.f32.mrb[27].mxu1  ;;  %2068 = vst.msk [vmem:[%s3399_s13 + $0x54] sm:$0xf] %vm2046_vm15, %v2397_v36  ;;  %v2589_v5 = vadd.f32 %v2556_v16, %v2522_v46  ;;  %v1789_v50 = vadd.f32 %v1788_v55, %v1787_v40  ;;  %v1890_v62 = vadd.f32 %v1889_v61, %v1888_v52  ;;  %v1790_v17 = vsel %vm1744_vm0, %v1735_v45, 0.0 }
 0x1d8   : > { %v2590_v35 = vadd.f32 %v1645_v58, %v1408_v41  ;;  %v2559_v37 = vpop.f32.mrb[28].mxu0  ;;  %v1738_v27 = vadd.f32 %v2587_v21, %v3391_v26  ;;  %v1736_v24 = vadd.f32 %v2588_v43, %v3391_v26  ;;  %v1893_v4 = vsel %vm1744_vm0, %v1839_v8, 0.0 }
 0x1d9   : > { %v1658_v48 = vpop.f32.mrb[29].mxu0  ;;  %v1739_v38 = vadd.f32 %v2589_v5, %v3391_v26  ;;  %v1892_v39 = vadd.f32 %v1891_v6, %v1890_v62  ;;  %v1791_v63 = vadd.f32 %v1790_v17, %v1789_v50 }
 0x1da   : > { %v1737_v25 = vadd.f32 %v2590_v35, %v3391_v26  ;;  %v2560_v12 = vpop.f32.mrb[30].mxu0  ;;  %v2402_v56 = vpack.c.bf16 %v1738_v27, %v1738_v27  ;;  %v1792_v59 = vsel %vm1744_vm0, %v1736_v24, 0.0  ;;  %v1840_v7 = vmul.f32 %v1736_v24, %v1736_v24 }
 0x1db   : > { %v1661_v20 = vpop.f32.mrb[31].mxu0  ;;  %v2400_v15 = vpack.c.bf16 %v1736_v24, %v1736_v24  ;;  %v1842_v3 = vmul.f32 %v1738_v27, %v1738_v27  ;;  %v1894_v23 = vadd.f32 %v1893_v4, %v1892_v39  ;;  %v1793_v49 = vadd.f32 %v1792_v59, %v1791_v63 }
 0x1dc   : > { %v2525_v19 = vpop.f32.mrb[28].mxu1  ;;  %2073 = vst.msk [vmem:[%s3399_s13 + $0x68] sm:$0xf] %vm2046_vm15, %v2402_v56  ;;  %v1895_v0 = vsel %vm1744_vm0, %v1840_v7, 0.0  ;;  %v2403_v2 = vpack.c.bf16 %v1739_v38, %v1739_v38  ;;  %v1794_v9 = vsel %vm1744_vm0, %v1737_v25, 0.0  ;;  %v1843_v42 = vmul.f32 %v1739_v38, %v1739_v38 }
 0x1dd   : > { %v1421_v34 = vpop.f32.mrb[29].mxu1  ;;  %2071 = vst.msk [vmem:[%s3399_s13 + $0x60] sm:$0xf] %vm2046_vm15, %v2400_v15  ;;  %v1896_v30 = vadd.f32 %v1895_v0, %v1894_v23  ;;  %v1841_v44 = vmul.f32 %v1737_v25, %v1737_v25  ;;  %v2401_v53 = vpack.c.bf16 %v1737_v25, %v1737_v25  ;;  %v1795_v33 = vadd.f32 %v1794_v9, %v1793_v49 }
 0x1de   : > { %v2526_v22 = vpop.f32.mrb[30].mxu1  ;;  %2074 = vst.msk [vmem:[%s3399_s13 + $0x6c] sm:$0xf] %vm2046_vm15, %v2403_v2  ;;  %v2591_v13 = vadd.f32 %v2559_v37, %v2525_v19  ;;  %v2592_v16 = vadd.f32 %v1658_v48, %v1421_v34  ;;  %v1796_v54 = vsel %vm1744_vm0, %v1738_v27, 0.0  ;;  %v1899_v55 = vsel %vm1744_vm0, %v1842_v3, 0.0 }
 0x1df   : > { %v1424_v14 = vpop.f32.mrb[31].mxu1  ;;  %v2593_v47 = vadd.f32 %v2560_v12, %v2526_v22  ;;  %v1897_v45 = vsel %vm1744_vm0, %v1841_v44, 0.0  ;;  %2072 = vst.msk [vmem:[%s3399_s13 + $0x64] sm:$0xf] %vm2046_vm15, %v2401_v53  ;;  %v1797_v32 = vadd.f32 %v1796_v54, %v1795_v33  ;;  %v1798_v31 = vsel %vm1744_vm0, %v1739_v38, 0.0 }
 0x1e0   : > { %v2594_v58 = vadd.f32 %v1661_v20, %v1424_v14  ;;  %v1898_v51 = vadd.f32 %v1897_v45, %v1896_v30  ;;  %v1742_v60 = vadd.f32 %v2591_v13, %v3391_v26  ;;  %v1740_v18 = vadd.f32 %v2592_v16, %v3391_v26 }
 0x1e1   : > { %v1743_v1 = vadd.f32 %v2593_v47, %v3391_v26  ;;  %v1901_v57 = vsel %vm1744_vm0, %v1843_v42, 0.0  ;;  %v1799_v29 = vadd.f32 %v1798_v31, %v1797_v32 }
 0x1e2   : > { %v1741_v10 = vadd.f32 %v2594_v58, %v3391_v26  ;;  %v1900_v11 = vadd.f32 %v1899_v55, %v1898_v51  ;;  %v2406_v28 = vpack.c.bf16 %v1742_v60, %v1742_v60  ;;  %v1800_v36 = vsel %vm1744_vm0, %v1740_v18, 0.0 }
 0x1e3   : > { %v1844_v46 = vmul.f32 %v1740_v18, %v1740_v18  ;;  %v2404_v52 = vpack.c.bf16 %v1740_v18, %v1740_v18  ;;  %v1801_v40 = vadd.f32 %v1800_v36, %v1799_v29  ;;  %v2407_v26 = vpack.c.bf16 %v1743_v1, %v1743_v1 }
 0x1e4   : > { %2077 = vst.msk [vmem:[%s3399_s13 + $0x78] sm:$0xf] %vm2046_vm15, %v2406_v28  ;;  %v1902_v8 = vadd.f32 %v1901_v57, %v1900_v11  ;;  %v1802_v41 = vsel %vm1744_vm0, %v1741_v10, 0.0  ;;  %v1846_v61 = vmul.f32 %v1742_v60, %v1742_v60  ;;  %v1845_v5 = vmul.f32 %v1741_v10, %v1741_v10 }
 0x1e5   : > { %v1903_v21 = vsel %vm1744_vm0, %v1844_v46, 0.0  ;;  %2075 = vst.msk [vmem:[%s3399_s13 + $0x70] sm:$0xf] %vm2046_vm15, %v2404_v52  ;;  %v2405_v35 = vpack.c.bf16 %v1741_v10, %v1741_v10  ;;  %2078 = vst.msk [vmem:[%s3399_s13 + $0x7c] sm:$0xf] %vm2046_vm15, %v2407_v26  ;;  %v1803_v37 = vadd.f32 %v1802_v41, %v1801_v40  ;;  %v1804_v50 = vsel %vm1744_vm0, %v1742_v60, 0.0 }
 0x1e6   : > { %v1904_v43 = vadd.f32 %v1903_v21, %v1902_v8  ;;  %v1847_v62 = vmul.f32 %v1743_v1, %v1743_v1  ;;  %v1905_v27 = vsel %vm1744_vm0, %v1845_v5, 0.0  ;;  %v1907_v24 = vsel %vm1744_vm0, %v1846_v61, 0.0 }
 0x1e7   : > { %2076 = vst.msk [vmem:[%s3399_s13 + $0x74] sm:$0xf] %vm2046_vm15, %v2405_v35  ;;  %v1805_v48 = vadd.f32 %v1804_v50, %v1803_v37  ;;  %v1806_v38 = vsel %vm1744_vm0, %v1743_v1, 0.0 }
 0x1e8   : > { %v1906_v6 = vadd.f32 %v1905_v27, %v1904_v43  ;;  %v1909_v17 = vsel %vm1744_vm0, %v1847_v62, 0.0 }
 0x1e9   : > { %v1807_v25 = vadd.f32 %v1806_v38, %v1805_v48 }
 0x1ea   : > { %v1908_v12 = vadd.f32 %v1907_v24, %v1906_v6 }
 0x1eb   : > { %v1808_v4 = vrot.slane %v1807_v25, 4 }
 0x1ec   : > { %v1910_v39 = vadd.f32 %v1909_v17, %v1908_v12 }
 0x1ed   : > { %v1809_v56 = vadd.f32 %v1808_v4, %v1807_v25 }
 0x1ee   : > { %v1911_v20 = vrot.slane %v1910_v39, 4 }
 0x1ef   : > { %v1810_v63 = vrot.slane %v1809_v56, 2 }
 0x1f0   : > { %v1912_v59 = vadd.f32 %v1911_v20, %v1910_v39 }
 0x1f1   : > { %v1811_v7 = vadd.f32 %v1810_v63, %v1809_v56 }
 0x1f2   : > { %v1913_v15 = vrot.slane %v1912_v59, 2 }
 0x1f3   : > { %v1812_v19 = vrot.slane %v1811_v7, 1 }
 0x1f4   : > { %v1914_v3 = vadd.f32 %v1913_v15, %v1912_v59 }
 0x1f5   : > { %v1813_v23 = vadd.f32 %v1812_v19, %v1811_v7 }
 0x1f6   : > { %v1915_v34 = vrot.slane %v1914_v3, 1 }
 0x1f7   : > { %1815 = vst.msk [vmem:[%s362_s16] sm:$0x1] %vm1814_vm1, %v1813_v23 }
 0x1f8   : > { %v1916_v49 = vadd.f32 %v1915_v34, %v1914_v3 }
 0x1fa   : > { %1917 = vst.msk [vmem:[%s368_s19] sm:$0x1] %vm1814_vm1, %v1916_v49 }
 0x1fb PF: > { %s19_s2 = sadd.s32 1, %s2742_s2   ;;  %s3609_s1 = smov %s2738_s24 }
 0x1fc   : > { %p16_p3 = scmp.ge.s32.totalorder %s19_s2, 4   ;;  %s3610_s24 = smov %s3612_s26 }
 0x1fe   :  { %18 = sbr.rel (!%p16_p3) target bundleno = 2 (0x2), region = 108 }
 0x205   :  { %2142 = vsyncpa [#allocation4], 1 }
 0x206   :  { %2144 = vsyncpa [#allocation4 + $0x1], 1 }

// kernel: triple_conv_apply.6
= control target key start
LH: loop header
LB: loop body
LE: loop exit
PB: predicated region body
PF: predicated region fallthrough
CT: control target
= control target key end

     0   :  { %s2868_s24 = smov 0   ;;  %s2870_s25 = smov 0   ;;  %s4025_s0 = inlined_call_operand.vmem [shape: bf16[2,16,16,64], index: 0, kind: input, shape index: {}]   ;;  %s4026_s1 = inlined_call_operand.vmem [shape: f32[1,64], index: 1, kind: input, shape index: {}]   ;;  %s4027_s2 = inlined_call_operand.vmem [shape: f32[1,64], index: 2, kind: input, shape index: {}]   ;;  %s4028_s3 = inlined_call_operand.vmem [shape: bf16[3,192,64], index: 3, kind: input, shape index: {}]   ;;  %s4029_s4 = inlined_call_operand.vmem [shape: f32[1,64], index: 4, kind: input, shape index: {}]   ;;  %s4030_s5 = inlined_call_operand.vmem [shape: f32[2,16,16,64], index: 5, kind: output, shape index: {0}]   ;;  %s4031_s6 = inlined_call_operand.vmem [shape: f32[2,1,64], index: 6, kind: output, shape index: {1}]   ;;  %s4032_s7 = inlined_call_operand.vmem [shape: f32[2,1,64], index: 7, kind: output, shape index: {2}]  }
   0x1   :  { %s2872_s26 = smov 0  }
   0x2 LB: > { %s30_s27 = sadd.s32 1, %s2820_s25  ;;  %p2492_p0 = scmp.ge.s32.totalorder %s2824_s26, 1  ;;  %s2824_s26 = sphi %s2872_s26, %s18_s26   ;;  %s2820_s25 = sphi %s2870_s25, %s4054_s25   ;;  %s2816_s24 = sphi %s2868_s24, %s4053_s24  }
   0x3   : > { %p32_p1 = scmp.ge.s32.totalorder %s30_s27, 2  ;;  %p277_p2 = scmp.lt.s32.totalorder %s2824_s26, 3 }
   0x5   : > { %s4056_s27 = smov (%p32_p1, %s30_s27), 0  ;;  %p278_p3 = pnand %p2492_p0, %p277_p2 }
   0x6   : > { %p331_p4 = scmp.lt.s32.totalorder (!%p278_p3), %s2816_s24, 1  ;;  %vm612_vm0 = vcmask (!%p278_p3), 523271   ;;  %vm613_vm1 = vsmask.f32 (!%p278_p3), 7966  ;;  %v639_v0 = vld [vmem:[#allocation2 + $0x98] sm:$0x80] (!%p278_p3) }
   0x7   : > { %281 = sbr.rel (%p278_p3) target bundleno = 575 (0x23f), region = 40  ;;  %vm555_vm2 = vcmask (!%p278_p3), 523264   ;;  %vm2888_vm3 = vmand (!%p278_p3), %vm612_vm0, %vm613_vm1  ;;  %v615_v2 = vld [vmem:[#allocation2 + $0x18] sm:$0x80] (!%p278_p3)  ;;  %v642_v5 = vld [vmem:[#allocation2 + $0xa8] sm:$0x80] (!%p278_p3) }
   0x8   : > { %v640_v3 = vsel (!%p278_p3), %vm2888_vm3, 0, %v639_v0  ;;  %v616_v4 = vsel (!%p278_p3), %vm2888_vm3, 0, %v615_v2  ;;  %v618_v6 = vld [vmem:[#allocation2 + $0x28] sm:$0x80] (!%p278_p3)  ;;  %v2826_v7 = vmov (!%p278_p3), 0   ;;  %v643_v9 = vsel (!%p278_p3), %vm2888_vm3, 0, %v642_v5 }
   0x9   : > { %2715 = vmatprep.subr.bf16.mxu1 (!%p278_p3), %v2826_v7  ;;  %554 = vst [vmem:[#allocation2] sm:$0xff] (!%p278_p3), %v2826_v7  ;;  %556 = vst.msk [vmem:[#allocation2 + $0x8] sm:$0xff] (!%p278_p3), %vm555_vm2, %v2826_v7  ;;  %1254 = vmatprep.subr.bf16.mxu0 (!%p278_p3), %v2826_v7  ;;  %v2907_v8 = vld [vmem:[%s4026_s1] ss:$0 sm:$0xff] (!%p278_p3)  ;;  %v619_v10 = vsel (!%p278_p3), %vm2888_vm3, 0, %v618_v6  ;;  %v2766_v16 = vld [vmem:[%s4028_s3 + $0x68] sm:$0xff] (!%p278_p3)  }
   0xa   : > { %559 = vst.msk [vmem:[#allocation2 + $0x118] sm:$0xff] (!%p278_p3), %vm555_vm2, %v2826_v7  ;;  %641 = vst [vmem:[#allocation2 + $0x98] sm:$0x80] (!%p278_p3), %v640_v3  ;;  %v645_v11 = vld [vmem:[#allocation2 + $0xb8] sm:$0x80] (!%p278_p3)  ;;  %v2765_v12 = vld [vmem:[%s4028_s3 + $0x60] sm:$0xff] (!%p278_p3)  }
   0xb   : > { %617 = vst [vmem:[#allocation2 + $0x18] sm:$0x80] (!%p278_p3), %v616_v4  ;;  %644 = vst [vmem:[#allocation2 + $0xa8] sm:$0x80] (!%p278_p3), %v643_v9  ;;  %v646_v13 = vsel (!%p278_p3), %vm2888_vm3, 0, %v645_v11  ;;  %2727 = vmatpush1.bf16.msra.mxu1 (!%p278_p3), %v2765_v12  ;;  %1255 = vmatpush1.bf16.msra.mxu0 (!%p278_p3), %v2765_v12  ;;  %s2827_s17 = smov (!%p278_p3), 64  }
   0xc   : > { %620 = vst [vmem:[#allocation2 + $0x28] sm:$0x80] (!%p278_p3), %v619_v10  ;;  %v621_v14 = vld [vmem:[#allocation2 + $0x38] sm:$0x80] (!%p278_p3)  ;;  %v648_v15 = vld [vmem:[#allocation2 + $0xc8] sm:$0x80] (!%p278_p3)  ;;  %2716 = vmatprep.subr.bf16.mxu1 (!%p278_p3), %v2826_v7  ;;  %1256 = vmatprep.subr.bf16.mxu0 (!%p278_p3), %v2826_v7 }
   0xd   : > { %647 = vst [vmem:[#allocation2 + $0xb8] sm:$0x80] (!%p278_p3), %v646_v13  ;;  %v622_v20 = vsel (!%p278_p3), %vm2888_vm3, 0, %v621_v14  ;;  %v649_v21 = vsel (!%p278_p3), %vm2888_vm3, 0, %v648_v15  ;;  %v2939_v27 = vld [vmem:[%s4027_s2] ss:$0 sm:$0xff] (!%p278_p3) }
   0xe   : > { %s4058_s24 = smov (!%p331_p4, %s2816_s24), 1  ;;  %623 = vst [vmem:[#allocation2 + $0x38] sm:$0x80] %v622_v20  ;;  %650 = vst [vmem:[#allocation2 + $0xc8] sm:$0x80] %v649_v21  ;;  %vm561_vm6 = vcmask 516096  }
   0xf   : > { %s2634_s28 = sshll.u32 %s4058_s24, 7  ;;  %2728 = vmatpush1.bf16.msra.mxu1 %v2766_v16  ;;  %1257 = vmatpush1.bf16.msra.mxu0 %v2766_v16  ;;  %vm971_vm4 = vsmask.f32 7424  ;;  %vm562_vm7 = vsmask.f32 256  ;;  %vm906_vm11 = vcmask 1048064   ;;  %s356_s20 = scalar_lea.vmem %s4031_s6, %s4058_s24 }
  0x10   : > { %s2919_s12 = scalar_lea.vmem %s4025_s0, %s2634_s28  ;;  %2717 = vmatprep.subr.bf16.mxu1 %v2826_v7  ;;  %1258 = vmatprep.subr.bf16.mxu0 %v2826_v7  ;;  %vm2985_vm5 = vmand %vm555_vm2, %vm971_vm4  ;;  %vm792_vm9 = vsmask.f32 7938  ;;  %s2635_s10 = sshll.u32 %s4058_s24, 8 }
  0x11   : > { %v2707_v17 = vld [vmem:[%s2919_s12 + $0x40] sm:$0xff]   ;;  %v2708_v19 = vld [vmem:[%s2919_s12 + $0x48] sm:$0xff]   ;;  %v2709_v56 = vld [vmem:[%s2919_s12 + $0x50] sm:$0xff]   ;;  %s3814_s16 = scalar_lea.vmem %s4030_s5, %s2635_s10  ;;  %s362_s21 = scalar_lea.vmem %s4032_s7, %s4058_s24 }
  0x12   : > { %v2637_v18 = vld [vmem:[%s2919_s12] sm:$0xff]   ;;  %v2670_v22 = vunpack.c.l.bf16 %v2707_v17  ;;  %v2671_v23 = vunpack.c.h.bf16 %v2707_v17  ;;  %v2700_v26 = vld [vmem:[%s2919_s12 + $0x8] sm:$0xff]   ;;  %v2674_v28 = vunpack.c.l.bf16 %v2708_v19  ;;  %v2675_v29 = vunpack.c.h.bf16 %v2708_v19  ;;  %v2701_v59 = vld [vmem:[%s2919_s12 + $0x10] sm:$0xff]  }
  0x13   : > { %v2638_v24 = vunpack.c.l.bf16 %v2637_v18  ;;  %v2639_v25 = vunpack.c.h.bf16 %v2637_v18  ;;  %v2642_v30 = vunpack.c.l.bf16 %v2700_v26  ;;  %v2643_v31 = vunpack.c.h.bf16 %v2700_v26  ;;  %v997_v3 = vld [vmem:[#allocation2 + $0x98] sm:$0xff]  ;;  %v1000_v14 = vld [vmem:[#allocation2 + $0xa8] sm:$0xff]  ;;  %vm3349_vm8 = vmand %vm561_vm6, %vm562_vm7 }
  0x14   : > { %v451_v32 = vmul.f32 %v2670_v22, %v2907_v8  ;;  %v452_v33 = vmul.f32 %v2671_v23, %v2907_v8  ;;  %v453_v36 = vmul.f32 %v2674_v28, %v2907_v8  ;;  %v454_v37 = vmul.f32 %v2675_v29, %v2907_v8  ;;  %v973_v5 = vld [vmem:[#allocation2 + $0x18] sm:$0xff]  ;;  %v976_v15 = vld [vmem:[#allocation2 + $0x28] sm:$0xff]  ;;  %v2767_v29 = vld [vmem:[%s4028_s3 + $0x70] sm:$0xff]  }
  0x15   : > { %v435_v34 = vmul.f32 %v2638_v24, %v2907_v8  ;;  %v436_v35 = vmul.f32 %v2639_v25, %v2907_v8  ;;  %v437_v38 = vmul.f32 %v2642_v30, %v2907_v8  ;;  %v438_v39 = vmul.f32 %v2643_v31, %v2907_v8  ;;  %v2710_v22 = vld [vmem:[%s2919_s12 + $0x58] sm:$0xff]   ;;  %2729 = vmatpush1.bf16.msra.mxu1 %v2767_v29  ;;  %vm3406_vm10 = vmand %vm555_vm2, %vm792_vm9 }
  0x16   : > { %v490_v40 = vadd.f32 %v2939_v27, %v451_v32  ;;  %v491_v41 = vadd.f32 %v2939_v27, %v452_v33  ;;  %v492_v44 = vadd.f32 %v2939_v27, %v453_v36  ;;  %v493_v45 = vadd.f32 %v2939_v27, %v454_v37  ;;  %1259 = vmatpush1.bf16.msra.mxu0 %v2767_v29 }
  0x17   : > { %v474_v42 = vadd.f32 %v2939_v27, %v435_v34  ;;  %v475_v43 = vadd.f32 %v2939_v27, %v436_v35  ;;  %v476_v46 = vadd.f32 %v2939_v27, %v437_v38  ;;  %v477_v47 = vadd.f32 %v2939_v27, %v438_v39  ;;  %v2702_v34 = vld [vmem:[%s2919_s12 + $0x18] sm:$0xff]   ;;  %2718 = vmatprep.subr.bf16.mxu1 %v2826_v7 }
  0x18   : > { %v522_v48 = vmax.f32 %v490_v40, 0.0  ;;  %v523_v49 = vmax.f32 %v491_v41, 0.0  ;;  %v524_v52 = vmax.f32 %v492_v44, 0.0  ;;  %v525_v53 = vmax.f32 %v493_v45, 0.0  ;;  %v2768_v39 = vld [vmem:[%s4028_s3 + $0x78] sm:$0xff]   ;;  %1260 = vmatprep.subr.bf16.mxu0 %v2826_v7 }
  0x19   : > { %v506_v50 = vmax.f32 %v474_v42, 0.0  ;;  %v507_v51 = vmax.f32 %v475_v43, 0.0  ;;  %v508_v54 = vmax.f32 %v476_v46, 0.0  ;;  %v509_v55 = vmax.f32 %v477_v47, 0.0  ;;  %2730 = vmatpush1.bf16.msra.mxu1 %v2768_v39 }
  0x1a   : > { %v2960_v57 = vpack.c.bf16 %v523_v49, %v522_v48  ;;  %v2965_v60 = vpack.c.bf16 %v525_v53, %v524_v52  ;;  %v2678_v0 = vunpack.c.l.bf16 %v2709_v56  ;;  %v2679_v2 = vunpack.c.h.bf16 %v2709_v56  ;;  %v624_v48 = vld [vmem:[#allocation2 + $0x48] sm:$0x80]  ;;  %v2711_v53 = vld [vmem:[%s2919_s12 + $0x60] sm:$0xff]   ;;  %1261 = vmatpush1.bf16.msra.mxu0 %v2768_v39  ;;  %2719 = vmatprep.subr.bf16.mxu1 %v2826_v7 }
  0x1b   : > { %v2962_v58 = vpack.c.bf16 %v507_v51, %v506_v50  ;;  %v2967_v61 = vpack.c.bf16 %v509_v55, %v508_v54  ;;  %v2646_v10 = vunpack.c.l.bf16 %v2701_v59  ;;  %v2647_v16 = vunpack.c.h.bf16 %v2701_v59  ;;  %v2769_v54 = vld [vmem:[%s4028_s3 + $0x80] sm:$0xff]   ;;  %1262 = vmatprep.subr.bf16.mxu0 %v2826_v7 }
  0x1c   : > { %874 = vrot.lane.b32.xlu0 %v2960_v57, %s2827_s17  ;;  %v723_v62 = vshll.u32 %v2960_v57, 16  ;;  %v720_v4 = vshrl.u32 %v2960_v57, 16  ;;  %876 = vrot.lane.b32.xlu1 %v2965_v60, %s2827_s17  ;;  %v730_v6 = vshll.u32 %v2965_v60, 16  ;;  %v727_v18 = vshrl.u32 %v2965_v60, 16 }
  0x1d   : > { %v667_v63 = vshll.u32 %v2962_v58, 16  ;;  %v674_v9 = vshll.u32 %v2967_v61, 16  ;;  %v664_v12 = vshrl.u32 %v2962_v58, 16  ;;  %v671_v20 = vshrl.u32 %v2967_v61, 16  ;;  %2731 = vmatpush1.bf16.msra.mxu1 %v2769_v54 }
  0x1e   : > { %v939_v11 = vrot.slane %v723_v62, 1  ;;  %v941_v19 = vrot.slane %v730_v6, 1  ;;  %v3000_v25 = vrot.slane %v720_v4, 7  ;;  %v455_v32 = vmul.f32 %v2678_v0, %v2907_v8  ;;  %1263 = vmatpush1.bf16.msra.mxu0 %v2769_v54  ;;  %2720 = vmatprep.subr.bf16.mxu1 %v2826_v7 }
  0x1f   : > { %v923_v13 = vrot.slane %v667_v63, 1  ;;  %v925_v21 = vrot.slane %v674_v9, 1  ;;  %v456_v33 = vmul.f32 %v2679_v2, %v2907_v8  ;;  %v439_v37 = vmul.f32 %v2646_v10, %v2907_v8  ;;  %1264 = vmatprep.subr.bf16.mxu0 %v2826_v7 }
  0x20   : > { %v940_v23 = vor.u32 %v939_v11, %v720_v4  ;;  %858 = vrot.lane.b32.xlu0 %v2962_v58, %s2827_s17  ;;  %v942_v26 = vor.u32 %v941_v19, %v727_v18  ;;  %860 = vrot.lane.b32.xlu1 %v2967_v61, %s2827_s17  ;;  %v440_v38 = vmul.f32 %v2647_v16, %v2907_v8  ;;  %v2682_v42 = vunpack.c.l.bf16 %v2710_v22 }
  0x21   : > { %v924_v24 = vor.u32 %v923_v13, %v664_v12  ;;  %v926_v28 = vor.u32 %v925_v21, %v671_v20  ;;  %v494_v40 = vadd.f32 %v2939_v27, %v455_v32  ;;  %v495_v41 = vadd.f32 %v2939_v27, %v456_v33 }
  0x22   : > { %v998_v30 = vsel %vm2985_vm5, %v940_v23, %v997_v3  ;;  %v3020_v35 = vsel %vm2985_vm5, %v942_v26, %v1000_v14  ;;  %v2683_v43 = vunpack.c.h.bf16 %v2710_v22  ;;  %v478_v44 = vadd.f32 %v2939_v27, %v439_v37 }
  0x23   : > { %v974_v31 = vsel %vm2985_vm5, %v924_v24, %v973_v5  ;;  %999 = vst [vmem:[#allocation2 + $0x98] sm:$0xff] %v998_v30  ;;  %v3024_v36 = vsel %vm2985_vm5, %v926_v28, %v976_v15  ;;  %1002 = vst [vmem:[#allocation2 + $0xa8] sm:$0xff] %v3020_v35  ;;  %v479_v45 = vadd.f32 %v2939_v27, %v440_v38  ;;  %v2650_v46 = vunpack.c.l.bf16 %v2702_v34  ;;  %v651_v38 = vld [vmem:[#allocation2 + $0xd8] sm:$0x80] }
  0x24   : > { %975 = vst [vmem:[#allocation2 + $0x18] sm:$0xff] %v974_v31  ;;  %978 = vst [vmem:[#allocation2 + $0x28] sm:$0xff] %v3024_v36  ;;  %v2651_v47 = vunpack.c.h.bf16 %v2702_v34  ;;  %2543 = vmatprep.mubr.msk.bf16.mxu1 %vm555_vm2, %v998_v30  ;;  %v526_v49 = vmax.f32 %v494_v40, 0.0  ;;  %v527_v50 = vmax.f32 %v495_v41, 0.0  ;;  %v457_v51 = vmul.f32 %v2682_v42, %v2907_v8  ;;  %2535 = vmatprep.mubr.msk.bf16.mxu0 %vm555_vm2, %v974_v31  ;;  %v1003_v31 = vld [vmem:[#allocation2 + $0xb8] sm:$0xff] }
  0x25   : > { %v458_v52 = vmul.f32 %v2683_v43, %v2907_v8  ;;  %v510_v55 = vmax.f32 %v478_v44, 0.0  ;;  %v511_v56 = vmax.f32 %v479_v45, 0.0  ;;  %v441_v59 = vmul.f32 %v2650_v46, %v2907_v8  ;;  %v979_v42 = vld [vmem:[#allocation2 + $0x38] sm:$0xff]  ;;  %v2703_v44 = vld [vmem:[%s2919_s12 + $0x20] sm:$0xff]  }
  0x26   : > { %v442_v0 = vmul.f32 %v2651_v47, %v2907_v8  ;;  %v3049_v2 = vpack.c.bf16 %v527_v50, %v526_v49  ;;  %v496_v3 = vadd.f32 %v2939_v27, %v457_v51  ;;  %v625_v5 = vsel %vm2888_vm3, 0, %v624_v48  ;;  %v1006_v49 = vld [vmem:[#allocation2 + $0xc8] sm:$0xff]  ;;  %v627_v51 = vld [vmem:[#allocation2 + $0x58] sm:$0x80] }
  0x27   : > { %v497_v4 = vadd.f32 %v2939_v27, %v458_v52  ;;  %v3056_v10 = vpack.c.bf16 %v511_v56, %v510_v55  ;;  %v480_v11 = vadd.f32 %v2939_v27, %v441_v59  ;;  %626 = vst [vmem:[#allocation2 + $0x48] sm:$0x80] %v625_v5  ;;  %v2686_v14 = vunpack.c.l.bf16 %v2711_v53  ;;  %v2712_v52 = vld [vmem:[%s2919_s12 + $0x68] sm:$0xff]  }
  0x28   : > { %v481_v13 = vadd.f32 %v2939_v27, %v442_v0  ;;  %v3063_v15 = vrot.slane %v664_v12, 7  ;;  %v737_v16 = vshll.u32 %v3049_v2, 16  ;;  %878 = vrot.lane.b32.xlu0 %v3049_v2, %s2827_s17  ;;  %v528_v19 = vmax.f32 %v496_v3, 0.0  ;;  %v2770_v12 = vld [vmem:[%s4028_s3 + $0x88] sm:$0xff]  }
  0x29   : > { %v529_v21 = vmax.f32 %v497_v4, 0.0  ;;  %v681_v22 = vshll.u32 %v3056_v10, 16  ;;  %862 = vrot.lane.b32.xlu1 %v3056_v10, %s2827_s17  ;;  %v512_v23 = vmax.f32 %v480_v11, 0.0  ;;  %v734_v26 = vshrl.u32 %v3049_v2, 16  ;;  %2732 = vmatpush1.bf16.msra.mxu1 %v2770_v12  ;;  %v654_v59 = vld [vmem:[#allocation2 + $0xe8] sm:$0x80] }
  0x2a   : > { %v513_v24 = vmax.f32 %v481_v13, 0.0  ;;  %v943_v28 = vrot.slane %v737_v16, 1  ;;  %v2687_v30 = vunpack.c.h.bf16 %v2711_v53  ;;  %v678_v32 = vshrl.u32 %v3056_v10, 16  ;;  %1265 = vmatpush1.bf16.msra.mxu0 %v2770_v12  ;;  %2721 = vmatprep.subr.bf16.mxu1 %v2826_v7 }
  0x2b   : > { %v3077_v29 = vpack.c.bf16 %v529_v21, %v528_v19  ;;  %v927_v33 = vrot.slane %v681_v22, 1  ;;  %v459_v37 = vmul.f32 %v2686_v14, %v2907_v8  ;;  %v3089_v39 = vrot.slane %v727_v18, 7  ;;  %1266 = vmatprep.subr.bf16.mxu0 %v2826_v7  ;;  %v2704_v21 = vld [vmem:[%s2919_s12 + $0x28] sm:$0xff]  }
  0x2c   : > { %v3083_v34 = vpack.c.bf16 %v513_v24, %v512_v23  ;;  %v3093_v40 = vrot.slane %v671_v20, 7  ;;  %v944_v41 = vor.u32 %v943_v28, %v734_v26  ;;  %v2771_v20 = vld [vmem:[%s4028_s3 + $0x90] sm:$0xff]   ;;  %v460_v50 = vmul.f32 %v2687_v30, %v2907_v8  ;;  %v2772_v23 = vld [vmem:[%s4028_s3 + $0x98] sm:$0xff]  }
  0x2d   : > { %v744_v43 = vshll.u32 %v3077_v29, 16  ;;  %880 = vrot.lane.b32.xlu0 %v3077_v29, %s2827_s17  ;;  %v928_v45 = vor.u32 %v927_v33, %v678_v32  ;;  %v741_v47 = vshrl.u32 %v3077_v29, 16  ;;  %v498_v56 = vadd.f32 %v2939_v27, %v459_v37  ;;  %2733 = vmatpush1.bf16.msra.mxu1 %v2771_v20 }
  0x2e   : > { %v688_v18 = vshll.u32 %v3083_v34, 16  ;;  %864 = vrot.lane.b32.xlu1 %v3083_v34, %s2827_s17  ;;  %v3111_v46 = vsel %vm2985_vm5, %v944_v41, %v1003_v31  ;;  %v685_v54 = vshrl.u32 %v3083_v34, 16  ;;  %v982_v3 = vld [vmem:[#allocation2 + $0x48] sm:$0xff]  ;;  %v499_v4 = vadd.f32 %v2939_v27, %v460_v50  ;;  %1267 = vmatpush1.bf16.msra.mxu0 %v2771_v20 }
  0x2f   : > { %v945_v48 = vrot.slane %v744_v43, 1  ;;  %1005 = vst [vmem:[#allocation2 + $0xb8] sm:$0xff] %v3111_v46  ;;  %v3122_v53 = vsel %vm2985_vm5, %v928_v45, %v979_v42  ;;  %v652_v5 = vsel %vm2888_vm3, 0, %v651_v38  ;;  %v3138_v11 = vor.u32 %v723_v62, %v3000_v25  ;;  %2722 = vmatprep.subr.bf16.mxu1 %v2826_v7  ;;  %1268 = vmatprep.subr.bf16.mxu0 %v2826_v7 }
  0x30   : > { %v929_v55 = vrot.slane %v688_v18, 1  ;;  %981 = vst [vmem:[#allocation2 + $0x38] sm:$0xff] %v3122_v53  ;;  %v530_v14 = vmax.f32 %v498_v56, 0.0  ;;  %653 = vst [vmem:[#allocation2 + $0xd8] sm:$0x80] %v652_v5  ;;  %v2654_v19 = vunpack.c.l.bf16 %v2703_v44  ;;  %v531_v12 = vmax.f32 %v499_v4, 0.0 }
  0x31   : > { %v946_v0 = vor.u32 %v945_v48, %v741_v47  ;;  %v2655_v57 = vunpack.c.h.bf16 %v2703_v44  ;;  %v628_v62 = vsel %vm2888_vm3, 0, %v627_v51  ;;  %v2690_v30 = vunpack.c.l.bf16 %v2712_v52  ;;  %2734 = vmatpush1.bf16.msra.mxu1 %v2772_v23  ;;  %v2773_v48 = vld [vmem:[%s4028_s3 + $0xa0] sm:$0xff]  }
  0x32   : > { %v930_v13 = vor.u32 %v929_v55, %v685_v54  ;;  %v443_v28 = vmul.f32 %v2654_v19, %v2907_v8  ;;  %629 = vst [vmem:[#allocation2 + $0x58] sm:$0x80] %v628_v62  ;;  %v2691_v31 = vunpack.c.h.bf16 %v2712_v52  ;;  %v3161_v33 = vpack.c.bf16 %v531_v12, %v530_v14  ;;  %v630_v55 = vld [vmem:[#allocation2 + $0x68] sm:$0x80]  ;;  %1269 = vmatpush1.bf16.msra.mxu0 %v2772_v23 }
  0x33   : > { %v3148_v24 = vsel %vm2985_vm5, %v946_v0, %v1006_v49  ;;  %v444_v37 = vmul.f32 %v2655_v57, %v2907_v8  ;;  %v655_v38 = vsel %vm2888_vm3, 0, %v654_v59  ;;  %v2658_v41 = vunpack.c.l.bf16 %v2704_v21  ;;  %2723 = vmatprep.subr.bf16.mxu1 %v2826_v7  ;;  %1270 = vmatprep.subr.bf16.mxu0 %v2826_v7  ;;  %v2774_v14 = vld [vmem:[%s4028_s3 + $0xa8] sm:$0xff]  }
  0x34   : > { %1008 = vst [vmem:[#allocation2 + $0xc8] sm:$0xff] %v3148_v24  ;;  %v3156_v25 = vsel %vm2985_vm5, %v930_v13, %v982_v3  ;;  %v482_v42 = vadd.f32 %v2939_v27, %v443_v28  ;;  %v461_v44 = vmul.f32 %v2690_v30, %v2907_v8  ;;  %v462_v45 = vmul.f32 %v2691_v31, %v2907_v8 }
  0x35   : > { %984 = vst [vmem:[#allocation2 + $0x48] sm:$0xff] %v3156_v25  ;;  %656 = vst [vmem:[#allocation2 + $0xe8] sm:$0x80] %v655_v38  ;;  %v2659_v20 = vunpack.c.h.bf16 %v2704_v21  ;;  %v3175_v49 = vor.u32 %v667_v63, %v3063_v15  ;;  %v751_v50 = vshll.u32 %v3161_v33, 16  ;;  %882 = vrot.lane.b32.xlu0 %v3161_v33, %s2827_s17  ;;  %v483_v51 = vadd.f32 %v2939_v27, %v444_v37  ;;  %v2713_v63 = vld [vmem:[%s2919_s12 + $0x70] sm:$0xff]  }
  0x36   : > { %v445_v52 = vmul.f32 %v2658_v41, %v2907_v8  ;;  %v514_v56 = vmax.f32 %v482_v42, 0.0  ;;  %v500_v59 = vadd.f32 %v2939_v27, %v461_v44  ;;  %v501_v0 = vadd.f32 %v2939_v27, %v462_v45  ;;  %v657_v15 = vld [vmem:[#allocation2 + $0xf8] sm:$0x80]  ;;  %2735 = vmatpush1.bf16.msra.mxu1 %v2773_v48  ;;  %1271 = vmatpush1.bf16.msra.mxu0 %v2773_v48  ;;  %v2705_v44 = vld [vmem:[%s2919_s12 + $0x30] sm:$0xff]  }
  0x37   : > { %v446_v58 = vmul.f32 %v2659_v20, %v2907_v8  ;;  %v748_v3 = vshrl.u32 %v3161_v33, 16  ;;  %v947_v4 = vrot.slane %v751_v50, 1  ;;  %v515_v5 = vmax.f32 %v483_v51, 0.0  ;;  %v1009_v19 = vld [vmem:[#allocation2 + $0xd8] sm:$0xff]  ;;  %2724 = vmatprep.subr.bf16.mxu1 %v2826_v7  ;;  %1272 = vmatprep.subr.bf16.mxu0 %v2826_v7  ;;  %v2775_v20 = vld [vmem:[%s4028_s3 + $0xb0] sm:$0xff]  }
  0x38   : > { %v484_v13 = vadd.f32 %v2939_v27, %v445_v52  ;;  %v532_v21 = vmax.f32 %v500_v59, 0.0  ;;  %v533_v23 = vmax.f32 %v501_v0, 0.0  ;;  %v631_v57 = vsel %vm2888_vm3, 0, %v630_v55 }
  0x39   : > { %v485_v12 = vadd.f32 %v2939_v27, %v446_v58  ;;  %v3201_v62 = vor.u32 %v730_v6, %v3089_v39  ;;  %v948_v28 = vor.u32 %v947_v4, %v748_v3  ;;  %v3205_v30 = vpack.c.bf16 %v515_v5, %v514_v56  ;;  %632 = vst [vmem:[#allocation2 + $0x68] sm:$0x80] %v631_v57  ;;  %v985_v0 = vld [vmem:[#allocation2 + $0x58] sm:$0xff] }
  0x3a   : > { %v516_v31 = vmax.f32 %v484_v13, 0.0  ;;  %v3208_v37 = vpack.c.bf16 %v533_v23, %v532_v21  ;;  %v2694_v41 = vunpack.c.l.bf16 %v2713_v63  ;;  %v2695_v42 = vunpack.c.h.bf16 %v2713_v63  ;;  %2736 = vmatpush1.bf16.msra.mxu1 %v2774_v14  ;;  %1273 = vmatpush1.bf16.msra.mxu0 %v2774_v14  ;;  %v660_v21 = vld [vmem:[#allocation2 + $0x108] sm:$0x80] }
  0x3b   : > { %v517_v38 = vmax.f32 %v485_v12, 0.0  ;;  %v736_v60 = vrot.slane %v734_v26, 7  ;;  %v3216_v6 = vsel %vm2985_vm5, %v948_v28, %v1009_v19  ;;  %v695_v39 = vshll.u32 %v3205_v30, 16  ;;  %866 = vrot.lane.b32.xlu1 %v3205_v30, %s2827_s17  ;;  %2725 = vmatprep.subr.bf16.mxu1 %v2826_v7  ;;  %v2776_v28 = vld [vmem:[%s4028_s3 + $0xb8] sm:$0xff]  }
  0x3c   : > { %v658_v45 = vsel %vm2888_vm3, 0, %v657_v15  ;;  %v680_v48 = vrot.slane %v678_v32, 7  ;;  %1011 = vst [vmem:[#allocation2 + $0xd8] sm:$0xff] %v3216_v6  ;;  %v4038_v26 = vshll.u32 %v3208_v37, 16  ;;  %884 = vrot.lane.b32.xlu0 %v3208_v37, %s2827_s17  ;;  %v463_v52 = vmul.f32 %v2694_v41, %v2907_v8  ;;  %v2714_v15 = vld [vmem:[%s2919_s12 + $0x78] sm:$0xff]   ;;  %1274 = vmatprep.subr.bf16.mxu0 %v2826_v7  ;;  %v1012_v13 = vld [vmem:[#allocation2 + $0xe8] sm:$0xff] }
  0x3d   : > { %v3232_v51 = vpack.c.bf16 %v517_v38, %v516_v31  ;;  %659 = vst [vmem:[#allocation2 + $0xf8] sm:$0x80] %v658_v45  ;;  %v3238_v55 = vor.u32 %v674_v9, %v3093_v40  ;;  %v692_v32 = vshrl.u32 %v3205_v30, 16  ;;  %v931_v56 = vrot.slane %v695_v39, 1  ;;  %v633_v40 = vld [vmem:[#allocation2 + $0x78] sm:$0x80] }
  0x3e   : > { %v464_v59 = vmul.f32 %v2695_v42, %v2907_v8  ;;  %v755_v58 = vshrl.u32 %v3208_v37, 16  ;;  %v949_v63 = vrot.slane %v4038_v26, 1  ;;  %v2662_v9 = vunpack.c.l.bf16 %v2705_v44  ;;  %2737 = vmatpush1.bf16.msra.mxu1 %v2775_v20  ;;  %1275 = vmatpush1.bf16.msra.mxu0 %v2775_v20 }
  0x3f   : > { %v4036_v61 = vshll.u32 %v3232_v51, 16  ;;  %v3253_v4 = vor.u32 %v737_v16, %v736_v60  ;;  %v932_v5 = vor.u32 %v931_v56, %v692_v32  ;;  %868 = vrot.lane.b32.xlu1 %v3232_v51, %s2827_s17  ;;  %v502_v14 = vadd.f32 %v2939_v27, %v463_v52  ;;  %2726 = vmatprep.subr.bf16.mxu1 %v2826_v7  ;;  %v2706_v52 = vld [vmem:[%s2919_s12 + $0x38] sm:$0xff]  }
  0x40   : > { %v503_v19 = vadd.f32 %v2939_v27, %v464_v59  ;;  %v3263_v23 = vor.u32 %v681_v22, %v680_v48  ;;  %v950_v2 = vor.u32 %v949_v63, %v755_v58  ;;  %v699_v16 = vshrl.u32 %v3232_v51, 16  ;;  %v988_v57 = vld [vmem:[#allocation2 + $0x68] sm:$0xff]  ;;  %1276 = vmatprep.subr.bf16.mxu0 %v2826_v7 }
  0x41   : > { %v933_v12 = vrot.slane %v4036_v61, 1  ;;  %v3275_v10 = vsel %vm2985_vm5, %v932_v5, %v985_v0  ;;  %v534_v22 = vmax.f32 %v502_v14, 0.0  ;;  %v2663_v38 = vunpack.c.h.bf16 %v2705_v44 }
  0x42   : > { %v535_v31 = vmax.f32 %v503_v19, 0.0  ;;  %v743_v41 = vrot.slane %v741_v47, 7  ;;  %987 = vst [vmem:[#allocation2 + $0x58] sm:$0xff] %v3275_v10  ;;  %v3283_v42 = vsel %vm2985_vm5, %v950_v2, %v1012_v13  ;;  %v447_v45 = vmul.f32 %v2662_v9, %v2907_v8  ;;  %2738 = vmatpush1.bf16.msra.mxu1 %v2776_v28  ;;  %1277 = vmatpush1.bf16.msra.mxu0 %v2776_v28 }
  0x43   : > { %v934_v60 = vor.u32 %v933_v12, %v699_v16  ;;  %1014 = vst [vmem:[#allocation2 + $0xe8] sm:$0xff] %v3283_v42  ;;  %v448_v20 = vmul.f32 %v2663_v38, %v2907_v8  ;;  %v634_v47 = vsel %vm2888_vm3, 0, %v633_v40  ;;  %v2698_v48 = vunpack.c.l.bf16 %v2714_v15  ;;  %1535 = vmatprep.subr.bf16.mxu1 %v2826_v7  ;;  %1874 = vmatprep.subr.bf16.mxu0 %v2826_v7  ;;  %v564_v7 = vld [vmem:[#allocation2 + $0x10] sm:$0x1] }
  0x44   : > { %v3290_v44 = vpack.c.bf16 %v535_v31, %v534_v22  ;;  %v486_v59 = vadd.f32 %v2939_v27, %v447_v45  ;;  %635 = vst [vmem:[#allocation2 + $0x78] sm:$0x80] %v634_v47  ;;  %v2699_v0 = vunpack.c.h.bf16 %v2714_v15  ;;  %v661_v63 = vsel %vm2888_vm3, 0, %v660_v21  ;;  %v636_v15 = vld [vmem:[#allocation2 + $0x88] sm:$0x80]  ;;  %v1015_v38 = vld [vmem:[#allocation2 + $0xf8] sm:$0xff] }
  0x45   : > { %v3298_v56 = vsel %vm2985_vm5, %v934_v60, %v988_v57  ;;  %v3305_v9 = vrot.slane %v685_v54, 7  ;;  %v487_v5 = vadd.f32 %v2939_v27, %v448_v20  ;;  %v465_v13 = vmul.f32 %v2698_v48, %v2907_v8  ;;  %662 = vst [vmem:[#allocation2 + $0x108] sm:$0x80] %v661_v63  ;;  %v588_v31 = vld [vmem:[#allocation2 + $0x90] sm:$0x1] }
  0x46   : > { %990 = vst [vmem:[#allocation2 + $0x68] sm:$0xff] %v3298_v56  ;;  %v4035_v40 = vshll.u32 %v3290_v44, 16  ;;  %886 = vrot.lane.b32.xlu0 %v3290_v44, %s2827_s17  ;;  %v518_v14 = vmax.f32 %v486_v59, 0.0  ;;  %v466_v19 = vmul.f32 %v2699_v0, %v2907_v8  ;;  %v2666_v21 = vunpack.c.l.bf16 %v2706_v52  ;;  %v591_v0 = vld [vmem:[#allocation2 + $0xa0] sm:$0x1] }
  0x47   : > { %v2667_v54 = vunpack.c.h.bf16 %v2706_v52  ;;  %v762_v2 = vshrl.u32 %v3290_v44, 16  ;;  %v519_v57 = vmax.f32 %v487_v5, 0.0  ;;  %v504_v22 = vadd.f32 %v2939_v27, %v465_v13 }
  0x48   : > { %v951_v12 = vrot.slane %v4035_v40, 1  ;;  %v505_v28 = vadd.f32 %v2939_v27, %v466_v19  ;;  %v449_v60 = vmul.f32 %v2666_v21, %v2907_v8  ;;  %v637_v20 = vsel %vm2888_vm3, 0, %v636_v15  ;;  %v570_v21 = vld [vmem:[#allocation2 + $0x30] sm:$0x1] }
  0x49   : > { %v450_v45 = vmul.f32 %v2667_v54, %v2907_v8  ;;  %v3327_v47 = vor.u32 %v744_v43, %v743_v41  ;;  %v3329_v52 = vpack.c.bf16 %v519_v57, %v518_v14  ;;  %v536_v59 = vmax.f32 %v504_v22, 0.0  ;;  %638 = vst [vmem:[#allocation2 + $0x88] sm:$0x80] %v637_v20  ;;  %v567_v8 = vld [vmem:[#allocation2 + $0x20] sm:$0x1] }
  0x4a   : > { %v952_v48 = vor.u32 %v951_v12, %v762_v2  ;;  %v537_v63 = vmax.f32 %v505_v28, 0.0  ;;  %v488_v5 = vadd.f32 %v2939_v27, %v449_v60  ;;  %v3335_v1 = vrot.slane %v748_v3, 7  ;;  %v594_v3 = vld [vmem:[#allocation2 + $0xb0] sm:$0x1]  ;;  %v597_v54 = vld [vmem:[#allocation2 + $0xc0] sm:$0x1] }
  0x4b   : > { %v489_v13 = vadd.f32 %v2939_v27, %v450_v45  ;;  %v3339_v29 = vrot.slane %v692_v32, 7  ;;  %v4033_v41 = vshll.u32 %v3329_v52, 16  ;;  %870 = vrot.lane.b32.xlu1 %v3329_v52, %s2827_s17  ;;  %v589_v19 = vsel %vm3349_vm8, 0, %v588_v31  ;;  %v573_v28 = vld [vmem:[#allocation2 + $0x40] sm:$0x1]  ;;  %v991_v31 = vld [vmem:[#allocation2 + $0x78] sm:$0xff] }
  0x4c   : > { %v3343_v43 = vsel %vm2985_vm5, %v952_v48, %v1015_v38  ;;  %v3354_v15 = vpack.c.bf16 %v537_v63, %v536_v59  ;;  %v520_v32 = vmax.f32 %v488_v5, 0.0  ;;  %v3360_v12 = vrot.slane %v755_v58, 7  ;;  %590 = vst [vmem:[#allocation2 + $0x90] sm:$0x1] %v589_v19  ;;  %v600_v48 = vld [vmem:[#allocation2 + $0xd0] sm:$0x1] }
  0x4d   : > { %1017 = vst [vmem:[#allocation2 + $0xf8] sm:$0xff] %v3343_v43  ;;  %v521_v14 = vmax.f32 %v489_v13, 0.0  ;;  %v706_v57 = vshrl.u32 %v3329_v52, 16  ;;  %v935_v22 = vrot.slane %v4033_v41, 1  ;;  %v565_v38 = vsel %vm3349_vm8, 0, %v564_v7 }
  0x4e   : > { %v3369_v60 = vrot.slane %v699_v16, 7  ;;  %v4034_v45 = vshll.u32 %v3354_v15, 16  ;;  %888 = vrot.lane.b32.xlu0 %v3354_v15, %s2827_s17  ;;  %566 = vst [vmem:[#allocation2 + $0x10] sm:$0x1] %v565_v38  ;;  %v592_v20 = vsel %vm3349_vm8, 0, %v591_v0  ;;  %v568_v16 = vsel %vm3349_vm8, 0, %v567_v8 }
  0x4f   : > { %v3374_v58 = vpack.c.bf16 %v521_v14, %v520_v32  ;;  %v576_v59 = vld [vmem:[#allocation2 + $0x50] sm:$0x1]  ;;  %v603_v7 = vld [vmem:[#allocation2 + $0xe0] sm:$0x1]  ;;  %v936_v5 = vor.u32 %v935_v22, %v706_v57  ;;  %593 = vst [vmem:[#allocation2 + $0xa0] sm:$0x1] %v592_v20  ;;  %v753_v27 = vor.u32 %v751_v50, %v3335_v1 }
  0x50   : > { %v579_v63 = vld [vmem:[#allocation2 + $0x60] sm:$0x1]  ;;  %v595_v13 = vsel %vm3349_vm8, 0, %v594_v3  ;;  %v606_v19 = vld [vmem:[#allocation2 + $0xf0] sm:$0x1]  ;;  %v3382_v32 = vrot.slane %v762_v2, 7 }
  0x51   : > { %v769_v14 = vshrl.u32 %v3354_v15, 16  ;;  %v953_v0 = vrot.slane %v4034_v45, 1  ;;  %v4037_v38 = vshll.u32 %v3374_v58, 16  ;;  %872 = vrot.lane.b32.xlu1 %v3374_v58, %s2827_s17  ;;  %569 = vst [vmem:[#allocation2 + $0x20] sm:$0x1] %v568_v16  ;;  %v3392_v3 = vsel %vm2985_vm5, %v936_v5, %v991_v31  ;;  %v1018_v2 = vld [vmem:[#allocation2 + $0x108] sm:$0xff] }
  0x52   : > { %596 = vst [vmem:[#allocation2 + $0xb0] sm:$0x1] %v595_v13  ;;  %v582_v22 = vld [vmem:[#allocation2 + $0x70] sm:$0x1]  ;;  %v609_v8 = vld [vmem:[#allocation2 + $0x100] sm:$0x1] }
  0x53   : > { %v585_v20 = vld [vmem:[#allocation2 + $0x80] sm:$0x1]  ;;  %v571_v41 = vsel %vm3349_vm8, 0, %v570_v21  ;;  %v598_v45 = vsel %vm3349_vm8, 0, %v597_v54  ;;  %v574_v40 = vsel %vm3349_vm8, 0, %v573_v28  ;;  %v708_v61 = vrot.slane %v706_v57, 7 }
  0x54   : > { %993 = vst [vmem:[#allocation2 + $0x78] sm:$0xff] %v3392_v3  ;;  %v954_v16 = vor.u32 %v953_v0, %v769_v14  ;;  %v713_v13 = vshrl.u32 %v3374_v58, 16  ;;  %v937_v31 = vrot.slane %v4037_v38, 1  ;;  %572 = vst [vmem:[#allocation2 + $0x30] sm:$0x1] %v571_v41  ;;  %v994_v21 = vld [vmem:[#allocation2 + $0x88] sm:$0xff] }
  0x55   : > { %599 = vst [vmem:[#allocation2 + $0xc0] sm:$0x1] %v598_v45  ;;  %575 = vst [vmem:[#allocation2 + $0x40] sm:$0x1] %v574_v40  ;;  %v601_v54 = vsel %vm3349_vm8, 0, %v600_v48  ;;  %v577_v57 = vsel %vm3349_vm8, 0, %v576_v59 }
  0x56   : > { %v604_v28 = vsel %vm3349_vm8, 0, %v603_v7  ;;  %v580_v0 = vsel %vm3349_vm8, 0, %v579_v63  ;;  %v771_v38 = vrot.slane %v769_v14, 7  ;;  %v3420_v26 = vsel %vm2985_vm5, %v954_v16, %v1018_v2  ;;  %v818_v40 = vld [vmem:[#allocation2 + $0x90] sm:$0xff]  ;;  %602 = vst [vmem:[#allocation2 + $0xd0] sm:$0x1] %v601_v54 }
  0x57   : > { %v938_v41 = vor.u32 %v937_v31, %v713_v13  ;;  %578 = vst [vmem:[#allocation2 + $0x50] sm:$0x1] %v577_v57  ;;  %605 = vst [vmem:[#allocation2 + $0xe0] sm:$0x1] %v604_v28  ;;  %v607_v45 = vsel %vm3349_vm8, 0, %v606_v19  ;;  %v819_v48 = vsel %vm3406_vm10, %v3138_v11, %v818_v40  ;;  %v794_v59 = vld [vmem:[#allocation2 + $0x10] sm:$0xff]  ;;  %v690_v19 = vor.u32 %v688_v18, %v3305_v9 }
  0x58   : > { %581 = vst [vmem:[#allocation2 + $0x60] sm:$0x1] %v580_v0  ;;  %1020 = vst [vmem:[#allocation2 + $0x108] sm:$0xff] %v3420_v26  ;;  %v583_v7 = vsel %vm3349_vm8, 0, %v582_v22  ;;  %v610_v63 = vsel %vm3349_vm8, 0, %v609_v8  ;;  %v586_v14 = vsel %vm3349_vm8, 0, %v585_v20  ;;  %v795_v11 = vsel %vm3406_vm10, %v3175_v49, %v794_v59 }
  0x59   : > { %608 = vst [vmem:[#allocation2 + $0xf0] sm:$0x1] %v607_v45  ;;  %v715_v2 = vrot.slane %v713_v13, 7  ;;  %v3439_v16 = vsel %vm2985_vm5, %v938_v41, %v994_v21  ;;  %820 = vst [vmem:[#allocation2 + $0x90] sm:$0xff] %v819_v48  ;;  %v821_v22 = vld [vmem:[#allocation2 + $0xa0] sm:$0xff]  ;;  %v824_v18 = vld [vmem:[#allocation2 + $0xb0] sm:$0xff]  ;;  %v697_v49 = vor.u32 %v695_v39, %v3339_v29 }
  0x5a   : > { %584 = vst [vmem:[#allocation2 + $0x70] sm:$0x1] %v583_v7  ;;  %611 = vst [vmem:[#allocation2 + $0x100] sm:$0x1] %v610_v63  ;;  %v822_v17 = vsel %vm3406_vm10, %v3201_v62, %v821_v22  ;;  %v797_v34 = vld [vmem:[#allocation2 + $0x20] sm:$0xff]  ;;  %v4047_v9 = vshll.u32 %v3208_v37, 16  ;;  %v825_v50 = vsel %vm3406_vm10, %v3253_v4, %v824_v18 }
  0x5b   : > { %587 = vst [vmem:[#allocation2 + $0x80] sm:$0x1] %v586_v14  ;;  %996 = vst [vmem:[#allocation2 + $0x88] sm:$0xff] %v3439_v16  ;;  %v798_v33 = vsel %vm3406_vm10, %v3238_v55, %v797_v34  ;;  %v4048_v62 = vshll.u32 %v3232_v51, 16  ;;  %v4049_v30 = vshll.u32 %v3290_v44, 16  ;;  %v4050_v37 = vshll.u32 %v3329_v52, 16 }
  0x5c   : > { %796 = vst [vmem:[#allocation2 + $0x10] sm:$0xff] %v795_v11  ;;  %v760_v8 = vor.u32 %v4047_v9, %v3360_v12  ;;  %823 = vst [vmem:[#allocation2 + $0xa0] sm:$0xff] %v822_v17  ;;  %v4051_v12 = vshll.u32 %v3354_v15, 16  ;;  %v800_v55 = vld [vmem:[#allocation2 + $0x30] sm:$0xff]  ;;  %v827_v13 = vld [vmem:[#allocation2 + $0xc0] sm:$0xff]  ;;  %v4052_v4 = vshll.u32 %v3374_v58, 16 }
  0x5d   : > { %v704_v1 = vor.u32 %v4048_v62, %v3369_v60  ;;  %v767_v39 = vor.u32 %v4049_v30, %v3382_v32  ;;  %v711_v29 = vor.u32 %v4050_v37, %v708_v61  ;;  %799 = vst [vmem:[#allocation2 + $0x20] sm:$0xff] %v798_v33  ;;  %826 = vst [vmem:[#allocation2 + $0xb0] sm:$0xff] %v825_v50  ;;  %v803_v31 = vld [vmem:[#allocation2 + $0x40] sm:$0xff]  ;;  %v830_v52 = vld [vmem:[#allocation2 + $0xd0] sm:$0xff] }
  0x5e   : > { %v774_v20 = vor.u32 %v4051_v12, %v771_v38  ;;  %v718_v21 = vor.u32 %v4052_v4, %v715_v2  ;;  %v801_v51 = vsel %vm3406_vm10, %v3263_v23, %v800_v55  ;;  %v828_v44 = vsel %vm3406_vm10, %v3327_v47, %v827_v13  ;;  %v806_v15 = vld [vmem:[#allocation2 + $0x50] sm:$0xff]  ;;  %v833_v60 = vld [vmem:[#allocation2 + $0xe0] sm:$0xff]  ;;  %v2779_v11 = vld [vmem:[%s4028_s3 + $0x8] sm:$0xff]  }
  0x5f   : > { %v804_v61 = vsel %vm3406_vm10, %v690_v19, %v803_v31  ;;  %802 = vst [vmem:[#allocation2 + $0x30] sm:$0xff] %v801_v51  ;;  %829 = vst [vmem:[#allocation2 + $0xc0] sm:$0xff] %v828_v44  ;;  %v831_v58 = vsel %vm3406_vm10, %v753_v27, %v830_v52  ;;  %v807_v32 = vsel %vm3406_vm10, %v697_v49, %v806_v15  ;;  %v809_v38 = vld [vmem:[#allocation2 + $0x60] sm:$0xff]  ;;  %v2781_v18 = vld [vmem:[%s4028_s3 + $0x10] sm:$0xff]  }
  0x60   : > { %805 = vst [vmem:[#allocation2 + $0x40] sm:$0xff] %v804_v61  ;;  %v834_v23 = vsel %vm3406_vm10, %v760_v8, %v833_v60  ;;  %v836_v47 = vld [vmem:[#allocation2 + $0xf0] sm:$0xff]  ;;  %832 = vst [vmem:[#allocation2 + $0xd0] sm:$0xff] %v831_v58  ;;  %v810_v54 = vsel %vm3406_vm10, %v704_v1, %v809_v38  ;;  %v2777_v19 = vld [vmem:[%s4028_s3] sm:$0xff]  }
  0x61   : > { %808 = vst [vmem:[#allocation2 + $0x50] sm:$0xff] %v807_v32  ;;  %835 = vst [vmem:[#allocation2 + $0xe0] sm:$0xff] %v834_v23  ;;  %v837_v57 = vsel %vm3406_vm10, %v767_v39, %v836_v47  ;;  %v812_v28 = vld [vmem:[#allocation2 + $0x70] sm:$0xff]  ;;  %v839_v0 = vld [vmem:[#allocation2 + $0x100] sm:$0xff] }
  0x62   : > { %v815_v41 = vld [vmem:[#allocation2 + $0x80] sm:$0xff]  ;;  %811 = vst [vmem:[#allocation2 + $0x60] sm:$0xff] %v810_v54  ;;  %838 = vst [vmem:[#allocation2 + $0xf0] sm:$0xff] %v837_v57  ;;  %v813_v40 = vsel %vm3406_vm10, %v711_v29, %v812_v28  ;;  %v840_v45 = vsel %vm3406_vm10, %v774_v20, %v839_v0  ;;  %v2782_v33 = vld [vmem:[%s4028_s3 + $0xd0] sm:$0xff]  }
  0x63   : > { %v816_v48 = vsel %vm3406_vm10, %v718_v21, %v815_v41  ;;  %814 = vst [vmem:[#allocation2 + $0x70] sm:$0xff] %v813_v40  ;;  %841 = vst [vmem:[#allocation2 + $0x100] sm:$0xff] %v840_v45  ;;  %v2778_v2 = vld [vmem:[%s4028_s3 + $0xc0] sm:$0xff]   ;;  %v2783_v50 = vld [vmem:[%s4028_s3 + $0x18] sm:$0xff]  }
  0x64   : > { %817 = vst [vmem:[#allocation2 + $0x80] sm:$0xff] %v816_v48  ;;  %v3517_v22 = vld [vmem:[#allocation2] sm:$0xff]  ;;  %v2784_v1 = vld [vmem:[%s4028_s3 + $0xd8] sm:$0xff]   ;;  %v2787_v39 = vld [vmem:[%s4028_s3 + $0x28] sm:$0xff]  }
  0x65   : > { %v2789_v12 = vld [vmem:[%s4028_s3 + $0x30] sm:$0xff]   ;;  %v2791_v31 = vld [vmem:[%s4028_s3 + $0x38] sm:$0xff]   ;;  %v2793_v51 = vld [vmem:[%s4028_s3 + $0x40] sm:$0xff]  }
  0x66   : > { %v2792_v21 = vld [vmem:[%s4028_s3 + $0xf8] sm:$0xff]   ;;  %v2795_v61 = vld [vmem:[%s4028_s3 + $0x48] sm:$0xff]   ;;  %v2797_v60 = vld [vmem:[%s4028_s3 + $0x50] sm:$0xff]  }
  0x67   : > { %v2796_v15 = vld [vmem:[%s4028_s3 + $0x108] sm:$0xff]   ;;  %v2799_v23 = vld [vmem:[%s4028_s3 + $0x58] sm:$0xff]  }
  0x68   : > { %v2800_v47 = vld [vmem:[%s4028_s3 + $0x118] sm:$0xff]   ;;  %v1022_v0 = vld [vmem:[#allocation2 + $0x8] sm:$0xff] }
  0x69   : > { %v1698_v40 = vld [vmem:[#allocation2 + $0x28] sm:$0xff]  ;;  %v1024_v45 = vld [vmem:[#allocation2 + $0x18] sm:$0xff] }
  0x6a   : > { %v1702_v48 = vld [vmem:[#allocation2 + $0x48] sm:$0xff] }
  0x8e   : > { %v875_v59 = vpop.permute.xlu0 %874  ;;  %v877_v7 = vpop.permute.xlu1 %876 }
  0x8f   : > { %915 = vst.msk [vmem:[#allocation2 + $0x90] sm:$0xff] %vm906_vm11, %v875_v59  ;;  %916 = vst.msk [vmem:[#allocation2 + $0xa0] sm:$0xff] %vm906_vm11, %v877_v7  ;;  %v1704_v59 = vld [vmem:[#allocation2 + $0x58] sm:$0xff]  ;;  %v1706_v7 = vld [vmem:[#allocation2 + $0x68] sm:$0xff] }
  0x92   : > { %v859_v63 = vpop.permute.xlu0 %858  ;;  %v861_v14 = vpop.permute.xlu1 %860 }
  0x93   : > { %907 = vst.msk [vmem:[#allocation2 + $0x10] sm:$0xff] %vm906_vm11, %v859_v63  ;;  %908 = vst.msk [vmem:[#allocation2 + $0x20] sm:$0xff] %vm906_vm11, %v861_v14  ;;  %v1712_v63 = vld [vmem:[#allocation2 + $0x98] sm:$0xff]  ;;  %v1714_v14 = vld [vmem:[#allocation2 + $0xa8] sm:$0xff] }
  0x96   : > { %v3506_v5 = vld [vmem:[#allocation2 + $0x90] sm:$0xff]  ;;  %v3523_v34 = vld [vmem:[#allocation2 + $0xa0] sm:$0xff] }
  0x97   : > { %1351 = vmatmul.mubr.bf16.vlgmr.msra.gmra.mrb[0].mxu1 %v3506_v5 }
  0x98   : > { %1536 = vmatpush1.bf16.msra.mxu1 %v2777_v19  ;;  %2544 = vmatprep.mubr.msk.bf16.mxu1 %vm555_vm2, %v3020_v35  ;;  %v2780_v35 = vld [vmem:[%s4028_s3 + $0xc8] sm:$0xff]   ;;  %v1716_v19 = vld [vmem:[#allocation2 + $0xb8] sm:$0xff] }
  0x99   : > { %1537 = vmatprep.subr.bf16.mxu1 %v3517_v22 }
  0x9a   : > { %v3520_v27 = vld [vmem:[#allocation2 + $0x10] sm:$0xff]  ;;  %v879_v17 = vpop.permute.xlu0 %878  ;;  %v3538_v9 = vld [vmem:[#allocation2 + $0x20] sm:$0xff] }
  0x9b   : > { %1287 = vmatmul.mubr.bf16.vlgmr.msra.gmra.mrb[0].mxu0 %v3520_v27  ;;  %917 = vst.msk [vmem:[#allocation2 + $0xb0] sm:$0xff] %vm906_vm11, %v879_v17  ;;  %v863_v49 = vpop.permute.xlu1 %862 }
  0x9c   : > { %1875 = vmatpush1.bf16.msra.mxu0 %v2778_v2  ;;  %1538 = vmatpush1.bf16.msra.mxu1 %v2779_v11  ;;  %909 = vst.msk [vmem:[#allocation2 + $0x30] sm:$0xff] %vm906_vm11, %v863_v49  ;;  %v1724_v2 = vld [vmem:[#allocation2 + $0xf8] sm:$0xff]  ;;  %v1726_v11 = vld [vmem:[#allocation2 + $0x108] sm:$0xff] }
  0x9d   : > { %1876 = vmatprep.subr.bf16.mxu0 %v3517_v22  ;;  %2536 = vmatprep.mubr.msk.bf16.mxu0 %vm555_vm2, %v3024_v36 }
  0x9e   : > { %1539 = vmatprep.subr.bf16.mxu1 %v3517_v22 }
  0x9f   : > { %1359 = vmatmul.mubr.bf16.gmra.mrb[4].mxu1 %v3523_v34  ;;  %v881_v8 = vpop.permute.xlu0 %880 }
  0xa0   : > { %1877 = vmatpush1.bf16.msra.mxu0 %v2780_v35  ;;  %1540 = vmatpush1.bf16.msra.mxu1 %v2781_v18  ;;  %918 = vst.msk [vmem:[#allocation2 + $0xc0] sm:$0xff] %vm906_vm11, %v881_v8  ;;  %v865_v36 = vpop.permute.xlu1 %864 }
  0xa1   : > { %1878 = vmatprep.subr.bf16.mxu0 %v3517_v22  ;;  %2545 = vmatprep.mubr.msk.bf16.mxu1 %vm555_vm2, %v3111_v46  ;;  %910 = vst.msk [vmem:[#allocation2 + $0x40] sm:$0xff] %vm906_vm11, %v865_v36  ;;  %v2785_v46 = vld [vmem:[%s4028_s3 + $0x20] sm:$0xff]  }
  0xa2   : > { %1541 = vmatprep.subr.bf16.mxu1 %v3517_v22  ;;  %v3553_v62 = vld [vmem:[#allocation2 + $0xb0] sm:$0xff] }
  0xa3   : > { %1295 = vmatmul.mubr.bf16.gmra.mrb[4].mxu0 %v3538_v9  ;;  %v3566_v30 = vld [vmem:[#allocation2 + $0x30] sm:$0xff] }
  0xa4   : > { %1879 = vmatpush1.bf16.msra.mxu0 %v2782_v33  ;;  %1542 = vmatpush1.bf16.msra.mxu1 %v2783_v50 }
  0xa5   : > { %2537 = vmatprep.mubr.msk.bf16.mxu0 %vm555_vm2, %v3122_v53  ;;  %1880 = vmatprep.subr.bf16.mxu0 %v3517_v22  ;;  %v2786_v53 = vld [vmem:[%s4028_s3 + $0xe0] sm:$0xff]  }
  0xa6   : > { %1543 = vmatprep.subr.bf16.mxu1 %v3517_v22 }
  0xa7   : > { %1367 = vmatmul.mubr.bf16.gmra.mrb[8].mxu1 %v3553_v62  ;;  %v883_v37 = vpop.permute.xlu0 %882  ;;  %v3580_v29 = vld [vmem:[#allocation2 + $0xc0] sm:$0xff] }
  0xa8   : > { %1881 = vmatpush1.bf16.msra.mxu0 %v2784_v1  ;;  %2546 = vmatprep.mubr.msk.bf16.mxu1 %vm555_vm2, %v3148_v24  ;;  %919 = vst.msk [vmem:[#allocation2 + $0xd0] sm:$0xff] %vm906_vm11, %v883_v37  ;;  %v2788_v24 = vld [vmem:[%s4028_s3 + $0xe8] sm:$0xff]   ;;  %v3593_v55 = vld [vmem:[#allocation2 + $0x40] sm:$0xff] }
  0xa9   : > { %1544 = vmatpush1.bf16.msra.mxu1 %v2785_v46  ;;  %1882 = vmatprep.subr.bf16.mxu0 %v3517_v22 }
  0xaa   : > { %1545 = vmatprep.subr.bf16.mxu1 %v3517_v22 }
  0xab   : > { %1303 = vmatmul.mubr.bf16.gmra.mrb[8].mxu0 %v3566_v30 }
  0xac   : > { %1883 = vmatpush1.bf16.msra.mxu0 %v2786_v53  ;;  %2538 = vmatprep.mubr.msk.bf16.mxu0 %vm555_vm2, %v3156_v25  ;;  %v2790_v25 = vld [vmem:[%s4028_s3 + $0xf0] sm:$0xff]  }
  0xad   : > { %1546 = vmatpush1.bf16.msra.mxu1 %v2787_v39  ;;  %1884 = vmatprep.subr.bf16.mxu0 %v3517_v22  ;;  %v867_v20 = vpop.permute.xlu1 %866 }
  0xae   : > { %1547 = vmatprep.subr.bf16.mxu1 %v3517_v22  ;;  %911 = vst.msk [vmem:[#allocation2 + $0x50] sm:$0xff] %vm906_vm11, %v867_v20  ;;  %v885_v13 = vpop.permute.xlu0 %884 }
  0xaf   : > { %1375 = vmatmul.mubr.bf16.gmra.mrb[12].mxu1 %v3580_v29  ;;  %920 = vst.msk [vmem:[#allocation2 + $0xe0] sm:$0xff] %vm906_vm11, %v885_v13 }
  0xb0   : > { %2547 = vmatprep.mubr.msk.bf16.mxu1 %vm555_vm2, %v3216_v6  ;;  %1885 = vmatpush1.bf16.msra.mxu0 %v2788_v24  ;;  %v3608_v6 = vld [vmem:[#allocation2 + $0xd0] sm:$0xff] }
  0xb1   : > { %1548 = vmatpush1.bf16.msra.mxu1 %v2789_v12  ;;  %1886 = vmatprep.subr.bf16.mxu0 %v3517_v22  ;;  %v869_v4 = vpop.permute.xlu1 %868 }
  0xb2   : > { %1549 = vmatprep.subr.bf16.mxu1 %v3517_v22  ;;  %912 = vst.msk [vmem:[#allocation2 + $0x60] sm:$0xff] %vm906_vm11, %v869_v4 }
  0xb3   : > { %1311 = vmatmul.mubr.bf16.gmra.mrb[12].mxu0 %v3593_v55 }
  0xb4   : > { %2539 = vmatprep.mubr.msk.bf16.mxu0 %vm555_vm2, %v3275_v10  ;;  %1887 = vmatpush1.bf16.msra.mxu0 %v2790_v25  ;;  %v2794_v10 = vld [vmem:[%s4028_s3 + $0x100] sm:$0xff]  }
  0xb5   : > { %1550 = vmatpush1.bf16.msra.mxu1 %v2791_v31  ;;  %1888 = vmatprep.subr.bf16.mxu0 %v3517_v22  ;;  %v3622_v44 = vld [vmem:[#allocation2 + $0x50] sm:$0xff] }
  0xb6   : > { %1551 = vmatprep.subr.bf16.mxu1 %v3517_v22 }
  0xb7   : > { %1383 = vmatmul.mubr.bf16.gmra.mrb[16].mxu1 %v3608_v6 }
  0xb8   : > { %2548 = vmatprep.mubr.msk.bf16.mxu1 %vm555_vm2, %v3283_v42  ;;  %1889 = vmatpush1.bf16.msra.mxu0 %v2792_v21  ;;  %v887_v52 = vpop.permute.xlu0 %886  ;;  %v3636_v42 = vld [vmem:[#allocation2 + $0xe0] sm:$0xff] }
  0xb9   : > { %1552 = vmatpush1.bf16.msra.mxu1 %v2793_v51  ;;  %1890 = vmatprep.subr.bf16.mxu0 %v3517_v22  ;;  %921 = vst.msk [vmem:[#allocation2 + $0xf0] sm:$0xff] %vm906_vm11, %v887_v52  ;;  %v3649_v32 = vld [vmem:[#allocation2 + $0x60] sm:$0xff] }
  0xba   : > { %1553 = vmatprep.subr.bf16.mxu1 %v3517_v22 }
  0xbb   : > { %1319 = vmatmul.mubr.bf16.gmra.mrb[16].mxu0 %v3622_v44 }
  0xbc   : > { %2540 = vmatprep.mubr.msk.bf16.mxu0 %vm555_vm2, %v3298_v56  ;;  %1891 = vmatpush1.bf16.msra.mxu0 %v2794_v10  ;;  %v2798_v56 = vld [vmem:[%s4028_s3 + $0x110] sm:$0xff]  }
  0xbd   : > { %1554 = vmatpush1.bf16.msra.mxu1 %v2795_v61  ;;  %1892 = vmatprep.subr.bf16.mxu0 %v3517_v22  ;;  %v871_v58 = vpop.permute.xlu1 %870 }
  0xbe   : > { %1555 = vmatprep.subr.bf16.mxu1 %v3517_v22  ;;  %913 = vst.msk [vmem:[#allocation2 + $0x70] sm:$0xff] %vm906_vm11, %v871_v58 }
  0xbf   : > { %1391 = vmatmul.mubr.bf16.gmra.mrb[20].mxu1 %v3636_v42 }
  0xc0   : > { %2549 = vmatprep.mubr.msk.bf16.mxu1 %vm555_vm2, %v3343_v43  ;;  %1893 = vmatpush1.bf16.msra.mxu0 %v2796_v15  ;;  %v889_v38 = vpop.permute.xlu0 %888  ;;  %v3664_v43 = vld [vmem:[#allocation2 + $0xf0] sm:$0xff] }
  0xc1   : > { %1556 = vmatpush1.bf16.msra.mxu1 %v2797_v60  ;;  %1894 = vmatprep.subr.bf16.mxu0 %v3517_v22  ;;  %922 = vst.msk [vmem:[#allocation2 + $0x100] sm:$0xff] %vm906_vm11, %v889_v38 }
  0xc2   : > { %1557 = vmatprep.subr.bf16.mxu1 %v3517_v22 }
  0xc3   : > { %1327 = vmatmul.mubr.bf16.gmra.mrb[20].mxu0 %v3649_v32  ;;  %v873_v54 = vpop.permute.xlu1 %872 }
  0xc4   : > { %2541 = vmatprep.mubr.msk.bf16.mxu0 %vm555_vm2, %v3392_v3  ;;  %1895 = vmatpush1.bf16.msra.mxu0 %v2798_v56  ;;  %914 = vst.msk [vmem:[#allocation2 + $0x80] sm:$0xff] %vm906_vm11, %v873_v54 }
  0xc5   : > { %1558 = vmatpush1.bf16.msra.mxu1 %v2799_v23  ;;  %1896 = vmatprep.subr.bf16.mxu0 %v3517_v22  ;;  %v1089_v57 = vld [vmem:[#allocation2 + $0x70] sm:$0xff] }
  0xc7   : > { %1399 = vmatmul.mubr.bf16.gmra.mrb[24].mxu1 %v3664_v43 }
  0xc8   : > { %2550 = vmatprep.mubr.msk.bf16.mxu1 %vm555_vm2, %v3420_v26  ;;  %1897 = vmatpush1.bf16.msra.mxu0 %v2800_v47  ;;  %v3676_v28 = vld [vmem:[#allocation2 + $0x100] sm:$0xff]  ;;  %v1700_v26 = vld [vmem:[#allocation2 + $0x38] sm:$0xff] }
  0xcb   : > { %1335 = vmatmul.mubr.bf16.gmra.mrb[24].mxu0 %v1089_v57  ;;  %v1091_v41 = vld [vmem:[#allocation2 + $0x80] sm:$0xff] }
  0xcc   : > { %2542 = vmatprep.mubr.msk.bf16.mxu0 %vm555_vm2, %v3439_v16 }
  0xcf   : > { %1407 = vmatmul.mubr.bf16.gmra.mrb[28].mxu1 %v3676_v28 }
  0xd0   : > { %2563 = vmatprep.mubr.msk.bf16.mxu1 %vm555_vm2, %v1022_v0 }
  0xd3   : > { %1343 = vmatmul.mubr.bf16.gmra.mrb[28].mxu0 %v1091_v41 }
  0xd4   : > { %2615 = vmatprep.mubr.msk.bf16.mxu0 %vm555_vm2, %v1698_v40 }
  0xd7   : > { %1568 = vmatmul.mubr.bf16.vlgmr.msra.gmra.mrb[32].mxu1 %v3517_v22 }
  0xd8   : > { %2564 = vmatprep.mubr.msk.bf16.mxu1 %vm555_vm2, %v1024_v45 }
  0xdb   : > { %1907 = vmatmul.mubr.bf16.vlgmr.msra.gmra.mrb[32].mxu0 %v3538_v9 }
  0xdc   : > { %2616 = vmatprep.mubr.msk.bf16.mxu0 %vm555_vm2, %v1700_v26 }
  0xdf   : > { %1576 = vmatmul.mubr.bf16.gmra.mrb[36].mxu1 %v3520_v27  ;;  %v1728_v27 = vld [vmem:[#allocation2 + $0x118] sm:$0xff] }
  0xe0   : > { %2565 = vmatprep.mubr.msk.bf16.mxu1 %vm555_vm2, %v1698_v40 }
  0xe3   : > { %1915 = vmatmul.mubr.bf16.gmra.mrb[36].mxu0 %v3566_v30 }
  0xe4   : > { %2617 = vmatprep.mubr.msk.bf16.mxu0 %vm555_vm2, %v1702_v48 }
  0xe7   : > { %1584 = vmatmul.mubr.bf16.gmra.mrb[40].mxu1 %v3538_v9 }
  0xe8   : > { %2566 = vmatprep.mubr.msk.bf16.mxu1 %vm555_vm2, %v1700_v26 }
  0xeb   : > { %1923 = vmatmul.mubr.bf16.gmra.mrb[40].mxu0 %v3593_v55 }
  0xec   : > { %2618 = vmatprep.mubr.msk.bf16.mxu0 %vm555_vm2, %v1704_v59 }
  0xef   : > { %1592 = vmatmul.mubr.bf16.gmra.mrb[44].mxu1 %v3566_v30 }
  0xf0   : > { %2567 = vmatprep.mubr.msk.bf16.mxu1 %vm555_vm2, %v1702_v48 }
  0xf3   : > { %1931 = vmatmul.mubr.bf16.gmra.mrb[44].mxu0 %v3622_v44 }
  0xf4   : > { %2619 = vmatprep.mubr.msk.bf16.mxu0 %vm555_vm2, %v1706_v7 }
  0xf7   : > { %1600 = vmatmul.mubr.bf16.gmra.mrb[48].mxu1 %v3593_v55 }
  0xf8   : > { %2568 = vmatprep.mubr.msk.bf16.mxu1 %vm555_vm2, %v1704_v59 }
  0xfb   : > { %1939 = vmatmul.mubr.bf16.gmra.mrb[48].mxu0 %v3649_v32 }
  0xfc   : > { %2620 = vmatprep.mubr.msk.bf16.mxu0 %vm555_vm2, %v3392_v3 }
  0xff   : > { %1608 = vmatmul.mubr.bf16.gmra.mrb[52].mxu1 %v3622_v44 }
 0x100   : > { %2569 = vmatprep.mubr.msk.bf16.mxu1 %vm555_vm2, %v1706_v7 }
 0x103   : > { %1947 = vmatmul.mubr.bf16.gmra.mrb[52].mxu0 %v1089_v57 }
 0x104   : > { %2621 = vmatprep.mubr.msk.bf16.mxu0 %vm555_vm2, %v3439_v16 }
 0x107   : > { %1616 = vmatmul.mubr.bf16.gmra.mrb[56].mxu1 %v3649_v32 }
 0x108   : > { %2570 = vmatprep.mubr.msk.bf16.mxu1 %vm555_vm2, %v3392_v3  ;;  %v1718_v3 = vld [vmem:[#allocation2 + $0xc8] sm:$0xff] }
 0x10b   : > { %1955 = vmatmul.mubr.bf16.gmra.mrb[56].mxu0 %v1091_v41 }
 0x10c   : > { %2622 = vmatprep.mubr.msk.bf16.mxu0 %vm555_vm2, %v1712_v63 }
 0x10f   : > { %1624 = vmatmul.mubr.bf16.gmra.mrb[60].mxu1 %v1089_v57 }
 0x110   : > { %2571 = vmatprep.mubr.msk.bf16.mxu1 %vm555_vm2, %v3439_v16  ;;  %v1720_v16 = vld [vmem:[#allocation2 + $0xd8] sm:$0xff] }
 0x113   : > { %1963 = vmatmul.mubr.bf16.gmra.mrb[60].mxu0 %v3506_v5 }
 0x114   : > { %2623 = vmatprep.mubr.msk.bf16.mxu0 %vm555_vm2, %v1714_v14 }
 0x117   : > { %1632 = vmatmul.mubr.bf16.gmra.mrb[64].mxu1 %v1091_v41 }
 0x118   : > { %2572 = vmatprep.mubr.msk.bf16.mxu1 %vm555_vm2, %v1712_v63 }
 0x11b   : > { %1971 = vmatmul.mubr.bf16.gmra.mrb[64].mxu0 %v3523_v34 }
 0x11c   : > { %2624 = vmatprep.mubr.msk.bf16.mxu0 %vm555_vm2, %v1716_v19 }
 0x11f   : > { %1640 = vmatmul.mubr.bf16.gmra.mrb[68].mxu1 %v3506_v5  ;;  %v1722_v5 = vld [vmem:[#allocation2 + $0xe8] sm:$0xff] }
 0x120   : > { %2573 = vmatprep.mubr.msk.bf16.mxu1 %vm555_vm2, %v1714_v14 }
 0x123   : > { %1979 = vmatmul.mubr.bf16.gmra.mrb[68].mxu0 %v3553_v62 }
 0x124   : > { %2625 = vmatprep.mubr.msk.bf16.mxu0 %vm555_vm2, %v1718_v3 }
 0x127   : > { %1648 = vmatmul.mubr.bf16.gmra.mrb[72].mxu1 %v3523_v34 }
 0x128   : > { %2574 = vmatprep.mubr.msk.bf16.mxu1 %vm555_vm2, %v1716_v19 }
 0x12b   : > { %1987 = vmatmul.mubr.bf16.gmra.mrb[72].mxu0 %v3580_v29 }
 0x12c   : > { %2626 = vmatprep.mubr.msk.bf16.mxu0 %vm555_vm2, %v1720_v16 }
 0x12f   : > { %1656 = vmatmul.mubr.bf16.gmra.mrb[76].mxu1 %v3553_v62 }
 0x130   : > { %2575 = vmatprep.mubr.msk.bf16.mxu1 %vm555_vm2, %v1718_v3 }
 0x133   : > { %1995 = vmatmul.mubr.bf16.gmra.mrb[76].mxu0 %v3608_v6 }
 0x134   : > { %2627 = vmatprep.mubr.msk.bf16.mxu0 %vm555_vm2, %v1722_v5 }
 0x137   : > { %1664 = vmatmul.mubr.bf16.gmra.mrb[80].mxu1 %v3580_v29 }
 0x138   : > { %2576 = vmatprep.mubr.msk.bf16.mxu1 %vm555_vm2, %v1720_v16 }
 0x13b   : > { %2003 = vmatmul.mubr.bf16.gmra.mrb[80].mxu0 %v3636_v42 }
 0x13c   : > { %2628 = vmatprep.mubr.msk.bf16.mxu0 %vm555_vm2, %v1724_v2 }
 0x13f   : > { %1672 = vmatmul.mubr.bf16.gmra.mrb[84].mxu1 %v3608_v6 }
 0x140   : > { %2577 = vmatprep.mubr.msk.bf16.mxu1 %vm555_vm2, %v1722_v5 }
 0x143   : > { %2011 = vmatmul.mubr.bf16.gmra.mrb[84].mxu0 %v3664_v43 }
 0x144   : > { %2629 = vmatprep.mubr.msk.bf16.mxu0 %vm555_vm2, %v1726_v11 }
 0x147   : > { %1680 = vmatmul.mubr.bf16.gmra.mrb[88].mxu1 %v3636_v42 }
 0x148   : > { %2578 = vmatprep.mubr.msk.bf16.mxu1 %vm555_vm2, %v1724_v2 }
 0x14b   : > { %2019 = vmatmul.mubr.bf16.gmra.mrb[88].mxu0 %v3676_v28 }
 0x14c   : > { %2630 = vmatprep.mubr.msk.bf16.mxu0 %vm555_vm2, %v1728_v27 }
 0x14f   : > { %1688 = vmatmul.mubr.bf16.gmra.mrb[92].mxu1 %v3664_v43 }
 0x153   : > { %2027 = vmatmul.mubr.bf16.gmra.mrb[92].mxu0 %v3517_v22 }
 0x16a   : > { %v3745_v17 = vpop.f32.mrb[0].mxu1 }
 0x16b   : > { %v1354_v34 = vpop.f32.mrb[1].mxu1 }
 0x16c   : > { %v3747_v35 = vpop.f32.mrb[2].mxu1 }
 0x16d   : > { %v1357_v18 = vpop.f32.mrb[3].mxu1 }
 0x16e   : > { %v1288_v49 = vpop.f32.mrb[0].mxu0 }
 0x16f   : > { %v1290_v9 = vpop.f32.mrb[1].mxu0 }
 0x170   : > { %v1291_v8 = vpop.f32.mrb[2].mxu0 }
 0x171   : > { %v1293_v33 = vpop.f32.mrb[3].mxu0 }
 0x172   : > { %v3749_v50 = vpop.f32.mrb[4].mxu1 }
 0x173   : > { %v1362_v36 = vpop.f32.mrb[5].mxu1 }
 0x174   : > { %v3751_v62 = vpop.f32.mrb[6].mxu1 }
 0x175   : > { %v1365_v1 = vpop.f32.mrb[7].mxu1 }
 0x176   : > { %v3753_v46 = vpop.f32.mrb[4].mxu0 }
 0x177   : > { %v1298_v30 = vpop.f32.mrb[5].mxu0 }
 0x178   : > { %v3755_v22 = vpop.f32.mrb[6].mxu0 }
 0x179   : > { %v1301_v53 = vpop.f32.mrb[7].mxu0 }
 0x17a   : > { %v3757_v39 = vpop.f32.mrb[8].mxu1  ;;  %v3809_v53 = vld [vmem:[%s4029_s4] ss:$0 sm:$0xff] }
 0x17b   : > { %v1370_v37 = vpop.f32.mrb[9].mxu1 }
 0x17c   : > { %v3759_v29 = vpop.f32.mrb[10].mxu1 }
 0x17d   : > { %v1373_v24 = vpop.f32.mrb[11].mxu1 }
 0x17e   : > { %v3761_v12 = vpop.f32.mrb[8].mxu0 }
 0x17f   : > { %v1306_v20 = vpop.f32.mrb[9].mxu0 }
 0x180   : > { %v3763_v55 = vpop.f32.mrb[10].mxu0 }
 0x181   : > { %v1309_v25 = vpop.f32.mrb[11].mxu0 }
 0x182   : > { %v3765_v13 = vpop.f32.mrb[12].mxu1 }
 0x183   : > { %v1378_v31 = vpop.f32.mrb[13].mxu1 }
 0x184   : > { %v3767_v6 = vpop.f32.mrb[14].mxu1 }
 0x185   : > { %v1381_v4 = vpop.f32.mrb[15].mxu1 }
 0x186   : > { %v3769_v21 = vpop.f32.mrb[12].mxu0 }
 0x187   : > { %v1314_v51 = vpop.f32.mrb[13].mxu0 }
 0x188   : > { %v3771_v44 = vpop.f32.mrb[14].mxu0 }
 0x189   : > { %v1317_v10 = vpop.f32.mrb[15].mxu0 }
 0x18a   : > { %v3773_v61 = vpop.f32.mrb[16].mxu1 }
 0x18b   : > { %v1386_v52 = vpop.f32.mrb[17].mxu1 }
 0x18c   : > { %v3775_v42 = vpop.f32.mrb[18].mxu1 }
 0x18d   : > { %v1389_v15 = vpop.f32.mrb[19].mxu1 }
 0x18e   : > { %v3777_v60 = vpop.f32.mrb[16].mxu0 }
 0x18f   : > { %v1322_v58 = vpop.f32.mrb[17].mxu0 }
 0x190   : > { %v3779_v32 = vpop.f32.mrb[18].mxu0 }
 0x191   : > { %v1325_v56 = vpop.f32.mrb[19].mxu0 }
 0x192   : > { %v3781_v23 = vpop.f32.mrb[20].mxu1 }
 0x193   : > { %v1394_v38 = vpop.f32.mrb[21].mxu1 }
 0x194   : > { %v3783_v43 = vpop.f32.mrb[22].mxu1 }
 0x195   : > { %v1397_v47 = vpop.f32.mrb[23].mxu1 }
 0x196   : > { %v3785_v54 = vpop.f32.mrb[20].mxu0 }
 0x197   : > { %v1330_v57 = vpop.f32.mrb[21].mxu0 }
 0x198   : > { %v3787_v28 = vpop.f32.mrb[22].mxu0 }
 0x199   : > { %v1333_v0 = vpop.f32.mrb[23].mxu0 }
 0x19a   : > { %v3789_v41 = vpop.f32.mrb[24].mxu1 }
 0x19b   : > { %v1402_v40 = vpop.f32.mrb[25].mxu1 }
 0x19c   : > { %v3791_v45 = vpop.f32.mrb[26].mxu1 }
 0x19d   : > { %v1405_v26 = vpop.f32.mrb[27].mxu1 }
 0x19e   : > { %v3793_v48 = vpop.f32.mrb[24].mxu0 }
 0x19f   : > { %v1338_v59 = vpop.f32.mrb[25].mxu0 }
 0x1a0   : > { %v3795_v7 = vpop.f32.mrb[26].mxu0 }
 0x1a1   : > { %v1341_v63 = vpop.f32.mrb[27].mxu0 }
 0x1a2   : > { %v3797_v14 = vpop.f32.mrb[28].mxu1 }
 0x1a3   : > { %v1410_v19 = vpop.f32.mrb[29].mxu1 }
 0x1a4   : > { %v3799_v3 = vpop.f32.mrb[30].mxu1 }
 0x1a5   : > { %v1413_v16 = vpop.f32.mrb[31].mxu1 }
 0x1a6   : > { %v3801_v5 = vpop.f32.mrb[28].mxu0 }
 0x1a7   : > { %v1346_v2 = vpop.f32.mrb[29].mxu0 }
 0x1a8   : > { %v3803_v11 = vpop.f32.mrb[30].mxu0 }
 0x1a9   : > { %v1349_v27 = vpop.f32.mrb[31].mxu0 }
 0x1aa   : > { %v1569_v34 = vpop.f32.mrb[32].mxu1 }
 0x1ab   : > { %v1570_v18 = vadd.f32 %v1569_v34, %v1288_v49  ;;  %v1571_v9 = vpop.f32.mrb[33].mxu1 }
 0x1ac   : > { %v1572_v33 = vpop.f32.mrb[34].mxu1 }
 0x1ad   : > { %v1573_v36 = vadd.f32 %v1572_v33, %v1291_v8  ;;  %v1574_v1 = vpop.f32.mrb[35].mxu1 }
 0x1ae   : > { %v1908_v30 = vpop.f32.mrb[32].mxu0 }
 0x1af   : > { %v2035_v37 = vadd.f32 %v1908_v30, %v1570_v18  ;;  %v1910_v24 = vpop.f32.mrb[33].mxu0 }
 0x1b0   : > { %v1911_v49 = vpop.f32.mrb[34].mxu0 }
 0x1b1   : > { %v2074_v8 = vadd.f32 %v3809_v53, %v2035_v37  ;;  %v2036_v20 = vadd.f32 %v1911_v49, %v1573_v36  ;;  %v1913_v25 = vpop.f32.mrb[35].mxu0 }
 0x1b2   : > { %v1577_v31 = vpop.f32.mrb[36].mxu1 }
 0x1b3   : > { %v2177_v4 = vmul.f32 %v2074_v8, %v2074_v8  ;;  %2279 = vst.msk [vmem:[%s3814_s16] sm:$0xff] %vm555_vm2, %v2074_v8  ;;  %v2075_v51 = vadd.f32 %v3809_v53, %v2036_v20  ;;  %v1578_v10 = vadd.f32 %v1577_v31, %v3753_v46  ;;  %v1579_v52 = vpop.f32.mrb[37].mxu1  ;;  %v2106_v58 = vsel %vm555_vm2, %v2074_v8, 0.0 }
 0x1b4   : > { %v1580_v15 = vpop.f32.mrb[38].mxu1 }
 0x1b5   : > { %v2107_v56 = vsel %vm555_vm2, %v2075_v51, 0.0  ;;  %v2178_v38 = vmul.f32 %v2075_v51, %v2075_v51  ;;  %2280 = vst.msk [vmem:[%s3814_s16 + $0x8] sm:$0xff] %vm555_vm2, %v2075_v51  ;;  %v1581_v47 = vadd.f32 %v1580_v15, %v3755_v22  ;;  %v1582_v57 = vpop.f32.mrb[39].mxu1  ;;  %v2209_v26 = vsel %vm555_vm2, %v2177_v4, 0.0 }
 0x1b6   : > { %v2108_v0 = vadd.f32 %v2107_v56, %v2106_v58  ;;  %v1916_v40 = vpop.f32.mrb[36].mxu0 }
 0x1b7   : > { %v2210_v59 = vsel %vm555_vm2, %v2178_v38, 0.0  ;;  %v2037_v46 = vadd.f32 %v1916_v40, %v1578_v10  ;;  %v1918_v63 = vpop.f32.mrb[37].mxu0 }
 0x1b8   : > { %v2211_v19 = vadd.f32 %v2210_v59, %v2209_v26  ;;  %v1919_v16 = vpop.f32.mrb[38].mxu0 }
 0x1b9   : > { %v2076_v2 = vadd.f32 %v3809_v53, %v2037_v46  ;;  %v2038_v27 = vadd.f32 %v1919_v16, %v1581_v47  ;;  %v1921_v34 = vpop.f32.mrb[39].mxu0 }
 0x1ba   : > { %v1585_v18 = vpop.f32.mrb[40].mxu1 }
 0x1bb   : > { %v2109_v22 = vsel %vm555_vm2, %v2076_v2, 0.0  ;;  %v2179_v9 = vmul.f32 %v2076_v2, %v2076_v2  ;;  %2281 = vst.msk [vmem:[%s3814_s16 + $0x10] sm:$0xff] %vm555_vm2, %v2076_v2  ;;  %v2077_v33 = vadd.f32 %v3809_v53, %v2038_v27  ;;  %v1586_v36 = vadd.f32 %v1585_v18, %v3761_v12  ;;  %v1587_v1 = vpop.f32.mrb[41].mxu1 }
 0x1bc   : > { %v2110_v30 = vadd.f32 %v2109_v22, %v2108_v0  ;;  %v1588_v37 = vpop.f32.mrb[42].mxu1 }
 0x1bd   : > { %v2212_v24 = vsel %vm555_vm2, %v2179_v9, 0.0  ;;  %v2111_v49 = vsel %vm555_vm2, %v2077_v33, 0.0  ;;  %v2180_v8 = vmul.f32 %v2077_v33, %v2077_v33  ;;  %2282 = vst.msk [vmem:[%s3814_s16 + $0x18] sm:$0xff] %vm555_vm2, %v2077_v33  ;;  %v1589_v20 = vadd.f32 %v1588_v37, %v3763_v55  ;;  %v1590_v25 = vpop.f32.mrb[43].mxu1 }
 0x1be   : > { %v2213_v31 = vadd.f32 %v2212_v24, %v2211_v19  ;;  %v2112_v4 = vadd.f32 %v2111_v49, %v2110_v30  ;;  %v1924_v51 = vpop.f32.mrb[40].mxu0 }
 0x1bf   : > { %v2214_v10 = vsel %vm555_vm2, %v2180_v8, 0.0  ;;  %v2039_v12 = vadd.f32 %v1924_v51, %v1586_v36  ;;  %v1926_v52 = vpop.f32.mrb[41].mxu0 }
 0x1c0   : > { %v2215_v15 = vadd.f32 %v2214_v10, %v2213_v31  ;;  %v1927_v58 = vpop.f32.mrb[42].mxu0 }
 0x1c1   : > { %v2078_v56 = vadd.f32 %v3809_v53, %v2039_v12  ;;  %v2040_v38 = vadd.f32 %v1927_v58, %v1589_v20  ;;  %v1929_v47 = vpop.f32.mrb[43].mxu0 }
 0x1c2   : > { %v1593_v57 = vpop.f32.mrb[44].mxu1 }
 0x1c3   : > { %v2113_v0 = vsel %vm555_vm2, %v2078_v56, 0.0  ;;  %v2181_v55 = vmul.f32 %v2078_v56, %v2078_v56  ;;  %2283 = vst.msk [vmem:[%s3814_s16 + $0x20] sm:$0xff] %vm555_vm2, %v2078_v56  ;;  %v2079_v40 = vadd.f32 %v3809_v53, %v2040_v38  ;;  %v1594_v26 = vadd.f32 %v1593_v57, %v3769_v21  ;;  %v1595_v59 = vpop.f32.mrb[45].mxu1 }
 0x1c4   : > { %v2114_v46 = vadd.f32 %v2113_v0, %v2112_v4  ;;  %v1596_v63 = vpop.f32.mrb[46].mxu1 }
 0x1c5   : > { %v2216_v19 = vsel %vm555_vm2, %v2181_v55, 0.0  ;;  %v2115_v16 = vsel %vm555_vm2, %v2079_v40, 0.0  ;;  %v2182_v2 = vmul.f32 %v2079_v40, %v2079_v40  ;;  %2284 = vst.msk [vmem:[%s3814_s16 + $0x28] sm:$0xff] %vm555_vm2, %v2079_v40  ;;  %v1597_v27 = vadd.f32 %v1596_v63, %v3771_v44  ;;  %v1598_v34 = vpop.f32.mrb[47].mxu1 }
 0x1c6   : > { %v2217_v18 = vadd.f32 %v2216_v19, %v2215_v15  ;;  %v2116_v22 = vadd.f32 %v2115_v16, %v2114_v46  ;;  %v1932_v9 = vpop.f32.mrb[44].mxu0 }
 0x1c7   : > { %v2218_v33 = vsel %vm555_vm2, %v2182_v2, 0.0  ;;  %v2041_v21 = vadd.f32 %v1932_v9, %v1594_v26  ;;  %v1934_v36 = vpop.f32.mrb[45].mxu0 }
 0x1c8   : > { %v2219_v1 = vadd.f32 %v2218_v33, %v2217_v18  ;;  %v1935_v30 = vpop.f32.mrb[46].mxu0 }
 0x1c9   : > { %v2080_v37 = vadd.f32 %v3809_v53, %v2041_v21  ;;  %v2042_v24 = vadd.f32 %v1935_v30, %v1597_v27  ;;  %v1937_v49 = vpop.f32.mrb[47].mxu0 }
 0x1ca   : > { %v1601_v8 = vpop.f32.mrb[48].mxu1 }
 0x1cb   : > { %v2117_v20 = vsel %vm555_vm2, %v2080_v37, 0.0  ;;  %v2183_v44 = vmul.f32 %v2080_v37, %v2080_v37  ;;  %2285 = vst.msk [vmem:[%s3814_s16 + $0x30] sm:$0xff] %vm555_vm2, %v2080_v37  ;;  %v2081_v25 = vadd.f32 %v3809_v53, %v2042_v24  ;;  %v1602_v31 = vadd.f32 %v1601_v8, %v3777_v60  ;;  %v1603_v4 = vpop.f32.mrb[49].mxu1 }
 0x1cc   : > { %v2118_v51 = vadd.f32 %v2117_v20, %v2116_v22  ;;  %v1604_v10 = vpop.f32.mrb[50].mxu1 }
 0x1cd   : > { %v2220_v12 = vsel %vm555_vm2, %v2183_v44, 0.0  ;;  %v2119_v52 = vsel %vm555_vm2, %v2081_v25, 0.0  ;;  %v2184_v15 = vmul.f32 %v2081_v25, %v2081_v25  ;;  %2286 = vst.msk [vmem:[%s3814_s16 + $0x38] sm:$0xff] %vm555_vm2, %v2081_v25  ;;  %v1605_v58 = vadd.f32 %v1604_v10, %v3779_v32  ;;  %v1606_v56 = vpop.f32.mrb[51].mxu1 }
 0x1ce   : > { %v2221_v38 = vadd.f32 %v2220_v12, %v2219_v1  ;;  %v2120_v47 = vadd.f32 %v2119_v52, %v2118_v51  ;;  %v1940_v57 = vpop.f32.mrb[48].mxu0 }
 0x1cf   : > { %v2222_v0 = vsel %vm555_vm2, %v2184_v15, 0.0  ;;  %v2043_v60 = vadd.f32 %v1940_v57, %v1602_v31  ;;  %v1942_v55 = vpop.f32.mrb[49].mxu0 }
 0x1d0   : > { %v2223_v40 = vadd.f32 %v2222_v0, %v2221_v38  ;;  %v1943_v26 = vpop.f32.mrb[50].mxu0 }
 0x1d1   : > { %v2082_v59 = vadd.f32 %v3809_v53, %v2043_v60  ;;  %v2044_v46 = vadd.f32 %v1943_v26, %v1605_v58  ;;  %v1945_v63 = vpop.f32.mrb[51].mxu0 }
 0x1d2   : > { %v1609_v19 = vpop.f32.mrb[52].mxu1 }
 0x1d3   : > { %v2121_v16 = vsel %vm555_vm2, %v2082_v59, 0.0  ;;  %v2185_v32 = vmul.f32 %v2082_v59, %v2082_v59  ;;  %2287 = vst.msk [vmem:[%s3814_s16 + $0x40] sm:$0xff] %vm555_vm2, %v2082_v59  ;;  %v2083_v2 = vadd.f32 %v3809_v53, %v2044_v46  ;;  %v1610_v27 = vadd.f32 %v1609_v19, %v3785_v54  ;;  %v1611_v34 = vpop.f32.mrb[53].mxu1 }
 0x1d4   : > { %v2122_v18 = vadd.f32 %v2121_v16, %v2120_v47  ;;  %v1612_v22 = vpop.f32.mrb[54].mxu1 }
 0x1d5   : > { %v2224_v9 = vsel %vm555_vm2, %v2185_v32, 0.0  ;;  %v2123_v33 = vsel %vm555_vm2, %v2083_v2, 0.0  ;;  %v2186_v21 = vmul.f32 %v2083_v2, %v2083_v2  ;;  %2288 = vst.msk [vmem:[%s3814_s16 + $0x48] sm:$0xff] %vm555_vm2, %v2083_v2  ;;  %v1613_v36 = vadd.f32 %v1612_v22, %v3787_v28  ;;  %v1614_v1 = vpop.f32.mrb[55].mxu1 }
 0x1d6   : > { %v2225_v30 = vadd.f32 %v2224_v9, %v2223_v40  ;;  %v2124_v37 = vadd.f32 %v2123_v33, %v2122_v18  ;;  %v1948_v24 = vpop.f32.mrb[52].mxu0 }
 0x1d7   : > { %v2226_v49 = vsel %vm555_vm2, %v2186_v21, 0.0  ;;  %v2045_v54 = vadd.f32 %v1948_v24, %v1610_v27  ;;  %v1950_v8 = vpop.f32.mrb[53].mxu0 }
 0x1d8   : > { %v2227_v20 = vadd.f32 %v2226_v49, %v2225_v30  ;;  %v1951_v44 = vpop.f32.mrb[54].mxu0 }
 0x1d9   : > { %v2084_v25 = vadd.f32 %v3809_v53, %v2045_v54  ;;  %v2046_v31 = vadd.f32 %v1951_v44, %v1613_v36  ;;  %v1953_v4 = vpop.f32.mrb[55].mxu0 }
 0x1da   : > { %v1617_v51 = vpop.f32.mrb[56].mxu1 }
 0x1db   : > { %v2125_v10 = vsel %vm555_vm2, %v2084_v25, 0.0  ;;  %v2187_v28 = vmul.f32 %v2084_v25, %v2084_v25  ;;  %2289 = vst.msk [vmem:[%s3814_s16 + $0x50] sm:$0xff] %vm555_vm2, %v2084_v25  ;;  %v2085_v12 = vadd.f32 %v3809_v53, %v2046_v31  ;;  %v1618_v52 = vadd.f32 %v1617_v51, %v3793_v48  ;;  %v1619_v15 = vpop.f32.mrb[57].mxu1 }
 0x1dc   : > { %v2126_v58 = vadd.f32 %v2125_v10, %v2124_v37  ;;  %v1620_v56 = vpop.f32.mrb[58].mxu1 }
 0x1dd   : > { %v2228_v38 = vsel %vm555_vm2, %v2187_v28, 0.0  ;;  %v2127_v47 = vsel %vm555_vm2, %v2085_v12, 0.0  ;;  %v2188_v57 = vmul.f32 %v2085_v12, %v2085_v12  ;;  %2290 = vst.msk [vmem:[%s3814_s16 + $0x58] sm:$0xff] %vm555_vm2, %v2085_v12  ;;  %v1621_v0 = vadd.f32 %v1620_v56, %v3795_v7  ;;  %v1622_v60 = vpop.f32.mrb[59].mxu1 }
 0x1de   : > { %v2229_v55 = vadd.f32 %v2228_v38, %v2227_v20  ;;  %v2128_v40 = vadd.f32 %v2127_v47, %v2126_v58  ;;  %v1956_v26 = vpop.f32.mrb[56].mxu0 }
 0x1df   : > { %v2230_v59 = vsel %vm555_vm2, %v2188_v57, 0.0  ;;  %v2047_v48 = vadd.f32 %v1956_v26, %v1618_v52  ;;  %v1958_v46 = vpop.f32.mrb[57].mxu0 }
 0x1e0   : > { %v2231_v63 = vadd.f32 %v2230_v59, %v2229_v55  ;;  %v1959_v19 = vpop.f32.mrb[58].mxu0 }
 0x1e1   : > { %v2086_v16 = vadd.f32 %v3809_v53, %v2047_v48  ;;  %v2048_v32 = vadd.f32 %v1959_v19, %v1621_v0  ;;  %v1961_v2 = vpop.f32.mrb[59].mxu0 }
 0x1e2   : > { %v1625_v27 = vpop.f32.mrb[60].mxu1 }
 0x1e3   : > { %v2129_v34 = vsel %vm555_vm2, %v2086_v16, 0.0  ;;  %v2189_v7 = vmul.f32 %v2086_v16, %v2086_v16  ;;  %2291 = vst.msk [vmem:[%s3814_s16 + $0x60] sm:$0xff] %vm555_vm2, %v2086_v16  ;;  %v2087_v18 = vadd.f32 %v3809_v53, %v2048_v32  ;;  %v1626_v22 = vadd.f32 %v1625_v27, %v3801_v5  ;;  %v1627_v9 = vpop.f32.mrb[61].mxu1 }
 0x1e4   : > { %v2130_v33 = vadd.f32 %v2129_v34, %v2128_v40  ;;  %v1628_v21 = vpop.f32.mrb[62].mxu1 }
 0x1e5   : > { %v2232_v36 = vsel %vm555_vm2, %v2189_v7, 0.0  ;;  %v2131_v1 = vsel %vm555_vm2, %v2087_v18, 0.0  ;;  %v2190_v30 = vmul.f32 %v2087_v18, %v2087_v18  ;;  %2292 = vst.msk [vmem:[%s3814_s16 + $0x68] sm:$0xff] %vm555_vm2, %v2087_v18  ;;  %v1629_v37 = vadd.f32 %v1628_v21, %v3803_v11  ;;  %v1630_v24 = vpop.f32.mrb[63].mxu1 }
 0x1e6   : > { %v2233_v49 = vadd.f32 %v2232_v36, %v2231_v63  ;;  %v2132_v54 = vadd.f32 %v2131_v1, %v2130_v33  ;;  %v1964_v8 = vpop.f32.mrb[60].mxu0 }
 0x1e7   : > { %v2234_v20 = vsel %vm555_vm2, %v2190_v30, 0.0  ;;  %v2049_v5 = vadd.f32 %v1964_v8, %v1626_v22  ;;  %v1966_v44 = vpop.f32.mrb[61].mxu0 }
 0x1e8   : > { %v2235_v25 = vadd.f32 %v2234_v20, %v2233_v49  ;;  %v1967_v31 = vpop.f32.mrb[62].mxu0 }
 0x1e9   : > { %v2088_v4 = vadd.f32 %v3809_v53, %v2049_v5  ;;  %v2050_v51 = vadd.f32 %v1967_v31, %v1629_v37  ;;  %v1969_v10 = vpop.f32.mrb[63].mxu0 }
 0x1ea   : > { %v1633_v28 = vpop.f32.mrb[64].mxu1 }
 0x1eb   : > { %v2133_v12 = vsel %vm555_vm2, %v2088_v4, 0.0  ;;  %v2191_v11 = vmul.f32 %v2088_v4, %v2088_v4  ;;  %2293 = vst.msk [vmem:[%s3814_s16 + $0x70] sm:$0xff] %vm555_vm2, %v2088_v4  ;;  %v2089_v52 = vadd.f32 %v3809_v53, %v2050_v51  ;;  %v1634_v15 = vadd.f32 %v1633_v28, %v3745_v17  ;;  %v1635_v58 = vpop.f32.mrb[65].mxu1 }
 0x1ec   : > { %v2134_v56 = vadd.f32 %v2133_v12, %v2132_v54  ;;  %v1636_v38 = vpop.f32.mrb[66].mxu1 }
 0x1ed   : > { %v2236_v47 = vsel %vm555_vm2, %v2191_v11, 0.0  ;;  %v2135_v57 = vsel %vm555_vm2, %v2089_v52, 0.0  ;;  %v2192_v0 = vmul.f32 %v2089_v52, %v2089_v52  ;;  %2294 = vst.msk [vmem:[%s3814_s16 + $0x78] sm:$0xff] %vm555_vm2, %v2089_v52  ;;  %v1637_v60 = vadd.f32 %v1636_v38, %v3747_v35  ;;  %v1638_v55 = vpop.f32.mrb[67].mxu1 }
 0x1ee   : > { %v2237_v40 = vadd.f32 %v2236_v47, %v2235_v25  ;;  %v2136_v26 = vadd.f32 %v2135_v57, %v2134_v56  ;;  %v1972_v59 = vpop.f32.mrb[64].mxu0 }
 0x1ef   : > { %v2238_v48 = vsel %vm555_vm2, %v2192_v0, 0.0  ;;  %v2051_v17 = vadd.f32 %v1972_v59, %v1634_v15  ;;  %v1974_v46 = vpop.f32.mrb[65].mxu0 }
 0x1f0   : > { %v2239_v63 = vadd.f32 %v2238_v48, %v2237_v40  ;;  %v1975_v19 = vpop.f32.mrb[66].mxu0 }
 0x1f1   : > { %v2090_v16 = vadd.f32 %v3809_v53, %v2051_v17  ;;  %v2052_v32 = vadd.f32 %v1975_v19, %v1637_v60  ;;  %v1977_v2 = vpop.f32.mrb[67].mxu0 }
 0x1f2   : > { %v1641_v27 = vpop.f32.mrb[68].mxu1 }
 0x1f3   : > { %v2137_v34 = vsel %vm555_vm2, %v2090_v16, 0.0  ;;  %v2193_v35 = vmul.f32 %v2090_v16, %v2090_v16  ;;  %2295 = vst.msk [vmem:[%s3814_s16 + $0x80] sm:$0xff] %vm555_vm2, %v2090_v16  ;;  %v2091_v7 = vadd.f32 %v3809_v53, %v2052_v32  ;;  %v1642_v18 = vadd.f32 %v1641_v27, %v3749_v50  ;;  %v1643_v22 = vpop.f32.mrb[69].mxu1 }
 0x1f4   : > { %v2138_v9 = vadd.f32 %v2137_v34, %v2136_v26  ;;  %v1644_v33 = vpop.f32.mrb[70].mxu1 }
 0x1f5   : > { %v2240_v21 = vsel %vm555_vm2, %v2193_v35, 0.0  ;;  %v2139_v36 = vsel %vm555_vm2, %v2091_v7, 0.0  ;;  %v2194_v1 = vmul.f32 %v2091_v7, %v2091_v7  ;;  %2296 = vst.msk [vmem:[%s3814_s16 + $0x88] sm:$0xff] %vm555_vm2, %v2091_v7  ;;  %v1645_v30 = vadd.f32 %v1644_v33, %v3751_v62  ;;  %v1646_v37 = vpop.f32.mrb[71].mxu1 }
 0x1f6   : > { %v2241_v24 = vadd.f32 %v2240_v21, %v2239_v63  ;;  %v2140_v49 = vadd.f32 %v2139_v36, %v2138_v9  ;;  %v1980_v54 = vpop.f32.mrb[68].mxu0 }
 0x1f7   : > { %v2242_v8 = vsel %vm555_vm2, %v2194_v1, 0.0  ;;  %v2053_v50 = vadd.f32 %v1980_v54, %v1642_v18  ;;  %v1982_v20 = vpop.f32.mrb[69].mxu0 }
 0x1f8   : > { %v2243_v5 = vadd.f32 %v2242_v8, %v2241_v24  ;;  %v1983_v44 = vpop.f32.mrb[70].mxu0 }
 0x1f9   : > { %v2092_v25 = vadd.f32 %v3809_v53, %v2053_v50  ;;  %v2054_v31 = vadd.f32 %v1983_v44, %v1645_v30  ;;  %v1985_v4 = vpop.f32.mrb[71].mxu0 }
 0x1fa   : > { %v1649_v51 = vpop.f32.mrb[72].mxu1 }
 0x1fb   : > { %v2141_v10 = vsel %vm555_vm2, %v2092_v25, 0.0  ;;  %v2195_v62 = vmul.f32 %v2092_v25, %v2092_v25  ;;  %2297 = vst.msk [vmem:[%s3814_s16 + $0x90] sm:$0xff] %vm555_vm2, %v2092_v25  ;;  %v2093_v28 = vadd.f32 %v3809_v53, %v2054_v31  ;;  %v1650_v12 = vadd.f32 %v1649_v51, %v3757_v39  ;;  %v1651_v11 = vpop.f32.mrb[73].mxu1 }
 0x1fc   : > { %v2142_v52 = vadd.f32 %v2141_v10, %v2140_v49  ;;  %v1652_v15 = vpop.f32.mrb[74].mxu1 }
 0x1fd   : > { %v2244_v58 = vsel %vm555_vm2, %v2195_v62, 0.0  ;;  %v2143_v56 = vsel %vm555_vm2, %v2093_v28, 0.0  ;;  %v2196_v38 = vmul.f32 %v2093_v28, %v2093_v28  ;;  %2298 = vst.msk [vmem:[%s3814_s16 + $0x98] sm:$0xff] %vm555_vm2, %v2093_v28  ;;  %v1653_v47 = vadd.f32 %v1652_v15, %v3759_v29  ;;  %v1654_v57 = vpop.f32.mrb[75].mxu1 }
 0x1fe   : > { %v2245_v0 = vadd.f32 %v2244_v58, %v2243_v5  ;;  %v2144_v60 = vadd.f32 %v2143_v56, %v2142_v52  ;;  %v1988_v55 = vpop.f32.mrb[72].mxu0 }
 0x1ff   : > { %v2246_v40 = vsel %vm555_vm2, %v2196_v38, 0.0  ;;  %v2055_v39 = vadd.f32 %v1988_v55, %v1650_v12  ;;  %v1990_v26 = vpop.f32.mrb[73].mxu0 }
 0x200   : > { %v2247_v59 = vadd.f32 %v2246_v40, %v2245_v0  ;;  %v1991_v48 = vpop.f32.mrb[74].mxu0 }
 0x201   : > { %v2094_v17 = vadd.f32 %v3809_v53, %v2055_v39  ;;  %v2056_v46 = vadd.f32 %v1991_v48, %v1653_v47  ;;  %v1993_v63 = vpop.f32.mrb[75].mxu0 }
 0x202   : > { %v1657_v19 = vpop.f32.mrb[76].mxu1 }
 0x203   : > { %v2145_v16 = vsel %vm555_vm2, %v2094_v17, 0.0  ;;  %v2197_v29 = vmul.f32 %v2094_v17, %v2094_v17  ;;  %2299 = vst.msk [vmem:[%s3814_s16 + $0xa0] sm:$0xff] %vm555_vm2, %v2094_v17  ;;  %v2095_v32 = vadd.f32 %v3809_v53, %v2056_v46  ;;  %v1658_v2 = vadd.f32 %v1657_v19, %v3765_v13  ;;  %v1659_v27 = vpop.f32.mrb[77].mxu1 }
 0x204   : > { %v2146_v34 = vadd.f32 %v2145_v16, %v2144_v60  ;;  %v1660_v35 = vpop.f32.mrb[78].mxu1 }
 0x205   : > { %v2248_v7 = vsel %vm555_vm2, %v2197_v29, 0.0  ;;  %v2147_v18 = vsel %vm555_vm2, %v2095_v32, 0.0  ;;  %v2198_v22 = vmul.f32 %v2095_v32, %v2095_v32  ;;  %2300 = vst.msk [vmem:[%s3814_s16 + $0xa8] sm:$0xff] %vm555_vm2, %v2095_v32  ;;  %v1661_v9 = vadd.f32 %v1660_v35, %v3767_v6  ;;  %v1662_v33 = vpop.f32.mrb[79].mxu1 }
 0x206   : > { %v2249_v21 = vadd.f32 %v2248_v7, %v2247_v59  ;;  %v2148_v36 = vadd.f32 %v2147_v18, %v2146_v34  ;;  %v1996_v1 = vpop.f32.mrb[76].mxu0 }
 0x207   : > { %v2250_v30 = vsel %vm555_vm2, %v2198_v22, 0.0  ;;  %v2057_v13 = vadd.f32 %v1996_v1, %v1658_v2  ;;  %v1998_v37 = vpop.f32.mrb[77].mxu0 }
 0x208   : > { %v2251_v24 = vadd.f32 %v2250_v30, %v2249_v21  ;;  %v1999_v49 = vpop.f32.mrb[78].mxu0 }
 0x209   : > { %v2096_v54 = vadd.f32 %v3809_v53, %v2057_v13  ;;  %v2058_v8 = vadd.f32 %v1999_v49, %v1661_v9  ;;  %v2001_v50 = vpop.f32.mrb[79].mxu0 }
 0x20a   : > { %v1665_v20 = vpop.f32.mrb[80].mxu1 }
 0x20b   : > { %v2149_v5 = vsel %vm555_vm2, %v2096_v54, 0.0  ;;  %v2199_v6 = vmul.f32 %v2096_v54, %v2096_v54  ;;  %2301 = vst.msk [vmem:[%s3814_s16 + $0xb0] sm:$0xff] %vm555_vm2, %v2096_v54  ;;  %v2097_v44 = vadd.f32 %v3809_v53, %v2058_v8  ;;  %v1666_v25 = vadd.f32 %v1665_v20, %v3773_v61  ;;  %v1667_v31 = vpop.f32.mrb[81].mxu1 }
 0x20c   : > { %v2150_v4 = vadd.f32 %v2149_v5, %v2148_v36  ;;  %v1668_v51 = vpop.f32.mrb[82].mxu1 }
 0x20d   : > { %v2252_v10 = vsel %vm555_vm2, %v2199_v6, 0.0  ;;  %v2151_v62 = vsel %vm555_vm2, %v2097_v44, 0.0  ;;  %v2200_v28 = vmul.f32 %v2097_v44, %v2097_v44  ;;  %2302 = vst.msk [vmem:[%s3814_s16 + $0xb8] sm:$0xff] %vm555_vm2, %v2097_v44  ;;  %v1669_v12 = vadd.f32 %v1668_v51, %v3775_v42  ;;  %v1670_v11 = vpop.f32.mrb[83].mxu1 }
 0x20e   : > { %v2253_v52 = vadd.f32 %v2252_v10, %v2251_v24  ;;  %v2152_v15 = vadd.f32 %v2151_v62, %v2150_v4  ;;  %v2004_v58 = vpop.f32.mrb[80].mxu0 }
 0x20f   : > { %v2254_v56 = vsel %vm555_vm2, %v2200_v28, 0.0  ;;  %v2059_v61 = vadd.f32 %v2004_v58, %v1666_v25  ;;  %v2006_v38 = vpop.f32.mrb[81].mxu0 }
 0x210   : > { %v2255_v47 = vadd.f32 %v2254_v56, %v2253_v52  ;;  %v2007_v57 = vpop.f32.mrb[82].mxu0 }
 0x211   : > { %v2098_v0 = vadd.f32 %v3809_v53, %v2059_v61  ;;  %v2060_v60 = vadd.f32 %v2007_v57, %v1669_v12  ;;  %v2009_v55 = vpop.f32.mrb[83].mxu0 }
 0x212   : > { %v1673_v40 = vpop.f32.mrb[84].mxu1 }
 0x213   : > { %v2153_v39 = vsel %vm555_vm2, %v2098_v0, 0.0  ;;  %v2201_v42 = vmul.f32 %v2098_v0, %v2098_v0  ;;  %2303 = vst.msk [vmem:[%s3814_s16 + $0xc0] sm:$0xff] %vm555_vm2, %v2098_v0  ;;  %v2099_v26 = vadd.f32 %v3809_v53, %v2060_v60  ;;  %v1674_v59 = vadd.f32 %v1673_v40, %v3781_v23  ;;  %v1675_v48 = vpop.f32.mrb[85].mxu1 }
 0x214   : > { %v2154_v17 = vadd.f32 %v2153_v39, %v2152_v15  ;;  %v1676_v46 = vpop.f32.mrb[86].mxu1 }
 0x215   : > { %v2256_v63 = vsel %vm555_vm2, %v2201_v42, 0.0  ;;  %v2155_v19 = vsel %vm555_vm2, %v2099_v26, 0.0  ;;  %v2202_v16 = vmul.f32 %v2099_v26, %v2099_v26  ;;  %2304 = vst.msk [vmem:[%s3814_s16 + $0xc8] sm:$0xff] %vm555_vm2, %v2099_v26  ;;  %v1677_v29 = vadd.f32 %v1676_v46, %v3783_v43  ;;  %v1678_v32 = vpop.f32.mrb[87].mxu1 }
 0x216   : > { %v2257_v2 = vadd.f32 %v2256_v63, %v2255_v47  ;;  %v2156_v27 = vadd.f32 %v2155_v19, %v2154_v17  ;;  %v2012_v34 = vpop.f32.mrb[84].mxu0 }
 0x217   : > { %v2258_v35 = vsel %vm555_vm2, %v2202_v16, 0.0  ;;  %v2061_v23 = vadd.f32 %v2012_v34, %v1674_v59  ;;  %v2014_v7 = vpop.f32.mrb[85].mxu0 }
 0x218   : > { %v2259_v18 = vadd.f32 %v2258_v35, %v2257_v2  ;;  %v2015_v22 = vpop.f32.mrb[86].mxu0 }
 0x219   : > { %v2100_v9 = vadd.f32 %v3809_v53, %v2061_v23  ;;  %v2062_v33 = vadd.f32 %v2015_v22, %v1677_v29  ;;  %v2017_v21 = vpop.f32.mrb[87].mxu0 }
 0x21a   : > { %v1681_v36 = vpop.f32.mrb[88].mxu1 }
 0x21b   : > { %v2157_v1 = vsel %vm555_vm2, %v2100_v9, 0.0  ;;  %v2203_v43 = vmul.f32 %v2100_v9, %v2100_v9  ;;  %2305 = vst.msk [vmem:[%s3814_s16 + $0xd0] sm:$0xff] %vm555_vm2, %v2100_v9  ;;  %v2101_v30 = vadd.f32 %v3809_v53, %v2062_v33  ;;  %v1682_v13 = vadd.f32 %v1681_v36, %v3789_v41  ;;  %v1683_v37 = vpop.f32.mrb[89].mxu1 }
 0x21c   : > { %v2158_v24 = vadd.f32 %v2157_v1, %v2156_v27  ;;  %v1684_v49 = vpop.f32.mrb[90].mxu1 }
 0x21d   : > { %v2260_v54 = vsel %vm555_vm2, %v2203_v43, 0.0  ;;  %v2159_v8 = vsel %vm555_vm2, %v2101_v30, 0.0  ;;  %v2204_v50 = vmul.f32 %v2101_v30, %v2101_v30  ;;  %2306 = vst.msk [vmem:[%s3814_s16 + $0xd8] sm:$0xff] %vm555_vm2, %v2101_v30  ;;  %v1685_v20 = vadd.f32 %v1684_v49, %v3791_v45  ;;  %v1686_v5 = vpop.f32.mrb[91].mxu1 }
 0x21e   : > { %v2261_v6 = vadd.f32 %v2260_v54, %v2259_v18  ;;  %v2160_v44 = vadd.f32 %v2159_v8, %v2158_v24  ;;  %v2020_v25 = vpop.f32.mrb[88].mxu0 }
 0x21f   : > { %v2262_v31 = vsel %vm555_vm2, %v2204_v50, 0.0  ;;  %v2063_v41 = vadd.f32 %v2020_v25, %v1682_v13  ;;  %v2022_v4 = vpop.f32.mrb[89].mxu0 }
 0x220   : > { %v2263_v51 = vadd.f32 %v2262_v31, %v2261_v6  ;;  %v2023_v10 = vpop.f32.mrb[90].mxu0 }
 0x221   : > { %v2102_v62 = vadd.f32 %v3809_v53, %v2063_v41  ;;  %v2064_v28 = vadd.f32 %v2023_v10, %v1685_v20  ;;  %v2025_v12 = vpop.f32.mrb[91].mxu0 }
 0x222   : > { %v1689_v11 = vpop.f32.mrb[92].mxu1 }
 0x223   : > { %v2161_v52 = vsel %vm555_vm2, %v2102_v62, 0.0  ;;  %v2205_v45 = vmul.f32 %v2102_v62, %v2102_v62  ;;  %2307 = vst.msk [vmem:[%s3814_s16 + $0xe0] sm:$0xff] %vm555_vm2, %v2102_v62  ;;  %v2103_v15 = vadd.f32 %v3809_v53, %v2064_v28  ;;  %v1690_v58 = vadd.f32 %v1689_v11, %v3797_v14  ;;  %v1691_v56 = vpop.f32.mrb[93].mxu1 }
 0x224   : > { %v2162_v61 = vadd.f32 %v2161_v52, %v2160_v44  ;;  %v1692_v38 = vpop.f32.mrb[94].mxu1 }
 0x225   : > { %v2264_v47 = vsel %vm555_vm2, %v2205_v45, 0.0  ;;  %v2163_v57 = vsel %vm555_vm2, %v2103_v15, 0.0  ;;  %v2206_v0 = vmul.f32 %v2103_v15, %v2103_v15  ;;  %2308 = vst.msk [vmem:[%s3814_s16 + $0xe8] sm:$0xff] %vm555_vm2, %v2103_v15  ;;  %v1693_v60 = vadd.f32 %v1692_v38, %v3799_v3  ;;  %v1694_v55 = vpop.f32.mrb[95].mxu1 }
 0x226   : > { %v2265_v40 = vadd.f32 %v2264_v47, %v2263_v51  ;;  %v2164_v39 = vadd.f32 %v2163_v57, %v2162_v61  ;;  %v2028_v42 = vpop.f32.mrb[92].mxu0 }
 0x227   : > { %v2266_v26 = vsel %vm555_vm2, %v2206_v0, 0.0  ;;  %v2065_v14 = vadd.f32 %v2028_v42, %v1690_v58  ;;  %v2030_v59 = vpop.f32.mrb[93].mxu0 }
 0x228   : > { %v2267_v48 = vadd.f32 %v2266_v26, %v2265_v40  ;;  %v2031_v17 = vpop.f32.mrb[94].mxu0 }
 0x229   : > { %v2104_v46 = vadd.f32 %v3809_v53, %v2065_v14  ;;  %v2066_v63 = vadd.f32 %v2031_v17, %v1693_v60  ;;  %v2033_v19 = vpop.f32.mrb[95].mxu0 }
 0x22b   : > { %v2165_v16 = vsel %vm555_vm2, %v2104_v46, 0.0  ;;  %v2207_v29 = vmul.f32 %v2104_v46, %v2104_v46  ;;  %2309 = vst.msk [vmem:[%s3814_s16 + $0xf0] sm:$0xff] %vm555_vm2, %v2104_v46  ;;  %v2105_v3 = vadd.f32 %v3809_v53, %v2066_v63 }
 0x22c   : > { %v2166_v32 = vadd.f32 %v2165_v16, %v2164_v39 }
 0x22d   : > { %v2268_v2 = vsel %vm555_vm2, %v2207_v29, 0.0  ;;  %v2167_v27 = vsel %vm555_vm2, %v2105_v3, 0.0  ;;  %v2208_v34 = vmul.f32 %v2105_v3, %v2105_v3  ;;  %2310 = vst.msk [vmem:[%s3814_s16 + $0xf8] sm:$0xff] %vm555_vm2, %v2105_v3 }
 0x22e   : > { %v2269_v35 = vadd.f32 %v2268_v2, %v2267_v48  ;;  %v2168_v23 = vadd.f32 %v2167_v27, %v2166_v32 }
 0x22f   : > { %v2270_v7 = vsel %vm555_vm2, %v2208_v34, 0.0 }
 0x230   : > { %v2169_v18 = vrot.slane %v2168_v23, 4  ;;  %v2271_v22 = vadd.f32 %v2270_v7, %v2269_v35 }
 0x232   : > { %v2170_v9 = vadd.f32 %v2169_v18, %v2168_v23  ;;  %v2272_v33 = vrot.slane %v2271_v22, 4 }
 0x234   : > { %v2171_v21 = vrot.slane %v2170_v9, 2  ;;  %v2273_v53 = vadd.f32 %v2272_v33, %v2271_v22 }
 0x236   : > { %v2172_v36 = vadd.f32 %v2171_v21, %v2170_v9  ;;  %v2274_v1 = vrot.slane %v2273_v53, 2 }
 0x238   : > { %v2173_v43 = vrot.slane %v2172_v36, 1  ;;  %v2275_v30 = vadd.f32 %v2274_v1, %v2273_v53 }
 0x23a   : > { %v2174_v13 = vadd.f32 %v2173_v43, %v2172_v36  ;;  %v2276_v37 = vrot.slane %v2275_v30, 1 }
 0x23c   : > { %2176 = vst.msk [vmem:[%s356_s20] sm:$0x1] %vm561_vm6, %v2174_v13  ;;  %v2277_v24 = vadd.f32 %v2276_v37, %v2275_v30 }
 0x23e   : > { %2278 = vst.msk [vmem:[%s362_s21] sm:$0x1] %vm561_vm6, %v2277_v24 }
 0x23f PF: > { %s18_s26 = sadd.s32 1, %s2824_s26   ;;  %s4053_s24 = smov %s2820_s25 }
 0x240   : > { %p15_p5 = scmp.ge.s32.totalorder %s18_s26, 4   ;;  %s4054_s25 = smov %s4056_s27 }
 0x242   :  { %17 = sbr.rel (!%p15_p5) target bundleno = 2 (0x2), region = 105 }

// kernel: triple_conv_apply.5
= control target key start
LH: loop header
LB: loop body
LE: loop exit
PB: predicated region body
PF: predicated region fallthrough
CT: control target
= control target key end

     0   :  { %s3061_s24 = smov 0   ;;  %s3063_s25 = smov 0   ;;  %s4221_s0 = inlined_call_operand.vmem [shape: bf16[2,16,16,64], index: 0, kind: input, shape index: {}]   ;;  %s4222_s1 = inlined_call_operand.vmem [shape: f32[1,64], index: 1, kind: input, shape index: {}]   ;;  %s4223_s2 = inlined_call_operand.vmem [shape: f32[1,64], index: 2, kind: input, shape index: {}]   ;;  %s4224_s3 = inlined_call_operand.vmem [shape: bf16[3,192,64], index: 3, kind: input, shape index: {}]   ;;  %s4225_s4 = inlined_call_operand.vmem [shape: f32[1,64], index: 4, kind: input, shape index: {}]   ;;  %s4226_s5 = inlined_call_operand.vmem [shape: bf16[2,16,16,64], index: 5, kind: output, shape index: {0}]   ;;  %s4227_s6 = inlined_call_operand.vmem [shape: f32[2,1,64], index: 6, kind: output, shape index: {1}]   ;;  %s4228_s7 = inlined_call_operand.vmem [shape: f32[2,1,64], index: 7, kind: output, shape index: {2}]  }
   0x1   :  { %s3065_s26 = smov 0  }
   0x2 LB: > { %s30_s27 = sadd.s32 1, %s3013_s25  ;;  %p2621_p0 = scmp.ge.s32.totalorder %s3017_s26, 1  ;;  %s3017_s26 = sphi %s3065_s26, %s18_s26   ;;  %s3013_s25 = sphi %s3063_s25, %s4250_s25   ;;  %s3009_s24 = sphi %s3061_s24, %s4249_s24  }
   0x3   : > { %p32_p1 = scmp.ge.s32.totalorder %s30_s27, 2  ;;  %p277_p2 = scmp.lt.s32.totalorder %s3017_s26, 3 }
   0x5   : > { %s4252_s27 = smov (%p32_p1, %s30_s27), 0  ;;  %p278_p3 = pnand %p2621_p0, %p277_p2 }
   0x6   : > { %p331_p4 = scmp.lt.s32.totalorder (!%p278_p3), %s3009_s24, 1  ;;  %vm612_vm0 = vcmask (!%p278_p3), 523271   ;;  %vm613_vm1 = vsmask.f32 (!%p278_p3), 7966  ;;  %v639_v0 = vld [vmem:[#allocation2 + $0x98] sm:$0x80] (!%p278_p3) }
   0x7   : > { %281 = sbr.rel (%p278_p3) target bundleno = 575 (0x23f), region = 40  ;;  %vm555_vm2 = vcmask (!%p278_p3), 523264   ;;  %vm3081_vm3 = vmand (!%p278_p3), %vm612_vm0, %vm613_vm1  ;;  %v615_v2 = vld [vmem:[#allocation2 + $0x18] sm:$0x80] (!%p278_p3)  ;;  %v642_v5 = vld [vmem:[#allocation2 + $0xa8] sm:$0x80] (!%p278_p3) }
   0x8   : > { %v640_v3 = vsel (!%p278_p3), %vm3081_vm3, 0, %v639_v0  ;;  %v616_v4 = vsel (!%p278_p3), %vm3081_vm3, 0, %v615_v2  ;;  %v618_v6 = vld [vmem:[#allocation2 + $0x28] sm:$0x80] (!%p278_p3)  ;;  %v3019_v7 = vmov (!%p278_p3), 0   ;;  %v643_v9 = vsel (!%p278_p3), %vm3081_vm3, 0, %v642_v5 }
   0x9   : > { %2908 = vmatprep.subr.bf16.mxu1 (!%p278_p3), %v3019_v7  ;;  %554 = vst [vmem:[#allocation2] sm:$0xff] (!%p278_p3), %v3019_v7  ;;  %556 = vst.msk [vmem:[#allocation2 + $0x8] sm:$0xff] (!%p278_p3), %vm555_vm2, %v3019_v7  ;;  %1254 = vmatprep.subr.bf16.mxu0 (!%p278_p3), %v3019_v7  ;;  %v3100_v8 = vld [vmem:[%s4222_s1] ss:$0 sm:$0xff] (!%p278_p3)  ;;  %v619_v10 = vsel (!%p278_p3), %vm3081_vm3, 0, %v618_v6  ;;  %v2959_v16 = vld [vmem:[%s4224_s3 + $0x68] sm:$0xff] (!%p278_p3)  }
   0xa   : > { %559 = vst.msk [vmem:[#allocation2 + $0x118] sm:$0xff] (!%p278_p3), %vm555_vm2, %v3019_v7  ;;  %641 = vst [vmem:[#allocation2 + $0x98] sm:$0x80] (!%p278_p3), %v640_v3  ;;  %v645_v11 = vld [vmem:[#allocation2 + $0xb8] sm:$0x80] (!%p278_p3)  ;;  %v2958_v12 = vld [vmem:[%s4224_s3 + $0x60] sm:$0xff] (!%p278_p3)  }
   0xb   : > { %617 = vst [vmem:[#allocation2 + $0x18] sm:$0x80] (!%p278_p3), %v616_v4  ;;  %644 = vst [vmem:[#allocation2 + $0xa8] sm:$0x80] (!%p278_p3), %v643_v9  ;;  %v646_v13 = vsel (!%p278_p3), %vm3081_vm3, 0, %v645_v11  ;;  %2920 = vmatpush1.bf16.msra.mxu1 (!%p278_p3), %v2958_v12  ;;  %1255 = vmatpush1.bf16.msra.mxu0 (!%p278_p3), %v2958_v12  ;;  %s3020_s17 = smov (!%p278_p3), 64  }
   0xc   : > { %620 = vst [vmem:[#allocation2 + $0x28] sm:$0x80] (!%p278_p3), %v619_v10  ;;  %v621_v14 = vld [vmem:[#allocation2 + $0x38] sm:$0x80] (!%p278_p3)  ;;  %v648_v15 = vld [vmem:[#allocation2 + $0xc8] sm:$0x80] (!%p278_p3)  ;;  %2909 = vmatprep.subr.bf16.mxu1 (!%p278_p3), %v3019_v7  ;;  %1256 = vmatprep.subr.bf16.mxu0 (!%p278_p3), %v3019_v7 }
   0xd   : > { %647 = vst [vmem:[#allocation2 + $0xb8] sm:$0x80] (!%p278_p3), %v646_v13  ;;  %v622_v20 = vsel (!%p278_p3), %vm3081_vm3, 0, %v621_v14  ;;  %v649_v21 = vsel (!%p278_p3), %vm3081_vm3, 0, %v648_v15  ;;  %v3134_v27 = vld [vmem:[%s4223_s2] ss:$0 sm:$0xff] (!%p278_p3) }
   0xe   : > { %s4254_s24 = smov (!%p331_p4, %s3009_s24), 1  ;;  %623 = vst [vmem:[#allocation2 + $0x38] sm:$0x80] %v622_v20  ;;  %650 = vst [vmem:[#allocation2 + $0xc8] sm:$0x80] %v649_v21  ;;  %vm561_vm6 = vcmask 516096  }
   0xf   : > { %s2795_s28 = sshll.u32 %s4254_s24, 7  ;;  %2921 = vmatpush1.bf16.msra.mxu1 %v2959_v16  ;;  %1257 = vmatpush1.bf16.msra.mxu0 %v2959_v16  ;;  %vm971_vm4 = vsmask.f32 7424  ;;  %vm562_vm7 = vsmask.f32 256  ;;  %vm906_vm11 = vcmask 1048064   ;;  %s362_s23 = scalar_lea.vmem %s4228_s7, %s4254_s24 }
  0x10   : > { %s3114_s12 = scalar_lea.vmem %s4221_s0, %s2795_s28  ;;  %2910 = vmatprep.subr.bf16.mxu1 %v3019_v7  ;;  %1258 = vmatprep.subr.bf16.mxu0 %v3019_v7  ;;  %vm3180_vm5 = vmand %vm555_vm2, %vm971_vm4  ;;  %vm792_vm9 = vsmask.f32 7938  ;;  %s4011_s20 = scalar_lea.vmem %s4226_s5, %s2795_s28  ;;  %vm2407_vm12 = vcmask 519168  }
  0x11   : > { %v2900_v17 = vld [vmem:[%s3114_s12 + $0x40] sm:$0xff]   ;;  %v2901_v19 = vld [vmem:[%s3114_s12 + $0x48] sm:$0xff]   ;;  %v2902_v56 = vld [vmem:[%s3114_s12 + $0x50] sm:$0xff]  }
  0x12   : > { %v2830_v18 = vld [vmem:[%s3114_s12] sm:$0xff]   ;;  %v2863_v22 = vunpack.c.l.bf16 %v2900_v17  ;;  %v2864_v23 = vunpack.c.h.bf16 %v2900_v17  ;;  %v2893_v26 = vld [vmem:[%s3114_s12 + $0x8] sm:$0xff]   ;;  %v2867_v28 = vunpack.c.l.bf16 %v2901_v19  ;;  %v2868_v29 = vunpack.c.h.bf16 %v2901_v19  ;;  %v2894_v59 = vld [vmem:[%s3114_s12 + $0x10] sm:$0xff]  }
  0x13   : > { %v2831_v24 = vunpack.c.l.bf16 %v2830_v18  ;;  %v2832_v25 = vunpack.c.h.bf16 %v2830_v18  ;;  %v2835_v30 = vunpack.c.l.bf16 %v2893_v26  ;;  %v2836_v31 = vunpack.c.h.bf16 %v2893_v26  ;;  %v997_v3 = vld [vmem:[#allocation2 + $0x98] sm:$0xff]  ;;  %v1000_v14 = vld [vmem:[#allocation2 + $0xa8] sm:$0xff]  ;;  %vm3544_vm8 = vmand %vm561_vm6, %vm562_vm7 }
  0x14   : > { %v451_v32 = vmul.f32 %v2863_v22, %v3100_v8  ;;  %v452_v33 = vmul.f32 %v2864_v23, %v3100_v8  ;;  %v453_v36 = vmul.f32 %v2867_v28, %v3100_v8  ;;  %v454_v37 = vmul.f32 %v2868_v29, %v3100_v8  ;;  %v973_v5 = vld [vmem:[#allocation2 + $0x18] sm:$0xff]  ;;  %v976_v15 = vld [vmem:[#allocation2 + $0x28] sm:$0xff]  ;;  %v2960_v29 = vld [vmem:[%s4224_s3 + $0x70] sm:$0xff]  }
  0x15   : > { %v435_v34 = vmul.f32 %v2831_v24, %v3100_v8  ;;  %v436_v35 = vmul.f32 %v2832_v25, %v3100_v8  ;;  %v437_v38 = vmul.f32 %v2835_v30, %v3100_v8  ;;  %v438_v39 = vmul.f32 %v2836_v31, %v3100_v8  ;;  %v2903_v22 = vld [vmem:[%s3114_s12 + $0x58] sm:$0xff]   ;;  %2922 = vmatpush1.bf16.msra.mxu1 %v2960_v29  ;;  %vm3601_vm10 = vmand %vm555_vm2, %vm792_vm9 }
  0x16   : > { %v490_v40 = vadd.f32 %v3134_v27, %v451_v32  ;;  %v491_v41 = vadd.f32 %v3134_v27, %v452_v33  ;;  %v492_v44 = vadd.f32 %v3134_v27, %v453_v36  ;;  %v493_v45 = vadd.f32 %v3134_v27, %v454_v37  ;;  %1259 = vmatpush1.bf16.msra.mxu0 %v2960_v29 }
  0x17   : > { %v474_v42 = vadd.f32 %v3134_v27, %v435_v34  ;;  %v475_v43 = vadd.f32 %v3134_v27, %v436_v35  ;;  %v476_v46 = vadd.f32 %v3134_v27, %v437_v38  ;;  %v477_v47 = vadd.f32 %v3134_v27, %v438_v39  ;;  %v2895_v34 = vld [vmem:[%s3114_s12 + $0x18] sm:$0xff]   ;;  %2911 = vmatprep.subr.bf16.mxu1 %v3019_v7 }
  0x18   : > { %v522_v48 = vmax.f32 %v490_v40, 0.0  ;;  %v523_v49 = vmax.f32 %v491_v41, 0.0  ;;  %v524_v52 = vmax.f32 %v492_v44, 0.0  ;;  %v525_v53 = vmax.f32 %v493_v45, 0.0  ;;  %v2961_v39 = vld [vmem:[%s4224_s3 + $0x78] sm:$0xff]   ;;  %1260 = vmatprep.subr.bf16.mxu0 %v3019_v7 }
  0x19   : > { %v506_v50 = vmax.f32 %v474_v42, 0.0  ;;  %v507_v51 = vmax.f32 %v475_v43, 0.0  ;;  %v508_v54 = vmax.f32 %v476_v46, 0.0  ;;  %v509_v55 = vmax.f32 %v477_v47, 0.0  ;;  %2923 = vmatpush1.bf16.msra.mxu1 %v2961_v39 }
  0x1a   : > { %v3155_v57 = vpack.c.bf16 %v523_v49, %v522_v48  ;;  %v3160_v60 = vpack.c.bf16 %v525_v53, %v524_v52  ;;  %v2871_v0 = vunpack.c.l.bf16 %v2902_v56  ;;  %v2872_v2 = vunpack.c.h.bf16 %v2902_v56  ;;  %v624_v48 = vld [vmem:[#allocation2 + $0x48] sm:$0x80]  ;;  %v2904_v53 = vld [vmem:[%s3114_s12 + $0x60] sm:$0xff]   ;;  %1261 = vmatpush1.bf16.msra.mxu0 %v2961_v39  ;;  %2912 = vmatprep.subr.bf16.mxu1 %v3019_v7 }
  0x1b   : > { %v3157_v58 = vpack.c.bf16 %v507_v51, %v506_v50  ;;  %v3162_v61 = vpack.c.bf16 %v509_v55, %v508_v54  ;;  %v2839_v10 = vunpack.c.l.bf16 %v2894_v59  ;;  %v2840_v16 = vunpack.c.h.bf16 %v2894_v59  ;;  %v2962_v54 = vld [vmem:[%s4224_s3 + $0x80] sm:$0xff]   ;;  %1262 = vmatprep.subr.bf16.mxu0 %v3019_v7 }
  0x1c   : > { %874 = vrot.lane.b32.xlu0 %v3155_v57, %s3020_s17  ;;  %v723_v62 = vshll.u32 %v3155_v57, 16  ;;  %v720_v4 = vshrl.u32 %v3155_v57, 16  ;;  %876 = vrot.lane.b32.xlu1 %v3160_v60, %s3020_s17  ;;  %v730_v6 = vshll.u32 %v3160_v60, 16  ;;  %v727_v18 = vshrl.u32 %v3160_v60, 16 }
  0x1d   : > { %v667_v63 = vshll.u32 %v3157_v58, 16  ;;  %v674_v9 = vshll.u32 %v3162_v61, 16  ;;  %v664_v12 = vshrl.u32 %v3157_v58, 16  ;;  %v671_v20 = vshrl.u32 %v3162_v61, 16  ;;  %2924 = vmatpush1.bf16.msra.mxu1 %v2962_v54 }
  0x1e   : > { %v939_v11 = vrot.slane %v723_v62, 1  ;;  %v941_v19 = vrot.slane %v730_v6, 1  ;;  %v3195_v25 = vrot.slane %v720_v4, 7  ;;  %v455_v32 = vmul.f32 %v2871_v0, %v3100_v8  ;;  %1263 = vmatpush1.bf16.msra.mxu0 %v2962_v54  ;;  %2913 = vmatprep.subr.bf16.mxu1 %v3019_v7 }
  0x1f   : > { %v923_v13 = vrot.slane %v667_v63, 1  ;;  %v925_v21 = vrot.slane %v674_v9, 1  ;;  %v456_v33 = vmul.f32 %v2872_v2, %v3100_v8  ;;  %v439_v37 = vmul.f32 %v2839_v10, %v3100_v8  ;;  %1264 = vmatprep.subr.bf16.mxu0 %v3019_v7 }
  0x20   : > { %v940_v23 = vor.u32 %v939_v11, %v720_v4  ;;  %858 = vrot.lane.b32.xlu0 %v3157_v58, %s3020_s17  ;;  %v942_v26 = vor.u32 %v941_v19, %v727_v18  ;;  %860 = vrot.lane.b32.xlu1 %v3162_v61, %s3020_s17  ;;  %v440_v38 = vmul.f32 %v2840_v16, %v3100_v8  ;;  %v2875_v42 = vunpack.c.l.bf16 %v2903_v22 }
  0x21   : > { %v924_v24 = vor.u32 %v923_v13, %v664_v12  ;;  %v926_v28 = vor.u32 %v925_v21, %v671_v20  ;;  %v494_v40 = vadd.f32 %v3134_v27, %v455_v32  ;;  %v495_v41 = vadd.f32 %v3134_v27, %v456_v33 }
  0x22   : > { %v998_v30 = vsel %vm3180_vm5, %v940_v23, %v997_v3  ;;  %v3215_v35 = vsel %vm3180_vm5, %v942_v26, %v1000_v14  ;;  %v2876_v43 = vunpack.c.h.bf16 %v2903_v22  ;;  %v478_v44 = vadd.f32 %v3134_v27, %v439_v37 }
  0x23   : > { %v974_v31 = vsel %vm3180_vm5, %v924_v24, %v973_v5  ;;  %999 = vst [vmem:[#allocation2 + $0x98] sm:$0xff] %v998_v30  ;;  %v3219_v36 = vsel %vm3180_vm5, %v926_v28, %v976_v15  ;;  %1002 = vst [vmem:[#allocation2 + $0xa8] sm:$0xff] %v3215_v35  ;;  %v479_v45 = vadd.f32 %v3134_v27, %v440_v38  ;;  %v2843_v46 = vunpack.c.l.bf16 %v2895_v34  ;;  %v651_v38 = vld [vmem:[#allocation2 + $0xd8] sm:$0x80] }
  0x24   : > { %975 = vst [vmem:[#allocation2 + $0x18] sm:$0xff] %v974_v31  ;;  %978 = vst [vmem:[#allocation2 + $0x28] sm:$0xff] %v3219_v36  ;;  %v2844_v47 = vunpack.c.h.bf16 %v2895_v34  ;;  %2672 = vmatprep.mubr.msk.bf16.mxu1 %vm555_vm2, %v998_v30  ;;  %v526_v49 = vmax.f32 %v494_v40, 0.0  ;;  %v527_v50 = vmax.f32 %v495_v41, 0.0  ;;  %v457_v51 = vmul.f32 %v2875_v42, %v3100_v8  ;;  %2664 = vmatprep.mubr.msk.bf16.mxu0 %vm555_vm2, %v974_v31  ;;  %v1003_v31 = vld [vmem:[#allocation2 + $0xb8] sm:$0xff] }
  0x25   : > { %v458_v52 = vmul.f32 %v2876_v43, %v3100_v8  ;;  %v510_v55 = vmax.f32 %v478_v44, 0.0  ;;  %v511_v56 = vmax.f32 %v479_v45, 0.0  ;;  %v441_v59 = vmul.f32 %v2843_v46, %v3100_v8  ;;  %v979_v42 = vld [vmem:[#allocation2 + $0x38] sm:$0xff]  ;;  %v2896_v44 = vld [vmem:[%s3114_s12 + $0x20] sm:$0xff]  }
  0x26   : > { %v442_v0 = vmul.f32 %v2844_v47, %v3100_v8  ;;  %v3244_v2 = vpack.c.bf16 %v527_v50, %v526_v49  ;;  %v496_v3 = vadd.f32 %v3134_v27, %v457_v51  ;;  %v625_v5 = vsel %vm3081_vm3, 0, %v624_v48  ;;  %v1006_v49 = vld [vmem:[#allocation2 + $0xc8] sm:$0xff]  ;;  %v627_v51 = vld [vmem:[#allocation2 + $0x58] sm:$0x80] }
  0x27   : > { %v497_v4 = vadd.f32 %v3134_v27, %v458_v52  ;;  %v3251_v10 = vpack.c.bf16 %v511_v56, %v510_v55  ;;  %v480_v11 = vadd.f32 %v3134_v27, %v441_v59  ;;  %626 = vst [vmem:[#allocation2 + $0x48] sm:$0x80] %v625_v5  ;;  %v2879_v14 = vunpack.c.l.bf16 %v2904_v53  ;;  %v2905_v52 = vld [vmem:[%s3114_s12 + $0x68] sm:$0xff]  }
  0x28   : > { %v481_v13 = vadd.f32 %v3134_v27, %v442_v0  ;;  %v3258_v15 = vrot.slane %v664_v12, 7  ;;  %v737_v16 = vshll.u32 %v3244_v2, 16  ;;  %878 = vrot.lane.b32.xlu0 %v3244_v2, %s3020_s17  ;;  %v528_v19 = vmax.f32 %v496_v3, 0.0  ;;  %v2963_v12 = vld [vmem:[%s4224_s3 + $0x88] sm:$0xff]  }
  0x29   : > { %v529_v21 = vmax.f32 %v497_v4, 0.0  ;;  %v681_v22 = vshll.u32 %v3251_v10, 16  ;;  %862 = vrot.lane.b32.xlu1 %v3251_v10, %s3020_s17  ;;  %v512_v23 = vmax.f32 %v480_v11, 0.0  ;;  %v734_v26 = vshrl.u32 %v3244_v2, 16  ;;  %2925 = vmatpush1.bf16.msra.mxu1 %v2963_v12  ;;  %v654_v59 = vld [vmem:[#allocation2 + $0xe8] sm:$0x80] }
  0x2a   : > { %v513_v24 = vmax.f32 %v481_v13, 0.0  ;;  %v943_v28 = vrot.slane %v737_v16, 1  ;;  %v2880_v30 = vunpack.c.h.bf16 %v2904_v53  ;;  %v678_v32 = vshrl.u32 %v3251_v10, 16  ;;  %1265 = vmatpush1.bf16.msra.mxu0 %v2963_v12  ;;  %2914 = vmatprep.subr.bf16.mxu1 %v3019_v7 }
  0x2b   : > { %v3272_v29 = vpack.c.bf16 %v529_v21, %v528_v19  ;;  %v927_v33 = vrot.slane %v681_v22, 1  ;;  %v459_v37 = vmul.f32 %v2879_v14, %v3100_v8  ;;  %v3284_v39 = vrot.slane %v727_v18, 7  ;;  %1266 = vmatprep.subr.bf16.mxu0 %v3019_v7  ;;  %v2897_v21 = vld [vmem:[%s3114_s12 + $0x28] sm:$0xff]  }
  0x2c   : > { %v3278_v34 = vpack.c.bf16 %v513_v24, %v512_v23  ;;  %v3288_v40 = vrot.slane %v671_v20, 7  ;;  %v944_v41 = vor.u32 %v943_v28, %v734_v26  ;;  %v2964_v20 = vld [vmem:[%s4224_s3 + $0x90] sm:$0xff]   ;;  %v460_v50 = vmul.f32 %v2880_v30, %v3100_v8  ;;  %v2965_v23 = vld [vmem:[%s4224_s3 + $0x98] sm:$0xff]  }
  0x2d   : > { %v744_v43 = vshll.u32 %v3272_v29, 16  ;;  %880 = vrot.lane.b32.xlu0 %v3272_v29, %s3020_s17  ;;  %v928_v45 = vor.u32 %v927_v33, %v678_v32  ;;  %v741_v47 = vshrl.u32 %v3272_v29, 16  ;;  %v498_v56 = vadd.f32 %v3134_v27, %v459_v37  ;;  %2926 = vmatpush1.bf16.msra.mxu1 %v2964_v20 }
  0x2e   : > { %v688_v18 = vshll.u32 %v3278_v34, 16  ;;  %864 = vrot.lane.b32.xlu1 %v3278_v34, %s3020_s17  ;;  %v3306_v46 = vsel %vm3180_vm5, %v944_v41, %v1003_v31  ;;  %v685_v54 = vshrl.u32 %v3278_v34, 16  ;;  %v982_v3 = vld [vmem:[#allocation2 + $0x48] sm:$0xff]  ;;  %v499_v4 = vadd.f32 %v3134_v27, %v460_v50  ;;  %1267 = vmatpush1.bf16.msra.mxu0 %v2964_v20 }
  0x2f   : > { %v945_v48 = vrot.slane %v744_v43, 1  ;;  %1005 = vst [vmem:[#allocation2 + $0xb8] sm:$0xff] %v3306_v46  ;;  %v3317_v53 = vsel %vm3180_vm5, %v928_v45, %v979_v42  ;;  %v652_v5 = vsel %vm3081_vm3, 0, %v651_v38  ;;  %v3333_v11 = vor.u32 %v723_v62, %v3195_v25  ;;  %2915 = vmatprep.subr.bf16.mxu1 %v3019_v7  ;;  %1268 = vmatprep.subr.bf16.mxu0 %v3019_v7 }
  0x30   : > { %v929_v55 = vrot.slane %v688_v18, 1  ;;  %981 = vst [vmem:[#allocation2 + $0x38] sm:$0xff] %v3317_v53  ;;  %v530_v14 = vmax.f32 %v498_v56, 0.0  ;;  %653 = vst [vmem:[#allocation2 + $0xd8] sm:$0x80] %v652_v5  ;;  %v2847_v19 = vunpack.c.l.bf16 %v2896_v44  ;;  %v531_v12 = vmax.f32 %v499_v4, 0.0 }
  0x31   : > { %v946_v0 = vor.u32 %v945_v48, %v741_v47  ;;  %v2848_v57 = vunpack.c.h.bf16 %v2896_v44  ;;  %v628_v62 = vsel %vm3081_vm3, 0, %v627_v51  ;;  %v2883_v30 = vunpack.c.l.bf16 %v2905_v52  ;;  %2927 = vmatpush1.bf16.msra.mxu1 %v2965_v23  ;;  %v2966_v48 = vld [vmem:[%s4224_s3 + $0xa0] sm:$0xff]  }
  0x32   : > { %v930_v13 = vor.u32 %v929_v55, %v685_v54  ;;  %v443_v28 = vmul.f32 %v2847_v19, %v3100_v8  ;;  %629 = vst [vmem:[#allocation2 + $0x58] sm:$0x80] %v628_v62  ;;  %v2884_v31 = vunpack.c.h.bf16 %v2905_v52  ;;  %v3356_v33 = vpack.c.bf16 %v531_v12, %v530_v14  ;;  %v630_v55 = vld [vmem:[#allocation2 + $0x68] sm:$0x80]  ;;  %1269 = vmatpush1.bf16.msra.mxu0 %v2965_v23 }
  0x33   : > { %v3343_v24 = vsel %vm3180_vm5, %v946_v0, %v1006_v49  ;;  %v444_v37 = vmul.f32 %v2848_v57, %v3100_v8  ;;  %v655_v38 = vsel %vm3081_vm3, 0, %v654_v59  ;;  %v2851_v41 = vunpack.c.l.bf16 %v2897_v21  ;;  %2916 = vmatprep.subr.bf16.mxu1 %v3019_v7  ;;  %1270 = vmatprep.subr.bf16.mxu0 %v3019_v7  ;;  %v2967_v14 = vld [vmem:[%s4224_s3 + $0xa8] sm:$0xff]  }
  0x34   : > { %1008 = vst [vmem:[#allocation2 + $0xc8] sm:$0xff] %v3343_v24  ;;  %v3351_v25 = vsel %vm3180_vm5, %v930_v13, %v982_v3  ;;  %v482_v42 = vadd.f32 %v3134_v27, %v443_v28  ;;  %v461_v44 = vmul.f32 %v2883_v30, %v3100_v8  ;;  %v462_v45 = vmul.f32 %v2884_v31, %v3100_v8 }
  0x35   : > { %984 = vst [vmem:[#allocation2 + $0x48] sm:$0xff] %v3351_v25  ;;  %656 = vst [vmem:[#allocation2 + $0xe8] sm:$0x80] %v655_v38  ;;  %v2852_v20 = vunpack.c.h.bf16 %v2897_v21  ;;  %v3370_v49 = vor.u32 %v667_v63, %v3258_v15  ;;  %v751_v50 = vshll.u32 %v3356_v33, 16  ;;  %882 = vrot.lane.b32.xlu0 %v3356_v33, %s3020_s17  ;;  %v483_v51 = vadd.f32 %v3134_v27, %v444_v37  ;;  %v2906_v63 = vld [vmem:[%s3114_s12 + $0x70] sm:$0xff]  }
  0x36   : > { %v445_v52 = vmul.f32 %v2851_v41, %v3100_v8  ;;  %v514_v56 = vmax.f32 %v482_v42, 0.0  ;;  %v500_v59 = vadd.f32 %v3134_v27, %v461_v44  ;;  %v501_v0 = vadd.f32 %v3134_v27, %v462_v45  ;;  %v657_v15 = vld [vmem:[#allocation2 + $0xf8] sm:$0x80]  ;;  %2928 = vmatpush1.bf16.msra.mxu1 %v2966_v48  ;;  %1271 = vmatpush1.bf16.msra.mxu0 %v2966_v48  ;;  %v2898_v44 = vld [vmem:[%s3114_s12 + $0x30] sm:$0xff]  }
  0x37   : > { %v446_v58 = vmul.f32 %v2852_v20, %v3100_v8  ;;  %v748_v3 = vshrl.u32 %v3356_v33, 16  ;;  %v947_v4 = vrot.slane %v751_v50, 1  ;;  %v515_v5 = vmax.f32 %v483_v51, 0.0  ;;  %v1009_v19 = vld [vmem:[#allocation2 + $0xd8] sm:$0xff]  ;;  %2917 = vmatprep.subr.bf16.mxu1 %v3019_v7  ;;  %1272 = vmatprep.subr.bf16.mxu0 %v3019_v7  ;;  %v2968_v20 = vld [vmem:[%s4224_s3 + $0xb0] sm:$0xff]  }
  0x38   : > { %v484_v13 = vadd.f32 %v3134_v27, %v445_v52  ;;  %v532_v21 = vmax.f32 %v500_v59, 0.0  ;;  %v533_v23 = vmax.f32 %v501_v0, 0.0  ;;  %v631_v57 = vsel %vm3081_vm3, 0, %v630_v55 }
  0x39   : > { %v485_v12 = vadd.f32 %v3134_v27, %v446_v58  ;;  %v3396_v62 = vor.u32 %v730_v6, %v3284_v39  ;;  %v948_v28 = vor.u32 %v947_v4, %v748_v3  ;;  %v3400_v30 = vpack.c.bf16 %v515_v5, %v514_v56  ;;  %632 = vst [vmem:[#allocation2 + $0x68] sm:$0x80] %v631_v57  ;;  %v985_v0 = vld [vmem:[#allocation2 + $0x58] sm:$0xff] }
  0x3a   : > { %v516_v31 = vmax.f32 %v484_v13, 0.0  ;;  %v3403_v37 = vpack.c.bf16 %v533_v23, %v532_v21  ;;  %v2887_v41 = vunpack.c.l.bf16 %v2906_v63  ;;  %v2888_v42 = vunpack.c.h.bf16 %v2906_v63  ;;  %2929 = vmatpush1.bf16.msra.mxu1 %v2967_v14  ;;  %1273 = vmatpush1.bf16.msra.mxu0 %v2967_v14  ;;  %v660_v21 = vld [vmem:[#allocation2 + $0x108] sm:$0x80] }
  0x3b   : > { %v517_v38 = vmax.f32 %v485_v12, 0.0  ;;  %v736_v60 = vrot.slane %v734_v26, 7  ;;  %v3411_v6 = vsel %vm3180_vm5, %v948_v28, %v1009_v19  ;;  %v695_v39 = vshll.u32 %v3400_v30, 16  ;;  %866 = vrot.lane.b32.xlu1 %v3400_v30, %s3020_s17  ;;  %2918 = vmatprep.subr.bf16.mxu1 %v3019_v7  ;;  %v2969_v28 = vld [vmem:[%s4224_s3 + $0xb8] sm:$0xff]  }
  0x3c   : > { %v658_v45 = vsel %vm3081_vm3, 0, %v657_v15  ;;  %v680_v48 = vrot.slane %v678_v32, 7  ;;  %1011 = vst [vmem:[#allocation2 + $0xd8] sm:$0xff] %v3411_v6  ;;  %v4234_v26 = vshll.u32 %v3403_v37, 16  ;;  %884 = vrot.lane.b32.xlu0 %v3403_v37, %s3020_s17  ;;  %v463_v52 = vmul.f32 %v2887_v41, %v3100_v8  ;;  %v2907_v15 = vld [vmem:[%s3114_s12 + $0x78] sm:$0xff]   ;;  %1274 = vmatprep.subr.bf16.mxu0 %v3019_v7  ;;  %v1012_v13 = vld [vmem:[#allocation2 + $0xe8] sm:$0xff] }
  0x3d   : > { %v3427_v51 = vpack.c.bf16 %v517_v38, %v516_v31  ;;  %659 = vst [vmem:[#allocation2 + $0xf8] sm:$0x80] %v658_v45  ;;  %v3433_v55 = vor.u32 %v674_v9, %v3288_v40  ;;  %v692_v32 = vshrl.u32 %v3400_v30, 16  ;;  %v931_v56 = vrot.slane %v695_v39, 1  ;;  %v633_v40 = vld [vmem:[#allocation2 + $0x78] sm:$0x80] }
  0x3e   : > { %v464_v59 = vmul.f32 %v2888_v42, %v3100_v8  ;;  %v755_v58 = vshrl.u32 %v3403_v37, 16  ;;  %v949_v63 = vrot.slane %v4234_v26, 1  ;;  %v2855_v9 = vunpack.c.l.bf16 %v2898_v44  ;;  %2930 = vmatpush1.bf16.msra.mxu1 %v2968_v20  ;;  %1275 = vmatpush1.bf16.msra.mxu0 %v2968_v20 }
  0x3f   : > { %v4232_v61 = vshll.u32 %v3427_v51, 16  ;;  %v3448_v4 = vor.u32 %v737_v16, %v736_v60  ;;  %v932_v5 = vor.u32 %v931_v56, %v692_v32  ;;  %868 = vrot.lane.b32.xlu1 %v3427_v51, %s3020_s17  ;;  %v502_v14 = vadd.f32 %v3134_v27, %v463_v52  ;;  %2919 = vmatprep.subr.bf16.mxu1 %v3019_v7  ;;  %v2899_v52 = vld [vmem:[%s3114_s12 + $0x38] sm:$0xff]   ;;  %s356_s12 = scalar_lea.vmem %s4227_s6, %s4254_s24 }
  0x40   : > { %v503_v19 = vadd.f32 %v3134_v27, %v464_v59  ;;  %v3458_v23 = vor.u32 %v681_v22, %v680_v48  ;;  %v950_v2 = vor.u32 %v949_v63, %v755_v58  ;;  %v699_v16 = vshrl.u32 %v3427_v51, 16  ;;  %v988_v57 = vld [vmem:[#allocation2 + $0x68] sm:$0xff]  ;;  %1276 = vmatprep.subr.bf16.mxu0 %v3019_v7 }
  0x41   : > { %v933_v12 = vrot.slane %v4232_v61, 1  ;;  %v3470_v10 = vsel %vm3180_vm5, %v932_v5, %v985_v0  ;;  %v534_v22 = vmax.f32 %v502_v14, 0.0  ;;  %v2856_v38 = vunpack.c.h.bf16 %v2898_v44 }
  0x42   : > { %v535_v31 = vmax.f32 %v503_v19, 0.0  ;;  %v743_v41 = vrot.slane %v741_v47, 7  ;;  %987 = vst [vmem:[#allocation2 + $0x58] sm:$0xff] %v3470_v10  ;;  %v3478_v42 = vsel %vm3180_vm5, %v950_v2, %v1012_v13  ;;  %v447_v45 = vmul.f32 %v2855_v9, %v3100_v8  ;;  %2931 = vmatpush1.bf16.msra.mxu1 %v2969_v28  ;;  %1277 = vmatpush1.bf16.msra.mxu0 %v2969_v28 }
  0x43   : > { %v934_v60 = vor.u32 %v933_v12, %v699_v16  ;;  %1014 = vst [vmem:[#allocation2 + $0xe8] sm:$0xff] %v3478_v42  ;;  %v448_v20 = vmul.f32 %v2856_v38, %v3100_v8  ;;  %v634_v47 = vsel %vm3081_vm3, 0, %v633_v40  ;;  %v2891_v48 = vunpack.c.l.bf16 %v2907_v15  ;;  %1535 = vmatprep.subr.bf16.mxu1 %v3019_v7  ;;  %1874 = vmatprep.subr.bf16.mxu0 %v3019_v7  ;;  %v564_v7 = vld [vmem:[#allocation2 + $0x10] sm:$0x1] }
  0x44   : > { %v3485_v44 = vpack.c.bf16 %v535_v31, %v534_v22  ;;  %v486_v59 = vadd.f32 %v3134_v27, %v447_v45  ;;  %635 = vst [vmem:[#allocation2 + $0x78] sm:$0x80] %v634_v47  ;;  %v2892_v0 = vunpack.c.h.bf16 %v2907_v15  ;;  %v661_v63 = vsel %vm3081_vm3, 0, %v660_v21  ;;  %v636_v15 = vld [vmem:[#allocation2 + $0x88] sm:$0x80]  ;;  %v1015_v38 = vld [vmem:[#allocation2 + $0xf8] sm:$0xff] }
  0x45   : > { %v3493_v56 = vsel %vm3180_vm5, %v934_v60, %v988_v57  ;;  %v3500_v9 = vrot.slane %v685_v54, 7  ;;  %v487_v5 = vadd.f32 %v3134_v27, %v448_v20  ;;  %v465_v13 = vmul.f32 %v2891_v48, %v3100_v8  ;;  %662 = vst [vmem:[#allocation2 + $0x108] sm:$0x80] %v661_v63  ;;  %v588_v31 = vld [vmem:[#allocation2 + $0x90] sm:$0x1] }
  0x46   : > { %990 = vst [vmem:[#allocation2 + $0x68] sm:$0xff] %v3493_v56  ;;  %v4231_v40 = vshll.u32 %v3485_v44, 16  ;;  %886 = vrot.lane.b32.xlu0 %v3485_v44, %s3020_s17  ;;  %v518_v14 = vmax.f32 %v486_v59, 0.0  ;;  %v466_v19 = vmul.f32 %v2892_v0, %v3100_v8  ;;  %v2859_v21 = vunpack.c.l.bf16 %v2899_v52  ;;  %v591_v0 = vld [vmem:[#allocation2 + $0xa0] sm:$0x1] }
  0x47   : > { %v2860_v54 = vunpack.c.h.bf16 %v2899_v52  ;;  %v762_v2 = vshrl.u32 %v3485_v44, 16  ;;  %v519_v57 = vmax.f32 %v487_v5, 0.0  ;;  %v504_v22 = vadd.f32 %v3134_v27, %v465_v13 }
  0x48   : > { %v951_v12 = vrot.slane %v4231_v40, 1  ;;  %v505_v28 = vadd.f32 %v3134_v27, %v466_v19  ;;  %v449_v60 = vmul.f32 %v2859_v21, %v3100_v8  ;;  %v637_v20 = vsel %vm3081_vm3, 0, %v636_v15  ;;  %v570_v21 = vld [vmem:[#allocation2 + $0x30] sm:$0x1] }
  0x49   : > { %v450_v45 = vmul.f32 %v2860_v54, %v3100_v8  ;;  %v3522_v47 = vor.u32 %v744_v43, %v743_v41  ;;  %v3524_v52 = vpack.c.bf16 %v519_v57, %v518_v14  ;;  %v536_v59 = vmax.f32 %v504_v22, 0.0  ;;  %638 = vst [vmem:[#allocation2 + $0x88] sm:$0x80] %v637_v20  ;;  %v567_v8 = vld [vmem:[#allocation2 + $0x20] sm:$0x1] }
  0x4a   : > { %v952_v48 = vor.u32 %v951_v12, %v762_v2  ;;  %v537_v63 = vmax.f32 %v505_v28, 0.0  ;;  %v488_v5 = vadd.f32 %v3134_v27, %v449_v60  ;;  %v3530_v1 = vrot.slane %v748_v3, 7  ;;  %v594_v3 = vld [vmem:[#allocation2 + $0xb0] sm:$0x1]  ;;  %v597_v54 = vld [vmem:[#allocation2 + $0xc0] sm:$0x1] }
  0x4b   : > { %v489_v13 = vadd.f32 %v3134_v27, %v450_v45  ;;  %v3534_v29 = vrot.slane %v692_v32, 7  ;;  %v4229_v41 = vshll.u32 %v3524_v52, 16  ;;  %870 = vrot.lane.b32.xlu1 %v3524_v52, %s3020_s17  ;;  %v589_v19 = vsel %vm3544_vm8, 0, %v588_v31  ;;  %v573_v28 = vld [vmem:[#allocation2 + $0x40] sm:$0x1]  ;;  %v991_v31 = vld [vmem:[#allocation2 + $0x78] sm:$0xff] }
  0x4c   : > { %v3538_v43 = vsel %vm3180_vm5, %v952_v48, %v1015_v38  ;;  %v3549_v15 = vpack.c.bf16 %v537_v63, %v536_v59  ;;  %v520_v32 = vmax.f32 %v488_v5, 0.0  ;;  %v3555_v12 = vrot.slane %v755_v58, 7  ;;  %590 = vst [vmem:[#allocation2 + $0x90] sm:$0x1] %v589_v19  ;;  %v600_v48 = vld [vmem:[#allocation2 + $0xd0] sm:$0x1] }
  0x4d   : > { %1017 = vst [vmem:[#allocation2 + $0xf8] sm:$0xff] %v3538_v43  ;;  %v521_v14 = vmax.f32 %v489_v13, 0.0  ;;  %v706_v57 = vshrl.u32 %v3524_v52, 16  ;;  %v935_v22 = vrot.slane %v4229_v41, 1  ;;  %v565_v38 = vsel %vm3544_vm8, 0, %v564_v7 }
  0x4e   : > { %v3564_v60 = vrot.slane %v699_v16, 7  ;;  %v4230_v45 = vshll.u32 %v3549_v15, 16  ;;  %888 = vrot.lane.b32.xlu0 %v3549_v15, %s3020_s17  ;;  %566 = vst [vmem:[#allocation2 + $0x10] sm:$0x1] %v565_v38  ;;  %v592_v20 = vsel %vm3544_vm8, 0, %v591_v0  ;;  %v568_v16 = vsel %vm3544_vm8, 0, %v567_v8 }
  0x4f   : > { %v3569_v58 = vpack.c.bf16 %v521_v14, %v520_v32  ;;  %v576_v59 = vld [vmem:[#allocation2 + $0x50] sm:$0x1]  ;;  %v603_v7 = vld [vmem:[#allocation2 + $0xe0] sm:$0x1]  ;;  %v936_v5 = vor.u32 %v935_v22, %v706_v57  ;;  %593 = vst [vmem:[#allocation2 + $0xa0] sm:$0x1] %v592_v20  ;;  %v753_v27 = vor.u32 %v751_v50, %v3530_v1 }
  0x50   : > { %v579_v63 = vld [vmem:[#allocation2 + $0x60] sm:$0x1]  ;;  %v595_v13 = vsel %vm3544_vm8, 0, %v594_v3  ;;  %v606_v19 = vld [vmem:[#allocation2 + $0xf0] sm:$0x1]  ;;  %v3577_v32 = vrot.slane %v762_v2, 7 }
  0x51   : > { %v769_v14 = vshrl.u32 %v3549_v15, 16  ;;  %v953_v0 = vrot.slane %v4230_v45, 1  ;;  %v4233_v38 = vshll.u32 %v3569_v58, 16  ;;  %872 = vrot.lane.b32.xlu1 %v3569_v58, %s3020_s17  ;;  %569 = vst [vmem:[#allocation2 + $0x20] sm:$0x1] %v568_v16  ;;  %v3587_v3 = vsel %vm3180_vm5, %v936_v5, %v991_v31  ;;  %v1018_v2 = vld [vmem:[#allocation2 + $0x108] sm:$0xff] }
  0x52   : > { %596 = vst [vmem:[#allocation2 + $0xb0] sm:$0x1] %v595_v13  ;;  %v582_v22 = vld [vmem:[#allocation2 + $0x70] sm:$0x1]  ;;  %v609_v8 = vld [vmem:[#allocation2 + $0x100] sm:$0x1] }
  0x53   : > { %v585_v20 = vld [vmem:[#allocation2 + $0x80] sm:$0x1]  ;;  %v571_v41 = vsel %vm3544_vm8, 0, %v570_v21  ;;  %v598_v45 = vsel %vm3544_vm8, 0, %v597_v54  ;;  %v574_v40 = vsel %vm3544_vm8, 0, %v573_v28  ;;  %v708_v61 = vrot.slane %v706_v57, 7 }
  0x54   : > { %993 = vst [vmem:[#allocation2 + $0x78] sm:$0xff] %v3587_v3  ;;  %v954_v16 = vor.u32 %v953_v0, %v769_v14  ;;  %v713_v13 = vshrl.u32 %v3569_v58, 16  ;;  %v937_v31 = vrot.slane %v4233_v38, 1  ;;  %572 = vst [vmem:[#allocation2 + $0x30] sm:$0x1] %v571_v41  ;;  %v994_v21 = vld [vmem:[#allocation2 + $0x88] sm:$0xff] }
  0x55   : > { %599 = vst [vmem:[#allocation2 + $0xc0] sm:$0x1] %v598_v45  ;;  %575 = vst [vmem:[#allocation2 + $0x40] sm:$0x1] %v574_v40  ;;  %v601_v54 = vsel %vm3544_vm8, 0, %v600_v48  ;;  %v577_v57 = vsel %vm3544_vm8, 0, %v576_v59 }
  0x56   : > { %v604_v28 = vsel %vm3544_vm8, 0, %v603_v7  ;;  %v580_v0 = vsel %vm3544_vm8, 0, %v579_v63  ;;  %v771_v38 = vrot.slane %v769_v14, 7  ;;  %v3615_v26 = vsel %vm3180_vm5, %v954_v16, %v1018_v2  ;;  %v818_v40 = vld [vmem:[#allocation2 + $0x90] sm:$0xff]  ;;  %602 = vst [vmem:[#allocation2 + $0xd0] sm:$0x1] %v601_v54 }
  0x57   : > { %v938_v41 = vor.u32 %v937_v31, %v713_v13  ;;  %578 = vst [vmem:[#allocation2 + $0x50] sm:$0x1] %v577_v57  ;;  %605 = vst [vmem:[#allocation2 + $0xe0] sm:$0x1] %v604_v28  ;;  %v607_v45 = vsel %vm3544_vm8, 0, %v606_v19  ;;  %v819_v48 = vsel %vm3601_vm10, %v3333_v11, %v818_v40  ;;  %v794_v59 = vld [vmem:[#allocation2 + $0x10] sm:$0xff]  ;;  %v690_v19 = vor.u32 %v688_v18, %v3500_v9 }
  0x58   : > { %581 = vst [vmem:[#allocation2 + $0x60] sm:$0x1] %v580_v0  ;;  %1020 = vst [vmem:[#allocation2 + $0x108] sm:$0xff] %v3615_v26  ;;  %v583_v7 = vsel %vm3544_vm8, 0, %v582_v22  ;;  %v610_v63 = vsel %vm3544_vm8, 0, %v609_v8  ;;  %v586_v14 = vsel %vm3544_vm8, 0, %v585_v20  ;;  %v795_v11 = vsel %vm3601_vm10, %v3370_v49, %v794_v59 }
  0x59   : > { %608 = vst [vmem:[#allocation2 + $0xf0] sm:$0x1] %v607_v45  ;;  %v715_v2 = vrot.slane %v713_v13, 7  ;;  %v3634_v16 = vsel %vm3180_vm5, %v938_v41, %v994_v21  ;;  %820 = vst [vmem:[#allocation2 + $0x90] sm:$0xff] %v819_v48  ;;  %v821_v22 = vld [vmem:[#allocation2 + $0xa0] sm:$0xff]  ;;  %v824_v18 = vld [vmem:[#allocation2 + $0xb0] sm:$0xff]  ;;  %v697_v49 = vor.u32 %v695_v39, %v3534_v29 }
  0x5a   : > { %584 = vst [vmem:[#allocation2 + $0x70] sm:$0x1] %v583_v7  ;;  %611 = vst [vmem:[#allocation2 + $0x100] sm:$0x1] %v610_v63  ;;  %v822_v17 = vsel %vm3601_vm10, %v3396_v62, %v821_v22  ;;  %v797_v34 = vld [vmem:[#allocation2 + $0x20] sm:$0xff]  ;;  %v4243_v9 = vshll.u32 %v3403_v37, 16  ;;  %v825_v50 = vsel %vm3601_vm10, %v3448_v4, %v824_v18 }
  0x5b   : > { %587 = vst [vmem:[#allocation2 + $0x80] sm:$0x1] %v586_v14  ;;  %996 = vst [vmem:[#allocation2 + $0x88] sm:$0xff] %v3634_v16  ;;  %v798_v33 = vsel %vm3601_vm10, %v3433_v55, %v797_v34  ;;  %v4244_v62 = vshll.u32 %v3427_v51, 16  ;;  %v4245_v30 = vshll.u32 %v3485_v44, 16  ;;  %v4246_v37 = vshll.u32 %v3524_v52, 16 }
  0x5c   : > { %796 = vst [vmem:[#allocation2 + $0x10] sm:$0xff] %v795_v11  ;;  %v760_v8 = vor.u32 %v4243_v9, %v3555_v12  ;;  %823 = vst [vmem:[#allocation2 + $0xa0] sm:$0xff] %v822_v17  ;;  %v4247_v12 = vshll.u32 %v3549_v15, 16  ;;  %v800_v55 = vld [vmem:[#allocation2 + $0x30] sm:$0xff]  ;;  %v827_v13 = vld [vmem:[#allocation2 + $0xc0] sm:$0xff]  ;;  %v4248_v4 = vshll.u32 %v3569_v58, 16 }
  0x5d   : > { %v704_v1 = vor.u32 %v4244_v62, %v3564_v60  ;;  %v767_v39 = vor.u32 %v4245_v30, %v3577_v32  ;;  %v711_v29 = vor.u32 %v4246_v37, %v708_v61  ;;  %799 = vst [vmem:[#allocation2 + $0x20] sm:$0xff] %v798_v33  ;;  %826 = vst [vmem:[#allocation2 + $0xb0] sm:$0xff] %v825_v50  ;;  %v803_v31 = vld [vmem:[#allocation2 + $0x40] sm:$0xff]  ;;  %v830_v52 = vld [vmem:[#allocation2 + $0xd0] sm:$0xff] }
  0x5e   : > { %v774_v20 = vor.u32 %v4247_v12, %v771_v38  ;;  %v718_v21 = vor.u32 %v4248_v4, %v715_v2  ;;  %v801_v51 = vsel %vm3601_vm10, %v3458_v23, %v800_v55  ;;  %v828_v44 = vsel %vm3601_vm10, %v3522_v47, %v827_v13  ;;  %v806_v15 = vld [vmem:[#allocation2 + $0x50] sm:$0xff]  ;;  %v833_v60 = vld [vmem:[#allocation2 + $0xe0] sm:$0xff]  ;;  %v2972_v11 = vld [vmem:[%s4224_s3 + $0x8] sm:$0xff]  }
  0x5f   : > { %v804_v61 = vsel %vm3601_vm10, %v690_v19, %v803_v31  ;;  %802 = vst [vmem:[#allocation2 + $0x30] sm:$0xff] %v801_v51  ;;  %829 = vst [vmem:[#allocation2 + $0xc0] sm:$0xff] %v828_v44  ;;  %v831_v58 = vsel %vm3601_vm10, %v753_v27, %v830_v52  ;;  %v807_v32 = vsel %vm3601_vm10, %v697_v49, %v806_v15  ;;  %v809_v38 = vld [vmem:[#allocation2 + $0x60] sm:$0xff]  ;;  %v2974_v18 = vld [vmem:[%s4224_s3 + $0x10] sm:$0xff]  }
  0x60   : > { %805 = vst [vmem:[#allocation2 + $0x40] sm:$0xff] %v804_v61  ;;  %v834_v23 = vsel %vm3601_vm10, %v760_v8, %v833_v60  ;;  %v836_v47 = vld [vmem:[#allocation2 + $0xf0] sm:$0xff]  ;;  %832 = vst [vmem:[#allocation2 + $0xd0] sm:$0xff] %v831_v58  ;;  %v810_v54 = vsel %vm3601_vm10, %v704_v1, %v809_v38  ;;  %v2970_v19 = vld [vmem:[%s4224_s3] sm:$0xff]  }
  0x61   : > { %808 = vst [vmem:[#allocation2 + $0x50] sm:$0xff] %v807_v32  ;;  %835 = vst [vmem:[#allocation2 + $0xe0] sm:$0xff] %v834_v23  ;;  %v837_v57 = vsel %vm3601_vm10, %v767_v39, %v836_v47  ;;  %v812_v28 = vld [vmem:[#allocation2 + $0x70] sm:$0xff]  ;;  %v839_v0 = vld [vmem:[#allocation2 + $0x100] sm:$0xff] }
  0x62   : > { %v815_v41 = vld [vmem:[#allocation2 + $0x80] sm:$0xff]  ;;  %811 = vst [vmem:[#allocation2 + $0x60] sm:$0xff] %v810_v54  ;;  %838 = vst [vmem:[#allocation2 + $0xf0] sm:$0xff] %v837_v57  ;;  %v813_v40 = vsel %vm3601_vm10, %v711_v29, %v812_v28  ;;  %v840_v45 = vsel %vm3601_vm10, %v774_v20, %v839_v0  ;;  %v2975_v33 = vld [vmem:[%s4224_s3 + $0xd0] sm:$0xff]  }
  0x63   : > { %v816_v48 = vsel %vm3601_vm10, %v718_v21, %v815_v41  ;;  %814 = vst [vmem:[#allocation2 + $0x70] sm:$0xff] %v813_v40  ;;  %841 = vst [vmem:[#allocation2 + $0x100] sm:$0xff] %v840_v45  ;;  %v2971_v2 = vld [vmem:[%s4224_s3 + $0xc0] sm:$0xff]   ;;  %v2976_v50 = vld [vmem:[%s4224_s3 + $0x18] sm:$0xff]  }
  0x64   : > { %817 = vst [vmem:[#allocation2 + $0x80] sm:$0xff] %v816_v48  ;;  %v3712_v22 = vld [vmem:[#allocation2] sm:$0xff]  ;;  %v2977_v1 = vld [vmem:[%s4224_s3 + $0xd8] sm:$0xff]   ;;  %v2980_v39 = vld [vmem:[%s4224_s3 + $0x28] sm:$0xff]  }
  0x65   : > { %v2982_v12 = vld [vmem:[%s4224_s3 + $0x30] sm:$0xff]   ;;  %v2984_v31 = vld [vmem:[%s4224_s3 + $0x38] sm:$0xff]   ;;  %v2986_v51 = vld [vmem:[%s4224_s3 + $0x40] sm:$0xff]  }
  0x66   : > { %v2985_v21 = vld [vmem:[%s4224_s3 + $0xf8] sm:$0xff]   ;;  %v2988_v61 = vld [vmem:[%s4224_s3 + $0x48] sm:$0xff]   ;;  %v2990_v60 = vld [vmem:[%s4224_s3 + $0x50] sm:$0xff]  }
  0x67   : > { %v2989_v15 = vld [vmem:[%s4224_s3 + $0x108] sm:$0xff]   ;;  %v2992_v23 = vld [vmem:[%s4224_s3 + $0x58] sm:$0xff]  }
  0x68   : > { %v2993_v47 = vld [vmem:[%s4224_s3 + $0x118] sm:$0xff]   ;;  %v1022_v0 = vld [vmem:[#allocation2 + $0x8] sm:$0xff] }
  0x69   : > { %v1698_v40 = vld [vmem:[#allocation2 + $0x28] sm:$0xff]  ;;  %v1024_v45 = vld [vmem:[#allocation2 + $0x18] sm:$0xff] }
  0x6a   : > { %v1702_v48 = vld [vmem:[#allocation2 + $0x48] sm:$0xff] }
  0x8e   : > { %v875_v59 = vpop.permute.xlu0 %874  ;;  %v877_v7 = vpop.permute.xlu1 %876 }
  0x8f   : > { %915 = vst.msk [vmem:[#allocation2 + $0x90] sm:$0xff] %vm906_vm11, %v875_v59  ;;  %916 = vst.msk [vmem:[#allocation2 + $0xa0] sm:$0xff] %vm906_vm11, %v877_v7  ;;  %v1704_v59 = vld [vmem:[#allocation2 + $0x58] sm:$0xff]  ;;  %v1706_v7 = vld [vmem:[#allocation2 + $0x68] sm:$0xff] }
  0x92   : > { %v859_v63 = vpop.permute.xlu0 %858  ;;  %v861_v14 = vpop.permute.xlu1 %860 }
  0x93   : > { %907 = vst.msk [vmem:[#allocation2 + $0x10] sm:$0xff] %vm906_vm11, %v859_v63  ;;  %908 = vst.msk [vmem:[#allocation2 + $0x20] sm:$0xff] %vm906_vm11, %v861_v14  ;;  %v1712_v63 = vld [vmem:[#allocation2 + $0x98] sm:$0xff]  ;;  %v1714_v14 = vld [vmem:[#allocation2 + $0xa8] sm:$0xff] }
  0x96   : > { %v3701_v5 = vld [vmem:[#allocation2 + $0x90] sm:$0xff]  ;;  %v3718_v34 = vld [vmem:[#allocation2 + $0xa0] sm:$0xff] }
  0x97   : > { %1351 = vmatmul.mubr.bf16.vlgmr.msra.gmra.mrb[0].mxu1 %v3701_v5 }
  0x98   : > { %1536 = vmatpush1.bf16.msra.mxu1 %v2970_v19  ;;  %2673 = vmatprep.mubr.msk.bf16.mxu1 %vm555_vm2, %v3215_v35  ;;  %v2973_v35 = vld [vmem:[%s4224_s3 + $0xc8] sm:$0xff]   ;;  %v1716_v19 = vld [vmem:[#allocation2 + $0xb8] sm:$0xff] }
  0x99   : > { %1537 = vmatprep.subr.bf16.mxu1 %v3712_v22 }
  0x9a   : > { %v3715_v27 = vld [vmem:[#allocation2 + $0x10] sm:$0xff]  ;;  %v879_v17 = vpop.permute.xlu0 %878  ;;  %v3733_v9 = vld [vmem:[#allocation2 + $0x20] sm:$0xff] }
  0x9b   : > { %1287 = vmatmul.mubr.bf16.vlgmr.msra.gmra.mrb[0].mxu0 %v3715_v27  ;;  %917 = vst.msk [vmem:[#allocation2 + $0xb0] sm:$0xff] %vm906_vm11, %v879_v17  ;;  %v863_v49 = vpop.permute.xlu1 %862 }
  0x9c   : > { %1875 = vmatpush1.bf16.msra.mxu0 %v2971_v2  ;;  %1538 = vmatpush1.bf16.msra.mxu1 %v2972_v11  ;;  %909 = vst.msk [vmem:[#allocation2 + $0x30] sm:$0xff] %vm906_vm11, %v863_v49  ;;  %v1724_v2 = vld [vmem:[#allocation2 + $0xf8] sm:$0xff]  ;;  %v1726_v11 = vld [vmem:[#allocation2 + $0x108] sm:$0xff] }
  0x9d   : > { %1876 = vmatprep.subr.bf16.mxu0 %v3712_v22  ;;  %2665 = vmatprep.mubr.msk.bf16.mxu0 %vm555_vm2, %v3219_v36 }
  0x9e   : > { %1539 = vmatprep.subr.bf16.mxu1 %v3712_v22 }
  0x9f   : > { %1359 = vmatmul.mubr.bf16.gmra.mrb[4].mxu1 %v3718_v34  ;;  %v881_v8 = vpop.permute.xlu0 %880 }
  0xa0   : > { %1877 = vmatpush1.bf16.msra.mxu0 %v2973_v35  ;;  %1540 = vmatpush1.bf16.msra.mxu1 %v2974_v18  ;;  %918 = vst.msk [vmem:[#allocation2 + $0xc0] sm:$0xff] %vm906_vm11, %v881_v8  ;;  %v865_v36 = vpop.permute.xlu1 %864 }
  0xa1   : > { %1878 = vmatprep.subr.bf16.mxu0 %v3712_v22  ;;  %2674 = vmatprep.mubr.msk.bf16.mxu1 %vm555_vm2, %v3306_v46  ;;  %910 = vst.msk [vmem:[#allocation2 + $0x40] sm:$0xff] %vm906_vm11, %v865_v36  ;;  %v2978_v46 = vld [vmem:[%s4224_s3 + $0x20] sm:$0xff]  }
  0xa2   : > { %1541 = vmatprep.subr.bf16.mxu1 %v3712_v22  ;;  %v3748_v62 = vld [vmem:[#allocation2 + $0xb0] sm:$0xff] }
  0xa3   : > { %1295 = vmatmul.mubr.bf16.gmra.mrb[4].mxu0 %v3733_v9  ;;  %v3761_v30 = vld [vmem:[#allocation2 + $0x30] sm:$0xff] }
  0xa4   : > { %1879 = vmatpush1.bf16.msra.mxu0 %v2975_v33  ;;  %1542 = vmatpush1.bf16.msra.mxu1 %v2976_v50 }
  0xa5   : > { %2666 = vmatprep.mubr.msk.bf16.mxu0 %vm555_vm2, %v3317_v53  ;;  %1880 = vmatprep.subr.bf16.mxu0 %v3712_v22  ;;  %v2979_v53 = vld [vmem:[%s4224_s3 + $0xe0] sm:$0xff]  }
  0xa6   : > { %1543 = vmatprep.subr.bf16.mxu1 %v3712_v22 }
  0xa7   : > { %1367 = vmatmul.mubr.bf16.gmra.mrb[8].mxu1 %v3748_v62  ;;  %v883_v37 = vpop.permute.xlu0 %882  ;;  %v3775_v29 = vld [vmem:[#allocation2 + $0xc0] sm:$0xff] }
  0xa8   : > { %1881 = vmatpush1.bf16.msra.mxu0 %v2977_v1  ;;  %2675 = vmatprep.mubr.msk.bf16.mxu1 %vm555_vm2, %v3343_v24  ;;  %919 = vst.msk [vmem:[#allocation2 + $0xd0] sm:$0xff] %vm906_vm11, %v883_v37  ;;  %v2981_v24 = vld [vmem:[%s4224_s3 + $0xe8] sm:$0xff]   ;;  %v3788_v55 = vld [vmem:[#allocation2 + $0x40] sm:$0xff] }
  0xa9   : > { %1544 = vmatpush1.bf16.msra.mxu1 %v2978_v46  ;;  %1882 = vmatprep.subr.bf16.mxu0 %v3712_v22 }
  0xaa   : > { %1545 = vmatprep.subr.bf16.mxu1 %v3712_v22 }
  0xab   : > { %1303 = vmatmul.mubr.bf16.gmra.mrb[8].mxu0 %v3761_v30 }
  0xac   : > { %1883 = vmatpush1.bf16.msra.mxu0 %v2979_v53  ;;  %2667 = vmatprep.mubr.msk.bf16.mxu0 %vm555_vm2, %v3351_v25  ;;  %v2983_v25 = vld [vmem:[%s4224_s3 + $0xf0] sm:$0xff]  }
  0xad   : > { %1546 = vmatpush1.bf16.msra.mxu1 %v2980_v39  ;;  %1884 = vmatprep.subr.bf16.mxu0 %v3712_v22  ;;  %v867_v20 = vpop.permute.xlu1 %866 }
  0xae   : > { %1547 = vmatprep.subr.bf16.mxu1 %v3712_v22  ;;  %911 = vst.msk [vmem:[#allocation2 + $0x50] sm:$0xff] %vm906_vm11, %v867_v20  ;;  %v885_v13 = vpop.permute.xlu0 %884 }
  0xaf   : > { %1375 = vmatmul.mubr.bf16.gmra.mrb[12].mxu1 %v3775_v29  ;;  %920 = vst.msk [vmem:[#allocation2 + $0xe0] sm:$0xff] %vm906_vm11, %v885_v13 }
  0xb0   : > { %2676 = vmatprep.mubr.msk.bf16.mxu1 %vm555_vm2, %v3411_v6  ;;  %1885 = vmatpush1.bf16.msra.mxu0 %v2981_v24  ;;  %v3803_v6 = vld [vmem:[#allocation2 + $0xd0] sm:$0xff] }
  0xb1   : > { %1548 = vmatpush1.bf16.msra.mxu1 %v2982_v12  ;;  %1886 = vmatprep.subr.bf16.mxu0 %v3712_v22  ;;  %v869_v4 = vpop.permute.xlu1 %868 }
  0xb2   : > { %1549 = vmatprep.subr.bf16.mxu1 %v3712_v22  ;;  %912 = vst.msk [vmem:[#allocation2 + $0x60] sm:$0xff] %vm906_vm11, %v869_v4 }
  0xb3   : > { %1311 = vmatmul.mubr.bf16.gmra.mrb[12].mxu0 %v3788_v55 }
  0xb4   : > { %2668 = vmatprep.mubr.msk.bf16.mxu0 %vm555_vm2, %v3470_v10  ;;  %1887 = vmatpush1.bf16.msra.mxu0 %v2983_v25  ;;  %v2987_v10 = vld [vmem:[%s4224_s3 + $0x100] sm:$0xff]  }
  0xb5   : > { %1550 = vmatpush1.bf16.msra.mxu1 %v2984_v31  ;;  %1888 = vmatprep.subr.bf16.mxu0 %v3712_v22  ;;  %v3817_v44 = vld [vmem:[#allocation2 + $0x50] sm:$0xff] }
  0xb6   : > { %1551 = vmatprep.subr.bf16.mxu1 %v3712_v22 }
  0xb7   : > { %1383 = vmatmul.mubr.bf16.gmra.mrb[16].mxu1 %v3803_v6 }
  0xb8   : > { %2677 = vmatprep.mubr.msk.bf16.mxu1 %vm555_vm2, %v3478_v42  ;;  %1889 = vmatpush1.bf16.msra.mxu0 %v2985_v21  ;;  %v887_v52 = vpop.permute.xlu0 %886  ;;  %v3831_v42 = vld [vmem:[#allocation2 + $0xe0] sm:$0xff] }
  0xb9   : > { %1552 = vmatpush1.bf16.msra.mxu1 %v2986_v51  ;;  %1890 = vmatprep.subr.bf16.mxu0 %v3712_v22  ;;  %921 = vst.msk [vmem:[#allocation2 + $0xf0] sm:$0xff] %vm906_vm11, %v887_v52  ;;  %v3844_v32 = vld [vmem:[#allocation2 + $0x60] sm:$0xff] }
  0xba   : > { %1553 = vmatprep.subr.bf16.mxu1 %v3712_v22 }
  0xbb   : > { %1319 = vmatmul.mubr.bf16.gmra.mrb[16].mxu0 %v3817_v44 }
  0xbc   : > { %2669 = vmatprep.mubr.msk.bf16.mxu0 %vm555_vm2, %v3493_v56  ;;  %1891 = vmatpush1.bf16.msra.mxu0 %v2987_v10  ;;  %v2991_v56 = vld [vmem:[%s4224_s3 + $0x110] sm:$0xff]  }
  0xbd   : > { %1554 = vmatpush1.bf16.msra.mxu1 %v2988_v61  ;;  %1892 = vmatprep.subr.bf16.mxu0 %v3712_v22  ;;  %v871_v58 = vpop.permute.xlu1 %870 }
  0xbe   : > { %1555 = vmatprep.subr.bf16.mxu1 %v3712_v22  ;;  %913 = vst.msk [vmem:[#allocation2 + $0x70] sm:$0xff] %vm906_vm11, %v871_v58 }
  0xbf   : > { %1391 = vmatmul.mubr.bf16.gmra.mrb[20].mxu1 %v3831_v42 }
  0xc0   : > { %2678 = vmatprep.mubr.msk.bf16.mxu1 %vm555_vm2, %v3538_v43  ;;  %1893 = vmatpush1.bf16.msra.mxu0 %v2989_v15  ;;  %v889_v38 = vpop.permute.xlu0 %888  ;;  %v3859_v43 = vld [vmem:[#allocation2 + $0xf0] sm:$0xff] }
  0xc1   : > { %1556 = vmatpush1.bf16.msra.mxu1 %v2990_v60  ;;  %1894 = vmatprep.subr.bf16.mxu0 %v3712_v22  ;;  %922 = vst.msk [vmem:[#allocation2 + $0x100] sm:$0xff] %vm906_vm11, %v889_v38 }
  0xc2   : > { %1557 = vmatprep.subr.bf16.mxu1 %v3712_v22 }
  0xc3   : > { %1327 = vmatmul.mubr.bf16.gmra.mrb[20].mxu0 %v3844_v32  ;;  %v873_v54 = vpop.permute.xlu1 %872 }
  0xc4   : > { %2670 = vmatprep.mubr.msk.bf16.mxu0 %vm555_vm2, %v3587_v3  ;;  %1895 = vmatpush1.bf16.msra.mxu0 %v2991_v56  ;;  %914 = vst.msk [vmem:[#allocation2 + $0x80] sm:$0xff] %vm906_vm11, %v873_v54 }
  0xc5   : > { %1558 = vmatpush1.bf16.msra.mxu1 %v2992_v23  ;;  %1896 = vmatprep.subr.bf16.mxu0 %v3712_v22  ;;  %v1089_v57 = vld [vmem:[#allocation2 + $0x70] sm:$0xff] }
  0xc7   : > { %1399 = vmatmul.mubr.bf16.gmra.mrb[24].mxu1 %v3859_v43 }
  0xc8   : > { %2679 = vmatprep.mubr.msk.bf16.mxu1 %vm555_vm2, %v3615_v26  ;;  %1897 = vmatpush1.bf16.msra.mxu0 %v2993_v47  ;;  %v3871_v28 = vld [vmem:[#allocation2 + $0x100] sm:$0xff]  ;;  %v1700_v26 = vld [vmem:[#allocation2 + $0x38] sm:$0xff] }
  0xcb   : > { %1335 = vmatmul.mubr.bf16.gmra.mrb[24].mxu0 %v1089_v57  ;;  %v1091_v41 = vld [vmem:[#allocation2 + $0x80] sm:$0xff] }
  0xcc   : > { %2671 = vmatprep.mubr.msk.bf16.mxu0 %vm555_vm2, %v3634_v16 }
  0xcf   : > { %1407 = vmatmul.mubr.bf16.gmra.mrb[28].mxu1 %v3871_v28 }
  0xd0   : > { %2692 = vmatprep.mubr.msk.bf16.mxu1 %vm555_vm2, %v1022_v0 }
  0xd3   : > { %1343 = vmatmul.mubr.bf16.gmra.mrb[28].mxu0 %v1091_v41 }
  0xd4   : > { %2744 = vmatprep.mubr.msk.bf16.mxu0 %vm555_vm2, %v1698_v40 }
  0xd7   : > { %1568 = vmatmul.mubr.bf16.vlgmr.msra.gmra.mrb[32].mxu1 %v3712_v22 }
  0xd8   : > { %2693 = vmatprep.mubr.msk.bf16.mxu1 %vm555_vm2, %v1024_v45 }
  0xdb   : > { %1907 = vmatmul.mubr.bf16.vlgmr.msra.gmra.mrb[32].mxu0 %v3733_v9 }
  0xdc   : > { %2745 = vmatprep.mubr.msk.bf16.mxu0 %vm555_vm2, %v1700_v26 }
  0xdf   : > { %1576 = vmatmul.mubr.bf16.gmra.mrb[36].mxu1 %v3715_v27  ;;  %v1728_v27 = vld [vmem:[#allocation2 + $0x118] sm:$0xff] }
  0xe0   : > { %2694 = vmatprep.mubr.msk.bf16.mxu1 %vm555_vm2, %v1698_v40 }
  0xe3   : > { %1915 = vmatmul.mubr.bf16.gmra.mrb[36].mxu0 %v3761_v30 }
  0xe4   : > { %2746 = vmatprep.mubr.msk.bf16.mxu0 %vm555_vm2, %v1702_v48 }
  0xe7   : > { %1584 = vmatmul.mubr.bf16.gmra.mrb[40].mxu1 %v3733_v9 }
  0xe8   : > { %2695 = vmatprep.mubr.msk.bf16.mxu1 %vm555_vm2, %v1700_v26 }
  0xeb   : > { %1923 = vmatmul.mubr.bf16.gmra.mrb[40].mxu0 %v3788_v55 }
  0xec   : > { %2747 = vmatprep.mubr.msk.bf16.mxu0 %vm555_vm2, %v1704_v59 }
  0xef   : > { %1592 = vmatmul.mubr.bf16.gmra.mrb[44].mxu1 %v3761_v30 }
  0xf0   : > { %2696 = vmatprep.mubr.msk.bf16.mxu1 %vm555_vm2, %v1702_v48 }
  0xf3   : > { %1931 = vmatmul.mubr.bf16.gmra.mrb[44].mxu0 %v3817_v44 }
  0xf4   : > { %2748 = vmatprep.mubr.msk.bf16.mxu0 %vm555_vm2, %v1706_v7 }
  0xf7   : > { %1600 = vmatmul.mubr.bf16.gmra.mrb[48].mxu1 %v3788_v55 }
  0xf8   : > { %2697 = vmatprep.mubr.msk.bf16.mxu1 %vm555_vm2, %v1704_v59 }
  0xfb   : > { %1939 = vmatmul.mubr.bf16.gmra.mrb[48].mxu0 %v3844_v32 }
  0xfc   : > { %2749 = vmatprep.mubr.msk.bf16.mxu0 %vm555_vm2, %v3587_v3 }
  0xff   : > { %1608 = vmatmul.mubr.bf16.gmra.mrb[52].mxu1 %v3817_v44 }
 0x100   : > { %2698 = vmatprep.mubr.msk.bf16.mxu1 %vm555_vm2, %v1706_v7 }
 0x103   : > { %1947 = vmatmul.mubr.bf16.gmra.mrb[52].mxu0 %v1089_v57 }
 0x104   : > { %2750 = vmatprep.mubr.msk.bf16.mxu0 %vm555_vm2, %v3634_v16 }
 0x107   : > { %1616 = vmatmul.mubr.bf16.gmra.mrb[56].mxu1 %v3844_v32 }
 0x108   : > { %2699 = vmatprep.mubr.msk.bf16.mxu1 %vm555_vm2, %v3587_v3  ;;  %v1718_v3 = vld [vmem:[#allocation2 + $0xc8] sm:$0xff] }
 0x10b   : > { %1955 = vmatmul.mubr.bf16.gmra.mrb[56].mxu0 %v1091_v41 }
 0x10c   : > { %2751 = vmatprep.mubr.msk.bf16.mxu0 %vm555_vm2, %v1712_v63 }
 0x10f   : > { %1624 = vmatmul.mubr.bf16.gmra.mrb[60].mxu1 %v1089_v57 }
 0x110   : > { %2700 = vmatprep.mubr.msk.bf16.mxu1 %vm555_vm2, %v3634_v16  ;;  %v1720_v16 = vld [vmem:[#allocation2 + $0xd8] sm:$0xff] }
 0x113   : > { %1963 = vmatmul.mubr.bf16.gmra.mrb[60].mxu0 %v3701_v5 }
 0x114   : > { %2752 = vmatprep.mubr.msk.bf16.mxu0 %vm555_vm2, %v1714_v14 }
 0x117   : > { %1632 = vmatmul.mubr.bf16.gmra.mrb[64].mxu1 %v1091_v41 }
 0x118   : > { %2701 = vmatprep.mubr.msk.bf16.mxu1 %vm555_vm2, %v1712_v63 }
 0x11b   : > { %1971 = vmatmul.mubr.bf16.gmra.mrb[64].mxu0 %v3718_v34 }
 0x11c   : > { %2753 = vmatprep.mubr.msk.bf16.mxu0 %vm555_vm2, %v1716_v19 }
 0x11f   : > { %1640 = vmatmul.mubr.bf16.gmra.mrb[68].mxu1 %v3701_v5  ;;  %v1722_v5 = vld [vmem:[#allocation2 + $0xe8] sm:$0xff] }
 0x120   : > { %2702 = vmatprep.mubr.msk.bf16.mxu1 %vm555_vm2, %v1714_v14 }
 0x123   : > { %1979 = vmatmul.mubr.bf16.gmra.mrb[68].mxu0 %v3748_v62 }
 0x124   : > { %2754 = vmatprep.mubr.msk.bf16.mxu0 %vm555_vm2, %v1718_v3 }
 0x127   : > { %1648 = vmatmul.mubr.bf16.gmra.mrb[72].mxu1 %v3718_v34 }
 0x128   : > { %2703 = vmatprep.mubr.msk.bf16.mxu1 %vm555_vm2, %v1716_v19 }
 0x12b   : > { %1987 = vmatmul.mubr.bf16.gmra.mrb[72].mxu0 %v3775_v29 }
 0x12c   : > { %2755 = vmatprep.mubr.msk.bf16.mxu0 %vm555_vm2, %v1720_v16 }
 0x12f   : > { %1656 = vmatmul.mubr.bf16.gmra.mrb[76].mxu1 %v3748_v62 }
 0x130   : > { %2704 = vmatprep.mubr.msk.bf16.mxu1 %vm555_vm2, %v1718_v3 }
 0x133   : > { %1995 = vmatmul.mubr.bf16.gmra.mrb[76].mxu0 %v3803_v6 }
 0x134   : > { %2756 = vmatprep.mubr.msk.bf16.mxu0 %vm555_vm2, %v1722_v5 }
 0x137   : > { %1664 = vmatmul.mubr.bf16.gmra.mrb[80].mxu1 %v3775_v29 }
 0x138   : > { %2705 = vmatprep.mubr.msk.bf16.mxu1 %vm555_vm2, %v1720_v16 }
 0x13b   : > { %2003 = vmatmul.mubr.bf16.gmra.mrb[80].mxu0 %v3831_v42 }
 0x13c   : > { %2757 = vmatprep.mubr.msk.bf16.mxu0 %vm555_vm2, %v1724_v2 }
 0x13f   : > { %1672 = vmatmul.mubr.bf16.gmra.mrb[84].mxu1 %v3803_v6 }
 0x140   : > { %2706 = vmatprep.mubr.msk.bf16.mxu1 %vm555_vm2, %v1722_v5 }
 0x143   : > { %2011 = vmatmul.mubr.bf16.gmra.mrb[84].mxu0 %v3859_v43 }
 0x144   : > { %2758 = vmatprep.mubr.msk.bf16.mxu0 %vm555_vm2, %v1726_v11 }
 0x147   : > { %1680 = vmatmul.mubr.bf16.gmra.mrb[88].mxu1 %v3831_v42 }
 0x148   : > { %2707 = vmatprep.mubr.msk.bf16.mxu1 %vm555_vm2, %v1724_v2 }
 0x14b   : > { %2019 = vmatmul.mubr.bf16.gmra.mrb[88].mxu0 %v3871_v28 }
 0x14c   : > { %2759 = vmatprep.mubr.msk.bf16.mxu0 %vm555_vm2, %v1728_v27 }
 0x14f   : > { %1688 = vmatmul.mubr.bf16.gmra.mrb[92].mxu1 %v3859_v43 }
 0x153   : > { %2027 = vmatmul.mubr.bf16.gmra.mrb[92].mxu0 %v3712_v22 }
 0x16a   : > { %v3940_v17 = vpop.f32.mrb[0].mxu1 }
 0x16b   : > { %v1354_v34 = vpop.f32.mrb[1].mxu1 }
 0x16c   : > { %v3942_v35 = vpop.f32.mrb[2].mxu1 }
 0x16d   : > { %v1357_v18 = vpop.f32.mrb[3].mxu1 }
 0x16e   : > { %v1288_v49 = vpop.f32.mrb[0].mxu0 }
 0x16f   : > { %v1290_v9 = vpop.f32.mrb[1].mxu0 }
 0x170   : > { %v1291_v8 = vpop.f32.mrb[2].mxu0 }
 0x171   : > { %v1293_v33 = vpop.f32.mrb[3].mxu0 }
 0x172   : > { %v3944_v50 = vpop.f32.mrb[4].mxu1 }
 0x173   : > { %v1362_v36 = vpop.f32.mrb[5].mxu1 }
 0x174   : > { %v3946_v62 = vpop.f32.mrb[6].mxu1 }
 0x175   : > { %v1365_v1 = vpop.f32.mrb[7].mxu1 }
 0x176   : > { %v3948_v46 = vpop.f32.mrb[4].mxu0 }
 0x177   : > { %v1298_v30 = vpop.f32.mrb[5].mxu0 }
 0x178   : > { %v3950_v22 = vpop.f32.mrb[6].mxu0 }
 0x179   : > { %v1301_v53 = vpop.f32.mrb[7].mxu0 }
 0x17a   : > { %v3952_v39 = vpop.f32.mrb[8].mxu1  ;;  %v4003_v53 = vld [vmem:[%s4225_s4] ss:$0 sm:$0xff] }
 0x17b   : > { %v1370_v37 = vpop.f32.mrb[9].mxu1 }
 0x17c   : > { %v3954_v29 = vpop.f32.mrb[10].mxu1 }
 0x17d   : > { %v1373_v24 = vpop.f32.mrb[11].mxu1 }
 0x17e   : > { %v3956_v12 = vpop.f32.mrb[8].mxu0 }
 0x17f   : > { %v1306_v20 = vpop.f32.mrb[9].mxu0 }
 0x180   : > { %v3958_v55 = vpop.f32.mrb[10].mxu0 }
 0x181   : > { %v1309_v25 = vpop.f32.mrb[11].mxu0 }
 0x182   : > { %v3960_v13 = vpop.f32.mrb[12].mxu1 }
 0x183   : > { %v1378_v31 = vpop.f32.mrb[13].mxu1 }
 0x184   : > { %v3962_v6 = vpop.f32.mrb[14].mxu1 }
 0x185   : > { %v1381_v4 = vpop.f32.mrb[15].mxu1 }
 0x186   : > { %v3964_v21 = vpop.f32.mrb[12].mxu0 }
 0x187   : > { %v1314_v51 = vpop.f32.mrb[13].mxu0 }
 0x188   : > { %v3966_v44 = vpop.f32.mrb[14].mxu0 }
 0x189   : > { %v1317_v10 = vpop.f32.mrb[15].mxu0 }
 0x18a   : > { %v3968_v61 = vpop.f32.mrb[16].mxu1 }
 0x18b   : > { %v1386_v52 = vpop.f32.mrb[17].mxu1 }
 0x18c   : > { %v3970_v42 = vpop.f32.mrb[18].mxu1 }
 0x18d   : > { %v1389_v15 = vpop.f32.mrb[19].mxu1 }
 0x18e   : > { %v3972_v60 = vpop.f32.mrb[16].mxu0 }
 0x18f   : > { %v1322_v58 = vpop.f32.mrb[17].mxu0 }
 0x190   : > { %v3974_v32 = vpop.f32.mrb[18].mxu0 }
 0x191   : > { %v1325_v56 = vpop.f32.mrb[19].mxu0 }
 0x192   : > { %v3976_v23 = vpop.f32.mrb[20].mxu1 }
 0x193   : > { %v1394_v38 = vpop.f32.mrb[21].mxu1 }
 0x194   : > { %v3978_v43 = vpop.f32.mrb[22].mxu1 }
 0x195   : > { %v1397_v47 = vpop.f32.mrb[23].mxu1 }
 0x196   : > { %v3980_v54 = vpop.f32.mrb[20].mxu0 }
 0x197   : > { %v1330_v57 = vpop.f32.mrb[21].mxu0 }
 0x198   : > { %v3982_v28 = vpop.f32.mrb[22].mxu0 }
 0x199   : > { %v1333_v0 = vpop.f32.mrb[23].mxu0 }
 0x19a   : > { %v3984_v41 = vpop.f32.mrb[24].mxu1 }
 0x19b   : > { %v1402_v40 = vpop.f32.mrb[25].mxu1 }
 0x19c   : > { %v3986_v45 = vpop.f32.mrb[26].mxu1 }
 0x19d   : > { %v1405_v26 = vpop.f32.mrb[27].mxu1 }
 0x19e   : > { %v3988_v48 = vpop.f32.mrb[24].mxu0 }
 0x19f   : > { %v1338_v59 = vpop.f32.mrb[25].mxu0 }
 0x1a0   : > { %v3990_v7 = vpop.f32.mrb[26].mxu0 }
 0x1a1   : > { %v1341_v63 = vpop.f32.mrb[27].mxu0 }
 0x1a2   : > { %v3992_v14 = vpop.f32.mrb[28].mxu1 }
 0x1a3   : > { %v1410_v19 = vpop.f32.mrb[29].mxu1 }
 0x1a4   : > { %v3994_v3 = vpop.f32.mrb[30].mxu1 }
 0x1a5   : > { %v1413_v16 = vpop.f32.mrb[31].mxu1 }
 0x1a6   : > { %v3996_v5 = vpop.f32.mrb[28].mxu0 }
 0x1a7   : > { %v1346_v2 = vpop.f32.mrb[29].mxu0 }
 0x1a8   : > { %v3998_v11 = vpop.f32.mrb[30].mxu0 }
 0x1a9   : > { %v1349_v27 = vpop.f32.mrb[31].mxu0 }
 0x1aa   : > { %v1569_v34 = vpop.f32.mrb[32].mxu1 }
 0x1ab   : > { %v1570_v18 = vadd.f32 %v1569_v34, %v1288_v49  ;;  %v1571_v9 = vpop.f32.mrb[33].mxu1 }
 0x1ac   : > { %v1572_v33 = vpop.f32.mrb[34].mxu1 }
 0x1ad   : > { %v1573_v36 = vadd.f32 %v1572_v33, %v1291_v8  ;;  %v1574_v1 = vpop.f32.mrb[35].mxu1 }
 0x1ae   : > { %v1908_v30 = vpop.f32.mrb[32].mxu0 }
 0x1af   : > { %v2035_v37 = vadd.f32 %v1908_v30, %v1570_v18  ;;  %v1910_v24 = vpop.f32.mrb[33].mxu0 }
 0x1b0   : > { %v1911_v20 = vpop.f32.mrb[34].mxu0 }
 0x1b1   : > { %v2074_v25 = vadd.f32 %v4003_v53, %v2035_v37  ;;  %v2036_v31 = vadd.f32 %v1911_v20, %v1573_v36  ;;  %v1913_v4 = vpop.f32.mrb[35].mxu0 }
 0x1b2   : > { %v1577_v49 = vpop.f32.mrb[36].mxu1 }
 0x1b3   : > { %v2177_v8 = vmul.f32 %v2074_v25, %v2074_v25  ;;  %v2797_v51 = vpack.c.bf16 %v2074_v25, %v2074_v25  ;;  %v2075_v10 = vadd.f32 %v4003_v53, %v2036_v31  ;;  %v1579_v52 = vpop.f32.mrb[37].mxu1  ;;  %v1578_v15 = vadd.f32 %v1577_v49, %v3948_v46 }
 0x1b4   : > { %v1580_v58 = vpop.f32.mrb[38].mxu1  ;;  %v2106_v56 = vsel %vm555_vm2, %v2074_v25, 0.0 }
 0x1b5   : > { %2408 = vst.msk [vmem:[%s4011_s20] sm:$0xf] %vm2407_vm12, %v2797_v51  ;;  %v2107_v38 = vsel %vm555_vm2, %v2075_v10, 0.0  ;;  %v2178_v47 = vmul.f32 %v2075_v10, %v2075_v10  ;;  %v2798_v57 = vpack.c.bf16 %v2075_v10, %v2075_v10  ;;  %v1582_v0 = vpop.f32.mrb[39].mxu1  ;;  %v1581_v26 = vadd.f32 %v1580_v58, %v3950_v22 }
 0x1b6   : > { %v2108_v40 = vadd.f32 %v2107_v38, %v2106_v56  ;;  %v1916_v59 = vpop.f32.mrb[36].mxu0  ;;  %v2209_v63 = vsel %vm555_vm2, %v2177_v8, 0.0 }
 0x1b7   : > { %v2210_v19 = vsel %vm555_vm2, %v2178_v47, 0.0  ;;  %2409 = vst.msk [vmem:[%s4011_s20 + $0x4] sm:$0xf] %vm2407_vm12, %v2798_v57  ;;  %v2037_v46 = vadd.f32 %v1916_v59, %v1578_v15  ;;  %v1918_v16 = vpop.f32.mrb[37].mxu0 }
 0x1b8   : > { %v2211_v2 = vadd.f32 %v2210_v19, %v2209_v63  ;;  %v1919_v27 = vpop.f32.mrb[38].mxu0 }
 0x1b9   : > { %v2076_v34 = vadd.f32 %v4003_v53, %v2037_v46  ;;  %v2038_v18 = vadd.f32 %v1919_v27, %v1581_v26  ;;  %v1921_v9 = vpop.f32.mrb[39].mxu0 }
 0x1ba   : > { %v1585_v33 = vpop.f32.mrb[40].mxu1 }
 0x1bb   : > { %v2109_v36 = vsel %vm555_vm2, %v2076_v34, 0.0  ;;  %v2179_v22 = vmul.f32 %v2076_v34, %v2076_v34  ;;  %v2799_v1 = vpack.c.bf16 %v2076_v34, %v2076_v34  ;;  %v2077_v30 = vadd.f32 %v4003_v53, %v2038_v18  ;;  %v1587_v37 = vpop.f32.mrb[41].mxu1 }
 0x1bc   : > { %v2110_v24 = vadd.f32 %v2109_v36, %v2108_v40  ;;  %v1586_v20 = vadd.f32 %v1585_v33, %v3956_v12  ;;  %v1588_v25 = vpop.f32.mrb[42].mxu1 }
 0x1bd   : > { %v2212_v31 = vsel %vm555_vm2, %v2179_v22, 0.0  ;;  %2410 = vst.msk [vmem:[%s4011_s20 + $0x8] sm:$0xf] %vm2407_vm12, %v2799_v1  ;;  %v2111_v4 = vsel %vm555_vm2, %v2077_v30, 0.0  ;;  %v2180_v49 = vmul.f32 %v2077_v30, %v2077_v30  ;;  %v2800_v8 = vpack.c.bf16 %v2077_v30, %v2077_v30  ;;  %v1590_v51 = vpop.f32.mrb[43].mxu1 }
 0x1be   : > { %v2213_v10 = vadd.f32 %v2212_v31, %v2211_v2  ;;  %v2112_v52 = vadd.f32 %v2111_v4, %v2110_v24  ;;  %v1589_v15 = vadd.f32 %v1588_v25, %v3958_v55  ;;  %v1924_v58 = vpop.f32.mrb[40].mxu0 }
 0x1bf   : > { %v2214_v56 = vsel %vm555_vm2, %v2180_v49, 0.0  ;;  %2411 = vst.msk [vmem:[%s4011_s20 + $0xc] sm:$0xf] %vm2407_vm12, %v2800_v8  ;;  %v2039_v12 = vadd.f32 %v1924_v58, %v1586_v20  ;;  %v1926_v38 = vpop.f32.mrb[41].mxu0 }
 0x1c0   : > { %v2215_v47 = vadd.f32 %v2214_v56, %v2213_v10  ;;  %v1927_v57 = vpop.f32.mrb[42].mxu0 }
 0x1c1   : > { %v2078_v0 = vadd.f32 %v4003_v53, %v2039_v12  ;;  %v2040_v40 = vadd.f32 %v1927_v57, %v1589_v15  ;;  %v1929_v26 = vpop.f32.mrb[43].mxu0 }
 0x1c2   : > { %v1593_v59 = vpop.f32.mrb[44].mxu1 }
 0x1c3   : > { %v2113_v63 = vsel %vm555_vm2, %v2078_v0, 0.0  ;;  %v2181_v19 = vmul.f32 %v2078_v0, %v2078_v0  ;;  %v2801_v46 = vpack.c.bf16 %v2078_v0, %v2078_v0  ;;  %v2079_v55 = vadd.f32 %v4003_v53, %v2040_v40  ;;  %v1595_v16 = vpop.f32.mrb[45].mxu1 }
 0x1c4   : > { %v2114_v2 = vadd.f32 %v2113_v63, %v2112_v52  ;;  %v1594_v27 = vadd.f32 %v1593_v59, %v3964_v21  ;;  %v1596_v34 = vpop.f32.mrb[46].mxu1 }
 0x1c5   : > { %v2216_v18 = vsel %vm555_vm2, %v2181_v19, 0.0  ;;  %2412 = vst.msk [vmem:[%s4011_s20 + $0x10] sm:$0xf] %vm2407_vm12, %v2801_v46  ;;  %v2115_v9 = vsel %vm555_vm2, %v2079_v55, 0.0  ;;  %v2182_v33 = vmul.f32 %v2079_v55, %v2079_v55  ;;  %v2802_v36 = vpack.c.bf16 %v2079_v55, %v2079_v55  ;;  %v1598_v22 = vpop.f32.mrb[47].mxu1 }
 0x1c6   : > { %v2217_v1 = vadd.f32 %v2216_v18, %v2215_v47  ;;  %v2116_v30 = vadd.f32 %v2115_v9, %v2114_v2  ;;  %v1597_v37 = vadd.f32 %v1596_v34, %v3966_v44  ;;  %v1932_v24 = vpop.f32.mrb[44].mxu0 }
 0x1c7   : > { %v2218_v20 = vsel %vm555_vm2, %v2182_v33, 0.0  ;;  %2413 = vst.msk [vmem:[%s4011_s20 + $0x14] sm:$0xf] %vm2407_vm12, %v2802_v36  ;;  %v2041_v21 = vadd.f32 %v1932_v24, %v1594_v27  ;;  %v1934_v25 = vpop.f32.mrb[45].mxu0 }
 0x1c8   : > { %v2219_v31 = vadd.f32 %v2218_v20, %v2217_v1  ;;  %v1935_v4 = vpop.f32.mrb[46].mxu0 }
 0x1c9   : > { %v2080_v49 = vadd.f32 %v4003_v53, %v2041_v21  ;;  %v2042_v8 = vadd.f32 %v1935_v4, %v1597_v37  ;;  %v1937_v51 = vpop.f32.mrb[47].mxu0 }
 0x1ca   : > { %v1601_v10 = vpop.f32.mrb[48].mxu1 }
 0x1cb   : > { %v2117_v52 = vsel %vm555_vm2, %v2080_v49, 0.0  ;;  %v2183_v15 = vmul.f32 %v2080_v49, %v2080_v49  ;;  %v2803_v58 = vpack.c.bf16 %v2080_v49, %v2080_v49  ;;  %v2081_v44 = vadd.f32 %v4003_v53, %v2042_v8  ;;  %v1603_v56 = vpop.f32.mrb[49].mxu1 }
 0x1cc   : > { %v2118_v12 = vadd.f32 %v2117_v52, %v2116_v30  ;;  %v1602_v38 = vadd.f32 %v1601_v10, %v3972_v60  ;;  %v1604_v47 = vpop.f32.mrb[50].mxu1 }
 0x1cd   : > { %v2220_v57 = vsel %vm555_vm2, %v2183_v15, 0.0  ;;  %2414 = vst.msk [vmem:[%s4011_s20 + $0x18] sm:$0xf] %vm2407_vm12, %v2803_v58  ;;  %v2119_v0 = vsel %vm555_vm2, %v2081_v44, 0.0  ;;  %v2184_v40 = vmul.f32 %v2081_v44, %v2081_v44  ;;  %v2804_v26 = vpack.c.bf16 %v2081_v44, %v2081_v44  ;;  %v1606_v59 = vpop.f32.mrb[51].mxu1 }
 0x1ce   : > { %v2221_v63 = vadd.f32 %v2220_v57, %v2219_v31  ;;  %v2120_v19 = vadd.f32 %v2119_v0, %v2118_v12  ;;  %v1605_v46 = vadd.f32 %v1604_v47, %v3974_v32  ;;  %v1940_v55 = vpop.f32.mrb[48].mxu0 }
 0x1cf   : > { %v2222_v16 = vsel %vm555_vm2, %v2184_v40, 0.0  ;;  %2415 = vst.msk [vmem:[%s4011_s20 + $0x1c] sm:$0xf] %vm2407_vm12, %v2804_v26  ;;  %v2043_v60 = vadd.f32 %v1940_v55, %v1602_v38  ;;  %v1942_v2 = vpop.f32.mrb[49].mxu0 }
 0x1d0   : > { %v2223_v27 = vadd.f32 %v2222_v16, %v2221_v63  ;;  %v1943_v34 = vpop.f32.mrb[50].mxu0 }
 0x1d1   : > { %v2082_v18 = vadd.f32 %v4003_v53, %v2043_v60  ;;  %v2044_v9 = vadd.f32 %v1943_v34, %v1605_v46  ;;  %v1945_v33 = vpop.f32.mrb[51].mxu0 }
 0x1d2   : > { %v1609_v36 = vpop.f32.mrb[52].mxu1 }
 0x1d3   : > { %v2121_v22 = vsel %vm555_vm2, %v2082_v18, 0.0  ;;  %v2185_v1 = vmul.f32 %v2082_v18, %v2082_v18  ;;  %v2805_v30 = vpack.c.bf16 %v2082_v18, %v2082_v18  ;;  %v2083_v32 = vadd.f32 %v4003_v53, %v2044_v9  ;;  %v1611_v37 = vpop.f32.mrb[53].mxu1 }
 0x1d4   : > { %v2122_v24 = vadd.f32 %v2121_v22, %v2120_v19  ;;  %v1610_v20 = vadd.f32 %v1609_v36, %v3980_v54  ;;  %v1612_v21 = vpop.f32.mrb[54].mxu1 }
 0x1d5   : > { %v2224_v25 = vsel %vm555_vm2, %v2185_v1, 0.0  ;;  %2416 = vst.msk [vmem:[%s4011_s20 + $0x20] sm:$0xf] %vm2407_vm12, %v2805_v30  ;;  %v2123_v31 = vsel %vm555_vm2, %v2083_v32, 0.0  ;;  %v2186_v4 = vmul.f32 %v2083_v32, %v2083_v32  ;;  %v2806_v49 = vpack.c.bf16 %v2083_v32, %v2083_v32  ;;  %v1614_v8 = vpop.f32.mrb[55].mxu1 }
 0x1d6   : > { %v2225_v51 = vadd.f32 %v2224_v25, %v2223_v27  ;;  %v2124_v10 = vadd.f32 %v2123_v31, %v2122_v24  ;;  %v1613_v52 = vadd.f32 %v1612_v21, %v3982_v28  ;;  %v1948_v15 = vpop.f32.mrb[52].mxu0 }
 0x1d7   : > { %v2226_v58 = vsel %vm555_vm2, %v2186_v4, 0.0  ;;  %2417 = vst.msk [vmem:[%s4011_s20 + $0x24] sm:$0xf] %vm2407_vm12, %v2806_v49  ;;  %v2045_v54 = vadd.f32 %v1948_v15, %v1610_v20  ;;  %v1950_v44 = vpop.f32.mrb[53].mxu0 }
 0x1d8   : > { %v2227_v56 = vadd.f32 %v2226_v58, %v2225_v51  ;;  %v1951_v12 = vpop.f32.mrb[54].mxu0 }
 0x1d9   : > { %v2084_v38 = vadd.f32 %v4003_v53, %v2045_v54  ;;  %v2046_v47 = vadd.f32 %v1951_v12, %v1613_v52  ;;  %v1953_v57 = vpop.f32.mrb[55].mxu0 }
 0x1da   : > { %v1617_v0 = vpop.f32.mrb[56].mxu1 }
 0x1db   : > { %v2125_v40 = vsel %vm555_vm2, %v2084_v38, 0.0  ;;  %v2187_v26 = vmul.f32 %v2084_v38, %v2084_v38  ;;  %v2807_v59 = vpack.c.bf16 %v2084_v38, %v2084_v38  ;;  %v2085_v28 = vadd.f32 %v4003_v53, %v2046_v47  ;;  %v1619_v63 = vpop.f32.mrb[57].mxu1 }
 0x1dc   : > { %v2126_v19 = vadd.f32 %v2125_v40, %v2124_v10  ;;  %v1618_v46 = vadd.f32 %v1617_v0, %v3988_v48  ;;  %v1620_v55 = vpop.f32.mrb[58].mxu1 }
 0x1dd   : > { %v2228_v16 = vsel %vm555_vm2, %v2187_v26, 0.0  ;;  %2418 = vst.msk [vmem:[%s4011_s20 + $0x28] sm:$0xf] %vm2407_vm12, %v2807_v59  ;;  %v2127_v60 = vsel %vm555_vm2, %v2085_v28, 0.0  ;;  %v2188_v2 = vmul.f32 %v2085_v28, %v2085_v28  ;;  %v2808_v27 = vpack.c.bf16 %v2085_v28, %v2085_v28  ;;  %v1622_v34 = vpop.f32.mrb[59].mxu1 }
 0x1de   : > { %v2229_v18 = vadd.f32 %v2228_v16, %v2227_v56  ;;  %v2128_v9 = vadd.f32 %v2127_v60, %v2126_v19  ;;  %v1621_v33 = vadd.f32 %v1620_v55, %v3990_v7  ;;  %v1956_v36 = vpop.f32.mrb[56].mxu0 }
 0x1df   : > { %v2230_v22 = vsel %vm555_vm2, %v2188_v2, 0.0  ;;  %2419 = vst.msk [vmem:[%s4011_s20 + $0x2c] sm:$0xf] %vm2407_vm12, %v2808_v27  ;;  %v2047_v48 = vadd.f32 %v1956_v36, %v1618_v46  ;;  %v1958_v1 = vpop.f32.mrb[57].mxu0 }
 0x1e0   : > { %v2231_v30 = vadd.f32 %v2230_v22, %v2229_v18  ;;  %v1959_v32 = vpop.f32.mrb[58].mxu0 }
 0x1e1   : > { %v2086_v37 = vadd.f32 %v4003_v53, %v2047_v48  ;;  %v2048_v24 = vadd.f32 %v1959_v32, %v1621_v33  ;;  %v1961_v20 = vpop.f32.mrb[59].mxu0 }
 0x1e2   : > { %v1625_v21 = vpop.f32.mrb[60].mxu1 }
 0x1e3   : > { %v2129_v25 = vsel %vm555_vm2, %v2086_v37, 0.0  ;;  %v2189_v31 = vmul.f32 %v2086_v37, %v2086_v37  ;;  %v2809_v4 = vpack.c.bf16 %v2086_v37, %v2086_v37  ;;  %v2087_v7 = vadd.f32 %v4003_v53, %v2048_v24  ;;  %v1627_v49 = vpop.f32.mrb[61].mxu1 }
 0x1e4   : > { %v2130_v8 = vadd.f32 %v2129_v25, %v2128_v9  ;;  %v1626_v51 = vadd.f32 %v1625_v21, %v3996_v5  ;;  %v1628_v10 = vpop.f32.mrb[62].mxu1 }
 0x1e5   : > { %v2232_v52 = vsel %vm555_vm2, %v2189_v31, 0.0  ;;  %2420 = vst.msk [vmem:[%s4011_s20 + $0x30] sm:$0xf] %vm2407_vm12, %v2809_v4  ;;  %v2131_v15 = vsel %vm555_vm2, %v2087_v7, 0.0  ;;  %v2190_v58 = vmul.f32 %v2087_v7, %v2087_v7  ;;  %v2810_v54 = vpack.c.bf16 %v2087_v7, %v2087_v7  ;;  %v1630_v44 = vpop.f32.mrb[63].mxu1 }
 0x1e6   : > { %v2233_v56 = vadd.f32 %v2232_v52, %v2231_v30  ;;  %v2132_v12 = vadd.f32 %v2131_v15, %v2130_v8  ;;  %v1629_v38 = vadd.f32 %v1628_v10, %v3998_v11  ;;  %v1964_v47 = vpop.f32.mrb[60].mxu0 }
 0x1e7   : > { %v2234_v57 = vsel %vm555_vm2, %v2190_v58, 0.0  ;;  %2421 = vst.msk [vmem:[%s4011_s20 + $0x34] sm:$0xf] %vm2407_vm12, %v2810_v54  ;;  %v2049_v5 = vadd.f32 %v1964_v47, %v1626_v51  ;;  %v1966_v0 = vpop.f32.mrb[61].mxu0 }
 0x1e8   : > { %v2235_v40 = vadd.f32 %v2234_v57, %v2233_v56  ;;  %v1967_v26 = vpop.f32.mrb[62].mxu0 }
 0x1e9   : > { %v2088_v59 = vadd.f32 %v4003_v53, %v2049_v5  ;;  %v2050_v28 = vadd.f32 %v1967_v26, %v1629_v38  ;;  %v1969_v63 = vpop.f32.mrb[63].mxu0 }
 0x1ea   : > { %v1633_v19 = vpop.f32.mrb[64].mxu1 }
 0x1eb   : > { %v2133_v46 = vsel %vm555_vm2, %v2088_v59, 0.0  ;;  %v2191_v55 = vmul.f32 %v2088_v59, %v2088_v59  ;;  %v2811_v16 = vpack.c.bf16 %v2088_v59, %v2088_v59  ;;  %v2089_v11 = vadd.f32 %v4003_v53, %v2050_v28  ;;  %v1635_v60 = vpop.f32.mrb[65].mxu1 }
 0x1ec   : > { %v2134_v2 = vadd.f32 %v2133_v46, %v2132_v12  ;;  %v1634_v27 = vadd.f32 %v1633_v19, %v3940_v17  ;;  %v1636_v34 = vpop.f32.mrb[66].mxu1 }
 0x1ed   : > { %v2236_v18 = vsel %vm555_vm2, %v2191_v55, 0.0  ;;  %2422 = vst.msk [vmem:[%s4011_s20 + $0x38] sm:$0xf] %vm2407_vm12, %v2811_v16  ;;  %v2135_v9 = vsel %vm555_vm2, %v2089_v11, 0.0  ;;  %v2192_v33 = vmul.f32 %v2089_v11, %v2089_v11  ;;  %v2812_v36 = vpack.c.bf16 %v2089_v11, %v2089_v11  ;;  %v1638_v22 = vpop.f32.mrb[67].mxu1 }
 0x1ee   : > { %v2237_v48 = vadd.f32 %v2236_v18, %v2235_v40  ;;  %v2136_v1 = vadd.f32 %v2135_v9, %v2134_v2  ;;  %v1637_v30 = vadd.f32 %v1636_v34, %v3942_v35  ;;  %v1972_v32 = vpop.f32.mrb[64].mxu0 }
 0x1ef   : > { %v2238_v37 = vsel %vm555_vm2, %v2192_v33, 0.0  ;;  %2423 = vst.msk [vmem:[%s4011_s20 + $0x3c] sm:$0xf] %vm2407_vm12, %v2812_v36  ;;  %v2051_v17 = vadd.f32 %v1972_v32, %v1634_v27  ;;  %v1974_v24 = vpop.f32.mrb[65].mxu0 }
 0x1f0   : > { %v2239_v20 = vadd.f32 %v2238_v37, %v2237_v48  ;;  %v1975_v21 = vpop.f32.mrb[66].mxu0 }
 0x1f1   : > { %v2090_v25 = vadd.f32 %v4003_v53, %v2051_v17  ;;  %v2052_v31 = vadd.f32 %v1975_v21, %v1637_v30  ;;  %v1977_v4 = vpop.f32.mrb[67].mxu0 }
 0x1f2   : > { %v1641_v7 = vpop.f32.mrb[68].mxu1 }
 0x1f3   : > { %v2137_v49 = vsel %vm555_vm2, %v2090_v25, 0.0  ;;  %v2193_v8 = vmul.f32 %v2090_v25, %v2090_v25  ;;  %v2813_v51 = vpack.c.bf16 %v2090_v25, %v2090_v25  ;;  %v2091_v35 = vadd.f32 %v4003_v53, %v2052_v31  ;;  %v1643_v10 = vpop.f32.mrb[69].mxu1 }
 0x1f4   : > { %v2138_v52 = vadd.f32 %v2137_v49, %v2136_v1  ;;  %v1642_v15 = vadd.f32 %v1641_v7, %v3944_v50  ;;  %v1644_v58 = vpop.f32.mrb[70].mxu1 }
 0x1f5   : > { %v2240_v54 = vsel %vm555_vm2, %v2193_v8, 0.0  ;;  %2424 = vst.msk [vmem:[%s4011_s20 + $0x40] sm:$0xf] %vm2407_vm12, %v2813_v51  ;;  %v2139_v44 = vsel %vm555_vm2, %v2091_v35, 0.0  ;;  %v2194_v56 = vmul.f32 %v2091_v35, %v2091_v35  ;;  %v2814_v12 = vpack.c.bf16 %v2091_v35, %v2091_v35  ;;  %v1646_v38 = vpop.f32.mrb[71].mxu1 }
 0x1f6   : > { %v2241_v47 = vadd.f32 %v2240_v54, %v2239_v20  ;;  %v2140_v57 = vadd.f32 %v2139_v44, %v2138_v52  ;;  %v1645_v5 = vadd.f32 %v1644_v58, %v3946_v62  ;;  %v1980_v0 = vpop.f32.mrb[68].mxu0 }
 0x1f7   : > { %v2242_v40 = vsel %vm555_vm2, %v2194_v56, 0.0  ;;  %2425 = vst.msk [vmem:[%s4011_s20 + $0x44] sm:$0xf] %vm2407_vm12, %v2814_v12  ;;  %v2053_v50 = vadd.f32 %v1980_v0, %v1642_v15  ;;  %v1982_v26 = vpop.f32.mrb[69].mxu0 }
 0x1f8   : > { %v2243_v59 = vadd.f32 %v2242_v40, %v2241_v47  ;;  %v1983_v28 = vpop.f32.mrb[70].mxu0 }
 0x1f9   : > { %v2092_v63 = vadd.f32 %v4003_v53, %v2053_v50  ;;  %v2054_v19 = vadd.f32 %v1983_v28, %v1645_v5  ;;  %v1985_v46 = vpop.f32.mrb[71].mxu0 }
 0x1fa   : > { %v1649_v55 = vpop.f32.mrb[72].mxu1 }
 0x1fb   : > { %v2141_v16 = vsel %vm555_vm2, %v2092_v63, 0.0  ;;  %v2195_v11 = vmul.f32 %v2092_v63, %v2092_v63  ;;  %v2815_v60 = vpack.c.bf16 %v2092_v63, %v2092_v63  ;;  %v2093_v62 = vadd.f32 %v4003_v53, %v2054_v19  ;;  %v1651_v2 = vpop.f32.mrb[73].mxu1 }
 0x1fc   : > { %v2142_v27 = vadd.f32 %v2141_v16, %v2140_v57  ;;  %v1650_v34 = vadd.f32 %v1649_v55, %v3952_v39  ;;  %v1652_v18 = vpop.f32.mrb[74].mxu1 }
 0x1fd   : > { %v2244_v9 = vsel %vm555_vm2, %v2195_v11, 0.0  ;;  %2426 = vst.msk [vmem:[%s4011_s20 + $0x48] sm:$0xf] %vm2407_vm12, %v2815_v60  ;;  %v2143_v33 = vsel %vm555_vm2, %v2093_v62, 0.0  ;;  %v2196_v36 = vmul.f32 %v2093_v62, %v2093_v62  ;;  %v2816_v22 = vpack.c.bf16 %v2093_v62, %v2093_v62  ;;  %v1654_v48 = vpop.f32.mrb[75].mxu1 }
 0x1fe   : > { %v2245_v1 = vadd.f32 %v2244_v9, %v2243_v59  ;;  %v2144_v30 = vadd.f32 %v2143_v33, %v2142_v27  ;;  %v1653_v32 = vadd.f32 %v1652_v18, %v3954_v29  ;;  %v1988_v37 = vpop.f32.mrb[72].mxu0 }
 0x1ff   : > { %v2246_v17 = vsel %vm555_vm2, %v2196_v36, 0.0  ;;  %2427 = vst.msk [vmem:[%s4011_s20 + $0x4c] sm:$0xf] %vm2407_vm12, %v2816_v22  ;;  %v2055_v39 = vadd.f32 %v1988_v37, %v1650_v34  ;;  %v1990_v24 = vpop.f32.mrb[73].mxu0 }
 0x200   : > { %v2247_v20 = vadd.f32 %v2246_v17, %v2245_v1  ;;  %v1991_v21 = vpop.f32.mrb[74].mxu0 }
 0x201   : > { %v2094_v25 = vadd.f32 %v4003_v53, %v2055_v39  ;;  %v2056_v31 = vadd.f32 %v1991_v21, %v1653_v32  ;;  %v1993_v4 = vpop.f32.mrb[75].mxu0 }
 0x202   : > { %v1657_v7 = vpop.f32.mrb[76].mxu1 }
 0x203   : > { %v2145_v49 = vsel %vm555_vm2, %v2094_v25, 0.0  ;;  %v2197_v8 = vmul.f32 %v2094_v25, %v2094_v25  ;;  %v2817_v51 = vpack.c.bf16 %v2094_v25, %v2094_v25  ;;  %v2095_v29 = vadd.f32 %v4003_v53, %v2056_v31  ;;  %v1659_v35 = vpop.f32.mrb[77].mxu1 }
 0x204   : > { %v2146_v10 = vadd.f32 %v2145_v49, %v2144_v30  ;;  %v1658_v52 = vadd.f32 %v1657_v7, %v3960_v13  ;;  %v1660_v15 = vpop.f32.mrb[78].mxu1 }
 0x205   : > { %v2248_v58 = vsel %vm555_vm2, %v2197_v8, 0.0  ;;  %2428 = vst.msk [vmem:[%s4011_s20 + $0x50] sm:$0xf] %vm2407_vm12, %v2817_v51  ;;  %v2147_v54 = vsel %vm555_vm2, %v2095_v29, 0.0  ;;  %v2198_v44 = vmul.f32 %v2095_v29, %v2095_v29  ;;  %v2818_v56 = vpack.c.bf16 %v2095_v29, %v2095_v29  ;;  %v1662_v12 = vpop.f32.mrb[79].mxu1 }
 0x206   : > { %v2249_v38 = vadd.f32 %v2248_v58, %v2247_v20  ;;  %v2148_v47 = vadd.f32 %v2147_v54, %v2146_v10  ;;  %v1661_v57 = vadd.f32 %v1660_v15, %v3962_v6  ;;  %v1996_v5 = vpop.f32.mrb[76].mxu0 }
 0x207   : > { %v2250_v0 = vsel %vm555_vm2, %v2198_v44, 0.0  ;;  %2429 = vst.msk [vmem:[%s4011_s20 + $0x54] sm:$0xf] %vm2407_vm12, %v2818_v56  ;;  %v2057_v13 = vadd.f32 %v1996_v5, %v1658_v52  ;;  %v1998_v40 = vpop.f32.mrb[77].mxu0 }
 0x208   : > { %v2251_v50 = vadd.f32 %v2250_v0, %v2249_v38  ;;  %v1999_v26 = vpop.f32.mrb[78].mxu0 }
 0x209   : > { %v2096_v59 = vadd.f32 %v4003_v53, %v2057_v13  ;;  %v2058_v28 = vadd.f32 %v1999_v26, %v1661_v57  ;;  %v2001_v63 = vpop.f32.mrb[79].mxu0 }
 0x20a   : > { %v1665_v19 = vpop.f32.mrb[80].mxu1 }
 0x20b   : > { %v2149_v46 = vsel %vm555_vm2, %v2096_v59, 0.0  ;;  %v2199_v55 = vmul.f32 %v2096_v59, %v2096_v59  ;;  %v2819_v16 = vpack.c.bf16 %v2096_v59, %v2096_v59  ;;  %v2097_v6 = vadd.f32 %v4003_v53, %v2058_v28  ;;  %v1667_v11 = vpop.f32.mrb[81].mxu1 }
 0x20c   : > { %v2150_v60 = vadd.f32 %v2149_v46, %v2148_v47  ;;  %v1666_v62 = vadd.f32 %v1665_v19, %v3968_v61  ;;  %v1668_v2 = vpop.f32.mrb[82].mxu1 }
 0x20d   : > { %v2252_v27 = vsel %vm555_vm2, %v2199_v55, 0.0  ;;  %2430 = vst.msk [vmem:[%s4011_s20 + $0x58] sm:$0xf] %vm2407_vm12, %v2819_v16  ;;  %v2151_v34 = vsel %vm555_vm2, %v2097_v6, 0.0  ;;  %v2200_v18 = vmul.f32 %v2097_v6, %v2097_v6  ;;  %v2820_v9 = vpack.c.bf16 %v2097_v6, %v2097_v6  ;;  %v1670_v33 = vpop.f32.mrb[83].mxu1 }
 0x20e   : > { %v2253_v36 = vadd.f32 %v2252_v27, %v2251_v50  ;;  %v2152_v22 = vadd.f32 %v2151_v34, %v2150_v60  ;;  %v1669_v48 = vadd.f32 %v1668_v2, %v3970_v42  ;;  %v2004_v1 = vpop.f32.mrb[80].mxu0 }
 0x20f   : > { %v2254_v30 = vsel %vm555_vm2, %v2200_v18, 0.0  ;;  %2431 = vst.msk [vmem:[%s4011_s20 + $0x5c] sm:$0xf] %vm2407_vm12, %v2820_v9  ;;  %v2059_v61 = vadd.f32 %v2004_v1, %v1666_v62  ;;  %v2006_v32 = vpop.f32.mrb[81].mxu0 }
 0x210   : > { %v2255_v37 = vadd.f32 %v2254_v30, %v2253_v36  ;;  %v2007_v17 = vpop.f32.mrb[82].mxu0 }
 0x211   : > { %v2098_v39 = vadd.f32 %v4003_v53, %v2059_v61  ;;  %v2060_v24 = vadd.f32 %v2007_v17, %v1669_v48  ;;  %v2009_v20 = vpop.f32.mrb[83].mxu0 }
 0x212   : > { %v1673_v21 = vpop.f32.mrb[84].mxu1 }
 0x213   : > { %v2153_v25 = vsel %vm555_vm2, %v2098_v39, 0.0  ;;  %v2201_v31 = vmul.f32 %v2098_v39, %v2098_v39  ;;  %v2821_v4 = vpack.c.bf16 %v2098_v39, %v2098_v39  ;;  %v2099_v42 = vadd.f32 %v4003_v53, %v2060_v24  ;;  %v1675_v7 = vpop.f32.mrb[85].mxu1 }
 0x214   : > { %v2154_v49 = vadd.f32 %v2153_v25, %v2152_v22  ;;  %v1674_v8 = vadd.f32 %v1673_v21, %v3976_v23  ;;  %v1676_v51 = vpop.f32.mrb[86].mxu1 }
 0x215   : > { %v2256_v29 = vsel %vm555_vm2, %v2201_v31, 0.0  ;;  %2432 = vst.msk [vmem:[%s4011_s20 + $0x60] sm:$0xf] %vm2407_vm12, %v2821_v4  ;;  %v2155_v35 = vsel %vm555_vm2, %v2099_v42, 0.0  ;;  %v2202_v10 = vmul.f32 %v2099_v42, %v2099_v42  ;;  %v2822_v52 = vpack.c.bf16 %v2099_v42, %v2099_v42  ;;  %v1678_v15 = vpop.f32.mrb[87].mxu1 }
 0x216   : > { %v2257_v58 = vadd.f32 %v2256_v29, %v2255_v37  ;;  %v2156_v54 = vadd.f32 %v2155_v35, %v2154_v49  ;;  %v1677_v44 = vadd.f32 %v1676_v51, %v3978_v43  ;;  %v2012_v56 = vpop.f32.mrb[84].mxu0 }
 0x217   : > { %v2258_v12 = vsel %vm555_vm2, %v2202_v10, 0.0  ;;  %2433 = vst.msk [vmem:[%s4011_s20 + $0x64] sm:$0xf] %vm2407_vm12, %v2822_v52  ;;  %v2061_v23 = vadd.f32 %v2012_v56, %v1674_v8  ;;  %v2014_v38 = vpop.f32.mrb[85].mxu0 }
 0x218   : > { %v2259_v47 = vadd.f32 %v2258_v12, %v2257_v58  ;;  %v2015_v57 = vpop.f32.mrb[86].mxu0 }
 0x219   : > { %v2100_v5 = vadd.f32 %v4003_v53, %v2061_v23  ;;  %v2062_v0 = vadd.f32 %v2015_v57, %v1677_v44  ;;  %v2017_v13 = vpop.f32.mrb[87].mxu0 }
 0x21a   : > { %v1681_v40 = vpop.f32.mrb[88].mxu1 }
 0x21b   : > { %v2157_v50 = vsel %vm555_vm2, %v2100_v5, 0.0  ;;  %v2203_v26 = vmul.f32 %v2100_v5, %v2100_v5  ;;  %v2823_v59 = vpack.c.bf16 %v2100_v5, %v2100_v5  ;;  %v2101_v43 = vadd.f32 %v4003_v53, %v2062_v0  ;;  %v1683_v28 = vpop.f32.mrb[89].mxu1 }
 0x21c   : > { %v2158_v63 = vadd.f32 %v2157_v50, %v2156_v54  ;;  %v1682_v19 = vadd.f32 %v1681_v40, %v3984_v41  ;;  %v1684_v46 = vpop.f32.mrb[90].mxu1 }
 0x21d   : > { %v2260_v55 = vsel %vm555_vm2, %v2203_v26, 0.0  ;;  %2434 = vst.msk [vmem:[%s4011_s20 + $0x68] sm:$0xf] %vm2407_vm12, %v2823_v59  ;;  %v2159_v16 = vsel %vm555_vm2, %v2101_v43, 0.0  ;;  %v2204_v6 = vmul.f32 %v2101_v43, %v2101_v43  ;;  %v2824_v11 = vpack.c.bf16 %v2101_v43, %v2101_v43  ;;  %v1686_v60 = vpop.f32.mrb[91].mxu1 }
 0x21e   : > { %v2261_v62 = vadd.f32 %v2260_v55, %v2259_v47  ;;  %v2160_v2 = vadd.f32 %v2159_v16, %v2158_v63  ;;  %v1685_v27 = vadd.f32 %v1684_v46, %v3986_v45  ;;  %v2020_v34 = vpop.f32.mrb[88].mxu0 }
 0x21f   : > { %v2262_v18 = vsel %vm555_vm2, %v2204_v6, 0.0  ;;  %2435 = vst.msk [vmem:[%s4011_s20 + $0x6c] sm:$0xf] %vm2407_vm12, %v2824_v11  ;;  %v2063_v41 = vadd.f32 %v2020_v34, %v1682_v19  ;;  %v2022_v9 = vpop.f32.mrb[89].mxu0 }
 0x220   : > { %v2263_v33 = vadd.f32 %v2262_v18, %v2261_v62  ;;  %v2023_v36 = vpop.f32.mrb[90].mxu0 }
 0x221   : > { %v2102_v22 = vadd.f32 %v4003_v53, %v2063_v41  ;;  %v2064_v48 = vadd.f32 %v2023_v36, %v1685_v27  ;;  %v2025_v1 = vpop.f32.mrb[91].mxu0 }
 0x222   : > { %v1689_v30 = vpop.f32.mrb[92].mxu1 }
 0x223   : > { %v2161_v61 = vsel %vm555_vm2, %v2102_v22, 0.0  ;;  %v2205_v32 = vmul.f32 %v2102_v22, %v2102_v22  ;;  %v2825_v37 = vpack.c.bf16 %v2102_v22, %v2102_v22  ;;  %v2103_v45 = vadd.f32 %v4003_v53, %v2064_v48  ;;  %v1691_v17 = vpop.f32.mrb[93].mxu1 }
 0x224   : > { %v2162_v39 = vadd.f32 %v2161_v61, %v2160_v2  ;;  %v1690_v24 = vadd.f32 %v1689_v30, %v3992_v14  ;;  %v1692_v20 = vpop.f32.mrb[94].mxu1 }
 0x225   : > { %v2264_v21 = vsel %vm555_vm2, %v2205_v32, 0.0  ;;  %2436 = vst.msk [vmem:[%s4011_s20 + $0x70] sm:$0xf] %vm2407_vm12, %v2825_v37  ;;  %v2163_v25 = vsel %vm555_vm2, %v2103_v45, 0.0  ;;  %v2206_v31 = vmul.f32 %v2103_v45, %v2103_v45  ;;  %v2826_v4 = vpack.c.bf16 %v2103_v45, %v2103_v45  ;;  %v1694_v42 = vpop.f32.mrb[95].mxu1 }
 0x226   : > { %v2265_v7 = vadd.f32 %v2264_v21, %v2263_v33  ;;  %v2164_v49 = vadd.f32 %v2163_v25, %v2162_v39  ;;  %v1693_v8 = vadd.f32 %v1692_v20, %v3994_v3  ;;  %v2028_v51 = vpop.f32.mrb[92].mxu0 }
 0x227   : > { %v2266_v29 = vsel %vm555_vm2, %v2206_v31, 0.0  ;;  %2437 = vst.msk [vmem:[%s4011_s20 + $0x74] sm:$0xf] %vm2407_vm12, %v2826_v4  ;;  %v2065_v14 = vadd.f32 %v2028_v51, %v1690_v24  ;;  %v2030_v35 = vpop.f32.mrb[93].mxu0 }
 0x228   : > { %v2267_v10 = vadd.f32 %v2266_v29, %v2265_v7  ;;  %v2031_v52 = vpop.f32.mrb[94].mxu0 }
 0x229   : > { %v2104_v15 = vadd.f32 %v4003_v53, %v2065_v14  ;;  %v2066_v58 = vadd.f32 %v2031_v52, %v1693_v8  ;;  %v2033_v54 = vpop.f32.mrb[95].mxu0 }
 0x22b   : > { %v2165_v44 = vsel %vm555_vm2, %v2104_v15, 0.0  ;;  %v2207_v56 = vmul.f32 %v2104_v15, %v2104_v15  ;;  %v2827_v12 = vpack.c.bf16 %v2104_v15, %v2104_v15  ;;  %v2105_v3 = vadd.f32 %v4003_v53, %v2066_v58 }
 0x22c   : > { %v2166_v23 = vadd.f32 %v2165_v44, %v2164_v49 }
 0x22d   : > { %v2268_v38 = vsel %vm555_vm2, %v2207_v56, 0.0  ;;  %2438 = vst.msk [vmem:[%s4011_s20 + $0x78] sm:$0xf] %vm2407_vm12, %v2827_v12  ;;  %v2167_v47 = vsel %vm555_vm2, %v2105_v3, 0.0  ;;  %v2208_v57 = vmul.f32 %v2105_v3, %v2105_v3  ;;  %v2828_v5 = vpack.c.bf16 %v2105_v3, %v2105_v3 }
 0x22e   : > { %v2269_v0 = vadd.f32 %v2268_v38, %v2267_v10  ;;  %v2168_v13 = vadd.f32 %v2167_v47, %v2166_v23 }
 0x22f   : > { %v2270_v40 = vsel %vm555_vm2, %v2208_v57, 0.0  ;;  %2439 = vst.msk [vmem:[%s4011_s20 + $0x7c] sm:$0xf] %vm2407_vm12, %v2828_v5 }
 0x230   : > { %v2169_v50 = vrot.slane %v2168_v13, 4  ;;  %v2271_v26 = vadd.f32 %v2270_v40, %v2269_v0 }
 0x232   : > { %v2170_v53 = vadd.f32 %v2169_v50, %v2168_v13  ;;  %v2272_v59 = vrot.slane %v2271_v26, 4 }
 0x234   : > { %v2171_v43 = vrot.slane %v2170_v53, 2  ;;  %v2273_v28 = vadd.f32 %v2272_v59, %v2271_v26 }
 0x236   : > { %v2172_v63 = vadd.f32 %v2171_v43, %v2170_v53  ;;  %v2274_v19 = vrot.slane %v2273_v28, 2 }
 0x238   : > { %v2173_v46 = vrot.slane %v2172_v63, 1  ;;  %v2275_v55 = vadd.f32 %v2274_v19, %v2273_v28 }
 0x23a   : > { %v2174_v16 = vadd.f32 %v2173_v46, %v2172_v63  ;;  %v2276_v6 = vrot.slane %v2275_v55, 1 }
 0x23c   : > { %2176 = vst.msk [vmem:[%s356_s12] sm:$0x1] %vm561_vm6, %v2174_v16  ;;  %v2277_v11 = vadd.f32 %v2276_v6, %v2275_v55 }
 0x23e   : > { %2278 = vst.msk [vmem:[%s362_s23] sm:$0x1] %vm561_vm6, %v2277_v11 }
 0x23f PF: > { %s18_s26 = sadd.s32 1, %s3017_s26   ;;  %s4249_s24 = smov %s3013_s25 }
 0x240   : > { %p15_p5 = scmp.ge.s32.totalorder %s18_s26, 4   ;;  %s4250_s25 = smov %s4252_s27 }
 0x242   :  { %17 = sbr.rel (!%p15_p5) target bundleno = 2 (0x2), region = 105 }

</bundles_post_ra>
